<compile_context>
chip_gen: v7x
topology: tpu7x:2x2x1
jax: 0.10.0
libtpu: 0.0.40
codegen_flags: <defaults>
</compile_context>

<pallas_src>
import math

import jax
import jax.numpy as jnp
from jax.experimental import pallas as pl
from jax.experimental.pallas import tpu as pltpu

NEG_INF = -1e30                      # finite stand-in for -inf additive masks
VMEM_LIMIT = 64 * 1024 * 1024        # raise scoped VMEM above the 16/32 MiB defaults


# ----------------------------------------------------------------------------
# In-kernel math helpers
# ----------------------------------------------------------------------------
def _layernorm(x, g, b):
    mean = jnp.mean(x, axis=-1, keepdims=True)
    xc = x - mean
    var = jnp.mean(xc * xc, axis=-1, keepdims=True)
    return xc * jax.lax.rsqrt(var + 1e-5) * g + b


def _softmax_rows(s):
    m = jnp.max(s, axis=-1, keepdims=True)
    p = jnp.exp(s - m)
    return p * pl.reciprocal(jnp.sum(p, axis=-1, keepdims=True), approx=True)


def _mha(qkv_q, qkv_k, qkv_v, bias, H, Dh, scale):
    """Batched multi-head attention.

    qkv_q: (N, Tq, E) bf16, qkv_k/qkv_v: (N, Tk, E) bf16,
    bias: None | (N, 1, Tk) | (N, Tq, Tk) f32.  Returns (N, Tq, E) f32.
    Per-head matmuls are batched over N via dot_general batch dims.
    """
    heads = []
    for h in range(H):
        sl = slice(h * Dh, (h + 1) * Dh)
        s = jax.lax.dot_general(qkv_q[:, :, sl], qkv_k[:, :, sl],
                                (((2,), (2,)), ((0,), (0,))),
                                preferred_element_type=jnp.float32) * scale
        if bias is not None:
            s = s + bias
        p = _softmax_rows(s)
        heads.append(jax.lax.dot_general(p.astype(jnp.bfloat16), qkv_v[:, :, sl],
                                         (((2,), (1,)), ((0,), (0,))),
                                         preferred_element_type=jnp.float32))
    return jnp.concatenate(heads, axis=-1)


def _const_index_map(ndim):
    return lambda l: (0,) * ndim


def _layer_index_map(ndim):
    return lambda l: (l,) + (0,) * (ndim - 1)


def _stacked_layer_call(body, *, L, const_inputs, layer_inputs, out_shape):
    """One pallas_call gridded over layers.

    const_inputs: [(name, array)] — full array, same block every grid step.
    layer_inputs: [(name, array)] — leading dim L, one layer streamed per step.
    The output block uses a constant index -> stays VMEM-resident across L and
    acts as the activation carry (written every layer, flushed to HBM once).
    """
    names = [n for n, _ in const_inputs] + [n for n, _ in layer_inputs]
    arrays = [a for _, a in const_inputs] + [a for _, a in layer_inputs]

    in_specs = []
    for _, a in const_inputs:
        in_specs.append(pl.BlockSpec(a.shape, _const_index_map(a.ndim)))
    for _, a in layer_inputs:
        in_specs.append(pl.BlockSpec((1,) + a.shape[1:], _layer_index_map(a.ndim)))

    out_specs = pl.BlockSpec(out_shape.shape, _const_index_map(len(out_shape.shape)))

    def kernel(*refs):
        d = dict(zip(names, refs[: len(names)]))
        body(d, refs[len(names)])

    return pl.pallas_call(
        kernel,
        grid=(L,),
        in_specs=in_specs,
        out_specs=out_specs,
        out_shape=out_shape,
        compiler_params=pltpu.CompilerParams(
            dimension_semantics=("arbitrary",),   # layer l+1 depends on layer l
            vmem_limit_bytes=VMEM_LIMIT),
    )(*arrays)


# ----------------------------------------------------------------------------
# Encoder stack: grid over layers, per-layer weights streamed
# ----------------------------------------------------------------------------
def encoder_forward(emb_src, src_pad_bias, enc, *, L, N, S, E, H):
    Dh = E // H
    scale = 1.0 / math.sqrt(Dh)

    def body(d, o_ref):
        l = pl.program_id(0)

        @pl.when(l == 0)
        def _():
            o_ref[...] = d["emb"][...]

        x = o_ref[...]                          # (N*S, E) f32 activation carry
        pad = d["pad"][...]                     # (N, 1, S) additive key-pad bias

        qkv = jnp.dot(x.astype(jnp.bfloat16), d["qkv_wT"][0],
                      preferred_element_type=jnp.float32) + d["qkv_b"][0]
        qkv3 = qkv.reshape(N, S, 3 * E).astype(jnp.bfloat16)
        a = _mha(qkv3[:, :, :E], qkv3[:, :, E:2 * E], qkv3[:, :, 2 * E:],
                 pad, H, Dh, scale).reshape(N * S, E)
        a = jnp.dot(a.astype(jnp.bfloat16), d["out_wT"][0],
                    preferred_element_type=jnp.float32) + d["out_b"][0]
        x = _layernorm(x + a, d["n1_g"][0], d["n1_b"][0])

        h = jnp.maximum(jnp.dot(x.astype(jnp.bfloat16), d["lin1_wT"][0],
                                preferred_element_type=jnp.float32) + d["lin1_b"][0], 0.0)
        h = jnp.dot(h.astype(jnp.bfloat16), d["lin2_wT"][0],
                    preferred_element_type=jnp.float32) + d["lin2_b"][0]
        x = _layernorm(x + h, d["n2_g"][0], d["n2_b"][0])

        o_ref[...] = x

    return _stacked_layer_call(
        body, L=L,
        const_inputs=[("emb", emb_src), ("pad", src_pad_bias)],
        layer_inputs=list(enc.items()),
        out_shape=jax.ShapeDtypeStruct((N * S, E), jnp.float32))


# ----------------------------------------------------------------------------
# ff1 + ff2 bottleneck MLP (single fused call; tiny at these sizes)
# ----------------------------------------------------------------------------
def ff_forward(x, p):
    Nb, F = x.shape

    def kernel(x_ref, w1, b1, w2, b2, w3, b3, o_ref):
        h = jnp.maximum(jnp.dot(x_ref[...].astype(jnp.bfloat16), w1[...],
                                preferred_element_type=jnp.float32) + b1[...], 0.0)
        h = jnp.maximum(jnp.dot(h.astype(jnp.bfloat16), w2[...],
                                preferred_element_type=jnp.float32) + b2[...], 0.0)
        o_ref[...] = jnp.dot(h.astype(jnp.bfloat16), w3[...],
                             preferred_element_type=jnp.float32) + b3[...]

    return pl.pallas_call(
        kernel,
        out_shape=jax.ShapeDtypeStruct((Nb, F), jnp.float32),
        compiler_params=pltpu.CompilerParams(vmem_limit_bytes=VMEM_LIMIT),
    )(x, p["ff1_wT"], p["ff1_b"], p["ff2a_wT"], p["ff2a_b"],
      p["ff2b_wT"], p["ff2b_b"])


# ----------------------------------------------------------------------------
# Decoder stack: grid over layers, per-layer weights streamed
# ----------------------------------------------------------------------------
def decoder_forward(emb_trg, mem, self_bias, dec, *, L, N, S, T, E, H):
    Dh = E // H
    scale = 1.0 / math.sqrt(Dh)

    def body(d, o_ref):
        l = pl.program_id(0)

        @pl.when(l == 0)
        def _():
            o_ref[...] = d["emb"][...]

        x = o_ref[...]                          # (N*T, E) f32 activation carry
        m = d["mem"][...]                       # (N*S, E) encoder memory
        bias = d["bias"][...]                   # (N, T, T) causal + key-pad bias

        # masked self-attention
        qkv = jnp.dot(x.astype(jnp.bfloat16), d["sa_qkv_wT"][0],
                      preferred_element_type=jnp.float32) + d["sa_qkv_b"][0]
        qkv3 = qkv.reshape(N, T, 3 * E).astype(jnp.bfloat16)
        a = _mha(qkv3[:, :, :E], qkv3[:, :, E:2 * E], qkv3[:, :, 2 * E:],
                 bias, H, Dh, scale).reshape(N * T, E)
        a = jnp.dot(a.astype(jnp.bfloat16), d["sa_out_wT"][0],
                    preferred_element_type=jnp.float32) + d["sa_out_b"][0]
        x = _layernorm(x + a, d["n1_g"][0], d["n1_b"][0])

        # unmasked cross-attention against encoder memory
        q = jnp.dot(x.astype(jnp.bfloat16), d["ca_q_wT"][0],
                    preferred_element_type=jnp.float32) + d["ca_q_b"][0]
        kv = jnp.dot(m.astype(jnp.bfloat16), d["ca_kv_wT"][0],
                     preferred_element_type=jnp.float32) + d["ca_kv_b"][0]
        q3 = q.reshape(N, T, E).astype(jnp.bfloat16)
        kv3 = kv.reshape(N, S, 2 * E).astype(jnp.bfloat16)
        a = _mha(q3, kv3[:, :, :E], kv3[:, :, E:],
                 None, H, Dh, scale).reshape(N * T, E)
        a = jnp.dot(a.astype(jnp.bfloat16), d["ca_out_wT"][0],
                    preferred_element_type=jnp.float32) + d["ca_out_b"][0]
        x = _layernorm(x + a, d["n2_g"][0], d["n2_b"][0])

        # FFN
        h = jnp.maximum(jnp.dot(x.astype(jnp.bfloat16), d["lin1_wT"][0],
                                preferred_element_type=jnp.float32) + d["lin1_b"][0], 0.0)
        h = jnp.dot(h.astype(jnp.bfloat16), d["lin2_wT"][0],
                    preferred_element_type=jnp.float32) + d["lin2_b"][0]
        x = _layernorm(x + h, d["n3_g"][0], d["n3_b"][0])

        o_ref[...] = x

    return _stacked_layer_call(
        body, L=L,
        const_inputs=[("emb", emb_trg), ("mem", mem), ("bias", self_bias)],
        layer_inputs=list(dec.items()),
        out_shape=jax.ShapeDtypeStruct((N * T, E), jnp.float32))


# ----------------------------------------------------------------------------
# fc_out — separate call fed seq-major so (T, N, V) comes out with no transpose
# of the (largest) logits tensor.  (At large V, grid this over V tiles.)
# ----------------------------------------------------------------------------
def fcout_forward(x_seq_major, wT, b, *, V):
    R = x_seq_major.shape[0]

    def kernel(x_ref, w_ref, b_ref, o_ref):
        o_ref[...] = jnp.dot(x_ref[...].astype(jnp.bfloat16), w_ref[...],
                             preferred_element_type=jnp.float32) + b_ref[...]

    return pl.pallas_call(
        kernel,
        out_shape=jax.ShapeDtypeStruct((R, V), jnp.float32),
        compiler_params=pltpu.CompilerParams(vmem_limit_bytes=VMEM_LIMIT),
    )(x_seq_major, wT, b)


# ----------------------------------------------------------------------------
# Full forward pass
# ----------------------------------------------------------------------------
def transformer_forward(prep, src, trg, cfg):
    S, N = src.shape
    T = trg.shape[0]
    E, H, L, V = cfg["embed_size"], cfg["heads"], cfg["num_layers"], cfg["trg_vocab"]

    # Embedding gathers + mask construction in plain JAX, batch-major so the
    # kernels never transpose.
    emb_src = (prep["src_word_emb"][src.T] + prep["src_pos_emb"][None, :S, :]).reshape(N * S, E)
    emb_trg = (prep["trg_word_emb"][trg.T] + prep["trg_pos_emb"][None, :T, :]).reshape(N * T, E)

    src_pad_bias = jnp.where(src.T == cfg["src_pad_idx"], NEG_INF, 0.0).astype(jnp.float32)
    src_pad_bias = src_pad_bias[:, None, :]                                   # (N, 1, S)
    # NOTE: reference forward() calls make_src_mask(trg), i.e. uses src_pad_idx on trg too.
    trg_pad_bias = jnp.where(trg.T == cfg["src_pad_idx"], NEG_INF, 0.0).astype(jnp.float32)
    causal = jnp.where(jnp.arange(T)[:, None] >= jnp.arange(T)[None, :], 0.0, NEG_INF)
    self_bias = (causal[None, :, :] + trg_pad_bias[:, None, :]).astype(jnp.float32)  # (N,T,T)

    enc = encoder_forward(emb_src, src_pad_bias, prep["enc"], L=L, N=N, S=S, E=E, H=H)
    # batch-major (N*S,E) == torch permute(1,0,2).reshape(N,-1); free reshape.
    h = ff_forward(enc.reshape(N, S * E), prep)   # ff1 + ff2 (roundpass unused in forward)
    mem = h.reshape(N * S, E)
    dec = decoder_forward(emb_trg, mem, self_bias, prep["dec"],
                          L=L, N=N, S=S, T=T, E=E, H=H)
    # tiny (N*T, E) -> seq-major transpose; fc_out output then reshapes free to (T, N, V)
    dec_t = dec.reshape(N, T, E).transpose(1, 0, 2).reshape(T * N, E)
    logits = fcout_forward(dec_t, prep["fcout_wT"], prep["fcout_b"], V=V)
    return logits.reshape(T, N, V)


# ----------------------------------------------------------------------------
# Parameters: torch-layout init + one-time kernel-ready preparation
# ----------------------------------------------------------------------------
def init_params(key, cfg):
    E = cfg["embed_size"]
    L = cfg["num_layers"]
    FF = cfg["forward_expansion"] * E
    ML = cfg["max_length"]
    MID = cfg["mid_embedding_size"]
    SV, TV = cfg["src_vocab"], cfg["trg_vocab"]

    keys = iter(jax.random.split(key, 512))

    def rnd(shape, scale=0.05):
        return jax.random.normal(next(keys), shape, jnp.float32) * scale

    def attn_params():
        return dict(in_w=rnd((3 * E, E)), in_b=rnd((3 * E,)),
                    out_w=rnd((E, E)), out_b=rnd((E,)))

    def enc_layer_params():
        return dict(self_attn=attn_params(),
                    lin1_w=rnd((FF, E)), lin1_b=rnd((FF,)),
                    lin2_w=rnd((E, FF)), lin2_b=rnd((E,)),
                    norm1_g=jnp.ones((E,), jnp.float32), norm1_b=jnp.zeros((E,), jnp.float32),
                    norm2_g=jnp.ones((E,), jnp.float32), norm2_b=jnp.zeros((E,), jnp.float32))

    def dec_layer_params():
        d = enc_layer_params()
        d["cross_attn"] = attn_params()
        d["norm3_g"] = jnp.ones((E,), jnp.float32)
        d["norm3_b"] = jnp.zeros((E,), jnp.float32)
        return d

    return dict(
        src_word_emb=rnd((SV, E)), src_pos_emb=rnd((ML, E)),
        trg_word_emb=rnd((TV, E)), trg_pos_emb=rnd((ML, E)),
        encoder=[enc_layer_params() for _ in range(L)],
        decoder=[dec_layer_params() for _ in range(L)],
        ff1_w=rnd((MID, ML * E)), ff1_b=rnd((MID,)),
        ff2a_w=rnd((MID, MID)), ff2a_b=rnd((MID,)),
        ff2b_w=rnd((ML * E, MID)), ff2b_b=rnd((ML * E,)),
        fc_out_w=rnd((TV, E)), fc_out_b=rnd((TV,)),
    )


def prepare_params(params, cfg):
    """One-time: transpose weights, cast matmul operands to bf16, reshape biases,
    stack per-layer arrays over a leading L axis (streamed per-layer by BlockSpec)."""
    E = cfg["embed_size"]
    bf = jnp.bfloat16

    def stk_w(xs):  # matmul weights -> bf16
        return jnp.stack(xs, axis=0).astype(bf)

    def stk_v(xs):  # biases / LN params -> f32
        return jnp.stack(xs, axis=0)

    el = params["encoder"]
    enc = dict(
        qkv_wT=stk_w([p["self_attn"]["in_w"].T for p in el]),
        qkv_b=stk_v([p["self_attn"]["in_b"].reshape(1, 3 * E) for p in el]),
        out_wT=stk_w([p["self_attn"]["out_w"].T for p in el]),
        out_b=stk_v([p["self_attn"]["out_b"].reshape(1, E) for p in el]),
        n1_g=stk_v([p["norm1_g"].reshape(1, E) for p in el]),
        n1_b=stk_v([p["norm1_b"].reshape(1, E) for p in el]),
        lin1_wT=stk_w([p["lin1_w"].T for p in el]),
        lin1_b=stk_v([p["lin1_b"].reshape(1, -1) for p in el]),
        lin2_wT=stk_w([p["lin2_w"].T for p in el]),
        lin2_b=stk_v([p["lin2_b"].reshape(1, E) for p in el]),
        n2_g=stk_v([p["norm2_g"].reshape(1, E) for p in el]),
        n2_b=stk_v([p["norm2_b"].reshape(1, E) for p in el]),
    )

    dl = params["decoder"]
    dec = dict(
        sa_qkv_wT=stk_w([p["self_attn"]["in_w"].T for p in dl]),
        sa_qkv_b=stk_v([p["self_attn"]["in_b"].reshape(1, 3 * E) for p in dl]),
        sa_out_wT=stk_w([p["self_attn"]["out_w"].T for p in dl]),
        sa_out_b=stk_v([p["self_attn"]["out_b"].reshape(1, E) for p in dl]),
        n1_g=stk_v([p["norm1_g"].reshape(1, E) for p in dl]),
        n1_b=stk_v([p["norm1_b"].reshape(1, E) for p in dl]),
        ca_q_wT=stk_w([p["cross_attn"]["in_w"][:E].T for p in dl]),
        ca_q_b=stk_v([p["cross_attn"]["in_b"][:E].reshape(1, E) for p in dl]),
        ca_kv_wT=stk_w([p["cross_attn"]["in_w"][E:].T for p in dl]),       # (E, 2E): [k | v]
        ca_kv_b=stk_v([p["cross_attn"]["in_b"][E:].reshape(1, 2 * E) for p in dl]),
        ca_out_wT=stk_w([p["cross_attn"]["out_w"].T for p in dl]),
        ca_out_b=stk_v([p["cross_attn"]["out_b"].reshape(1, E) for p in dl]),
        n2_g=stk_v([p["norm2_g"].reshape(1, E) for p in dl]),
        n2_b=stk_v([p["norm2_b"].reshape(1, E) for p in dl]),
        lin1_wT=stk_w([p["lin1_w"].T for p in dl]),
        lin1_b=stk_v([p["lin1_b"].reshape(1, -1) for p in dl]),
        lin2_wT=stk_w([p["lin2_w"].T for p in dl]),
        lin2_b=stk_v([p["lin2_b"].reshape(1, E) for p in dl]),
        n3_g=stk_v([p["norm3_g"].reshape(1, E) for p in dl]),
        n3_b=stk_v([p["norm3_b"].reshape(1, E) for p in dl]),
    )

    return dict(
        src_word_emb=params["src_word_emb"], src_pos_emb=params["src_pos_emb"],
        trg_word_emb=params["trg_word_emb"], trg_pos_emb=params["trg_pos_emb"],
        enc=enc, dec=dec,
        ff1_wT=params["ff1_w"].T.astype(bf), ff1_b=params["ff1_b"].reshape(1, -1),
        ff2a_wT=params["ff2a_w"].T.astype(bf), ff2a_b=params["ff2a_b"].reshape(1, -1),
        ff2b_wT=params["ff2b_w"].T.astype(bf), ff2b_b=params["ff2b_b"].reshape(1, -1),
        fcout_wT=params["fc_out_w"].T.astype(bf), fcout_b=params["fc_out_b"].reshape(1, -1),
    )


# ----------------------------------------------------------------------------
if __name__ == "__main__":
    # Small-but-consistent config: forward requires src_seq_length == max_length
    # (ff1 takes max_length * embed_size input features).
    cfg = dict(
        src_vocab=16, trg_vocab=16, src_pad_idx=0, trg_pad_idx=0,
        embed_size=32, num_layers=2, forward_expansion=4, heads=4,
        max_length=8, mid_embedding_size=64,
    )
    S = T = cfg["max_length"]
    N = 2

    key = jax.random.PRNGKey(0)
    kp, ksrc, ktrg = jax.random.split(key, 3)
    params = init_params(kp, cfg)
    prep = prepare_params(params, cfg)   # one-time weight transpose / bf16 cast / stacking

    src = jax.random.randint(ksrc, (S, N), 0, cfg["src_vocab"], dtype=jnp.int32)
    trg = jax.random.randint(ktrg, (T, N), 0, cfg["trg_vocab"], dtype=jnp.int32)
    # Guarantee the first token is non-pad so no attention row is fully masked
    # (fully-padded rows produce NaN in PyTorch too).
    src = src.at[0].set(3)
    trg = trg.at[0].set(1)

    fwd = jax.jit(lambda p, s, t: transformer_forward(p, s, t, cfg))
    out = jax.block_until_ready(fwd(prep, src, trg))

    assert out.shape == (T, N, cfg["trg_vocab"]), out.shape
    assert bool(jnp.all(jnp.isfinite(out)))
    print("KERNEL_OK")
</pallas_src>

<mosaic_0001>
module attributes {stable_mosaic.version = 11 : i64} {
  func.func @kernel(%arg0: memref<2x256xf32, #tpu.memory_space<vmem>>, %arg1: memref<256x64xbf16, #tpu.memory_space<vmem>>, %arg2: memref<1x64xf32, #tpu.memory_space<vmem>>, %arg3: memref<64x64xbf16, #tpu.memory_space<vmem>>, %arg4: memref<1x64xf32, #tpu.memory_space<vmem>>, %arg5: memref<64x256xbf16, #tpu.memory_space<vmem>>, %arg6: memref<1x256xf32, #tpu.memory_space<vmem>>, %arg7: memref<2x256xf32, #tpu.memory_space<vmem>>) attributes {dimension_semantics = [], scalar_prefetch = 0 : i64, scratch_operands = 0 : i64, tpu.core_type = #tpu.core_type<tc>} {
    %c0 = arith.constant 0 : index
    %c0_0 = arith.constant 0 : index
    %0 = vector.load %arg0[%c0, %c0_0] : memref<2x256xf32, #tpu.memory_space<vmem>>, vector<2x256xf32>
    %1 = arith.truncf %0 : vector<2x256xf32> to vector<2x256xbf16>
    %c0_1 = arith.constant 0 : index
    %c0_2 = arith.constant 0 : index
    %2 = vector.load %arg1[%c0_1, %c0_2] : memref<256x64xbf16, #tpu.memory_space<vmem>>, vector<256x64xbf16>
    %cst = arith.constant dense<0.000000e+00> : vector<2x64xf32>
    %3 = tpu.matmul %1, %2, %cst {dimension_numbers = #tpu.dot_dimension_numbers<[1], [0], [0], [1], [0, 0, 1, 1], [], []>} : vector<2x256xbf16>, vector<256x64xbf16>, vector<2x64xf32> -> vector<2x64xf32>
    %c0_3 = arith.constant 0 : index
    %c0_4 = arith.constant 0 : index
    %4 = vector.load %arg2[%c0_3, %c0_4] : memref<1x64xf32, #tpu.memory_space<vmem>>, vector<1x64xf32>
    %5 = vector.broadcast %4 : vector<1x64xf32> to vector<2x64xf32>
    %6 = arith.addf %3, %5 : vector<2x64xf32>
    %cst_5 = arith.constant 0.000000e+00 : f32
    %7 = vector.broadcast %cst_5 : f32 to vector<2x64xf32>
    %8 = arith.maximumf %6, %7 : vector<2x64xf32>
    %9 = arith.truncf %8 : vector<2x64xf32> to vector<2x64xbf16>
    %c0_6 = arith.constant 0 : index
    %c0_7 = arith.constant 0 : index
    %10 = vector.load %arg3[%c0_6, %c0_7] : memref<64x64xbf16, #tpu.memory_space<vmem>>, vector<64x64xbf16>
    %cst_8 = arith.constant dense<0.000000e+00> : vector<2x64xf32>
    %11 = tpu.matmul %9, %10, %cst_8 {dimension_numbers = #tpu.dot_dimension_numbers<[1], [0], [0], [1], [0, 0, 1, 1], [], []>} : vector<2x64xbf16>, vector<64x64xbf16>, vector<2x64xf32> -> vector<2x64xf32>
    %c0_9 = arith.constant 0 : index
    %c0_10 = arith.constant 0 : index
    %12 = vector.load %arg4[%c0_9, %c0_10] : memref<1x64xf32, #tpu.memory_space<vmem>>, vector<1x64xf32>
    %13 = vector.broadcast %12 : vector<1x64xf32> to vector<2x64xf32>
    %14 = arith.addf %11, %13 : vector<2x64xf32>
    %cst_11 = arith.constant 0.000000e+00 : f32
    %15 = vector.broadcast %cst_11 : f32 to vector<2x64xf32>
    %16 = arith.maximumf %14, %15 : vector<2x64xf32>
    %17 = arith.truncf %16 : vector<2x64xf32> to vector<2x64xbf16>
    %c0_12 = arith.constant 0 : index
    %c0_13 = arith.constant 0 : index
    %18 = vector.load %arg5[%c0_12, %c0_13] : memref<64x256xbf16, #tpu.memory_space<vmem>>, vector<64x256xbf16>
    %cst_14 = arith.constant dense<0.000000e+00> : vector<2x256xf32>
    %19 = tpu.matmul %17, %18, %cst_14 {dimension_numbers = #tpu.dot_dimension_numbers<[1], [0], [0], [1], [0, 0, 1, 1], [], []>} : vector<2x64xbf16>, vector<64x256xbf16>, vector<2x256xf32> -> vector<2x256xf32>
    %c0_15 = arith.constant 0 : index
    %c0_16 = arith.constant 0 : index
    %20 = vector.load %arg6[%c0_15, %c0_16] : memref<1x256xf32, #tpu.memory_space<vmem>>, vector<1x256xf32>
    %21 = vector.broadcast %20 : vector<1x256xf32> to vector<2x256xf32>
    %22 = arith.addf %19, %21 : vector<2x256xf32>
    %c0_17 = arith.constant 0 : index
    %c0_18 = arith.constant 0 : index
    %23 = vector.load %arg7[%c0_17, %c0_18] : memref<2x256xf32, #tpu.memory_space<vmem>>, vector<2x256xf32>
    tpu.vector_store %arg7[%c0_17, %c0_18], %22 {strides = array<i32>} : memref<2x256xf32, #tpu.memory_space<vmem>>, vector<2x256xf32>,
    return
  }
}

module attributes {stable_mosaic.version = 11 : i64} {
  func.func @kernel(%arg0: i32, %arg1: memref<16x32xf32, #tpu.memory_space<vmem>>, %arg2: memref<2x1x8xf32, #tpu.memory_space<vmem>>, %arg3: memref<1x1x128xf32, #tpu.memory_space<vmem>>, %arg4: memref<1x32x128xbf16, #tpu.memory_space<vmem>>, %arg5: memref<1x1x32xf32, #tpu.memory_space<vmem>>, %arg6: memref<1x128x32xbf16, #tpu.memory_space<vmem>>, %arg7: memref<1x1x32xf32, #tpu.memory_space<vmem>>, %arg8: memref<1x1x32xf32, #tpu.memory_space<vmem>>, %arg9: memref<1x1x32xf32, #tpu.memory_space<vmem>>, %arg10: memref<1x1x32xf32, #tpu.memory_space<vmem>>, %arg11: memref<1x1x32xf32, #tpu.memory_space<vmem>>, %arg12: memref<1x32x32xbf16, #tpu.memory_space<vmem>>, %arg13: memref<1x1x96xf32, #tpu.memory_space<vmem>>, %arg14: memref<1x32x96xbf16, #tpu.memory_space<vmem>>, %arg15: memref<16x32xf32, #tpu.memory_space<vmem>>) attributes {dimension_semantics = [#tpu.dimension_semantics<arbitrary>], iteration_bounds = array<i64: 2>, scalar_prefetch = 0 : i64, scratch_operands = 0 : i64, tpu.core_type = #tpu.core_type<tc>, window_params = [{pipeline_mode = #tpu.pipeline_mode<synchronous>, transform_indices = @transform_0, window_bounds = array<i64: 16, 32>}, {pipeline_mode = #tpu.pipeline_mode<synchronous>, transform_indices = @transform_1, window_bounds = array<i64: 2, 1, 8>}, {transform_indices = @transform_2, window_bounds = array<i64: 1, 1, 128>}, {transform_indices = @transform_3, window_bounds = array<i64: 1, 32, 128>}, {transform_indices = @transform_4, window_bounds = array<i64: 1, 1, 32>}, {transform_indices = @transform_5, window_bounds = array<i64: 1, 128, 32>}, {transform_indices = @transform_6, window_bounds = array<i64: 1, 1, 32>}, {transform_indices = @transform_7, window_bounds = array<i64: 1, 1, 32>}, {transform_indices = @transform_8, window_bounds = array<i64: 1, 1, 32>}, {transform_indices = @transform_9, window_bounds = array<i64: 1, 1, 32>}, {transform_indices = @transform_10, window_bounds = array<i64: 1, 1, 32>}, {transform_indices = @transform_11, window_bounds = array<i64: 1, 32, 32>}, {transform_indices = @transform_12, window_bounds = array<i64: 1, 1, 96>}, {transform_indices = @transform_13, window_bounds = array<i64: 1, 32, 96>}, {pipeline_mode = #tpu.pipeline_mode<synchronous>, transform_indices = @transform_14, window_bounds = array<i64: 16, 32>}]} {
    %c0_i32 = arith.constant 0 : i32
    %0 = arith.cmpi eq, %arg0, %c0_i32 : i32
    %1 = arith.extui %0 : i1 to i32
    %c0_i32_0 = arith.constant 0 : i32
    %2 = arith.cmpi ne, %1, %c0_i32_0 : i32
    scf.if %2 {
      %c0_77 = arith.constant 0 : index
      %c0_78 = arith.constant 0 : index
      %177 = vector.load %arg1[%c0_77, %c0_78] : memref<16x32xf32, #tpu.memory_space<vmem>>, vector<16x32xf32>
      %c0_79 = arith.constant 0 : index
      %c0_80 = arith.constant 0 : index
      %178 = vector.load %arg15[%c0_79, %c0_80] : memref<16x32xf32, #tpu.memory_space<vmem>>, vector<16x32xf32>
      tpu.vector_store %arg15[%c0_79, %c0_80], %177 {strides = array<i32>} : memref<16x32xf32, #tpu.memory_space<vmem>>, vector<16x32xf32>,
    } else {
    }
    %c0 = arith.constant 0 : index
    %c0_1 = arith.constant 0 : index
    %3 = vector.load %arg15[%c0, %c0_1] : memref<16x32xf32, #tpu.memory_space<vmem>>, vector<16x32xf32>
    %c0_2 = arith.constant 0 : index
    %c0_3 = arith.constant 0 : index
    %c0_4 = arith.constant 0 : index
    %4 = vector.load %arg2[%c0_2, %c0_3, %c0_4] : memref<2x1x8xf32, #tpu.memory_space<vmem>>, vector<2x1x8xf32>
    %5 = arith.truncf %3 : vector<16x32xf32> to vector<16x32xbf16>
    %c0_5 = arith.constant 0 : index
    %c0_6 = arith.constant 0 : index
    %c0_7 = arith.constant 0 : index
    %6 = vector.load %arg14[%c0_5, %c0_6, %c0_7] : memref<1x32x96xbf16, #tpu.memory_space<vmem>>, vector<1x32x96xbf16>
    %7 = vector.shape_cast %6 : vector<1x32x96xbf16> to vector<32x96xbf16>
    %cst = arith.constant dense<0.000000e+00> : vector<16x96xf32>
    %8 = tpu.matmul %5, %7, %cst {dimension_numbers = #tpu.dot_dimension_numbers<[1], [0], [0], [1], [0, 0, 1, 1], [], []>} : vector<16x32xbf16>, vector<32x96xbf16>, vector<16x96xf32> -> vector<16x96xf32>
    %c0_8 = arith.constant 0 : index
    %c0_9 = arith.constant 0 : index
    %c0_10 = arith.constant 0 : index
    %9 = vector.load %arg13[%c0_8, %c0_9, %c0_10] : memref<1x1x96xf32, #tpu.memory_space<vmem>>, vector<1x1x96xf32>
    %10 = vector.shape_cast %9 : vector<1x1x96xf32> to vector<1x96xf32>
    %11 = vector.broadcast %10 : vector<1x96xf32> to vector<16x96xf32>
    %12 = arith.addf %8, %11 : vector<16x96xf32>
    %13 = vector.shape_cast %12 : vector<16x96xf32> to vector<2x8x96xf32>
    %14 = arith.truncf %13 : vector<2x8x96xf32> to vector<2x8x96xbf16>
    %15 = vector.extract_strided_slice %14 {offsets = [0, 0, 0], sizes = [2, 8, 32], strides = [1, 1, 1]} : vector<2x8x96xbf16> to vector<2x8x32xbf16>
    %16 = vector.extract_strided_slice %14 {offsets = [0, 0, 32], sizes = [2, 8, 32], strides = [1, 1, 1]} : vector<2x8x96xbf16> to vector<2x8x32xbf16>
    %17 = vector.extract_strided_slice %14 {offsets = [0, 0, 64], sizes = [2, 8, 32], strides = [1, 1, 1]} : vector<2x8x96xbf16> to vector<2x8x32xbf16>
    %18 = vector.extract_strided_slice %15 {offsets = [0, 0, 0], sizes = [2, 8, 8], strides = [1, 1, 1]} : vector<2x8x32xbf16> to vector<2x8x8xbf16>
    %19 = vector.extract_strided_slice %16 {offsets = [0, 0, 0], sizes = [2, 8, 8], strides = [1, 1, 1]} : vector<2x8x32xbf16> to vector<2x8x8xbf16>
    %cst_11 = arith.constant dense<0.000000e+00> : vector<2x8x8xf32>
    %20 = tpu.matmul %18, %19, %cst_11 {dimension_numbers = #tpu.dot_dimension_numbers<[2], [2], [1], [1], [0, 0, 0, 1, 1, 1], [0], [0]>} : vector<2x8x8xbf16>, vector<2x8x8xbf16>, vector<2x8x8xf32> -> vector<2x8x8xf32>
    %cst_12 = arith.constant 0.353553385 : f32
    %21 = vector.broadcast %cst_12 : f32 to vector<2x8x8xf32>
    %22 = arith.mulf %20, %21 : vector<2x8x8xf32>
    %23 = vector.broadcast %4 : vector<2x1x8xf32> to vector<2x8x8xf32>
    %24 = arith.addf %22, %23 : vector<2x8x8xf32>
    %cst_13 = arith.constant dense<0xFF800000> : vector<2x8xf32>
    %25 = vector.multi_reduction <maximumf>, %24, %cst_13 [2] : vector<2x8x8xf32> to vector<2x8xf32>
    %26 = vector.shape_cast %25 : vector<2x8xf32> to vector<2x8x1xf32>
    %27 = vector.broadcast %26 : vector<2x8x1xf32> to vector<2x8x8xf32>
    %28 = arith.subf %24, %27 : vector<2x8x8xf32>
    %29 = math.exp %28 : vector<2x8x8xf32>
    %cst_14 = arith.constant dense<0.000000e+00> : vector<2x8xf32>
    %30 = vector.multi_reduction <add>, %29, %cst_14 [2] : vector<2x8x8xf32> to vector<2x8xf32>
    %31 = vector.shape_cast %30 : vector<2x8xf32> to vector<2x8x1xf32>
    %32 = tpu.reciprocal %31 {approx = true} : vector<2x8x1xf32> -> vector<2x8x1xf32>
    %33 = vector.broadcast %32 : vector<2x8x1xf32> to vector<2x8x8xf32>
    %34 = arith.mulf %29, %33 : vector<2x8x8xf32>
    %35 = arith.truncf %34 : vector<2x8x8xf32> to vector<2x8x8xbf16>
    %36 = vector.extract_strided_slice %17 {offsets = [0, 0, 0], sizes = [2, 8, 8], strides = [1, 1, 1]} : vector<2x8x32xbf16> to vector<2x8x8xbf16>
    %cst_15 = arith.constant dense<0.000000e+00> : vector<2x8x8xf32>
    %37 = tpu.matmul %35, %36, %cst_15 {dimension_numbers = #tpu.dot_dimension_numbers<[2], [1], [1], [2], [0, 0, 0, 1, 1, 2], [0], [0]>} : vector<2x8x8xbf16>, vector<2x8x8xbf16>, vector<2x8x8xf32> -> vector<2x8x8xf32>
    %38 = vector.extract_strided_slice %15 {offsets = [0, 0, 8], sizes = [2, 8, 8], strides = [1, 1, 1]} : vector<2x8x32xbf16> to vector<2x8x8xbf16>
    %39 = vector.extract_strided_slice %16 {offsets = [0, 0, 8], sizes = [2, 8, 8], strides = [1, 1, 1]} : vector<2x8x32xbf16> to vector<2x8x8xbf16>
    %cst_16 = arith.constant dense<0.000000e+00> : vector<2x8x8xf32>
    %40 = tpu.matmul %38, %39, %cst_16 {dimension_numbers = #tpu.dot_dimension_numbers<[2], [2], [1], [1], [0, 0, 0, 1, 1, 1], [0], [0]>} : vector<2x8x8xbf16>, vector<2x8x8xbf16>, vector<2x8x8xf32> -> vector<2x8x8xf32>
    %cst_17 = arith.constant 0.353553385 : f32
    %41 = vector.broadcast %cst_17 : f32 to vector<2x8x8xf32>
    %42 = arith.mulf %40, %41 : vector<2x8x8xf32>
    %43 = vector.broadcast %4 : vector<2x1x8xf32> to vector<2x8x8xf32>
    %44 = arith.addf %42, %43 : vector<2x8x8xf32>
    %cst_18 = arith.constant dense<0xFF800000> : vector<2x8xf32>
    %45 = vector.multi_reduction <maximumf>, %44, %cst_18 [2] : vector<2x8x8xf32> to vector<2x8xf32>
    %46 = vector.shape_cast %45 : vector<2x8xf32> to vector<2x8x1xf32>
    %47 = vector.broadcast %46 : vector<2x8x1xf32> to vector<2x8x8xf32>
    %48 = arith.subf %44, %47 : vector<2x8x8xf32>
    %49 = math.exp %48 : vector<2x8x8xf32>
    %cst_19 = arith.constant dense<0.000000e+00> : vector<2x8xf32>
    %50 = vector.multi_reduction <add>, %49, %cst_19 [2] : vector<2x8x8xf32> to vector<2x8xf32>
    %51 = vector.shape_cast %50 : vector<2x8xf32> to vector<2x8x1xf32>
    %52 = tpu.reciprocal %51 {approx = true} : vector<2x8x1xf32> -> vector<2x8x1xf32>
    %53 = vector.broadcast %52 : vector<2x8x1xf32> to vector<2x8x8xf32>
    %54 = arith.mulf %49, %53 : vector<2x8x8xf32>
    %55 = arith.truncf %54 : vector<2x8x8xf32> to vector<2x8x8xbf16>
    %56 = vector.extract_strided_slice %17 {offsets = [0, 0, 8], sizes = [2, 8, 8], strides = [1, 1, 1]} : vector<2x8x32xbf16> to vector<2x8x8xbf16>
    %cst_20 = arith.constant dense<0.000000e+00> : vector<2x8x8xf32>
    %57 = tpu.matmul %55, %56, %cst_20 {dimension_numbers = #tpu.dot_dimension_numbers<[2], [1], [1], [2], [0, 0, 0, 1, 1, 2], [0], [0]>} : vector<2x8x8xbf16>, vector<2x8x8xbf16>, vector<2x8x8xf32> -> vector<2x8x8xf32>
    %58 = vector.extract_strided_slice %15 {offsets = [0, 0, 16], sizes = [2, 8, 8], strides = [1, 1, 1]} : vector<2x8x32xbf16> to vector<2x8x8xbf16>
    %59 = vector.extract_strided_slice %16 {offsets = [0, 0, 16], sizes = [2, 8, 8], strides = [1, 1, 1]} : vector<2x8x32xbf16> to vector<2x8x8xbf16>
    %cst_21 = arith.constant dense<0.000000e+00> : vector<2x8x8xf32>
    %60 = tpu.matmul %58, %59, %cst_21 {dimension_numbers = #tpu.dot_dimension_numbers<[2], [2], [1], [1], [0, 0, 0, 1, 1, 1], [0], [0]>} : vector<2x8x8xbf16>, vector<2x8x8xbf16>, vector<2x8x8xf32> -> vector<2x8x8xf32>
    %cst_22 = arith.constant 0.353553385 : f32
    %61 = vector.broadcast %cst_22 : f32 to vector<2x8x8xf32>
    %62 = arith.mulf %60, %61 : vector<2x8x8xf32>
    %63 = vector.broadcast %4 : vector<2x1x8xf32> to vector<2x8x8xf32>
    %64 = arith.addf %62, %63 : vector<2x8x8xf32>
    %cst_23 = arith.constant dense<0xFF800000> : vector<2x8xf32>
    %65 = vector.multi_reduction <maximumf>, %64, %cst_23 [2] : vector<2x8x8xf32> to vector<2x8xf32>
    %66 = vector.shape_cast %65 : vector<2x8xf32> to vector<2x8x1xf32>
    %67 = vector.broadcast %66 : vector<2x8x1xf32> to vector<2x8x8xf32>
    %68 = arith.subf %64, %67 : vector<2x8x8xf32>
    %69 = math.exp %68 : vector<2x8x8xf32>
    %cst_24 = arith.constant dense<0.000000e+00> : vector<2x8xf32>
    %70 = vector.multi_reduction <add>, %69, %cst_24 [2] : vector<2x8x8xf32> to vector<2x8xf32>
    %71 = vector.shape_cast %70 : vector<2x8xf32> to vector<2x8x1xf32>
    %72 = tpu.reciprocal %71 {approx = true} : vector<2x8x1xf32> -> vector<2x8x1xf32>
    %73 = vector.broadcast %72 : vector<2x8x1xf32> to vector<2x8x8xf32>
    %74 = arith.mulf %69, %73 : vector<2x8x8xf32>
    %75 = arith.truncf %74 : vector<2x8x8xf32> to vector<2x8x8xbf16>
    %76 = vector.extract_strided_slice %17 {offsets = [0, 0, 16], sizes = [2, 8, 8], strides = [1, 1, 1]} : vector<2x8x32xbf16> to vector<2x8x8xbf16>
    %cst_25 = arith.constant dense<0.000000e+00> : vector<2x8x8xf32>
    %77 = tpu.matmul %75, %76, %cst_25 {dimension_numbers = #tpu.dot_dimension_numbers<[2], [1], [1], [2], [0, 0, 0, 1, 1, 2], [0], [0]>} : vector<2x8x8xbf16>, vector<2x8x8xbf16>, vector<2x8x8xf32> -> vector<2x8x8xf32>
    %78 = vector.extract_strided_slice %15 {offsets = [0, 0, 24], sizes = [2, 8, 8], strides = [1, 1, 1]} : vector<2x8x32xbf16> to vector<2x8x8xbf16>
    %79 = vector.extract_strided_slice %16 {offsets = [0, 0, 24], sizes = [2, 8, 8], strides = [1, 1, 1]} : vector<2x8x32xbf16> to vector<2x8x8xbf16>
    %cst_26 = arith.constant dense<0.000000e+00> : vector<2x8x8xf32>
    %80 = tpu.matmul %78, %79, %cst_26 {dimension_numbers = #tpu.dot_dimension_numbers<[2], [2], [1], [1], [0, 0, 0, 1, 1, 1], [0], [0]>} : vector<2x8x8xbf16>, vector<2x8x8xbf16>, vector<2x8x8xf32> -> vector<2x8x8xf32>
    %cst_27 = arith.constant 0.353553385 : f32
    %81 = vector.broadcast %cst_27 : f32 to vector<2x8x8xf32>
    %82 = arith.mulf %80, %81 : vector<2x8x8xf32>
    %83 = vector.broadcast %4 : vector<2x1x8xf32> to vector<2x8x8xf32>
    %84 = arith.addf %82, %83 : vector<2x8x8xf32>
    %cst_28 = arith.constant dense<0xFF800000> : vector<2x8xf32>
    %85 = vector.multi_reduction <maximumf>, %84, %cst_28 [2] : vector<2x8x8xf32> to vector<2x8xf32>
    %86 = vector.shape_cast %85 : vector<2x8xf32> to vector<2x8x1xf32>
    %87 = vector.broadcast %86 : vector<2x8x1xf32> to vector<2x8x8xf32>
    %88 = arith.subf %84, %87 : vector<2x8x8xf32>
    %89 = math.exp %88 : vector<2x8x8xf32>
    %cst_29 = arith.constant dense<0.000000e+00> : vector<2x8xf32>
    %90 = vector.multi_reduction <add>, %89, %cst_29 [2] : vector<2x8x8xf32> to vector<2x8xf32>
    %91 = vector.shape_cast %90 : vector<2x8xf32> to vector<2x8x1xf32>
    %92 = tpu.reciprocal %91 {approx = true} : vector<2x8x1xf32> -> vector<2x8x1xf32>
    %93 = vector.broadcast %92 : vector<2x8x1xf32> to vector<2x8x8xf32>
    %94 = arith.mulf %89, %93 : vector<2x8x8xf32>
    %95 = arith.truncf %94 : vector<2x8x8xf32> to vector<2x8x8xbf16>
    %96 = vector.extract_strided_slice %17 {offsets = [0, 0, 24], sizes = [2, 8, 8], strides = [1, 1, 1]} : vector<2x8x32xbf16> to vector<2x8x8xbf16>
    %cst_30 = arith.constant dense<0.000000e+00> : vector<2x8x8xf32>
    %97 = tpu.matmul %95, %96, %cst_30 {dimension_numbers = #tpu.dot_dimension_numbers<[2], [1], [1], [2], [0, 0, 0, 1, 1, 2], [0], [0]>} : vector<2x8x8xbf16>, vector<2x8x8xbf16>, vector<2x8x8xf32> -> vector<2x8x8xf32>
    %98 = tpu.concatenate %37, %57, %77, %97 in 2 : vector<2x8x8xf32>, vector<2x8x8xf32>, vector<2x8x8xf32>, vector<2x8x8xf32> -> vector<2x8x32xf32>
    %99 = vector.shape_cast %98 : vector<2x8x32xf32> to vector<16x32xf32>
    %100 = arith.truncf %99 : vector<16x32xf32> to vector<16x32xbf16>
    %c0_31 = arith.constant 0 : index
    %c0_32 = arith.constant 0 : index
    %c0_33 = arith.constant 0 : index
    %101 = vector.load %arg12[%c0_31, %c0_32, %c0_33] : memref<1x32x32xbf16, #tpu.memory_space<vmem>>, vector<1x32x32xbf16>
    %102 = vector.shape_cast %101 : vector<1x32x32xbf16> to vector<32x32xbf16>
    %cst_34 = arith.constant dense<0.000000e+00> : vector<16x32xf32>
    %103 = tpu.matmul %100, %102, %cst_34 {dimension_numbers = #tpu.dot_dimension_numbers<[1], [0], [0], [1], [0, 0, 1, 1], [], []>} : vector<16x32xbf16>, vector<32x32xbf16>, vector<16x32xf32> -> vector<16x32xf32>
    %c0_35 = arith.constant 0 : index
    %c0_36 = arith.constant 0 : index
    %c0_37 = arith.constant 0 : index
    %104 = vector.load %arg11[%c0_35, %c0_36, %c0_37] : memref<1x1x32xf32, #tpu.memory_space<vmem>>, vector<1x1x32xf32>
    %105 = vector.shape_cast %104 : vector<1x1x32xf32> to vector<1x32xf32>
    %106 = vector.broadcast %105 : vector<1x32xf32> to vector<16x32xf32>
    %107 = arith.addf %103, %106 : vector<16x32xf32>
    %108 = arith.addf %3, %107 : vector<16x32xf32>
    %c0_38 = arith.constant 0 : index
    %c0_39 = arith.constant 0 : index
    %c0_40 = arith.constant 0 : index
    %109 = vector.load %arg8[%c0_38, %c0_39, %c0_40] : memref<1x1x32xf32, #tpu.memory_space<vmem>>, vector<1x1x32xf32>
    %110 = vector.shape_cast %109 : vector<1x1x32xf32> to vector<1x32xf32>
    %c0_41 = arith.constant 0 : index
    %c0_42 = arith.constant 0 : index
    %c0_43 = arith.constant 0 : index
    %111 = vector.load %arg7[%c0_41, %c0_42, %c0_43] : memref<1x1x32xf32, #tpu.memory_space<vmem>>, vector<1x1x32xf32>
    %112 = vector.shape_cast %111 : vector<1x1x32xf32> to vector<1x32xf32>
    %cst_44 = arith.constant dense<0.000000e+00> : vector<16xf32>
    %113 = vector.multi_reduction <add>, %108, %cst_44 [1] : vector<16x32xf32> to vector<16xf32>
    %114 = vector.shape_cast %113 : vector<16xf32> to vector<16x1xf32>
    %cst_45 = arith.constant 3.200000e+01 : f32
    %115 = vector.broadcast %cst_45 : f32 to vector<16x1xf32>
    %116 = arith.divf %114, %115 : vector<16x1xf32>
    %117 = vector.broadcast %116 : vector<16x1xf32> to vector<16x32xf32>
    %118 = arith.subf %108, %117 : vector<16x32xf32>
    %119 = arith.mulf %118, %118 : vector<16x32xf32>
    %cst_46 = arith.constant dense<0.000000e+00> : vector<16xf32>
    %120 = vector.multi_reduction <add>, %119, %cst_46 [1] : vector<16x32xf32> to vector<16xf32>
    %121 = vector.shape_cast %120 : vector<16xf32> to vector<16x1xf32>
    %cst_47 = arith.constant 3.200000e+01 : f32
    %122 = vector.broadcast %cst_47 : f32 to vector<16x1xf32>
    %123 = arith.divf %121, %122 : vector<16x1xf32>
    %cst_48 = arith.constant 9.99999974E-6 : f32
    %124 = vector.broadcast %cst_48 : f32 to vector<16x1xf32>
    %125 = arith.addf %123, %124 : vector<16x1xf32>
    %126 = math.rsqrt %125 : vector<16x1xf32>
    %127 = vector.broadcast %126 : vector<16x1xf32> to vector<16x32xf32>
    %128 = arith.mulf %118, %127 : vector<16x32xf32>
    %129 = vector.broadcast %110 : vector<1x32xf32> to vector<16x32xf32>
    %130 = arith.mulf %128, %129 : vector<16x32xf32>
    %131 = vector.broadcast %112 : vector<1x32xf32> to vector<16x32xf32>
    %132 = arith.addf %130, %131 : vector<16x32xf32>
    %133 = arith.truncf %132 : vector<16x32xf32> to vector<16x32xbf16>
    %c0_49 = arith.constant 0 : index
    %c0_50 = arith.constant 0 : index
    %c0_51 = arith.constant 0 : index
    %134 = vector.load %arg4[%c0_49, %c0_50, %c0_51] : memref<1x32x128xbf16, #tpu.memory_space<vmem>>, vector<1x32x128xbf16>
    %135 = vector.shape_cast %134 : vector<1x32x128xbf16> to vector<32x128xbf16>
    %cst_52 = arith.constant dense<0.000000e+00> : vector<16x128xf32>
    %136 = tpu.matmul %133, %135, %cst_52 {dimension_numbers = #tpu.dot_dimension_numbers<[1], [0], [0], [1], [0, 0, 1, 1], [], []>} : vector<16x32xbf16>, vector<32x128xbf16>, vector<16x128xf32> -> vector<16x128xf32>
    %c0_53 = arith.constant 0 : index
    %c0_54 = arith.constant 0 : index
    %c0_55 = arith.constant 0 : index
    %137 = vector.load %arg3[%c0_53, %c0_54, %c0_55] : memref<1x1x128xf32, #tpu.memory_space<vmem>>, vector<1x1x128xf32>
    %138 = vector.shape_cast %137 : vector<1x1x128xf32> to vector<1x128xf32>
    %139 = vector.broadcast %138 : vector<1x128xf32> to vector<16x128xf32>
    %140 = arith.addf %136, %139 : vector<16x128xf32>
    %cst_56 = arith.constant 0.000000e+00 : f32
    %141 = vector.broadcast %cst_56 : f32 to vector<16x128xf32>
    %142 = arith.maximumf %140, %141 : vector<16x128xf32>
    %143 = arith.truncf %142 : vector<16x128xf32> to vector<16x128xbf16>
    %c0_57 = arith.constant 0 : index
    %c0_58 = arith.constant 0 : index
    %c0_59 = arith.constant 0 : index
    %144 = vector.load %arg6[%c0_57, %c0_58, %c0_59] : memref<1x128x32xbf16, #tpu.memory_space<vmem>>, vector<1x128x32xbf16>
    %145 = vector.shape_cast %144 : vector<1x128x32xbf16> to vector<128x32xbf16>
    %cst_60 = arith.constant dense<0.000000e+00> : vector<16x32xf32>
    %146 = tpu.matmul %143, %145, %cst_60 {dimension_numbers = #tpu.dot_dimension_numbers<[1], [0], [0], [1], [0, 0, 1, 1], [], []>} : vector<16x128xbf16>, vector<128x32xbf16>, vector<16x32xf32> -> vector<16x32xf32>
    %c0_61 = arith.constant 0 : index
    %c0_62 = arith.constant 0 : index
    %c0_63 = arith.constant 0 : index
    %147 = vector.load %arg5[%c0_61, %c0_62, %c0_63] : memref<1x1x32xf32, #tpu.memory_space<vmem>>, vector<1x1x32xf32>
    %148 = vector.shape_cast %147 : vector<1x1x32xf32> to vector<1x32xf32>
    %149 = vector.broadcast %148 : vector<1x32xf32> to vector<16x32xf32>
    %150 = arith.addf %146, %149 : vector<16x32xf32>
    %151 = arith.addf %132, %150 : vector<16x32xf32>
    %c0_64 = arith.constant 0 : index
    %c0_65 = arith.constant 0 : index
    %c0_66 = arith.constant 0 : index
    %152 = vector.load %arg10[%c0_64, %c0_65, %c0_66] : memref<1x1x32xf32, #tpu.memory_space<vmem>>, vector<1x1x32xf32>
    %153 = vector.shape_cast %152 : vector<1x1x32xf32> to vector<1x32xf32>
    %c0_67 = arith.constant 0 : index
    %c0_68 = arith.constant 0 : index
    %c0_69 = arith.constant 0 : index
    %154 = vector.load %arg9[%c0_67, %c0_68, %c0_69] : memref<1x1x32xf32, #tpu.memory_space<vmem>>, vector<1x1x32xf32>
    %155 = vector.shape_cast %154 : vector<1x1x32xf32> to vector<1x32xf32>
    %cst_70 = arith.constant dense<0.000000e+00> : vector<16xf32>
    %156 = vector.multi_reduction <add>, %151, %cst_70 [1] : vector<16x32xf32> to vector<16xf32>
    %157 = vector.shape_cast %156 : vector<16xf32> to vector<16x1xf32>
    %cst_71 = arith.constant 3.200000e+01 : f32
    %158 = vector.broadcast %cst_71 : f32 to vector<16x1xf32>
    %159 = arith.divf %157, %158 : vector<16x1xf32>
    %160 = vector.broadcast %159 : vector<16x1xf32> to vector<16x32xf32>
    %161 = arith.subf %151, %160 : vector<16x32xf32>
    %162 = arith.mulf %161, %161 : vector<16x32xf32>
    %cst_72 = arith.constant dense<0.000000e+00> : vector<16xf32>
    %163 = vector.multi_reduction <add>, %162, %cst_72 [1] : vector<16x32xf32> to vector<16xf32>
    %164 = vector.shape_cast %163 : vector<16xf32> to vector<16x1xf32>
    %cst_73 = arith.constant 3.200000e+01 : f32
    %165 = vector.broadcast %cst_73 : f32 to vector<16x1xf32>
    %166 = arith.divf %164, %165 : vector<16x1xf32>
    %cst_74 = arith.constant 9.99999974E-6 : f32
    %167 = vector.broadcast %cst_74 : f32 to vector<16x1xf32>
    %168 = arith.addf %166, %167 : vector<16x1xf32>
    %169 = math.rsqrt %168 : vector<16x1xf32>
    %170 = vector.broadcast %169 : vector<16x1xf32> to vector<16x32xf32>
    %171 = arith.mulf %161, %170 : vector<16x32xf32>
    %172 = vector.broadcast %153 : vector<1x32xf32> to vector<16x32xf32>
    %173 = arith.mulf %171, %172 : vector<16x32xf32>
    %174 = vector.broadcast %155 : vector<1x32xf32> to vector<16x32xf32>
    %175 = arith.addf %173, %174 : vector<16x32xf32>
    %c0_75 = arith.constant 0 : index
    %c0_76 = arith.constant 0 : index
    %176 = vector.load %arg15[%c0_75, %c0_76] : memref<16x32xf32, #tpu.memory_space<vmem>>, vector<16x32xf32>
    tpu.vector_store %arg15[%c0_75, %c0_76], %175 {strides = array<i32>} : memref<16x32xf32, #tpu.memory_space<vmem>>, vector<16x32xf32>,
    return
  }
  func.func @transform_0(%arg0: i32) -> (i32, i32) {
    %c0_i32 = arith.constant 0 : i32
    %c0_i32_0 = arith.constant 0 : i32
    %c0_i32_1 = arith.constant 0 : i32
    return %c0_i32, %c0_i32_0 : i32, i32
  }
  func.func @transform_1(%arg0: i32) -> (i32, i32, i32) {
    %c0_i32 = arith.constant 0 : i32
    %c0_i32_0 = arith.constant 0 : i32
    %c0_i32_1 = arith.constant 0 : i32
    %c0_i32_2 = arith.constant 0 : i32
    return %c0_i32, %c0_i32_0, %c0_i32_1 : i32, i32, i32
  }
  func.func @transform_2(%arg0: i32) -> (i32, i32, i32) {
    %c0_i32 = arith.constant 0 : i32
    %c0_i32_0 = arith.constant 0 : i32
    %c0_i32_1 = arith.constant 0 : i32
    return %arg0, %c0_i32, %c0_i32_0 : i32, i32, i32
  }
  func.func @transform_3(%arg0: i32) -> (i32, i32, i32) {
    %c0_i32 = arith.constant 0 : i32
    %c0_i32_0 = arith.constant 0 : i32
    %c0_i32_1 = arith.constant 0 : i32
    return %arg0, %c0_i32, %c0_i32_0 : i32, i32, i32
  }
  func.func @transform_4(%arg0: i32) -> (i32, i32, i32) {
    %c0_i32 = arith.constant 0 : i32
    %c0_i32_0 = arith.constant 0 : i32
    %c0_i32_1 = arith.constant 0 : i32
    return %arg0, %c0_i32, %c0_i32_0 : i32, i32, i32
  }
  func.func @transform_5(%arg0: i32) -> (i32, i32, i32) {
    %c0_i32 = arith.constant 0 : i32
    %c0_i32_0 = arith.constant 0 : i32
    %c0_i32_1 = arith.constant 0 : i32
    return %arg0, %c0_i32, %c0_i32_0 : i32, i32, i32
  }
  func.func @transform_6(%arg0: i32) -> (i32, i32, i32) {
    %c0_i32 = arith.constant 0 : i32
    %c0_i32_0 = arith.constant 0 : i32
    %c0_i32_1 = arith.constant 0 : i32
    return %arg0, %c0_i32, %c0_i32_0 : i32, i32, i32
  }
  func.func @transform_7(%arg0: i32) -> (i32, i32, i32) {
    %c0_i32 = arith.constant 0 : i32
    %c0_i32_0 = arith.constant 0 : i32
    %c0_i32_1 = arith.constant 0 : i32
    return %arg0, %c0_i32, %c0_i32_0 : i32, i32, i32
  }
  func.func @transform_8(%arg0: i32) -> (i32, i32, i32) {
    %c0_i32 = arith.constant 0 : i32
    %c0_i32_0 = arith.constant 0 : i32
    %c0_i32_1 = arith.constant 0 : i32
    return %arg0, %c0_i32, %c0_i32_0 : i32, i32, i32
  }
  func.func @transform_9(%arg0: i32) -> (i32, i32, i32) {
    %c0_i32 = arith.constant 0 : i32
    %c0_i32_0 = arith.constant 0 : i32
    %c0_i32_1 = arith.constant 0 : i32
    return %arg0, %c0_i32, %c0_i32_0 : i32, i32, i32
  }
  func.func @transform_10(%arg0: i32) -> (i32, i32, i32) {
    %c0_i32 = arith.constant 0 : i32
    %c0_i32_0 = arith.constant 0 : i32
    %c0_i32_1 = arith.constant 0 : i32
    return %arg0, %c0_i32, %c0_i32_0 : i32, i32, i32
  }
  func.func @transform_11(%arg0: i32) -> (i32, i32, i32) {
    %c0_i32 = arith.constant 0 : i32
    %c0_i32_0 = arith.constant 0 : i32
    %c0_i32_1 = arith.constant 0 : i32
    return %arg0, %c0_i32, %c0_i32_0 : i32, i32, i32
  }
  func.func @transform_12(%arg0: i32) -> (i32, i32, i32) {
    %c0_i32 = arith.constant 0 : i32
    %c0_i32_0 = arith.constant 0 : i32
    %c0_i32_1 = arith.constant 0 : i32
    return %arg0, %c0_i32, %c0_i32_0 : i32, i32, i32
  }
  func.func @transform_13(%arg0: i32) -> (i32, i32, i32) {
    %c0_i32 = arith.constant 0 : i32
    %c0_i32_0 = arith.constant 0 : i32
    %c0_i32_1 = arith.constant 0 : i32
    return %arg0, %c0_i32, %c0_i32_0 : i32, i32, i32
  }
  func.func @transform_14(%arg0: i32) -> (i32, i32) {
    %c0_i32 = arith.constant 0 : i32
    %c0_i32_0 = arith.constant 0 : i32
    %c0_i32_1 = arith.constant 0 : i32
    return %c0_i32, %c0_i32_0 : i32, i32
  }
}

module attributes {stable_mosaic.version = 11 : i64} {
  func.func @kernel(%arg0: memref<16x32xf32, #tpu.memory_space<vmem>>, %arg1: memref<32x16xbf16, #tpu.memory_space<vmem>>, %arg2: memref<1x16xf32, #tpu.memory_space<vmem>>, %arg3: memref<16x16xf32, #tpu.memory_space<vmem>>) attributes {dimension_semantics = [], scalar_prefetch = 0 : i64, scratch_operands = 0 : i64, tpu.core_type = #tpu.core_type<tc>} {
    %c0 = arith.constant 0 : index
    %c0_0 = arith.constant 0 : index
    %0 = vector.load %arg0[%c0, %c0_0] : memref<16x32xf32, #tpu.memory_space<vmem>>, vector<16x32xf32>
    %1 = arith.truncf %0 : vector<16x32xf32> to vector<16x32xbf16>
    %c0_1 = arith.constant 0 : index
    %c0_2 = arith.constant 0 : index
    %2 = vector.load %arg1[%c0_1, %c0_2] : memref<32x16xbf16, #tpu.memory_space<vmem>>, vector<32x16xbf16>
    %cst = arith.constant dense<0.000000e+00> : vector<16x16xf32>
    %3 = tpu.matmul %1, %2, %cst {dimension_numbers = #tpu.dot_dimension_numbers<[1], [0], [0], [1], [0, 0, 1, 1], [], []>} : vector<16x32xbf16>, vector<32x16xbf16>, vector<16x16xf32> -> vector<16x16xf32>
    %c0_3 = arith.constant 0 : index
    %c0_4 = arith.constant 0 : index
    %4 = vector.load %arg2[%c0_3, %c0_4] : memref<1x16xf32, #tpu.memory_space<vmem>>, vector<1x16xf32>
    %5 = vector.broadcast %4 : vector<1x16xf32> to vector<16x16xf32>
    %6 = arith.addf %3, %5 : vector<16x16xf32>
    %c0_5 = arith.constant 0 : index
    %c0_6 = arith.constant 0 : index
    %7 = vector.load %arg3[%c0_5, %c0_6] : memref<16x16xf32, #tpu.memory_space<vmem>>, vector<16x16xf32>
    tpu.vector_store %arg3[%c0_5, %c0_6], %6 {strides = array<i32>} : memref<16x16xf32, #tpu.memory_space<vmem>>, vector<16x16xf32>,
    return
  }
}

module attributes {stable_mosaic.version = 11 : i64} {
  func.func @kernel(%arg0: i32, %arg1: memref<16x32xf32, #tpu.memory_space<vmem>>, %arg2: memref<16x32xf32, #tpu.memory_space<vmem>>, %arg3: memref<2x8x8xf32, #tpu.memory_space<vmem>>, %arg4: memref<1x1x64xf32, #tpu.memory_space<vmem>>, %arg5: memref<1x32x64xbf16, #tpu.memory_space<vmem>>, %arg6: memref<1x1x32xf32, #tpu.memory_space<vmem>>, %arg7: memref<1x32x32xbf16, #tpu.memory_space<vmem>>, %arg8: memref<1x1x32xf32, #tpu.memory_space<vmem>>, %arg9: memref<1x32x32xbf16, #tpu.memory_space<vmem>>, %arg10: memref<1x1x128xf32, #tpu.memory_space<vmem>>, %arg11: memref<1x32x128xbf16, #tpu.memory_space<vmem>>, %arg12: memref<1x1x32xf32, #tpu.memory_space<vmem>>, %arg13: memref<1x128x32xbf16, #tpu.memory_space<vmem>>, %arg14: memref<1x1x32xf32, #tpu.memory_space<vmem>>, %arg15: memref<1x1x32xf32, #tpu.memory_space<vmem>>, %arg16: memref<1x1x32xf32, #tpu.memory_space<vmem>>, %arg17: memref<1x1x32xf32, #tpu.memory_space<vmem>>, %arg18: memref<1x1x32xf32, #tpu.memory_space<vmem>>, %arg19: memref<1x1x32xf32, #tpu.memory_space<vmem>>, %arg20: memref<1x1x32xf32, #tpu.memory_space<vmem>>, %arg21: memref<1x32x32xbf16, #tpu.memory_space<vmem>>, %arg22: memref<1x1x96xf32, #tpu.memory_space<vmem>>, %arg23: memref<1x32x96xbf16, #tpu.memory_space<vmem>>, %arg24: memref<16x32xf32, #tpu.memory_space<vmem>>) attributes {dimension_semantics = [#tpu.dimension_semantics<arbitrary>], iteration_bounds = array<i64: 2>, scalar_prefetch = 0 : i64, scratch_operands = 0 : i64, tpu.core_type = #tpu.core_type<tc>, window_params = [{pipeline_mode = #tpu.pipeline_mode<synchronous>, transform_indices = @transform_0, window_bounds = array<i64: 16, 32>}, {pipeline_mode = #tpu.pipeline_mode<synchronous>, transform_indices = @transform_1, window_bounds = array<i64: 16, 32>}, {pipeline_mode = #tpu.pipeline_mode<synchronous>, transform_indices = @transform_2, window_bounds = array<i64: 2, 8, 8>}, {transform_indices = @transform_3, window_bounds = array<i64: 1, 1, 64>}, {transform_indices = @transform_4, window_bounds = array<i64: 1, 32, 64>}, {transform_indices = @transform_5, window_bounds = array<i64: 1, 1, 32>}, {transform_indices = @transform_6, window_bounds = array<i64: 1, 32, 32>}, {transform_indices = @transform_7, window_bounds = array<i64: 1, 1, 32>}, {transform_indices = @transform_8, window_bounds = array<i64: 1, 32, 32>}, {transform_indices = @transform_9, window_bounds = array<i64: 1, 1, 128>}, {transform_indices = @transform_10, window_bounds = array<i64: 1, 32, 128>}, {transform_indices = @transform_11, window_bounds = array<i64: 1, 1, 32>}, {transform_indices = @transform_12, window_bounds = array<i64: 1, 128, 32>}, {transform_indices = @transform_13, window_bounds = array<i64: 1, 1, 32>}, {transform_indices = @transform_14, window_bounds = array<i64: 1, 1, 32>}, {transform_indices = @transform_15, window_bounds = array<i64: 1, 1, 32>}, {transform_indices = @transform_16, window_bounds = array<i64: 1, 1, 32>}, {transform_indices = @transform_17, window_bounds = array<i64: 1, 1, 32>}, {transform_indices = @transform_18, window_bounds = array<i64: 1, 1, 32>}, {transform_indices = @transform_19, window_bounds = array<i64: 1, 1, 32>}, {transform_indices = @transform_20, window_bounds = array<i64: 1, 32, 32>}, {transform_indices = @transform_21, window_bounds = array<i64: 1, 1, 96>}, {transform_indices = @transform_22, window_bounds = array<i64: 1, 32, 96>}, {pipeline_mode = #tpu.pipeline_mode<synchronous>, transform_indices = @transform_23, window_bounds = array<i64: 16, 32>}]} {
    %c0_i32 = arith.constant 0 : i32
    %0 = arith.cmpi eq, %arg0, %c0_i32 : i32
    %1 = arith.extui %0 : i1 to i32
    %c0_i32_0 = arith.constant 0 : i32
    %2 = arith.cmpi ne, %1, %c0_i32_0 : i32
    scf.if %2 {
      %c0_131 = arith.constant 0 : index
      %c0_132 = arith.constant 0 : index
      %303 = vector.load %arg1[%c0_131, %c0_132] : memref<16x32xf32, #tpu.memory_space<vmem>>, vector<16x32xf32>
      %c0_133 = arith.constant 0 : index
      %c0_134 = arith.constant 0 : index
      %304 = vector.load %arg24[%c0_133, %c0_134] : memref<16x32xf32, #tpu.memory_space<vmem>>, vector<16x32xf32>
      tpu.vector_store %arg24[%c0_133, %c0_134], %303 {strides = array<i32>} : memref<16x32xf32, #tpu.memory_space<vmem>>, vector<16x32xf32>,
    } else {
    }
    %c0 = arith.constant 0 : index
    %c0_1 = arith.constant 0 : index
    %3 = vector.load %arg24[%c0, %c0_1] : memref<16x32xf32, #tpu.memory_space<vmem>>, vector<16x32xf32>
    %c0_2 = arith.constant 0 : index
    %c0_3 = arith.constant 0 : index
    %4 = vector.load %arg2[%c0_2, %c0_3] : memref<16x32xf32, #tpu.memory_space<vmem>>, vector<16x32xf32>
    %c0_4 = arith.constant 0 : index
    %c0_5 = arith.constant 0 : index
    %c0_6 = arith.constant 0 : index
    %5 = vector.load %arg3[%c0_4, %c0_5, %c0_6] : memref<2x8x8xf32, #tpu.memory_space<vmem>>, vector<2x8x8xf32>
    %6 = arith.truncf %3 : vector<16x32xf32> to vector<16x32xbf16>
    %c0_7 = arith.constant 0 : index
    %c0_8 = arith.constant 0 : index
    %c0_9 = arith.constant 0 : index
    %7 = vector.load %arg23[%c0_7, %c0_8, %c0_9] : memref<1x32x96xbf16, #tpu.memory_space<vmem>>, vector<1x32x96xbf16>
    %8 = vector.shape_cast %7 : vector<1x32x96xbf16> to vector<32x96xbf16>
    %cst = arith.constant dense<0.000000e+00> : vector<16x96xf32>
    %9 = tpu.matmul %6, %8, %cst {dimension_numbers = #tpu.dot_dimension_numbers<[1], [0], [0], [1], [0, 0, 1, 1], [], []>} : vector<16x32xbf16>, vector<32x96xbf16>, vector<16x96xf32> -> vector<16x96xf32>
    %c0_10 = arith.constant 0 : index
    %c0_11 = arith.constant 0 : index
    %c0_12 = arith.constant 0 : index
    %10 = vector.load %arg22[%c0_10, %c0_11, %c0_12] : memref<1x1x96xf32, #tpu.memory_space<vmem>>, vector<1x1x96xf32>
    %11 = vector.shape_cast %10 : vector<1x1x96xf32> to vector<1x96xf32>
    %12 = vector.broadcast %11 : vector<1x96xf32> to vector<16x96xf32>
    %13 = arith.addf %9, %12 : vector<16x96xf32>
    %14 = vector.shape_cast %13 : vector<16x96xf32> to vector<2x8x96xf32>
    %15 = arith.truncf %14 : vector<2x8x96xf32> to vector<2x8x96xbf16>
    %16 = vector.extract_strided_slice %15 {offsets = [0, 0, 0], sizes = [2, 8, 32], strides = [1, 1, 1]} : vector<2x8x96xbf16> to vector<2x8x32xbf16>
    %17 = vector.extract_strided_slice %15 {offsets = [0, 0, 32], sizes = [2, 8, 32], strides = [1, 1, 1]} : vector<2x8x96xbf16> to vector<2x8x32xbf16>
    %18 = vector.extract_strided_slice %15 {offsets = [0, 0, 64], sizes = [2, 8, 32], strides = [1, 1, 1]} : vector<2x8x96xbf16> to vector<2x8x32xbf16>
    %19 = vector.extract_strided_slice %16 {offsets = [0, 0, 0], sizes = [2, 8, 8], strides = [1, 1, 1]} : vector<2x8x32xbf16> to vector<2x8x8xbf16>
    %20 = vector.extract_strided_slice %17 {offsets = [0, 0, 0], sizes = [2, 8, 8], strides = [1, 1, 1]} : vector<2x8x32xbf16> to vector<2x8x8xbf16>
    %cst_13 = arith.constant dense<0.000000e+00> : vector<2x8x8xf32>
    %21 = tpu.matmul %19, %20, %cst_13 {dimension_numbers = #tpu.dot_dimension_numbers<[2], [2], [1], [1], [0, 0, 0, 1, 1, 1], [0], [0]>} : vector<2x8x8xbf16>, vector<2x8x8xbf16>, vector<2x8x8xf32> -> vector<2x8x8xf32>
    %cst_14 = arith.constant 0.353553385 : f32
    %22 = vector.broadcast %cst_14 : f32 to vector<2x8x8xf32>
    %23 = arith.mulf %21, %22 : vector<2x8x8xf32>
    %24 = arith.addf %23, %5 : vector<2x8x8xf32>
    %cst_15 = arith.constant dense<0xFF800000> : vector<2x8xf32>
    %25 = vector.multi_reduction <maximumf>, %24, %cst_15 [2] : vector<2x8x8xf32> to vector<2x8xf32>
    %26 = vector.shape_cast %25 : vector<2x8xf32> to vector<2x8x1xf32>
    %27 = vector.broadcast %26 : vector<2x8x1xf32> to vector<2x8x8xf32>
    %28 = arith.subf %24, %27 : vector<2x8x8xf32>
    %29 = math.exp %28 : vector<2x8x8xf32>
    %cst_16 = arith.constant dense<0.000000e+00> : vector<2x8xf32>
    %30 = vector.multi_reduction <add>, %29, %cst_16 [2] : vector<2x8x8xf32> to vector<2x8xf32>
    %31 = vector.shape_cast %30 : vector<2x8xf32> to vector<2x8x1xf32>
    %32 = tpu.reciprocal %31 {approx = true} : vector<2x8x1xf32> -> vector<2x8x1xf32>
    %33 = vector.broadcast %32 : vector<2x8x1xf32> to vector<2x8x8xf32>
    %34 = arith.mulf %29, %33 : vector<2x8x8xf32>
    %35 = arith.truncf %34 : vector<2x8x8xf32> to vector<2x8x8xbf16>
    %36 = vector.extract_strided_slice %18 {offsets = [0, 0, 0], sizes = [2, 8, 8], strides = [1, 1, 1]} : vector<2x8x32xbf16> to vector<2x8x8xbf16>
    %cst_17 = arith.constant dense<0.000000e+00> : vector<2x8x8xf32>
    %37 = tpu.matmul %35, %36, %cst_17 {dimension_numbers = #tpu.dot_dimension_numbers<[2], [1], [1], [2], [0, 0, 0, 1, 1, 2], [0], [0]>} : vector<2x8x8xbf16>, vector<2x8x8xbf16>, vector<2x8x8xf32> -> vector<2x8x8xf32>
    %38 = vector.extract_strided_slice %16 {offsets = [0, 0, 8], sizes = [2, 8, 8], strides = [1, 1, 1]} : vector<2x8x32xbf16> to vector<2x8x8xbf16>
    %39 = vector.extract_strided_slice %17 {offsets = [0, 0, 8], sizes = [2, 8, 8], strides = [1, 1, 1]} : vector<2x8x32xbf16> to vector<2x8x8xbf16>
    %cst_18 = arith.constant dense<0.000000e+00> : vector<2x8x8xf32>
    %40 = tpu.matmul %38, %39, %cst_18 {dimension_numbers = #tpu.dot_dimension_numbers<[2], [2], [1], [1], [0, 0, 0, 1, 1, 1], [0], [0]>} : vector<2x8x8xbf16>, vector<2x8x8xbf16>, vector<2x8x8xf32> -> vector<2x8x8xf32>
    %cst_19 = arith.constant 0.353553385 : f32
    %41 = vector.broadcast %cst_19 : f32 to vector<2x8x8xf32>
    %42 = arith.mulf %40, %41 : vector<2x8x8xf32>
    %43 = arith.addf %42, %5 : vector<2x8x8xf32>
    %cst_20 = arith.constant dense<0xFF800000> : vector<2x8xf32>
    %44 = vector.multi_reduction <maximumf>, %43, %cst_20 [2] : vector<2x8x8xf32> to vector<2x8xf32>
    %45 = vector.shape_cast %44 : vector<2x8xf32> to vector<2x8x1xf32>
    %46 = vector.broadcast %45 : vector<2x8x1xf32> to vector<2x8x8xf32>
    %47 = arith.subf %43, %46 : vector<2x8x8xf32>
    %48 = math.exp %47 : vector<2x8x8xf32>
    %cst_21 = arith.constant dense<0.000000e+00> : vector<2x8xf32>
    %49 = vector.multi_reduction <add>, %48, %cst_21 [2] : vector<2x8x8xf32> to vector<2x8xf32>
    %50 = vector.shape_cast %49 : vector<2x8xf32> to vector<2x8x1xf32>
    %51 = tpu.reciprocal %50 {approx = true} : vector<2x8x1xf32> -> vector<2x8x1xf32>
    %52 = vector.broadcast %51 : vector<2x8x1xf32> to vector<2x8x8xf32>
    %53 = arith.mulf %48, %52 : vector<2x8x8xf32>
    %54 = arith.truncf %53 : vector<2x8x8xf32> to vector<2x8x8xbf16>
    %55 = vector.extract_strided_slice %18 {offsets = [0, 0, 8], sizes = [2, 8, 8], strides = [1, 1, 1]} : vector<2x8x32xbf16> to vector<2x8x8xbf16>
    %cst_22 = arith.constant dense<0.000000e+00> : vector<2x8x8xf32>
    %56 = tpu.matmul %54, %55, %cst_22 {dimension_numbers = #tpu.dot_dimension_numbers<[2], [1], [1], [2], [0, 0, 0, 1, 1, 2], [0], [0]>} : vector<2x8x8xbf16>, vector<2x8x8xbf16>, vector<2x8x8xf32> -> vector<2x8x8xf32>
    %57 = vector.extract_strided_slice %16 {offsets = [0, 0, 16], sizes = [2, 8, 8], strides = [1, 1, 1]} : vector<2x8x32xbf16> to vector<2x8x8xbf16>
    %58 = vector.extract_strided_slice %17 {offsets = [0, 0, 16], sizes = [2, 8, 8], strides = [1, 1, 1]} : vector<2x8x32xbf16> to vector<2x8x8xbf16>
    %cst_23 = arith.constant dense<0.000000e+00> : vector<2x8x8xf32>
    %59 = tpu.matmul %57, %58, %cst_23 {dimension_numbers = #tpu.dot_dimension_numbers<[2], [2], [1], [1], [0, 0, 0, 1, 1, 1], [0], [0]>} : vector<2x8x8xbf16>, vector<2x8x8xbf16>, vector<2x8x8xf32> -> vector<2x8x8xf32>
    %cst_24 = arith.constant 0.353553385 : f32
    %60 = vector.broadcast %cst_24 : f32 to vector<2x8x8xf32>
    %61 = arith.mulf %59, %60 : vector<2x8x8xf32>
    %62 = arith.addf %61, %5 : vector<2x8x8xf32>
    %cst_25 = arith.constant dense<0xFF800000> : vector<2x8xf32>
    %63 = vector.multi_reduction <maximumf>, %62, %cst_25 [2] : vector<2x8x8xf32> to vector<2x8xf32>
    %64 = vector.shape_cast %63 : vector<2x8xf32> to vector<2x8x1xf32>
    %65 = vector.broadcast %64 : vector<2x8x1xf32> to vector<2x8x8xf32>
    %66 = arith.subf %62, %65 : vector<2x8x8xf32>
    %67 = math.exp %66 : vector<2x8x8xf32>
    %cst_26 = arith.constant dense<0.000000e+00> : vector<2x8xf32>
    %68 = vector.multi_reduction <add>, %67, %cst_26 [2] : vector<2x8x8xf32> to vector<2x8xf32>
    %69 = vector.shape_cast %68 : vector<2x8xf32> to vector<2x8x1xf32>
    %70 = tpu.reciprocal %69 {approx = true} : vector<2x8x1xf32> -> vector<2x8x1xf32>
    %71 = vector.broadcast %70 : vector<2x8x1xf32> to vector<2x8x8xf32>
    %72 = arith.mulf %67, %71 : vector<2x8x8xf32>
    %73 = arith.truncf %72 : vector<2x8x8xf32> to vector<2x8x8xbf16>
    %74 = vector.extract_strided_slice %18 {offsets = [0, 0, 16], sizes = [2, 8, 8], strides = [1, 1, 1]} : vector<2x8x32xbf16> to vector<2x8x8xbf16>
    %cst_27 = arith.constant dense<0.000000e+00> : vector<2x8x8xf32>
    %75 = tpu.matmul %73, %74, %cst_27 {dimension_numbers = #tpu.dot_dimension_numbers<[2], [1], [1], [2], [0, 0, 0, 1, 1, 2], [0], [0]>} : vector<2x8x8xbf16>, vector<2x8x8xbf16>, vector<2x8x8xf32> -> vector<2x8x8xf32>
    %76 = vector.extract_strided_slice %16 {offsets = [0, 0, 24], sizes = [2, 8, 8], strides = [1, 1, 1]} : vector<2x8x32xbf16> to vector<2x8x8xbf16>
    %77 = vector.extract_strided_slice %17 {offsets = [0, 0, 24], sizes = [2, 8, 8], strides = [1, 1, 1]} : vector<2x8x32xbf16> to vector<2x8x8xbf16>
    %cst_28 = arith.constant dense<0.000000e+00> : vector<2x8x8xf32>
    %78 = tpu.matmul %76, %77, %cst_28 {dimension_numbers = #tpu.dot_dimension_numbers<[2], [2], [1], [1], [0, 0, 0, 1, 1, 1], [0], [0]>} : vector<2x8x8xbf16>, vector<2x8x8xbf16>, vector<2x8x8xf32> -> vector<2x8x8xf32>
    %cst_29 = arith.constant 0.353553385 : f32
    %79 = vector.broadcast %cst_29 : f32 to vector<2x8x8xf32>
    %80 = arith.mulf %78, %79 : vector<2x8x8xf32>
    %81 = arith.addf %80, %5 : vector<2x8x8xf32>
    %cst_30 = arith.constant dense<0xFF800000> : vector<2x8xf32>
    %82 = vector.multi_reduction <maximumf>, %81, %cst_30 [2] : vector<2x8x8xf32> to vector<2x8xf32>
    %83 = vector.shape_cast %82 : vector<2x8xf32> to vector<2x8x1xf32>
    %84 = vector.broadcast %83 : vector<2x8x1xf32> to vector<2x8x8xf32>
    %85 = arith.subf %81, %84 : vector<2x8x8xf32>
    %86 = math.exp %85 : vector<2x8x8xf32>
    %cst_31 = arith.constant dense<0.000000e+00> : vector<2x8xf32>
    %87 = vector.multi_reduction <add>, %86, %cst_31 [2] : vector<2x8x8xf32> to vector<2x8xf32>
    %88 = vector.shape_cast %87 : vector<2x8xf32> to vector<2x8x1xf32>
    %89 = tpu.reciprocal %88 {approx = true} : vector<2x8x1xf32> -> vector<2x8x1xf32>
    %90 = vector.broadcast %89 : vector<2x8x1xf32> to vector<2x8x8xf32>
    %91 = arith.mulf %86, %90 : vector<2x8x8xf32>
    %92 = arith.truncf %91 : vector<2x8x8xf32> to vector<2x8x8xbf16>
    %93 = vector.extract_strided_slice %18 {offsets = [0, 0, 24], sizes = [2, 8, 8], strides = [1, 1, 1]} : vector<2x8x32xbf16> to vector<2x8x8xbf16>
    %cst_32 = arith.constant dense<0.000000e+00> : vector<2x8x8xf32>
    %94 = tpu.matmul %92, %93, %cst_32 {dimension_numbers = #tpu.dot_dimension_numbers<[2], [1], [1], [2], [0, 0, 0, 1, 1, 2], [0], [0]>} : vector<2x8x8xbf16>, vector<2x8x8xbf16>, vector<2x8x8xf32> -> vector<2x8x8xf32>
    %95 = tpu.concatenate %37, %56, %75, %94 in 2 : vector<2x8x8xf32>, vector<2x8x8xf32>, vector<2x8x8xf32>, vector<2x8x8xf32> -> vector<2x8x32xf32>
    %96 = vector.shape_cast %95 : vector<2x8x32xf32> to vector<16x32xf32>
    %97 = arith.truncf %96 : vector<16x32xf32> to vector<16x32xbf16>
    %c0_33 = arith.constant 0 : index
    %c0_34 = arith.constant 0 : index
    %c0_35 = arith.constant 0 : index
    %98 = vector.load %arg21[%c0_33, %c0_34, %c0_35] : memref<1x32x32xbf16, #tpu.memory_space<vmem>>, vector<1x32x32xbf16>
    %99 = vector.shape_cast %98 : vector<1x32x32xbf16> to vector<32x32xbf16>
    %cst_36 = arith.constant dense<0.000000e+00> : vector<16x32xf32>
    %100 = tpu.matmul %97, %99, %cst_36 {dimension_numbers = #tpu.dot_dimension_numbers<[1], [0], [0], [1], [0, 0, 1, 1], [], []>} : vector<16x32xbf16>, vector<32x32xbf16>, vector<16x32xf32> -> vector<16x32xf32>
    %c0_37 = arith.constant 0 : index
    %c0_38 = arith.constant 0 : index
    %c0_39 = arith.constant 0 : index
    %101 = vector.load %arg20[%c0_37, %c0_38, %c0_39] : memref<1x1x32xf32, #tpu.memory_space<vmem>>, vector<1x1x32xf32>
    %102 = vector.shape_cast %101 : vector<1x1x32xf32> to vector<1x32xf32>
    %103 = vector.broadcast %102 : vector<1x32xf32> to vector<16x32xf32>
    %104 = arith.addf %100, %103 : vector<16x32xf32>
    %105 = arith.addf %3, %104 : vector<16x32xf32>
    %c0_40 = arith.constant 0 : index
    %c0_41 = arith.constant 0 : index
    %c0_42 = arith.constant 0 : index
    %106 = vector.load %arg15[%c0_40, %c0_41, %c0_42] : memref<1x1x32xf32, #tpu.memory_space<vmem>>, vector<1x1x32xf32>
    %107 = vector.shape_cast %106 : vector<1x1x32xf32> to vector<1x32xf32>
    %c0_43 = arith.constant 0 : index
    %c0_44 = arith.constant 0 : index
    %c0_45 = arith.constant 0 : index
    %108 = vector.load %arg14[%c0_43, %c0_44, %c0_45] : memref<1x1x32xf32, #tpu.memory_space<vmem>>, vector<1x1x32xf32>
    %109 = vector.shape_cast %108 : vector<1x1x32xf32> to vector<1x32xf32>
    %cst_46 = arith.constant dense<0.000000e+00> : vector<16xf32>
    %110 = vector.multi_reduction <add>, %105, %cst_46 [1] : vector<16x32xf32> to vector<16xf32>
    %111 = vector.shape_cast %110 : vector<16xf32> to vector<16x1xf32>
    %cst_47 = arith.constant 3.200000e+01 : f32
    %112 = vector.broadcast %cst_47 : f32 to vector<16x1xf32>
    %113 = arith.divf %111, %112 : vector<16x1xf32>
    %114 = vector.broadcast %113 : vector<16x1xf32> to vector<16x32xf32>
    %115 = arith.subf %105, %114 : vector<16x32xf32>
    %116 = arith.mulf %115, %115 : vector<16x32xf32>
    %cst_48 = arith.constant dense<0.000000e+00> : vector<16xf32>
    %117 = vector.multi_reduction <add>, %116, %cst_48 [1] : vector<16x32xf32> to vector<16xf32>
    %118 = vector.shape_cast %117 : vector<16xf32> to vector<16x1xf32>
    %cst_49 = arith.constant 3.200000e+01 : f32
    %119 = vector.broadcast %cst_49 : f32 to vector<16x1xf32>
    %120 = arith.divf %118, %119 : vector<16x1xf32>
    %cst_50 = arith.constant 9.99999974E-6 : f32
    %121 = vector.broadcast %cst_50 : f32 to vector<16x1xf32>
    %122 = arith.addf %120, %121 : vector<16x1xf32>
    %123 = math.rsqrt %122 : vector<16x1xf32>
    %124 = vector.broadcast %123 : vector<16x1xf32> to vector<16x32xf32>
    %125 = arith.mulf %115, %124 : vector<16x32xf32>
    %126 = vector.broadcast %107 : vector<1x32xf32> to vector<16x32xf32>
    %127 = arith.mulf %125, %126 : vector<16x32xf32>
    %128 = vector.broadcast %109 : vector<1x32xf32> to vector<16x32xf32>
    %129 = arith.addf %127, %128 : vector<16x32xf32>
    %130 = arith.truncf %129 : vector<16x32xf32> to vector<16x32xbf16>
    %c0_51 = arith.constant 0 : index
    %c0_52 = arith.constant 0 : index
    %c0_53 = arith.constant 0 : index
    %131 = vector.load %arg9[%c0_51, %c0_52, %c0_53] : memref<1x32x32xbf16, #tpu.memory_space<vmem>>, vector<1x32x32xbf16>
    %132 = vector.shape_cast %131 : vector<1x32x32xbf16> to vector<32x32xbf16>
    %cst_54 = arith.constant dense<0.000000e+00> : vector<16x32xf32>
    %133 = tpu.matmul %130, %132, %cst_54 {dimension_numbers = #tpu.dot_dimension_numbers<[1], [0], [0], [1], [0, 0, 1, 1], [], []>} : vector<16x32xbf16>, vector<32x32xbf16>, vector<16x32xf32> -> vector<16x32xf32>
    %c0_55 = arith.constant 0 : index
    %c0_56 = arith.constant 0 : index
    %c0_57 = arith.constant 0 : index
    %134 = vector.load %arg8[%c0_55, %c0_56, %c0_57] : memref<1x1x32xf32, #tpu.memory_space<vmem>>, vector<1x1x32xf32>
    %135 = vector.shape_cast %134 : vector<1x1x32xf32> to vector<1x32xf32>
    %136 = vector.broadcast %135 : vector<1x32xf32> to vector<16x32xf32>
    %137 = arith.addf %133, %136 : vector<16x32xf32>
    %138 = arith.truncf %4 : vector<16x32xf32> to vector<16x32xbf16>
    %c0_58 = arith.constant 0 : index
    %c0_59 = arith.constant 0 : index
    %c0_60 = arith.constant 0 : index
    %139 = vector.load %arg5[%c0_58, %c0_59, %c0_60] : memref<1x32x64xbf16, #tpu.memory_space<vmem>>, vector<1x32x64xbf16>
    %140 = vector.shape_cast %139 : vector<1x32x64xbf16> to vector<32x64xbf16>
    %cst_61 = arith.constant dense<0.000000e+00> : vector<16x64xf32>
    %141 = tpu.matmul %138, %140, %cst_61 {dimension_numbers = #tpu.dot_dimension_numbers<[1], [0], [0], [1], [0, 0, 1, 1], [], []>} : vector<16x32xbf16>, vector<32x64xbf16>, vector<16x64xf32> -> vector<16x64xf32>
    %c0_62 = arith.constant 0 : index
    %c0_63 = arith.constant 0 : index
    %c0_64 = arith.constant 0 : index
    %142 = vector.load %arg4[%c0_62, %c0_63, %c0_64] : memref<1x1x64xf32, #tpu.memory_space<vmem>>, vector<1x1x64xf32>
    %143 = vector.shape_cast %142 : vector<1x1x64xf32> to vector<1x64xf32>
    %144 = vector.broadcast %143 : vector<1x64xf32> to vector<16x64xf32>
    %145 = arith.addf %141, %144 : vector<16x64xf32>
    %146 = vector.shape_cast %137 : vector<16x32xf32> to vector<2x8x32xf32>
    %147 = arith.truncf %146 : vector<2x8x32xf32> to vector<2x8x32xbf16>
    %148 = vector.shape_cast %145 : vector<16x64xf32> to vector<2x8x64xf32>
    %149 = arith.truncf %148 : vector<2x8x64xf32> to vector<2x8x64xbf16>
    %150 = vector.extract_strided_slice %149 {offsets = [0, 0, 0], sizes = [2, 8, 32], strides = [1, 1, 1]} : vector<2x8x64xbf16> to vector<2x8x32xbf16>
    %151 = vector.extract_strided_slice %149 {offsets = [0, 0, 32], sizes = [2, 8, 32], strides = [1, 1, 1]} : vector<2x8x64xbf16> to vector<2x8x32xbf16>
    %152 = vector.extract_strided_slice %147 {offsets = [0, 0, 0], sizes = [2, 8, 8], strides = [1, 1, 1]} : vector<2x8x32xbf16> to vector<2x8x8xbf16>
    %153 = vector.extract_strided_slice %150 {offsets = [0, 0, 0], sizes = [2, 8, 8], strides = [1, 1, 1]} : vector<2x8x32xbf16> to vector<2x8x8xbf16>
    %cst_65 = arith.constant dense<0.000000e+00> : vector<2x8x8xf32>
    %154 = tpu.matmul %152, %153, %cst_65 {dimension_numbers = #tpu.dot_dimension_numbers<[2], [2], [1], [1], [0, 0, 0, 1, 1, 1], [0], [0]>} : vector<2x8x8xbf16>, vector<2x8x8xbf16>, vector<2x8x8xf32> -> vector<2x8x8xf32>
    %cst_66 = arith.constant 0.353553385 : f32
    %155 = vector.broadcast %cst_66 : f32 to vector<2x8x8xf32>
    %156 = arith.mulf %154, %155 : vector<2x8x8xf32>
    %cst_67 = arith.constant dense<0xFF800000> : vector<2x8xf32>
    %157 = vector.multi_reduction <maximumf>, %156, %cst_67 [2] : vector<2x8x8xf32> to vector<2x8xf32>
    %158 = vector.shape_cast %157 : vector<2x8xf32> to vector<2x8x1xf32>
    %159 = vector.broadcast %158 : vector<2x8x1xf32> to vector<2x8x8xf32>
    %160 = arith.subf %156, %159 : vector<2x8x8xf32>
    %161 = math.exp %160 : vector<2x8x8xf32>
    %cst_68 = arith.constant dense<0.000000e+00> : vector<2x8xf32>
    %162 = vector.multi_reduction <add>, %161, %cst_68 [2] : vector<2x8x8xf32> to vector<2x8xf32>
    %163 = vector.shape_cast %162 : vector<2x8xf32> to vector<2x8x1xf32>
    %164 = tpu.reciprocal %163 {approx = true} : vector<2x8x1xf32> -> vector<2x8x1xf32>
    %165 = vector.broadcast %164 : vector<2x8x1xf32> to vector<2x8x8xf32>
    %166 = arith.mulf %161, %165 : vector<2x8x8xf32>
    %167 = arith.truncf %166 : vector<2x8x8xf32> to vector<2x8x8xbf16>
    %168 = vector.extract_strided_slice %151 {offsets = [0, 0, 0], sizes = [2, 8, 8], strides = [1, 1, 1]} : vector<2x8x32xbf16> to vector<2x8x8xbf16>
    %cst_69 = arith.constant dense<0.000000e+00> : vector<2x8x8xf32>
    %169 = tpu.matmul %167, %168, %cst_69 {dimension_numbers = #tpu.dot_dimension_numbers<[2], [1], [1], [2], [0, 0, 0, 1, 1, 2], [0], [0]>} : vector<2x8x8xbf16>, vector<2x8x8xbf16>, vector<2x8x8xf32> -> vector<2x8x8xf32>
    %170 = vector.extract_strided_slice %147 {offsets = [0, 0, 8], sizes = [2, 8, 8], strides = [1, 1, 1]} : vector<2x8x32xbf16> to vector<2x8x8xbf16>
    %171 = vector.extract_strided_slice %150 {offsets = [0, 0, 8], sizes = [2, 8, 8], strides = [1, 1, 1]} : vector<2x8x32xbf16> to vector<2x8x8xbf16>
    %cst_70 = arith.constant dense<0.000000e+00> : vector<2x8x8xf32>
    %172 = tpu.matmul %170, %171, %cst_70 {dimension_numbers = #tpu.dot_dimension_numbers<[2], [2], [1], [1], [0, 0, 0, 1, 1, 1], [0], [0]>} : vector<2x8x8xbf16>, vector<2x8x8xbf16>, vector<2x8x8xf32> -> vector<2x8x8xf32>
    %cst_71 = arith.constant 0.353553385 : f32
    %173 = vector.broadcast %cst_71 : f32 to vector<2x8x8xf32>
    %174 = arith.mulf %172, %173 : vector<2x8x8xf32>
    %cst_72 = arith.constant dense<0xFF800000> : vector<2x8xf32>
    %175 = vector.multi_reduction <maximumf>, %174, %cst_72 [2] : vector<2x8x8xf32> to vector<2x8xf32>
    %176 = vector.shape_cast %175 : vector<2x8xf32> to vector<2x8x1xf32>
    %177 = vector.broadcast %176 : vector<2x8x1xf32> to vector<2x8x8xf32>
    %178 = arith.subf %174, %177 : vector<2x8x8xf32>
    %179 = math.exp %178 : vector<2x8x8xf32>
    %cst_73 = arith.constant dense<0.000000e+00> : vector<2x8xf32>
    %180 = vector.multi_reduction <add>, %179, %cst_73 [2] : vector<2x8x8xf32> to vector<2x8xf32>
    %181 = vector.shape_cast %180 : vector<2x8xf32> to vector<2x8x1xf32>
    %182 = tpu.reciprocal %181 {approx = true} : vector<2x8x1xf32> -> vector<2x8x1xf32>
    %183 = vector.broadcast %182 : vector<2x8x1xf32> to vector<2x8x8xf32>
    %184 = arith.mulf %179, %183 : vector<2x8x8xf32>
    %185 = arith.truncf %184 : vector<2x8x8xf32> to vector<2x8x8xbf16>
    %186 = vector.extract_strided_slice %151 {offsets = [0, 0, 8], sizes = [2, 8, 8], strides = [1, 1, 1]} : vector<2x8x32xbf16> to vector<2x8x8xbf16>
    %cst_74 = arith.constant dense<0.000000e+00> : vector<2x8x8xf32>
    %187 = tpu.matmul %185, %186, %cst_74 {dimension_numbers = #tpu.dot_dimension_numbers<[2], [1], [1], [2], [0, 0, 0, 1, 1, 2], [0], [0]>} : vector<2x8x8xbf16>, vector<2x8x8xbf16>, vector<2x8x8xf32> -> vector<2x8x8xf32>
    %188 = vector.extract_strided_slice %147 {offsets = [0, 0, 16], sizes = [2, 8, 8], strides = [1, 1, 1]} : vector<2x8x32xbf16> to vector<2x8x8xbf16>
    %189 = vector.extract_strided_slice %150 {offsets = [0, 0, 16], sizes = [2, 8, 8], strides = [1, 1, 1]} : vector<2x8x32xbf16> to vector<2x8x8xbf16>
    %cst_75 = arith.constant dense<0.000000e+00> : vector<2x8x8xf32>
    %190 = tpu.matmul %188, %189, %cst_75 {dimension_numbers = #tpu.dot_dimension_numbers<[2], [2], [1], [1], [0, 0, 0, 1, 1, 1], [0], [0]>} : vector<2x8x8xbf16>, vector<2x8x8xbf16>, vector<2x8x8xf32> -> vector<2x8x8xf32>
    %cst_76 = arith.constant 0.353553385 : f32
    %191 = vector.broadcast %cst_76 : f32 to vector<2x8x8xf32>
    %192 = arith.mulf %190, %191 : vector<2x8x8xf32>
    %cst_77 = arith.constant dense<0xFF800000> : vector<2x8xf32>
    %193 = vector.multi_reduction <maximumf>, %192, %cst_77 [2] : vector<2x8x8xf32> to vector<2x8xf32>
    %194 = vector.shape_cast %193 : vector<2x8xf32> to vector<2x8x1xf32>
    %195 = vector.broadcast %194 : vector<2x8x1xf32> to vector<2x8x8xf32>
    %196 = arith.subf %192, %195 : vector<2x8x8xf32>
    %197 = math.exp %196 : vector<2x8x8xf32>
    %cst_78 = arith.constant dense<0.000000e+00> : vector<2x8xf32>
    %198 = vector.multi_reduction <add>, %197, %cst_78 [2] : vector<2x8x8xf32> to vector<2x8xf32>
    %199 = vector.shape_cast %198 : vector<2x8xf32> to vector<2x8x1xf32>
    %200 = tpu.reciprocal %199 {approx = true} : vector<2x8x1xf32> -> vector<2x8x1xf32>
    %201 = vector.broadcast %200 : vector<2x8x1xf32> to vector<2x8x8xf32>
    %202 = arith.mulf %197, %201 : vector<2x8x8xf32>
    %203 = arith.truncf %202 : vector<2x8x8xf32> to vector<2x8x8xbf16>
    %204 = vector.extract_strided_slice %151 {offsets = [0, 0, 16], sizes = [2, 8, 8], strides = [1, 1, 1]} : vector<2x8x32xbf16> to vector<2x8x8xbf16>
    %cst_79 = arith.constant dense<0.000000e+00> : vector<2x8x8xf32>
    %205 = tpu.matmul %203, %204, %cst_79 {dimension_numbers = #tpu.dot_dimension_numbers<[2], [1], [1], [2], [0, 0, 0, 1, 1, 2], [0], [0]>} : vector<2x8x8xbf16>, vector<2x8x8xbf16>, vector<2x8x8xf32> -> vector<2x8x8xf32>
    %206 = vector.extract_strided_slice %147 {offsets = [0, 0, 24], sizes = [2, 8, 8], strides = [1, 1, 1]} : vector<2x8x32xbf16> to vector<2x8x8xbf16>
    %207 = vector.extract_strided_slice %150 {offsets = [0, 0, 24], sizes = [2, 8, 8], strides = [1, 1, 1]} : vector<2x8x32xbf16> to vector<2x8x8xbf16>
    %cst_80 = arith.constant dense<0.000000e+00> : vector<2x8x8xf32>
    %208 = tpu.matmul %206, %207, %cst_80 {dimension_numbers = #tpu.dot_dimension_numbers<[2], [2], [1], [1], [0, 0, 0, 1, 1, 1], [0], [0]>} : vector<2x8x8xbf16>, vector<2x8x8xbf16>, vector<2x8x8xf32> -> vector<2x8x8xf32>
    %cst_81 = arith.constant 0.353553385 : f32
    %209 = vector.broadcast %cst_81 : f32 to vector<2x8x8xf32>
    %210 = arith.mulf %208, %209 : vector<2x8x8xf32>
    %cst_82 = arith.constant dense<0xFF800000> : vector<2x8xf32>
    %211 = vector.multi_reduction <maximumf>, %210, %cst_82 [2] : vector<2x8x8xf32> to vector<2x8xf32>
    %212 = vector.shape_cast %211 : vector<2x8xf32> to vector<2x8x1xf32>
    %213 = vector.broadcast %212 : vector<2x8x1xf32> to vector<2x8x8xf32>
    %214 = arith.subf %210, %213 : vector<2x8x8xf32>
    %215 = math.exp %214 : vector<2x8x8xf32>
    %cst_83 = arith.constant dense<0.000000e+00> : vector<2x8xf32>
    %216 = vector.multi_reduction <add>, %215, %cst_83 [2] : vector<2x8x8xf32> to vector<2x8xf32>
    %217 = vector.shape_cast %216 : vector<2x8xf32> to vector<2x8x1xf32>
    %218 = tpu.reciprocal %217 {approx = true} : vector<2x8x1xf32> -> vector<2x8x1xf32>
    %219 = vector.broadcast %218 : vector<2x8x1xf32> to vector<2x8x8xf32>
    %220 = arith.mulf %215, %219 : vector<2x8x8xf32>
    %221 = arith.truncf %220 : vector<2x8x8xf32> to vector<2x8x8xbf16>
    %222 = vector.extract_strided_slice %151 {offsets = [0, 0, 24], sizes = [2, 8, 8], strides = [1, 1, 1]} : vector<2x8x32xbf16> to vector<2x8x8xbf16>
    %cst_84 = arith.constant dense<0.000000e+00> : vector<2x8x8xf32>
    %223 = tpu.matmul %221, %222, %cst_84 {dimension_numbers = #tpu.dot_dimension_numbers<[2], [1], [1], [2], [0, 0, 0, 1, 1, 2], [0], [0]>} : vector<2x8x8xbf16>, vector<2x8x8xbf16>, vector<2x8x8xf32> -> vector<2x8x8xf32>
    %224 = tpu.concatenate %169, %187, %205, %223 in 2 : vector<2x8x8xf32>, vector<2x8x8xf32>, vector<2x8x8xf32>, vector<2x8x8xf32> -> vector<2x8x32xf32>
    %225 = vector.shape_cast %224 : vector<2x8x32xf32> to vector<16x32xf32>
    %226 = arith.truncf %225 : vector<16x32xf32> to vector<16x32xbf16>
    %c0_85 = arith.constant 0 : index
    %c0_86 = arith.constant 0 : index
    %c0_87 = arith.constant 0 : index
    %227 = vector.load %arg7[%c0_85, %c0_86, %c0_87] : memref<1x32x32xbf16, #tpu.memory_space<vmem>>, vector<1x32x32xbf16>
    %228 = vector.shape_cast %227 : vector<1x32x32xbf16> to vector<32x32xbf16>
    %cst_88 = arith.constant dense<0.000000e+00> : vector<16x32xf32>
    %229 = tpu.matmul %226, %228, %cst_88 {dimension_numbers = #tpu.dot_dimension_numbers<[1], [0], [0], [1], [0, 0, 1, 1], [], []>} : vector<16x32xbf16>, vector<32x32xbf16>, vector<16x32xf32> -> vector<16x32xf32>
    %c0_89 = arith.constant 0 : index
    %c0_90 = arith.constant 0 : index
    %c0_91 = arith.constant 0 : index
    %230 = vector.load %arg6[%c0_89, %c0_90, %c0_91] : memref<1x1x32xf32, #tpu.memory_space<vmem>>, vector<1x1x32xf32>
    %231 = vector.shape_cast %230 : vector<1x1x32xf32> to vector<1x32xf32>
    %232 = vector.broadcast %231 : vector<1x32xf32> to vector<16x32xf32>
    %233 = arith.addf %229, %232 : vector<16x32xf32>
    %234 = arith.addf %129, %233 : vector<16x32xf32>
    %c0_92 = arith.constant 0 : index
    %c0_93 = arith.constant 0 : index
    %c0_94 = arith.constant 0 : index
    %235 = vector.load %arg17[%c0_92, %c0_93, %c0_94] : memref<1x1x32xf32, #tpu.memory_space<vmem>>, vector<1x1x32xf32>
    %236 = vector.shape_cast %235 : vector<1x1x32xf32> to vector<1x32xf32>
    %c0_95 = arith.constant 0 : index
    %c0_96 = arith.constant 0 : index
    %c0_97 = arith.constant 0 : index
    %237 = vector.load %arg16[%c0_95, %c0_96, %c0_97] : memref<1x1x32xf32, #tpu.memory_space<vmem>>, vector<1x1x32xf32>
    %238 = vector.shape_cast %237 : vector<1x1x32xf32> to vector<1x32xf32>
    %cst_98 = arith.constant dense<0.000000e+00> : vector<16xf32>
    %239 = vector.multi_reduction <add>, %234, %cst_98 [1] : vector<16x32xf32> to vector<16xf32>
    %240 = vector.shape_cast %239 : vector<16xf32> to vector<16x1xf32>
    %cst_99 = arith.constant 3.200000e+01 : f32
    %241 = vector.broadcast %cst_99 : f32 to vector<16x1xf32>
    %242 = arith.divf %240, %241 : vector<16x1xf32>
    %243 = vector.broadcast %242 : vector<16x1xf32> to vector<16x32xf32>
    %244 = arith.subf %234, %243 : vector<16x32xf32>
    %245 = arith.mulf %244, %244 : vector<16x32xf32>
    %cst_100 = arith.constant dense<0.000000e+00> : vector<16xf32>
    %246 = vector.multi_reduction <add>, %245, %cst_100 [1] : vector<16x32xf32> to vector<16xf32>
    %247 = vector.shape_cast %246 : vector<16xf32> to vector<16x1xf32>
    %cst_101 = arith.constant 3.200000e+01 : f32
    %248 = vector.broadcast %cst_101 : f32 to vector<16x1xf32>
    %249 = arith.divf %247, %248 : vector<16x1xf32>
    %cst_102 = arith.constant 9.99999974E-6 : f32
    %250 = vector.broadcast %cst_102 : f32 to vector<16x1xf32>
    %251 = arith.addf %249, %250 : vector<16x1xf32>
    %252 = math.rsqrt %251 : vector<16x1xf32>
    %253 = vector.broadcast %252 : vector<16x1xf32> to vector<16x32xf32>
    %254 = arith.mulf %244, %253 : vector<16x32xf32>
    %255 = vector.broadcast %236 : vector<1x32xf32> to vector<16x32xf32>
    %256 = arith.mulf %254, %255 : vector<16x32xf32>
    %257 = vector.broadcast %238 : vector<1x32xf32> to vector<16x32xf32>
    %258 = arith.addf %256, %257 : vector<16x32xf32>
    %259 = arith.truncf %258 : vector<16x32xf32> to vector<16x32xbf16>
    %c0_103 = arith.constant 0 : index
    %c0_104 = arith.constant 0 : index
    %c0_105 = arith.constant 0 : index
    %260 = vector.load %arg11[%c0_103, %c0_104, %c0_105] : memref<1x32x128xbf16, #tpu.memory_space<vmem>>, vector<1x32x128xbf16>
    %261 = vector.shape_cast %260 : vector<1x32x128xbf16> to vector<32x128xbf16>
    %cst_106 = arith.constant dense<0.000000e+00> : vector<16x128xf32>
    %262 = tpu.matmul %259, %261, %cst_106 {dimension_numbers = #tpu.dot_dimension_numbers<[1], [0], [0], [1], [0, 0, 1, 1], [], []>} : vector<16x32xbf16>, vector<32x128xbf16>, vector<16x128xf32> -> vector<16x128xf32>
    %c0_107 = arith.constant 0 : index
    %c0_108 = arith.constant 0 : index
    %c0_109 = arith.constant 0 : index
    %263 = vector.load %arg10[%c0_107, %c0_108, %c0_109] : memref<1x1x128xf32, #tpu.memory_space<vmem>>, vector<1x1x128xf32>
    %264 = vector.shape_cast %263 : vector<1x1x128xf32> to vector<1x128xf32>
    %265 = vector.broadcast %264 : vector<1x128xf32> to vector<16x128xf32>
    %266 = arith.addf %262, %265 : vector<16x128xf32>
    %cst_110 = arith.constant 0.000000e+00 : f32
    %267 = vector.broadcast %cst_110 : f32 to vector<16x128xf32>
    %268 = arith.maximumf %266, %267 : vector<16x128xf32>
    %269 = arith.truncf %268 : vector<16x128xf32> to vector<16x128xbf16>
    %c0_111 = arith.constant 0 : index
    %c0_112 = arith.constant 0 : index
    %c0_113 = arith.constant 0 : index
    %270 = vector.load %arg13[%c0_111, %c0_112, %c0_113] : memref<1x128x32xbf16, #tpu.memory_space<vmem>>, vector<1x128x32xbf16>
    %271 = vector.shape_cast %270 : vector<1x128x32xbf16> to vector<128x32xbf16>
    %cst_114 = arith.constant dense<0.000000e+00> : vector<16x32xf32>
    %272 = tpu.matmul %269, %271, %cst_114 {dimension_numbers = #tpu.dot_dimension_numbers<[1], [0], [0], [1], [0, 0, 1, 1], [], []>} : vector<16x128xbf16>, vector<128x32xbf16>, vector<16x32xf32> -> vector<16x32xf32>
    %c0_115 = arith.constant 0 : index
    %c0_116 = arith.constant 0 : index
    %c0_117 = arith.constant 0 : index
    %273 = vector.load %arg12[%c0_115, %c0_116, %c0_117] : memref<1x1x32xf32, #tpu.memory_space<vmem>>, vector<1x1x32xf32>
    %274 = vector.shape_cast %273 : vector<1x1x32xf32> to vector<1x32xf32>
    %275 = vector.broadcast %274 : vector<1x32xf32> to vector<16x32xf32>
    %276 = arith.addf %272, %275 : vector<16x32xf32>
    %277 = arith.addf %258, %276 : vector<16x32xf32>
    %c0_118 = arith.constant 0 : index
    %c0_119 = arith.constant 0 : index
    %c0_120 = arith.constant 0 : index
    %278 = vector.load %arg19[%c0_118, %c0_119, %c0_120] : memref<1x1x32xf32, #tpu.memory_space<vmem>>, vector<1x1x32xf32>
    %279 = vector.shape_cast %278 : vector<1x1x32xf32> to vector<1x32xf32>
    %c0_121 = arith.constant 0 : index
    %c0_122 = arith.constant 0 : index
    %c0_123 = arith.constant 0 : index
    %280 = vector.load %arg18[%c0_121, %c0_122, %c0_123] : memref<1x1x32xf32, #tpu.memory_space<vmem>>, vector<1x1x32xf32>
    %281 = vector.shape_cast %280 : vector<1x1x32xf32> to vector<1x32xf32>
    %cst_124 = arith.constant dense<0.000000e+00> : vector<16xf32>
    %282 = vector.multi_reduction <add>, %277, %cst_124 [1] : vector<16x32xf32> to vector<16xf32>
    %283 = vector.shape_cast %282 : vector<16xf32> to vector<16x1xf32>
    %cst_125 = arith.constant 3.200000e+01 : f32
    %284 = vector.broadcast %cst_125 : f32 to vector<16x1xf32>
    %285 = arith.divf %283, %284 : vector<16x1xf32>
    %286 = vector.broadcast %285 : vector<16x1xf32> to vector<16x32xf32>
    %287 = arith.subf %277, %286 : vector<16x32xf32>
    %288 = arith.mulf %287, %287 : vector<16x32xf32>
    %cst_126 = arith.constant dense<0.000000e+00> : vector<16xf32>
    %289 = vector.multi_reduction <add>, %288, %cst_126 [1] : vector<16x32xf32> to vector<16xf32>
    %290 = vector.shape_cast %289 : vector<16xf32> to vector<16x1xf32>
    %cst_127 = arith.constant 3.200000e+01 : f32
    %291 = vector.broadcast %cst_127 : f32 to vector<16x1xf32>
    %292 = arith.divf %290, %291 : vector<16x1xf32>
    %cst_128 = arith.constant 9.99999974E-6 : f32
    %293 = vector.broadcast %cst_128 : f32 to vector<16x1xf32>
    %294 = arith.addf %292, %293 : vector<16x1xf32>
    %295 = math.rsqrt %294 : vector<16x1xf32>
    %296 = vector.broadcast %295 : vector<16x1xf32> to vector<16x32xf32>
    %297 = arith.mulf %287, %296 : vector<16x32xf32>
    %298 = vector.broadcast %279 : vector<1x32xf32> to vector<16x32xf32>
    %299 = arith.mulf %297, %298 : vector<16x32xf32>
    %300 = vector.broadcast %281 : vector<1x32xf32> to vector<16x32xf32>
    %301 = arith.addf %299, %300 : vector<16x32xf32>
    %c0_129 = arith.constant 0 : index
    %c0_130 = arith.constant 0 : index
    %302 = vector.load %arg24[%c0_129, %c0_130] : memref<16x32xf32, #tpu.memory_space<vmem>>, vector<16x32xf32>
    tpu.vector_store %arg24[%c0_129, %c0_130], %301 {strides = array<i32>} : memref<16x32xf32, #tpu.memory_space<vmem>>, vector<16x32xf32>,
    return
  }
  func.func @transform_0(%arg0: i32) -> (i32, i32) {
    %c0_i32 = arith.constant 0 : i32
    %c0_i32_0 = arith.constant 0 : i32
    %c0_i32_1 = arith.constant 0 : i32
    return %c0_i32, %c0_i32_0 : i32, i32
  }
  func.func @transform_1(%arg0: i32) -> (i32, i32) {
    %c0_i32 = arith.constant 0 : i32
    %c0_i32_0 = arith.constant 0 : i32
    %c0_i32_1 = arith.constant 0 : i32
    return %c0_i32, %c0_i32_0 : i32, i32
  }
  func.func @transform_2(%arg0: i32) -> (i32, i32, i32) {
    %c0_i32 = arith.constant 0 : i32
    %c0_i32_0 = arith.constant 0 : i32
    %c0_i32_1 = arith.constant 0 : i32
    %c0_i32_2 = arith.constant 0 : i32
    return %c0_i32, %c0_i32_0, %c0_i32_1 : i32, i32, i32
  }
  func.func @transform_3(%arg0: i32) -> (i32, i32, i32) {
    %c0_i32 = arith.constant 0 : i32
    %c0_i32_0 = arith.constant 0 : i32
    %c0_i32_1 = arith.constant 0 : i32
    return %arg0, %c0_i32, %c0_i32_0 : i32, i32, i32
  }
  func.func @transform_4(%arg0: i32) -> (i32, i32, i32) {
    %c0_i32 = arith.constant 0 : i32
    %c0_i32_0 = arith.constant 0 : i32
    %c0_i32_1 = arith.constant 0 : i32
    return %arg0, %c0_i32, %c0_i32_0 : i32, i32, i32
  }
  func.func @transform_5(%arg0: i32) -> (i32, i32, i32) {
    %c0_i32 = arith.constant 0 : i32
    %c0_i32_0 = arith.constant 0 : i32
    %c0_i32_1 = arith.constant 0 : i32
    return %arg0, %c0_i32, %c0_i32_0 : i32, i32, i32
  }
  func.func @transform_6(%arg0: i32) -> (i32, i32, i32) {
    %c0_i32 = arith.constant 0 : i32
    %c0_i32_0 = arith.constant 0 : i32
    %c0_i32_1 = arith.constant 0 : i32
    return %arg0, %c0_i32, %c0_i32_0 : i32, i32, i32
  }
  func.func @transform_7(%arg0: i32) -> (i32, i32, i32) {
    %c0_i32 = arith.constant 0 : i32
    %c0_i32_0 = arith.constant 0 : i32
    %c0_i32_1 = arith.constant 0 : i32
    return %arg0, %c0_i32, %c0_i32_0 : i32, i32, i32
  }
  func.func @transform_8(%arg0: i32) -> (i32, i32, i32) {
    %c0_i32 = arith.constant 0 : i32
    %c0_i32_0 = arith.constant 0 : i32
    %c0_i32_1 = arith.constant 0 : i32
    return %arg0, %c0_i32, %c0_i32_0 : i32, i32, i32
  }
  func.func @transform_9(%arg0: i32) -> (i32, i32, i32) {
    %c0_i32 = arith.constant 0 : i32
    %c0_i32_0 = arith.constant 0 : i32
    %c0_i32_1 = arith.constant 0 : i32
    return %arg0, %c0_i32, %c0_i32_0 : i32, i32, i32
  }
  func.func @transform_10(%arg0: i32) -> (i32, i32, i32) {
    %c0_i32 = arith.constant 0 : i32
    %c0_i32_0 = arith.constant 0 : i32
    %c0_i32_1 = arith.constant 0 : i32
    return %arg0, %c0_i32, %c0_i32_0 : i32, i32, i32
  }
  func.func @transform_11(%arg0: i32) -> (i32, i32, i32) {
    %c0_i32 = arith.constant 0 : i32
    %c0_i32_0 = arith.constant 0 : i32
    %c0_i32_1 = arith.constant 0 : i32
    return %arg0, %c0_i32, %c0_i32_0 : i32, i32, i32
  }
  func.func @transform_12(%arg0: i32) -> (i32, i32, i32) {
    %c0_i32 = arith.constant 0 : i32
    %c0_i32_0 = arith.constant 0 : i32
    %c0_i32_1 = arith.constant 0 : i32
    return %arg0, %c0_i32, %c0_i32_0 : i32, i32, i32
  }
  func.func @transform_13(%arg0: i32) -> (i32, i32, i32) {
    %c0_i32 = arith.constant 0 : i32
    %c0_i32_0 = arith.constant 0 : i32
    %c0_i32_1 = arith.constant 0 : i32
    return %arg0, %c0_i32, %c0_i32_0 : i32, i32, i32
  }
  func.func @transform_14(%arg0: i32) -> (i32, i32, i32) {
    %c0_i32 = arith.constant 0 : i32
    %c0_i32_0 = arith.constant 0 : i32
    %c0_i32_1 = arith.constant 0 : i32
    return %arg0, %c0_i32, %c0_i32_0 : i32, i32, i32
  }
  func.func @transform_15(%arg0: i32) -> (i32, i32, i32) {
    %c0_i32 = arith.constant 0 : i32
    %c0_i32_0 = arith.constant 0 : i32
    %c0_i32_1 = arith.constant 0 : i32
    return %arg0, %c0_i32, %c0_i32_0 : i32, i32, i32
  }
  func.func @transform_16(%arg0: i32) -> (i32, i32, i32) {
    %c0_i32 = arith.constant 0 : i32
    %c0_i32_0 = arith.constant 0 : i32
    %c0_i32_1 = arith.constant 0 : i32
    return %arg0, %c0_i32, %c0_i32_0 : i32, i32, i32
  }
  func.func @transform_17(%arg0: i32) -> (i32, i32, i32) {
    %c0_i32 = arith.constant 0 : i32
    %c0_i32_0 = arith.constant 0 : i32
    %c0_i32_1 = arith.constant 0 : i32
    return %arg0, %c0_i32, %c0_i32_0 : i32, i32, i32
  }
  func.func @transform_18(%arg0: i32) -> (i32, i32, i32) {
    %c0_i32 = arith.constant 0 : i32
    %c0_i32_0 = arith.constant 0 : i32
    %c0_i32_1 = arith.constant 0 : i32
    return %arg0, %c0_i32, %c0_i32_0 : i32, i32, i32
  }
  func.func @transform_19(%arg0: i32) -> (i32, i32, i32) {
    %c0_i32 = arith.constant 0 : i32
    %c0_i32_0 = arith.constant 0 : i32
    %c0_i32_1 = arith.constant 0 : i32
    return %arg0, %c0_i32, %c0_i32_0 : i32, i32, i32
  }
  func.func @transform_20(%arg0: i32) -> (i32, i32, i32) {
    %c0_i32 = arith.constant 0 : i32
    %c0_i32_0 = arith.constant 0 : i32
    %c0_i32_1 = arith.constant 0 : i32
    return %arg0, %c0_i32, %c0_i32_0 : i32, i32, i32
  }
  func.func @transform_21(%arg0: i32) -> (i32, i32, i32) {
    %c0_i32 = arith.constant 0 : i32
    %c0_i32_0 = arith.constant 0 : i32
    %c0_i32_1 = arith.constant 0 : i32
    return %arg0, %c0_i32, %c0_i32_0 : i32, i32, i32
  }
  func.func @transform_22(%arg0: i32) -> (i32, i32, i32) {
    %c0_i32 = arith.constant 0 : i32
    %c0_i32_0 = arith.constant 0 : i32
    %c0_i32_1 = arith.constant 0 : i32
    return %arg0, %c0_i32, %c0_i32_0 : i32, i32, i32
  }
  func.func @transform_23(%arg0: i32) -> (i32, i32) {
    %c0_i32 = arith.constant 0 : i32
    %c0_i32_0 = arith.constant 0 : i32
    %c0_i32_1 = arith.constant 0 : i32
    return %c0_i32, %c0_i32_0 : i32, i32
  }
}

</mosaic_0001>

<bundles_post_ra>
// kernel: _lambda_.7
= control target key start
LH: loop header
LB: loop body
LE: loop exit
PB: predicated region body
PF: predicated region fallthrough
CT: control target
= control target key end

     0   :  { %8 = vsyncpa [#allocation3], 0  ;;  %s352_s0 = inlined_call_operand.hbm [shape: f32[16,32], index: 0, kind: input, shape index: {}]   ;;  %s353_s1 = inlined_call_operand.hbm [shape: bf16[32,16], index: 1, kind: input, shape index: {}]   ;;  %s354_s2 = inlined_call_operand.hbm [shape: f32[1,16], index: 2, kind: input, shape index: {}]   ;;  %s355_s3 = inlined_call_operand.hbm [shape: f32[16,16], index: 3, kind: output, shape index: {}]  }
   0x1   :  { %9 = vsyncpa [#allocation6], 0 }
   0x2   :  { %10 = vsyncpa [#allocation4], 0  ;;  %s268_s12 = smov [#allocation5]   ;;  %s174_s16 = scalar_lea.hbm %s353_s1, 256 }
   0x3   :  { %s28_s13 = sshll.u32 %s268_s12, 4  ;;  %p175_p0 = scmp.ne.s32.totalorder %s353_s1, %s174_s16  ;;  %s29_s13 = int_to_ptr.vmem [resolvable:$true] %s28_s13 }
   0x4   :  { %p178_p1 = scmp.lt.u32.totalorder %s174_s16, %s353_s1 }
   0x6   :  { %p180_p2 = pnand %p178_p1, %p175_p0 }
   0x8   :  { %183 = shalt.err (!%p180_p2)
}
   0x9   :  { %s184_s21 = scalar_lea.vmem %s29_s13, 256  ;;  %p189_p4 = scmp.lt.s32.totalorder %s29_s13, %s29_s13 }
   0xa   :  { %p185_p3 = scmp.ne.s32.totalorder %s29_s13, %s184_s21  ;;  %p190_p5 = scmp.lt.s32.totalorder %s184_s21, %s184_s21 }
   0xc   :  { %p191_p6 = por %p190_p5, %p189_p4 }
   0xe   :  { %p192_p7 = pnand %p191_p6, %p185_p3 }
  0x10   :  { %195 = shalt.err (!%p192_p7)
}
  0x11   :  { %s269_s22 = smov 64   ;;  %s270_s23 = smov 4  }
  0x12   :  { %34 = dma.hbm_to_vmem [thread:$0]  %s353_s1, 256, %s29_s13, [#allocation6], %s269_s22, %s269_s22, %s270_s23  }
  0x13   :  { %s271_s26 = smov [#allocation2]   ;;  %s196_s30 = scalar_lea.hbm %s352_s0, 256 }
  0x14   :  { %s16_s27 = sshll.u32 %s271_s26, 4  ;;  %p197_p8 = scmp.ne.s32.totalorder %s352_s0, %s196_s30  ;;  %s17_s27 = int_to_ptr.vmem [resolvable:$true] %s16_s27 }
  0x15   :  { %p200_p9 = scmp.lt.u32.totalorder %s196_s30, %s352_s0 }
  0x17   :  { %p202_p10 = pnand %p200_p9, %p197_p8 }
  0x19   :  { %205 = shalt.err (!%p202_p10)
}
  0x1a   :  { %s206_s8 = scalar_lea.vmem %s17_s27, 256  ;;  %p211_p12 = scmp.lt.s32.totalorder %s17_s27, %s17_s27 }
  0x1b   :  { %p207_p11 = scmp.ne.s32.totalorder %s17_s27, %s206_s8  ;;  %p212_p13 = scmp.lt.s32.totalorder %s206_s8, %s206_s8 }
  0x1d   :  { %p213_p0 = por %p212_p13, %p211_p12 }
  0x1f   :  { %p214_p1 = pnand %p213_p0, %p207_p11 }
  0x21   :  { %217 = shalt.err (!%p214_p1)
}
  0x22   :  { %s272_s1 = smov 128   ;;  %s273_s9 = smov 8  }
  0x23   :  { %22 = dma.hbm_to_vmem [thread:$0]  %s352_s0, 256, %s17_s27, [#allocation3], %s272_s1, %s272_s1, %s273_s9  }
  0x24   :  { %s274_s12 = smov [#allocation7]   ;;  %s218_s16 = scalar_lea.hbm %s354_s2, 16 }
  0x25   :  { %s41_s13 = sshll.u32 %s274_s12, 4  ;;  %p219_p2 = scmp.ne.s32.totalorder %s354_s2, %s218_s16  ;;  %s42_s13 = int_to_ptr.vmem [resolvable:$true] %s41_s13 }
  0x26   :  { %p222_p3 = scmp.lt.u32.totalorder %s218_s16, %s354_s2 }
  0x28   :  { %p224_p4 = pnand %p222_p3, %p219_p2 }
  0x2a   :  { %227 = shalt.err (!%p224_p4)
}
  0x2b   :  { %s228_s21 = scalar_lea.vmem %s42_s13, 16  ;;  %s232_s0 = scalar_lea.vmem %s42_s13, 32 }
  0x2c   :  { %p229_p5 = scmp.ne.s32.totalorder %s42_s13, %s228_s21  ;;  %p233_p6 = scmp.lt.s32.totalorder %s42_s13, %s42_s13 }
  0x2d   :  { %p234_p7 = scmp.lt.s32.totalorder %s232_s0, %s228_s21 }
  0x2f   :  { %p235_p8 = por %p234_p7, %p233_p6 }
  0x31   :  { %p236_p9 = pnand %p235_p8, %p229_p5 }
  0x33   :  { %239 = shalt.err (!%p236_p9)
}
  0x34   :  { %44 = dma.hbm_to_vmem [thread:$0]  %s354_s2, 16, %s42_s13, [#allocation6]  }
  0x35   :  { %262 = dma.done.wait [#allocation3], 256  }
  0x36   :  { %263 = vsyncadd [#allocation3], 4294967040 }
  0x37   :  { %264 = dma.done.wait [#allocation6], 272  }
  0x38   :  { %265 = vsyncadd [#allocation6], 4294967024  ;;  %v275_v0 = vmov 0.0   ;;  %vm276_vm0 = vmmov 0   ;;  %v172_v1 = vld [vmem:[#allocation5] sm:$0xff]   ;;  %v173_v2 = vld [vmem:[#allocation5 + $0x8] sm:$0xff]  }
  0x39   :  { %154 = vmatprep.subr.bf16.mxu0 %v275_v0  ;;  %158 = vmatprep.mubr.msk.bf16.mxu0 %vm276_vm0, %v275_v0  ;;  %v55_v3 = vld [vmem:[#allocation2] sm:$0xff]  ;;  %v56_v4 = vld [vmem:[#allocation2 + $0x8] sm:$0xff]  ;;  %vm81_vm1 = vcmask 261120   ;;  %vm126_vm2 = vcmask 130048   ;;  %s277_s2 = smov [#allocation8]  }
  0x3a   :  { %155 = vmatpush3.bf16.msra.mxu0 %v172_v1  ;;  %v57_v5 = vpack.c.bf16 %v56_v4, %v55_v3  ;;  %v147_v6 = vld [vmem:[#allocation7] ss:$0 sm:$0xff]  ;;  %s134_s24 = sshll.u32 %s277_s2, 4  ;;  %s135_s24 = int_to_ptr.vmem [resolvable:$true] %s134_s24 }
  0x3b   :  { %156 = vmatprep.subr.bf16.mxu0 %v275_v0  ;;  %s240_s25 = scalar_lea.vmem %s135_s24, 256  ;;  %p245_p11 = scmp.lt.s32.totalorder %s135_s24, %s135_s24 }
  0x3c   :  { %p241_p10 = scmp.ne.s32.totalorder %s135_s24, %s240_s25  ;;  %p246_p12 = scmp.lt.s32.totalorder %s240_s25, %s240_s25 }
  0x3e   :  { %157 = vmatpush3.bf16.msra.mxu0 %v173_v2  ;;  %p247_p13 = por %p246_p12, %p245_p11 }
  0x40   :  { %p248_p0 = pnand %p247_p13, %p241_p10 }
  0x41   :  { %159 = vmatmul.mubr.msk.bf16.vlgmr.msra.gmra.mrb[0].mxu0 %vm81_vm1, %v57_v5 }
 0x114   :  { %v119_v7 = vpop.f32.mrb[0].mxu0 }
 0x115   :  { %v120_v8 = vadd.f32 %v147_v6, %v119_v7  ;;  %v160_v9 = vpop.f32.mrb[1].mxu0 }
 0x116   :  { %v122_v10 = vpop.f32.mrb[2].mxu0 }
 0x117   :  { %v123_v11 = vadd.f32 %v147_v6, %v122_v10  ;;  %v161_v12 = vpop.f32.mrb[3].mxu0  ;;  %127 = vst.msk [vmem:[#allocation8] sm:$0xff] %vm126_vm2, %v120_v8 }
 0x119   :  { %128 = vst.msk [vmem:[#allocation8 + $0x8] sm:$0xff] %vm126_vm2, %v123_v11 }
 0x11a   :  { %251 = shalt.err (!%p248_p0)
}
 0x11b   :  { %s252_s28 = scalar_lea.hbm %s355_s3, 256 }
 0x11c   :  { %p253_p1 = scmp.ne.s32.totalorder %s355_s3, %s252_s28  ;;  %p256_p2 = scmp.lt.u32.totalorder %s252_s28, %s355_s3 }
 0x11e   :  { %p258_p3 = pnand %p256_p2, %p253_p1 }
 0x120   :  { %261 = shalt.err (!%p258_p3)
}
 0x121   :  { %140 = dma.vmem_to_hbm [thread:$0]  %s135_s24, 256, %s355_s3, [#allocation4], %s272_s1, %s272_s1, %s273_s9  }
 0x122   :  { %266 = dma.done.wait [#allocation4], 256  }
 0x123   :  { %267 = vsyncadd [#allocation4], 4294967040 }
 0x124   :  { %144 = vsyncpa [#allocation3], 1 }
 0x125   :  { %145 = vsyncpa [#allocation6], 1 }
 0x126   :  { %146 = vsyncpa [#allocation4], 1 }

// kernel: _lambda_.5
= control target key start
LH: loop header
LB: loop body
LE: loop exit
PB: predicated region body
PF: predicated region fallthrough
CT: control target
= control target key end

     0   :  { %12 = vsyncpa [#allocation3], 0  ;;  %s984_s0 = inlined_call_operand.hbm [shape: f32[2,256], index: 0, kind: input, shape index: {}]   ;;  %s985_s1 = inlined_call_operand.hbm [shape: bf16[256,64], index: 1, kind: input, shape index: {}]   ;;  %s986_s2 = inlined_call_operand.hbm [shape: f32[1,64], index: 2, kind: input, shape index: {}]   ;;  %s987_s3 = inlined_call_operand.hbm [shape: bf16[64,64], index: 3, kind: input, shape index: {}]   ;;  %s988_s4 = inlined_call_operand.hbm [shape: f32[1,64], index: 4, kind: input, shape index: {}]   ;;  %s989_s5 = inlined_call_operand.hbm [shape: bf16[64,256], index: 5, kind: input, shape index: {}]   ;;  %s990_s6 = inlined_call_operand.hbm [shape: f32[1,256], index: 6, kind: input, shape index: {}]   ;;  %s991_s7 = inlined_call_operand.hbm [shape: f32[2,256], index: 7, kind: output, shape index: {}]  }
   0x1   :  { %13 = vsyncpa [#allocation6], 0 }
   0x2   :  { %14 = vsyncpa [#allocation9], 0 }
   0x3   :  { %15 = vsyncpa [#allocation12], 0 }
   0x4   :  { %16 = vsyncpa [#allocation4], 0  ;;  %s831_s24 = smov [#allocation5]   ;;  %s645_s28 = scalar_lea.hbm %s985_s1, 2048 }
   0x5   :  { %s32_s25 = sshll.u32 %s831_s24, 4  ;;  %p646_p0 = scmp.ne.s32.totalorder %s985_s1, %s645_s28  ;;  %s33_s25 = int_to_ptr.vmem [resolvable:$true] %s32_s25 }
   0x6   :  { %p649_p1 = scmp.lt.u32.totalorder %s645_s28, %s985_s1 }
   0x8   :  { %p651_p2 = pnand %p649_p1, %p646_p0 }
   0xa   :  { %654 = shalt.err (!%p651_p2)
}
   0xb   :  { %s655_s10 = scalar_lea.vmem %s33_s25, 2048  ;;  %p660_p4 = scmp.lt.s32.totalorder %s33_s25, %s33_s25 }
   0xc   :  { %p656_p3 = scmp.ne.s32.totalorder %s33_s25, %s655_s10  ;;  %p661_p5 = scmp.lt.s32.totalorder %s655_s10, %s655_s10 }
   0xe   :  { %p662_p6 = por %p661_p5, %p660_p4 }
  0x10   :  { %p663_p7 = pnand %p662_p6, %p656_p3 }
  0x12   :  { %666 = shalt.err (!%p663_p7)
}
  0x13   :  { %s832_s11 = smov 64   ;;  %s833_s12 = smov 4  }
  0x14   :  { %38 = dma.hbm_to_vmem [thread:$0]  %s985_s1, 2048, %s33_s25, [#allocation6], %s832_s11, %s832_s11, %s833_s12  }
  0x15   :  { %s834_s15 = smov [#allocation8]   ;;  %s835_s17 = smov [#allocation11]  }
  0x16   :  { %s54_s16 = sshll.u32 %s834_s15, 4  ;;  %s76_s18 = sshll.u32 %s835_s17, 4  ;;  %s55_s16 = int_to_ptr.vmem [resolvable:$true] %s54_s16  ;;  %s77_s18 = int_to_ptr.vmem [resolvable:$true] %s76_s18 }
  0x17   :  { %s667_s21 = scalar_lea.hbm %s987_s3, 512 }
  0x18   :  { %p668_p8 = scmp.ne.s32.totalorder %s987_s3, %s667_s21  ;;  %p671_p9 = scmp.lt.u32.totalorder %s667_s21, %s987_s3 }
  0x1a   :  { %p673_p10 = pnand %p671_p9, %p668_p8 }
  0x1c   :  { %676 = shalt.err (!%p673_p10)
}
  0x1d   :  { %s677_s1 = scalar_lea.vmem %s55_s16, 512  ;;  %p682_p12 = scmp.lt.s32.totalorder %s55_s16, %s55_s16 }
  0x1e   :  { %p678_p11 = scmp.ne.s32.totalorder %s55_s16, %s677_s1  ;;  %p683_p13 = scmp.lt.s32.totalorder %s677_s1, %s677_s1 }
  0x20   :  { %p684_p0 = por %p683_p13, %p682_p12 }
  0x22   :  { %p685_p1 = pnand %p684_p0, %p678_p11 }
  0x24   :  { %688 = shalt.err (!%p685_p1)
}
  0x25   :  { %60 = dma.hbm_to_vmem [thread:$0]  %s987_s3, 512, %s55_s16, [#allocation9], %s832_s11, %s832_s11, %s833_s12  }
  0x26   :  { %s689_s30 = scalar_lea.hbm %s989_s5, 1024 }
  0x27   :  { %p690_p2 = scmp.ne.s32.totalorder %s989_s5, %s689_s30  ;;  %p693_p3 = scmp.lt.u32.totalorder %s689_s30, %s989_s5 }
  0x29   :  { %p695_p4 = pnand %p693_p3, %p690_p2 }
  0x2b   :  { %698 = shalt.err (!%p695_p4)
}
  0x2c   :  { %s699_s14 = scalar_lea.vmem %s77_s18, 1024  ;;  %p704_p6 = scmp.lt.s32.totalorder %s77_s18, %s77_s18 }
  0x2d   :  { %p700_p5 = scmp.ne.s32.totalorder %s77_s18, %s699_s14  ;;  %p705_p7 = scmp.lt.s32.totalorder %s699_s14, %s699_s14 }
  0x2f   :  { %p706_p8 = por %p705_p7, %p704_p6 }
  0x31   :  { %p707_p9 = pnand %p706_p8, %p700_p5 }
  0x33   :  { %710 = shalt.err (!%p707_p9)
}
  0x34   :  { %s836_s3 = smov 128   ;;  %s837_s11 = smov 8  }
  0x35   :  { %82 = dma.hbm_to_vmem [thread:$0]  %s989_s5, 1024, %s77_s18, [#allocation12], %s836_s3, %s836_s3, %s837_s11  }
  0x36   :  { %s838_s16 = smov [#allocation2]   ;;  %s839_s19 = smov [#allocation7]  }
  0x37   :  { %s23_s17 = sshll.u32 %s838_s16, 4  ;;  %s45_s20 = sshll.u32 %s839_s19, 4  ;;  %s24_s17 = int_to_ptr.vmem [resolvable:$true] %s23_s17  ;;  %s46_s20 = int_to_ptr.vmem [resolvable:$true] %s45_s20 }
  0x38   :  { %s711_s23 = scalar_lea.hbm %s984_s0, 64 }
  0x39   :  { %p712_p10 = scmp.ne.s32.totalorder %s984_s0, %s711_s23  ;;  %p715_p11 = scmp.lt.u32.totalorder %s711_s23, %s984_s0 }
  0x3b   :  { %p717_p12 = pnand %p715_p11, %p712_p10 }
  0x3d   :  { %720 = shalt.err (!%p717_p12)
}
  0x3e   :  { %s721_s5 = scalar_lea.vmem %s24_s17, 64  ;;  %p726_p0 = scmp.lt.s32.totalorder %s24_s17, %s24_s17 }
  0x3f   :  { %p722_p13 = scmp.ne.s32.totalorder %s24_s17, %s721_s5  ;;  %p727_p1 = scmp.lt.s32.totalorder %s721_s5, %s721_s5 }
  0x41   :  { %p728_p2 = por %p727_p1, %p726_p0 }
  0x43   :  { %p729_p3 = pnand %p728_p2, %p722_p13 }
  0x45   :  { %732 = shalt.err (!%p729_p3)
}
  0x46   :  { %26 = dma.hbm_to_vmem [thread:$0]  %s984_s0, 64, %s24_s17, [#allocation3]  }
  0x47   :  { %s733_s30 = scalar_lea.hbm %s986_s2, 16 }
  0x48   :  { %p734_p4 = scmp.ne.s32.totalorder %s986_s2, %s733_s30  ;;  %p737_p5 = scmp.lt.u32.totalorder %s733_s30, %s986_s2 }
  0x4a   :  { %p739_p6 = pnand %p737_p5, %p734_p4 }
  0x4c   :  { %742 = shalt.err (!%p739_p6)
}
  0x4d   :  { %s743_s14 = scalar_lea.vmem %s46_s20, 16  ;;  %s747_s3 = scalar_lea.vmem %s46_s20, 32 }
  0x4e   :  { %p744_p7 = scmp.ne.s32.totalorder %s46_s20, %s743_s14  ;;  %p748_p8 = scmp.lt.s32.totalorder %s46_s20, %s46_s20 }
  0x4f   :  { %p749_p9 = scmp.lt.s32.totalorder %s747_s3, %s743_s14 }
  0x51   :  { %p750_p10 = por %p749_p9, %p748_p8 }
  0x53   :  { %p751_p11 = pnand %p750_p10, %p744_p7 }
  0x55   :  { %754 = shalt.err (!%p751_p11)
}
  0x56   :  { %48 = dma.hbm_to_vmem [thread:$0]  %s986_s2, 16, %s46_s20, [#allocation6]  }
  0x57   :  { %s840_s12 = smov [#allocation10]   ;;  %s841_s16 = smov [#allocation13]  }
  0x58   :  { %s67_s15 = sshll.u32 %s840_s12, 4  ;;  %s89_s17 = sshll.u32 %s841_s16, 4  ;;  %s68_s15 = int_to_ptr.vmem [resolvable:$true] %s67_s15  ;;  %s90_s17 = int_to_ptr.vmem [resolvable:$true] %s89_s17 }
  0x59   :  { %s755_s22 = scalar_lea.hbm %s988_s4, 16 }
  0x5a   :  { %p756_p12 = scmp.ne.s32.totalorder %s988_s4, %s755_s22  ;;  %p759_p13 = scmp.lt.u32.totalorder %s755_s22, %s988_s4 }
  0x5c   :  { %p761_p0 = pnand %p759_p13, %p756_p12 }
  0x5e   :  { %764 = shalt.err (!%p761_p0)
}
  0x5f   :  { %s765_s2 = scalar_lea.vmem %s68_s15, 16  ;;  %s769_s20 = scalar_lea.vmem %s68_s15, 32 }
  0x60   :  { %p766_p1 = scmp.ne.s32.totalorder %s68_s15, %s765_s2  ;;  %p770_p2 = scmp.lt.s32.totalorder %s68_s15, %s68_s15 }
  0x61   :  { %p771_p3 = scmp.lt.s32.totalorder %s769_s20, %s765_s2 }
  0x63   :  { %p772_p4 = por %p771_p3, %p770_p2 }
  0x65   :  { %p773_p5 = pnand %p772_p4, %p766_p1 }
  0x67   :  { %776 = shalt.err (!%p773_p5)
}
  0x68   :  { %70 = dma.hbm_to_vmem [thread:$0]  %s988_s4, 16, %s68_s15, [#allocation9]  }
  0x69   :  { %s777_s28 = scalar_lea.hbm %s990_s6, 32 }
  0x6a   :  { %p778_p6 = scmp.ne.s32.totalorder %s990_s6, %s777_s28  ;;  %p781_p7 = scmp.lt.u32.totalorder %s777_s28, %s990_s6 }
  0x6c   :  { %p783_p8 = pnand %p781_p7, %p778_p6 }
  0x6e   :  { %786 = shalt.err (!%p783_p8)
}
  0x6f   :  { %s787_s10 = scalar_lea.vmem %s90_s17, 32  ;;  %p792_p10 = scmp.lt.s32.totalorder %s90_s17, %s90_s17 }
  0x70   :  { %p788_p9 = scmp.ne.s32.totalorder %s90_s17, %s787_s10  ;;  %p793_p11 = scmp.lt.s32.totalorder %s787_s10, %s787_s10 }
  0x72   :  { %p794_p12 = por %p793_p11, %p792_p10 }
  0x74   :  { %p795_p13 = pnand %p794_p12, %p788_p9 }
  0x76   :  { %798 = shalt.err (!%p795_p13)
}
  0x77   :  { %92 = dma.hbm_to_vmem [thread:$0]  %s990_s6, 32, %s90_s17, [#allocation12]  }
  0x78   :  { %821 = dma.done.wait [#allocation3], 64  }
  0x79   :  { %822 = vsyncadd [#allocation3], 4294967232 }
  0x7a   :  { %823 = dma.done.wait [#allocation6], 2064  }
  0x7b   :  { %824 = vsyncadd [#allocation6], 4294965232 }
  0x7c   :  { %825 = dma.done.wait [#allocation9], 528  }
  0x7d   :  { %826 = vsyncadd [#allocation9], 4294966768 }
  0x7e   :  { %827 = dma.done.wait [#allocation12], 1056  }
  0x7f   :  { %828 = vsyncadd [#allocation12], 4294966240  ;;  %v842_v0 = vmov 0.0   ;;  %v613_v1 = vld [vmem:[#allocation5 + $0x40] sm:$0xff]   ;;  %v615_v3 = vld [vmem:[#allocation5 + $0x48] sm:$0xff]   ;;  %vm843_vm0 = vmmov 0   ;;  %v401_v51 = vlaneseq }
  0x80   :  { %586 = vmatprep.subr.bf16.mxu1 %v842_v0  ;;  %v614_v2 = vld [vmem:[#allocation5] sm:$0xff]   ;;  %559 = vmatprep.subr.bf16.mxu0 %v613_v1  ;;  %v616_v4 = vld [vmem:[#allocation5 + $0x8] sm:$0xff]   ;;  %v617_v5 = vld [vmem:[#allocation5 + $0x50] sm:$0xff]   ;;  %vm345_vm1 = vcmask 523264   ;;  %v844_v42 = vmov 0   ;;  %s845_s6 = smov [#allocation14]  }
  0x81   :  { %560 = vmatpush3.bf16.msra.mxu0 %v614_v2  ;;  %v618_v6 = vld [vmem:[#allocation5 + $0x10] sm:$0xff]   ;;  %v619_v7 = vld [vmem:[#allocation5 + $0x58] sm:$0xff]   ;;  %v621_v9 = vld [vmem:[#allocation5 + $0x60] sm:$0xff]   ;;  %594 = vmatprep.mubr.msk.bf16.mxu1 %vm843_vm0, %v842_v0  ;;  %v402_v52 = vshrl.u32 %v401_v51, 7  ;;  %s513_s14 = sshll.u32 %s845_s6, 4  ;;  %s514_s14 = int_to_ptr.vmem [resolvable:$true] %s513_s14 }
  0x82   :  { %561 = vmatprep.subr.bf16.mxu0 %v615_v3  ;;  %v620_v8 = vld [vmem:[#allocation5 + $0x18] sm:$0xff]   ;;  %v622_v10 = vld [vmem:[#allocation5 + $0x20] sm:$0xff]   ;;  %v623_v11 = vld [vmem:[#allocation5 + $0x68] sm:$0xff]   ;;  %s799_s3 = scalar_lea.vmem %s514_s14, 64  ;;  %p804_p1 = scmp.lt.s32.totalorder %s514_s14, %s514_s14 }
  0x83   :  { %v525_v12 = vld.sshfl [vmem:[#allocation2] sm:$0x33 pattern:$0x76325410]  ;;  %v624_v13 = vld [vmem:[#allocation5 + $0x28] sm:$0xff]   ;;  %v625_v16 = vld [vmem:[#allocation5 + $0x70] sm:$0xff]   ;;  %p800_p0 = scmp.ne.s32.totalorder %s514_s14, %s799_s3  ;;  %p805_p2 = scmp.lt.s32.totalorder %s799_s3, %s799_s3 }
  0x84   :  { %v124_v14 = vcombine.high %v525_v12, %v525_v12  ;;  %v629_v15 = vld [vmem:[#allocation8] sm:$0xff]   ;;  %v630_v17 = vld [vmem:[#allocation8 + $0x8] sm:$0xff]   ;;  %v627_v20 = vld [vmem:[#allocation5 + $0x78] sm:$0xff]   ;;  %v127_v22 = vpack.c.bf16 %v525_v12, %v525_v12  ;;  %v403_v53 = vsub.s32 0, %v402_v52  ;;  %v407_v55 = vsub.s32 1, %v402_v52 }
  0x85   :  { %562 = vmatpush3.bf16.msra.mxu0 %v616_v4  ;;  %587 = vmatpush3.bf16.msra.mxu1 %v629_v15  ;;  %v626_v19 = vld [vmem:[#allocation5 + $0x30] sm:$0xff]   ;;  %v628_v21 = vld [vmem:[#allocation5 + $0x38] sm:$0xff]   ;;  %v526_v27 = vld [vmem:[#allocation7] ss:$0 sm:$0xff]  ;;  %p806_p3 = por %p805_p2, %p804_p1 }
  0x86   :  { %563 = vmatprep.subr.bf16.mxu0 %v617_v5  ;;  %v128_v18 = vpack.c.bf16 %v124_v14, %v124_v14  ;;  %588 = vmatprep.subr.bf16.mxu1 %v842_v0  ;;  %v631_v23 = vld [vmem:[#allocation8 + $0x10] sm:$0xff]   ;;  %v632_v24 = vld [vmem:[#allocation8 + $0x18] sm:$0xff]   ;;  %v633_v34 = vld [vmem:[#allocation11] ss:$8 sps:$4 sm:$0xff]  }
  0x87   :  { %v635_v25 = vld [vmem:[#allocation11 + $0x4] ss:$8 sps:$4 sm:$0xff]   ;;  %v638_v36 = vld [vmem:[#allocation11 + $0x14] ss:$8 sps:$4 sm:$0xff]   ;;  %v636_v37 = vld [vmem:[#allocation11 + $0x10] ss:$8 sps:$4 sm:$0xff]   ;;  %p807_p4 = pnand %p806_p3, %p800_p0 }
  0x88   :  { %296 = vmatprep.mubr.bf16.mxu0 %v128_v18  ;;  %v641_v38 = vld [vmem:[#allocation11 + $0x24] ss:$8 sps:$4 sm:$0xff]   ;;  %v639_v39 = vld [vmem:[#allocation11 + $0x20] ss:$8 sps:$4 sm:$0xff]   ;;  %v644_v40 = vld [vmem:[#allocation11 + $0x34] ss:$8 sps:$4 sm:$0xff]  }
  0x89   :  { %564 = vmatpush3.bf16.msra.mxu0 %v618_v6  ;;  %589 = vmatpush3.bf16.msra.mxu1 %v630_v17  ;;  %v642_v41 = vld [vmem:[#allocation11 + $0x30] ss:$8 sps:$4 sm:$0xff]   ;;  %v543_v43 = vld [vmem:[#allocation10] ss:$0 sm:$0xff]  ;;  %v399_v54 = vld [vmem:[#allocation13] sm:$0x3] }
  0x8a   :  { %565 = vmatprep.subr.bf16.mxu0 %v619_v7  ;;  %590 = vmatprep.subr.bf16.mxu1 %v842_v0  ;;  %v404_v56 = vrot.slane %v399_v54, %v403_v53  ;;  %v408_v57 = vrot.slane %v399_v54, %v407_v55 }
  0x8d   :  { %566 = vmatpush3.bf16.msra.mxu0 %v620_v8  ;;  %591 = vmatpush3.bf16.msra.mxu1 %v631_v23 }
  0x8e   :  { %567 = vmatprep.subr.bf16.mxu0 %v621_v9  ;;  %592 = vmatprep.subr.bf16.mxu1 %v842_v0 }
  0x91   :  { %568 = vmatpush3.bf16.msra.mxu0 %v622_v10  ;;  %593 = vmatpush3.bf16.msra.mxu1 %v632_v24 }
  0x92   :  { %569 = vmatprep.subr.bf16.mxu0 %v623_v11  ;;  %454 = vmatprep.subr.bf16.mxu1 %v635_v25 }
  0x95   :  { %570 = vmatpush3.bf16.msra.mxu0 %v624_v13 }
  0x96   :  { %571 = vmatprep.subr.bf16.mxu0 %v625_v16 }
  0x99   :  { %572 = vmatpush3.bf16.msra.mxu0 %v626_v19 }
  0x9a   :  { %573 = vmatprep.subr.bf16.mxu0 %v627_v20 }
  0x9d   :  { %574 = vmatpush3.bf16.msra.mxu0 %v628_v21 }
  0xa0   :  { %297 = vmatmul.mubr.bf16.vlgmr.msra.gmra.mrb[0].mxu0 %v127_v22 }
 0x173   :  { %v575_v26 = vpop.f32.mrb[0].mxu0 }
 0x174   :  { %v576_v28 = vpop.f32.mrb[1].mxu0 }
 0x175   :  { %v577_v29 = vadd.f32 %v576_v28, %v575_v26  ;;  %v578_v30 = vpop.f32.mrb[2].mxu0 }
 0x176   :  { %v579_v31 = vpop.f32.mrb[3].mxu0 }
 0x177   :  { %v299_v32 = vadd.f32 %v577_v29, %v526_v27 }
 0x179   :  { %v304_v33 = vmax.f32 %v299_v32, 0.0 }
 0x17b   :  { %v305_v35 = vpack.c.bf16 %v304_v33, %v304_v33 }
 0x17d   :  { %595 = vmatmul.mubr.msk.bf16.vlgmr.msra.gmra.mrb[0].mxu1 %vm345_vm1, %v305_v35 }
 0x17e   :  { %455 = vmatpush1.bf16.msra.mxu1 %v633_v34  ;;  %486 = vmatprep.mubr.bf16.mxu1 %v844_v42 }
 0x17f   :  { %456 = vmatprep.subr.bf16.mxu1 %v638_v36 }
 0x182   :  { %457 = vmatpush1.bf16.msra.mxu1 %v636_v37 }
 0x183   :  { %458 = vmatprep.subr.bf16.mxu1 %v641_v38 }
 0x186   :  { %459 = vmatpush1.bf16.msra.mxu1 %v639_v39 }
 0x187   :  { %460 = vmatprep.subr.bf16.mxu1 %v644_v40 }
 0x18a   :  { %461 = vmatpush1.bf16.msra.mxu1 %v642_v41 }
 0x250   :  { %v383_v44 = vpop.f32.mrb[0].mxu1 }
 0x251   :  { %v384_v45 = vadd.f32 %v543_v43, %v383_v44  ;;  %v596_v46 = vpop.f32.mrb[1].mxu1 }
 0x252   :  { %v386_v47 = vpop.f32.mrb[2].mxu1 }
 0x253   :  { %v389_v48 = vmax.f32 %v384_v45, 0.0  ;;  %v597_v49 = vpop.f32.mrb[3].mxu1 }
 0x255   :  { %v390_v50 = vpack.c.bf16 %v389_v48, %v389_v48 }
 0x257   :  { %557 = vmatmul.mubr.msk.bf16.vlgmr.msra.gmra.mrb[4].mxu1 %vm345_vm1, %v390_v50 }
 0x32a   :  { %v488_v58 = vpop.f32.mrb[4].mxu1 }
 0x32b   :  { %v489_v59 = vadd.f32 %v488_v58, %v404_v56  ;;  %v490_v60 = vpop.f32.mrb[5].mxu1 }
 0x32c   :  { %v491_v61 = vadd.f32 %v490_v60, %v408_v57  ;;  %v492_v62 = vpop.f32.mrb[6].mxu1 }
 0x32d   :  { %v493_v63 = vpop.f32.mrb[7].mxu1 }
 0x32e   :  { %v497_v0 = vcombine.low %v489_v59, %v491_v61 }
 0x330   :  { %558 = vst.sshfl [vmem:[#allocation14] sm:$0x33 pattern:$0x76325410] %v497_v0 }
 0x331   :  { %810 = shalt.err (!%p807_p4)
}
 0x332   :  { %s811_s12 = scalar_lea.hbm %s991_s7, 64 }
 0x333   :  { %p812_p5 = scmp.ne.s32.totalorder %s991_s7, %s811_s12  ;;  %p815_p6 = scmp.lt.u32.totalorder %s811_s12, %s991_s7 }
 0x335   :  { %p817_p7 = pnand %p815_p6, %p812_p5 }
 0x337   :  { %820 = shalt.err (!%p817_p7)
}
 0x338   :  { %516 = dma.vmem_to_hbm [thread:$0]  %s514_s14, 64, %s991_s7, [#allocation4]  }
 0x339   :  { %829 = dma.done.wait [#allocation4], 64  }
 0x33a   :  { %830 = vsyncadd [#allocation4], 4294967232 }
 0x33b   :  { %520 = vsyncpa [#allocation3], 1 }
 0x33c   :  { %521 = vsyncpa [#allocation6], 1 }
 0x33d   :  { %522 = vsyncpa [#allocation9], 1 }
 0x33e   :  { %523 = vsyncpa [#allocation12], 1 }
 0x33f   :  { %524 = vsyncpa [#allocation4], 1 }

// kernel: _lambda_.4
= control target key start
LH: loop header
LB: loop body
LE: loop exit
PB: predicated region body
PF: predicated region fallthrough
CT: control target
= control target key end

     0   :  { %s4371_s0 = inlined_call_operand.hbm [shape: f32[16,32], index: 0, kind: input, shape index: {}]   ;;  %s4372_s1 = inlined_call_operand.hbm [shape: f32[2,1,8], index: 1, kind: input, shape index: {}]   ;;  %s4373_s2 = inlined_call_operand.hbm [shape: f32[2,1,128], index: 2, kind: input, shape index: {}]   ;;  %s4374_s3 = inlined_call_operand.hbm [shape: bf16[2,32,128], index: 3, kind: input, shape index: {}]   ;;  %s4375_s4 = inlined_call_operand.hbm [shape: f32[2,1,32], index: 4, kind: input, shape index: {}]   ;;  %s4376_s5 = inlined_call_operand.hbm [shape: bf16[2,128,32], index: 5, kind: input, shape index: {}]   ;;  %s4377_s6 = inlined_call_operand.hbm [shape: f32[2,1,32], index: 6, kind: input, shape index: {}]   ;;  %s4378_s7 = inlined_call_operand.hbm [shape: f32[2,1,32], index: 7, kind: input, shape index: {}]   ;;  %s4379_s8 = inlined_call_operand.hbm [shape: f32[2,1,32], index: 8, kind: input, shape index: {}]   ;;  %s4380_s9 = inlined_call_operand.hbm [shape: f32[2,1,32], index: 9, kind: input, shape index: {}]   ;;  %s4381_s10 = inlined_call_operand.hbm [shape: f32[2,1,32], index: 10, kind: input, shape index: {}]   ;;  %s4382_s11 = inlined_call_operand.hbm [shape: bf16[2,32,32], index: 11, kind: input, shape index: {}]   ;;  %s4383_s12 = inlined_call_operand.hbm [shape: f32[2,1,96], index: 12, kind: input, shape index: {}]   ;;  %s4384_s13 = inlined_call_operand.hbm [shape: bf16[2,32,96], index: 13, kind: input, shape index: {}]   ;;  %s4385_s14 = inlined_call_operand.hbm [shape: f32[16,32], index: 14, kind: output, shape index: {}]  }
   0x1   :  { %4414 = sst [smem:[#allocation31_spill]] %s4371_s0 }
   0x2   :  { %4415 = sst [smem:[#allocation32_spill]] %s4373_s2 }
   0x3   :  { %4416 = sst [smem:[#allocation33_spill]] %s4374_s3 }
   0x4   :  { %4417 = sst [smem:[#allocation34_spill]] %s4384_s13 }
   0x5   :  { %4418 = sst [smem:[#allocation35_spill]] %s4385_s14 }
   0x6   :  { %19 = vsyncpa [#allocation3], 0 }
   0x7   :  { %20 = vsyncpa [#allocation6], 0 }
   0x8   :  { %21 = vsyncpa [#allocation4], 0  ;;  %s3596_s29 = smov 0   ;;  %s3598_s30 = smov 0  }
   0x9   :  { %s3600_s15 = smov 0   ;;  %s3602_s16 = smov 0  }
   0xa LB: > { %4419 = sst [smem:[#allocation24_spill]] %s3473_s30  ;;  %s3615_s17 = sadd.s32 4294967295, %s3481_s16   ;;  %s3481_s16 = sphi %s3602_s16, %s4465_s16   ;;  %s3477_s15 = sphi %s3600_s15, %s4468_s15   ;;  %s3473_s30 = sphi %s3598_s30, %s4467_s30   ;;  %s3469_s29 = sphi %s3596_s29, %s4466_s29  }
   0xb   : > { %4420 = sst [smem:[#allocation25_spill]] %s3477_s15  ;;  %s3618_s18 = sadd.s32 1, %s3481_s16  }
   0xc   : > { %4421 = sst [smem:[#allocation26_spill]] %s3615_s17  ;;  %s73_s19 = ssub.s32 %s3481_s16, %s3618_s18 }
   0xd   : > { %4422 = sst [smem:[#allocation27_spill]] %s3618_s18  ;;  %s76_s20 = sadd.s32 1, %s3477_s15 }
   0xe   : > { %p74_p0 = scmp.eq.s32.totalorder %s73_s19, 0  ;;  %p83_p1 = scmp.ne.s32.totalorder %s3477_s15, %s3473_s30 }
   0xf   : > { %p84_p2 = scmp.eq.s32.totalorder %s3481_s16, 0  ;;  %p89_p3 = scmp.ne.s32.totalorder %s3473_s30, %s3469_s29 }
  0x10   : > { %s3628_s21 = scalar_select %p74_p0, %s3477_s15, %s76_s20  }
  0x11   : > { %p3630_p4 = por %p84_p2, %p83_p1  ;;  %p4392_p5 = scmp.eq.s32.totalorder %s3615_s17, 0 }
  0x12   : > { %4423 = sst [smem:[#allocation28_spill]] %s3628_s21  ;;  %p2506_p6 = scmp.ge.s32.totalorder %s3481_s16, 1 }
  0x13   : > { %p407_p7 = scmp.lt.s32.totalorder %s3481_s16, 3  ;;  %p3639_p8 = por %p4392_p5, %p89_p3 }
  0x14   : > { %s3483_s25 = smov [#allocation2]   ;;  %p2861_p13 = scmp.lt.s32.totalorder %s3481_s16, 2 }
  0x15   : > { %s4425_s23 = scalar_select %p3639_p8, 1, 0 }
  0x16   : > { %p3644_p10 = pnand %p2506_p6, %p407_p7  ;;  %s419_s26 = sshll.u32 %s3483_s25, 4  ;;  %s420_s26 = int_to_ptr.vmem [resolvable:$true] %s419_s26 }
  0x17   : > { %4426 = sst [smem:[#allocation29_spill]] %s4425_s23  ;;  %s3658_s28 = sand.u32 1, %s3477_s15  }
  0x18   : > { %s4427_s24 = scalar_select %p3644_p10, 1, 0 }
  0x19   : > { %p2815_p11 = pneg %p3644_p10  ;;  %s446_s29 = sand.u32 1, %s3481_s16  }
  0x1a   : > { %4428 = sst [smem:[#allocation30_spill]] %s4427_s24  ;;  %p3663_p0 = pnand %p2861_p13, %p3630_p4 }
  0x1b   : > { %p3652_p12 = pnand %p2815_p11, %p4392_p5  ;;  %s4431_s0 = sld [smem:[#allocation31_spill]] }
  0x1c   : > { %s4430_s19 = scalar_select %p3663_p0, 1, 0 }
  0x1d   : > { %s4429_s27 = scalar_select %p3652_p12, 1, 0 }
  0x1e   : > { %p4401_p2 = pneg %p3652_p12 }
  0x21   : > { %s2993_s21 = scalar_lea.hbm %s4431_s0, 256 }
  0x22   : > { %p2994_p1 = scmp.ne.s32.totalorder %s4431_s0, %s2993_s21  ;;  %p3000_p4 = scmp.lt.u32.totalorder %s2993_s21, %s4431_s0 }
  0x24   : > { %p2996_p3 = pnand %p4401_p2, %p2994_p1 }
  0x26   : > { %p2997_p6 = pneg %p2996_p3 }
  0x28   : > { %p3002_p7 = pnand %p3000_p4, %p2997_p6 }
  0x2a   : > { %3005 = shalt.err (!%p3002_p7)
}
  0x2b   : > { %s3006_s23 = scalar_lea.vmem %s420_s26, 256  ;;  %p3014_p5 = scmp.lt.s32.totalorder %s420_s26, %s420_s26 }
  0x2c   : > { %p3007_p11 = scmp.ne.s32.totalorder %s420_s26, %s3006_s23  ;;  %p3015_p8 = scmp.lt.s32.totalorder %s3006_s23, %s3006_s23 }
  0x2e   : > { %p3009_p13 = pnand %p3007_p11, %p4401_p2  ;;  %p3016_p10 = por %p3015_p8, %p3014_p5 }
  0x30   : > { %p3010_p9 = pneg %p3009_p13 }
  0x32   : > { %p3017_p0 = pnand %p3016_p10, %p3010_p9 }
  0x34   : > { %3020 = shalt.err (!%p3017_p0)
}
  0x35   : > { %s3484_s14 = smov 128   ;;  %s3485_s15 = smov 8  }
  0x36   : > { %2818 = dma.hbm_to_vmem [thread:$0]  (!%p3652_p12), %s4431_s0, 256, %s420_s26, [#allocation3], %s3484_s14, %s3484_s14, %s3485_s15  }
  0x37   : > { %s3690_s20 = sshll.u32 %s3481_s16, 4  ;;  %s4432_s2 = sld [smem:[#allocation32_spill]] }
  0x38   : > { %s449_s30 = scalar_lea.vmem [#allocation7], %s3658_s28  ;;  %s3702_s24 = sshll.u32 %s3658_s28, 4 }
  0x39   : > { %s456_s17 = sshll.u32 %s449_s30, 4  ;;  %s3704_s18 = scalar_lea.sflag [#allocation3], %s446_s29  ;;  %s3699_s17 = int_to_ptr.vmem [resolvable:$true] %s456_s17 }
  0x3a   : > { %p4433_p8 = scmp.ne.s32.totalorder %s4430_s19, 0 }
  0x3c   : > { %p3710_p9 = pneg %p4433_p8 }
  0x3d   : > { %s3696_s22 = scalar_lea.hbm %s4432_s2, %s3690_s20  ;;  %s3026_s30 = scalar_lea.hbm %s4432_s2, 32 }
  0x3e   : > { %s3021_s26 = scalar_lea.hbm %s3696_s22, 16  ;;  %p3027_p1 = scmp.lt.u32.totalorder %s3696_s22, %s4432_s2 }
  0x3f   : > { %p3022_p5 = scmp.ne.s32.totalorder %s3696_s22, %s3021_s26  ;;  %p3028_p3 = scmp.lt.u32.totalorder %s3026_s30, %s3021_s26 }
  0x40   : > { %s4434_s14 = scalar_select %p3710_p9, 1, 0 }
  0x41   : > { %p3024_p10 = pnand %p3710_p9, %p3022_p5  ;;  %p3029_p6 = por %p3028_p3, %p3027_p1 }
  0x42   : > { %p3030_p4 = scmp.lt.u32.totalorder %s3021_s26, %s3696_s22 }
  0x43   : > { %p3025_p0 = pneg %p3024_p10 }
  0x44   : > { %p3031_p7 = por %p3030_p4, %p3029_p6 }
  0x46   : > { %p3032_p11 = pnand %p3031_p7, %p3025_p0 }
  0x48   : > { %3035 = shalt.err (!%p3032_p11)
}
  0x49   : > { %s3036_s29 = scalar_lea.vmem %s3699_s17, 16  ;;  %s3486_s15 = smov [#allocation7]  }
  0x4a   : > { %p3037_p13 = scmp.ne.s32.totalorder %s3699_s17, %s3036_s29  ;;  %s3041_s21 = sshll.u32 %s3486_s15, 4  ;;  %s3042_s21 = int_to_ptr.vmem [resolvable:$false] %s3041_s21 }
  0x4b   : > { %s3043_s25 = scalar_lea.vmem %s3042_s21, 32  ;;  %p3044_p2 = scmp.lt.s32.totalorder %s3699_s17, %s3042_s21 }
  0x4c   : > { %p3039_p5 = pnand %p3037_p13, %p3710_p9  ;;  %p3045_p12 = scmp.lt.s32.totalorder %s3043_s25, %s3036_s29 }
  0x4e   : > { %p3040_p10 = pneg %p3039_p5  ;;  %p3046_p1 = por %p3045_p12, %p3044_p2 }
  0x50   : > { %p3047_p3 = pnand %p3046_p1, %p3040_p10 }
  0x52   : > { %3050 = shalt.err (!%p3047_p3)
}
  0x53   : > { %2825 = dma.hbm_to_vmem [thread:$0]  (!%p4433_p8), %s3696_s22, 16, %s3699_s17, %s3704_s18  }
  0x54   : > { %s3735_s26 = sshll.u32 %s3481_s16, 8  ;;  %s4435_s3 = sld [smem:[#allocation33_spill]] }
  0x55   : > { %s467_s29 = scalar_lea.vmem [#allocation8], %s3702_s24 }
  0x56   : > { %s474_s21 = sshll.u32 %s467_s29, 4  ;;  %s3744_s21 = int_to_ptr.vmem [resolvable:$true] %s474_s21 }
  0x5a   : > { %s3741_s15 = scalar_lea.hbm %s4435_s3, %s3735_s26  ;;  %s3056_s0 = scalar_lea.hbm %s4435_s3, 512 }
  0x5b   : > { %s3051_s25 = scalar_lea.hbm %s3741_s15, 256  ;;  %p3057_p6 = scmp.lt.u32.totalorder %s3741_s15, %s4435_s3 }
  0x5c   : > { %p3052_p12 = scmp.ne.s32.totalorder %s3741_s15, %s3051_s25  ;;  %p3058_p4 = scmp.lt.u32.totalorder %s3056_s0, %s3051_s25 }
  0x5d   : > { %p3060_p11 = scmp.lt.u32.totalorder %s3051_s25, %s3741_s15 }
  0x5e   : > { %p3054_p2 = pnand %p3052_p12, %p3710_p9  ;;  %p3059_p7 = por %p3058_p4, %p3057_p6 }
  0x60   : > { %p3055_p0 = pneg %p3054_p2  ;;  %p3061_p13 = por %p3060_p11, %p3059_p7 }
  0x62   : > { %p3062_p5 = pnand %p3061_p13, %p3055_p0 }
  0x64   : > { %3065 = shalt.err (!%p3062_p5)
}
  0x65   : > { %s3066_s29 = scalar_lea.vmem %s3744_s21, 256  ;;  %s3487_s17 = smov [#allocation8]  }
  0x66   : > { %p3067_p10 = scmp.ne.s32.totalorder %s3744_s21, %s3066_s29  ;;  %s3071_s22 = sshll.u32 %s3487_s17, 4  ;;  %s3072_s22 = int_to_ptr.vmem [resolvable:$false] %s3071_s22 }
  0x67   : > { %s3073_s30 = scalar_lea.vmem %s3072_s22, 512  ;;  %p3074_p12 = scmp.lt.s32.totalorder %s3744_s21, %s3072_s22 }
  0x68   : > { %p3069_p1 = pnand %p3067_p10, %p3710_p9  ;;  %p3075_p2 = scmp.lt.s32.totalorder %s3073_s30, %s3066_s29 }
  0x6a   : > { %p3070_p3 = pneg %p3069_p1  ;;  %p3076_p6 = por %p3075_p2, %p3074_p12 }
  0x6c   : > { %p3077_p4 = pnand %p3076_p6, %p3070_p3 }
  0x6e   : > { %3080 = shalt.err (!%p3077_p4)
}
  0x6f   : > { %s4405_s0 = smov 64   ;;  %s4407_s25 = smov 4  }
  0x70   : > { %2828 = dma.hbm_to_vmem [thread:$0]  (!%p4433_p8), %s3741_s15, 256, %s3744_s21, %s3704_s18, %s4405_s0, %s4405_s0, %s4407_s25  }
  0x71   : > { %s3775_s17 = scalar_lea.hbm %s4375_s4, %s3690_s20  ;;  %s487_s22 = scalar_lea.vmem [#allocation9], %s3658_s28 }
  0x72   : > { %s494_s30 = sshll.u32 %s487_s22, 4  ;;  %s2515_s2 = sshll.u32 %s3658_s28, 6  ;;  %s495_s30 = int_to_ptr.vmem [resolvable:$true] %s494_s30 }
  0x73   : > { %s3081_s3 = scalar_lea.hbm %s3775_s17, 16  ;;  %s3086_s21 = scalar_lea.hbm %s4375_s4, 32 }
  0x74   : > { %p3082_p0 = scmp.ne.s32.totalorder %s3775_s17, %s3081_s3  ;;  %p3087_p13 = scmp.lt.u32.totalorder %s3775_s17, %s4375_s4 }
  0x75   : > { %p3088_p5 = scmp.lt.u32.totalorder %s3086_s21, %s3081_s3  ;;  %p3090_p1 = scmp.lt.u32.totalorder %s3081_s3, %s3775_s17 }
  0x76   : > { %p3084_p7 = pnand %p3082_p0, %p3710_p9 }
  0x77   : > { %p3089_p10 = por %p3088_p5, %p3087_p13 }
  0x78   : > { %p3085_p11 = pneg %p3084_p7 }
  0x79   : > { %p3091_p3 = por %p3090_p1, %p3089_p10 }
  0x7b   : > { %p3092_p12 = pnand %p3091_p3, %p3085_p11 }
  0x7d   : > { %3095 = shalt.err (!%p3092_p12)
}
  0x7e   : > { %s3096_s22 = scalar_lea.vmem %s495_s30, 16  ;;  %s3490_s0 = smov [#allocation9]  }
  0x7f   : > { %p3097_p2 = scmp.ne.s32.totalorder %s495_s30, %s3096_s22  ;;  %s3101_s25 = sshll.u32 %s3490_s0, 4  ;;  %s3102_s25 = int_to_ptr.vmem [resolvable:$false] %s3101_s25 }
  0x80   : > { %s3103_s13 = scalar_lea.vmem %s3102_s25, 32  ;;  %p3104_p0 = scmp.lt.s32.totalorder %s495_s30, %s3102_s25 }
  0x81   : > { %p3099_p6 = pnand %p3097_p2, %p3710_p9  ;;  %p3105_p7 = scmp.lt.s32.totalorder %s3103_s13, %s3096_s22 }
  0x83   : > { %p3100_p4 = pneg %p3099_p6  ;;  %p3106_p8 = por %p3105_p7, %p3104_p0 }
  0x85   : > { %p3107_p5 = pnand %p3106_p8, %p3100_p4 }
  0x87   : > { %3110 = shalt.err (!%p3107_p5)
}
  0x88   : > { %p4436_p13 = scmp.ne.s32.totalorder %s4430_s19, 0  ;;  %s2586_s3 = sshll.u32 %s3481_s16, 10 }
  0x89   : > { %s3801_s0 = scalar_lea.hbm %s4376_s5, %s2586_s3  ;;  %s505_s25 = scalar_lea.vmem [#allocation10], %s2515_s2 }
  0x8a   : > { %2831 = dma.hbm_to_vmem [thread:$0]  (!%p4436_p13), %s3775_s17, 16, %s495_s30, %s3704_s18  }
  0x8b   : > { %s512_s23 = sshll.u32 %s505_s25, 4  ;;  %s3111_s29 = scalar_lea.hbm %s3801_s0, 1024  ;;  %s3805_s23 = int_to_ptr.vmem [resolvable:$true] %s512_s23 }
  0x8c   : > { %p3112_p8 = scmp.ne.s32.totalorder %s3801_s0, %s3111_s29  ;;  %s3116_s30 = scalar_lea.hbm %s4376_s5, 2048 }
  0x8d   : > { %p3117_p1 = scmp.lt.u32.totalorder %s3801_s0, %s4376_s5  ;;  %p3118_p3 = scmp.lt.u32.totalorder %s3116_s30, %s3111_s29 }
  0x8e   : > { %p3114_p11 = pnand %p3112_p8, %p3710_p9  ;;  %p3120_p2 = scmp.lt.u32.totalorder %s3111_s29, %s3801_s0 }
  0x8f   : > { %p3119_p12 = por %p3118_p3, %p3117_p1 }
  0x90   : > { %p3115_p10 = pneg %p3114_p11 }
  0x91   : > { %p3121_p6 = por %p3120_p2, %p3119_p12 }
  0x93   : > { %p3122_p4 = pnand %p3121_p6, %p3115_p10 }
  0x95   : > { %3125 = shalt.err (!%p3122_p4)
}
  0x96   : > { %s3126_s2 = scalar_lea.vmem %s3805_s23, 1024  ;;  %s3491_s3 = smov [#allocation10]  }
  0x97   : > { %p3127_p0 = scmp.ne.s32.totalorder %s3805_s23, %s3126_s2  ;;  %s3131_s15 = sshll.u32 %s3491_s3, 4  ;;  %s3132_s15 = int_to_ptr.vmem [resolvable:$false] %s3131_s15 }
  0x98   : > { %s3133_s21 = scalar_lea.vmem %s3132_s15, 2048  ;;  %p3134_p8 = scmp.lt.s32.totalorder %s3805_s23, %s3132_s15 }
  0x99   : > { %p3129_p7 = pnand %p3127_p0, %p3710_p9  ;;  %p3135_p11 = scmp.lt.s32.totalorder %s3133_s21, %s3126_s2 }
  0x9b   : > { %p3130_p5 = pneg %p3129_p7  ;;  %p3136_p1 = por %p3135_p11, %p3134_p8 }
  0x9d   : > { %p3137_p3 = pnand %p3136_p1, %p3130_p5 }
  0x9f   : > { %3140 = shalt.err (!%p3137_p3)
}
  0xa0   : > { %s4437_s25 = smov 4   ;;  %s4438_s29 = smov 64  }
  0xa1   : > { %2834 = dma.hbm_to_vmem [thread:$0]  (!%p4436_p13), %s3801_s0, 1024, %s3805_s23, %s3704_s18, %s4438_s29, %s4438_s29, %s4437_s25  }
  0xa2   : > { %s3836_s30 = scalar_lea.hbm %s4377_s6, %s3690_s20  ;;  %s525_s22 = scalar_lea.vmem [#allocation11], %s3658_s28 }
  0xa3   : > { %s532_s13 = sshll.u32 %s525_s22, 4  ;;  %s3141_s2 = scalar_lea.hbm %s3836_s30, 16  ;;  %s533_s13 = int_to_ptr.vmem [resolvable:$true] %s532_s13 }
  0xa4   : > { %p3142_p10 = scmp.ne.s32.totalorder %s3836_s30, %s3141_s2  ;;  %s3146_s0 = scalar_lea.hbm %s4377_s6, 32 }
  0xa5   : > { %p3147_p6 = scmp.lt.u32.totalorder %s3836_s30, %s4377_s6  ;;  %p3148_p4 = scmp.lt.u32.totalorder %s3146_s0, %s3141_s2 }
  0xa6   : > { %p3144_p12 = pnand %p3142_p10, %p3710_p9  ;;  %p3150_p7 = scmp.lt.u32.totalorder %s3141_s2, %s3836_s30 }
  0xa7   : > { %p3149_p0 = por %p3148_p4, %p3147_p6 }
  0xa8   : > { %p3145_p2 = pneg %p3144_p12 }
  0xa9   : > { %p3151_p5 = por %p3150_p7, %p3149_p0 }
  0xab   : > { %p3152_p8 = pnand %p3151_p5, %p3145_p2 }
  0xad   : > { %3155 = shalt.err (!%p3152_p8)
}
  0xae   : > { %s3156_s16 = scalar_lea.vmem %s533_s13, 16  ;;  %s3492_s17 = smov [#allocation11]  }
  0xaf   : > { %p3157_p11 = scmp.ne.s32.totalorder %s533_s13, %s3156_s16  ;;  %s3161_s22 = sshll.u32 %s3492_s17, 4  ;;  %s3162_s22 = int_to_ptr.vmem [resolvable:$false] %s3161_s22 }
  0xb0   : > { %s3163_s3 = scalar_lea.vmem %s3162_s22, 32  ;;  %p3164_p10 = scmp.lt.s32.totalorder %s533_s13, %s3162_s22 }
  0xb1   : > { %p3159_p1 = pnand %p3157_p11, %p3710_p9  ;;  %p3165_p12 = scmp.lt.s32.totalorder %s3163_s3, %s3156_s16 }
  0xb3   : > { %p3160_p3 = pneg %p3159_p1  ;;  %p3166_p13 = por %p3165_p12, %p3164_p10 }
  0xb5   : > { %p3167_p4 = pnand %p3166_p13, %p3160_p3 }
  0xb7   : > { %3170 = shalt.err (!%p3167_p4)
}
  0xb8   : > { %p4439_p6 = scmp.ne.s32.totalorder %s4430_s19, 0  ;;  %s3861_s0 = scalar_lea.hbm %s4378_s7, %s3690_s20 }
  0xb9   : > { %s542_s23 = scalar_lea.vmem [#allocation12], %s3658_s28  ;;  %s3171_s16 = scalar_lea.hbm %s3861_s0, 16 }
  0xba   : > { %2837 = dma.hbm_to_vmem [thread:$0]  (!%p4439_p6), %s3836_s30, 16, %s533_s13, %s3704_s18  }
  0xbb   : > { %s549_s21 = sshll.u32 %s542_s23, 4  ;;  %p3172_p13 = scmp.ne.s32.totalorder %s3861_s0, %s3171_s16  ;;  %s550_s21 = int_to_ptr.vmem [resolvable:$true] %s549_s21 }
  0xbc   : > { %s3176_s30 = scalar_lea.hbm %s4378_s7, 32  ;;  %p3177_p7 = scmp.lt.u32.totalorder %s3861_s0, %s4378_s7 }
  0xbd   : > { %p3174_p2 = pnand %p3172_p13, %p3710_p9  ;;  %p3178_p5 = scmp.lt.u32.totalorder %s3176_s30, %s3171_s16 }
  0xbe   : > { %p3180_p11 = scmp.lt.u32.totalorder %s3171_s16, %s3861_s0 }
  0xbf   : > { %p3175_p0 = pneg %p3174_p2  ;;  %p3179_p8 = por %p3178_p5, %p3177_p7 }
  0xc1   : > { %p3181_p1 = por %p3180_p11, %p3179_p8 }
  0xc3   : > { %p3182_p3 = pnand %p3181_p1, %p3175_p0 }
  0xc5   : > { %3185 = shalt.err (!%p3182_p3)
}
  0xc6   : > { %s3186_s2 = scalar_lea.vmem %s550_s21, 16  ;;  %s3493_s15 = smov [#allocation12]  }
  0xc7   : > { %p3187_p10 = scmp.ne.s32.totalorder %s550_s21, %s3186_s2  ;;  %s3191_s23 = sshll.u32 %s3493_s15, 4  ;;  %s3192_s23 = int_to_ptr.vmem [resolvable:$false] %s3191_s23 }
  0xc8   : > { %s3193_s17 = scalar_lea.vmem %s3192_s23, 32  ;;  %p3194_p13 = scmp.lt.s32.totalorder %s550_s21, %s3192_s23 }
  0xc9   : > { %p3189_p12 = pnand %p3187_p10, %p3710_p9  ;;  %p3195_p2 = scmp.lt.s32.totalorder %s3193_s17, %s3186_s2 }
  0xcb   : > { %p3190_p4 = pneg %p3189_p12  ;;  %p3196_p6 = por %p3195_p2, %p3194_p13 }
  0xcd   : > { %p3197_p5 = pnand %p3196_p6, %p3190_p4 }
  0xcf   : > { %3200 = shalt.err (!%p3197_p5)
}
  0xd0   : > { %p4440_p7 = scmp.ne.s32.totalorder %s4430_s19, 0  ;;  %s3886_s30 = scalar_lea.hbm %s4379_s8, %s3690_s20 }
  0xd1   : > { %s559_s13 = scalar_lea.vmem [#allocation13], %s3658_s28  ;;  %s3201_s2 = scalar_lea.hbm %s3886_s30, 16 }
  0xd2   : > { %2840 = dma.hbm_to_vmem [thread:$0]  (!%p4440_p7), %s3861_s0, 16, %s550_s21, %s3704_s18  }
  0xd3   : > { %s566_s3 = sshll.u32 %s559_s13, 4  ;;  %p3202_p6 = scmp.ne.s32.totalorder %s3886_s30, %s3201_s2  ;;  %s567_s3 = int_to_ptr.vmem [resolvable:$true] %s566_s3 }
  0xd4   : > { %s3206_s0 = scalar_lea.hbm %s4379_s8, 32  ;;  %p3207_p11 = scmp.lt.u32.totalorder %s3886_s30, %s4379_s8 }
  0xd5   : > { %p3204_p0 = pnand %p3202_p6, %p3710_p9  ;;  %p3208_p1 = scmp.lt.u32.totalorder %s3206_s0, %s3201_s2 }
  0xd6   : > { %p3210_p10 = scmp.lt.u32.totalorder %s3201_s2, %s3886_s30 }
  0xd7   : > { %p3205_p8 = pneg %p3204_p0  ;;  %p3209_p3 = por %p3208_p1, %p3207_p11 }
  0xd9   : > { %p3211_p12 = por %p3210_p10, %p3209_p3 }
  0xdb   : > { %p3212_p4 = pnand %p3211_p12, %p3205_p8 }
  0xdd   : > { %3215 = shalt.err (!%p3212_p4)
}
  0xde   : > { %s3216_s16 = scalar_lea.vmem %s567_s3, 16  ;;  %s3494_s22 = smov [#allocation13]  }
  0xdf   : > { %p3217_p13 = scmp.ne.s32.totalorder %s567_s3, %s3216_s16  ;;  %s3221_s13 = sshll.u32 %s3494_s22, 4  ;;  %s3222_s13 = int_to_ptr.vmem [resolvable:$false] %s3221_s13 }
  0xe0   : > { %s3223_s15 = scalar_lea.vmem %s3222_s13, 32  ;;  %p3224_p6 = scmp.lt.s32.totalorder %s567_s3, %s3222_s13 }
  0xe1   : > { %p3219_p2 = pnand %p3217_p13, %p3710_p9  ;;  %p3225_p0 = scmp.lt.s32.totalorder %s3223_s15, %s3216_s16 }
  0xe3   : > { %p3220_p5 = pneg %p3219_p2  ;;  %p3226_p7 = por %p3225_p0, %p3224_p6 }
  0xe5   : > { %p3227_p1 = pnand %p3226_p7, %p3220_p5 }
  0xe7   : > { %3230 = shalt.err (!%p3227_p1)
}
  0xe8   : > { %p4441_p11 = scmp.ne.s32.totalorder %s4430_s19, 0  ;;  %s3911_s0 = scalar_lea.hbm %s4380_s9, %s3690_s20 }
  0xe9   : > { %s576_s21 = scalar_lea.vmem [#allocation14], %s3658_s28  ;;  %s3231_s16 = scalar_lea.hbm %s3911_s0, 16 }
  0xea   : > { %2843 = dma.hbm_to_vmem [thread:$0]  (!%p4441_p11), %s3886_s30, 16, %s567_s3, %s3704_s18  }
  0xeb   : > { %s583_s17 = sshll.u32 %s576_s21, 4  ;;  %p3232_p7 = scmp.ne.s32.totalorder %s3911_s0, %s3231_s16  ;;  %s584_s17 = int_to_ptr.vmem [resolvable:$true] %s583_s17 }
  0xec   : > { %s3236_s30 = scalar_lea.hbm %s4380_s9, 32  ;;  %p3237_p10 = scmp.lt.u32.totalorder %s3911_s0, %s4380_s9 }
  0xed   : > { %p3234_p8 = pnand %p3232_p7, %p3710_p9  ;;  %p3238_p12 = scmp.lt.u32.totalorder %s3236_s30, %s3231_s16 }
  0xee   : > { %p3240_p13 = scmp.lt.u32.totalorder %s3231_s16, %s3911_s0 }
  0xef   : > { %p3235_p3 = pneg %p3234_p8  ;;  %p3239_p4 = por %p3238_p12, %p3237_p10 }
  0xf1   : > { %p3241_p2 = por %p3240_p13, %p3239_p4 }
  0xf3   : > { %p3242_p5 = pnand %p3241_p2, %p3235_p3 }
  0xf5   : > { %3245 = shalt.err (!%p3242_p5)
}
  0xf6   : > { %s3246_s2 = scalar_lea.vmem %s584_s17, 16  ;;  %s3495_s23 = smov [#allocation14]  }
  0xf7   : > { %p3247_p6 = scmp.ne.s32.totalorder %s584_s17, %s3246_s2  ;;  %s3251_s21 = sshll.u32 %s3495_s23, 4  ;;  %s3252_s21 = int_to_ptr.vmem [resolvable:$false] %s3251_s21 }
  0xf8   : > { %s3253_s22 = scalar_lea.vmem %s3252_s21, 32  ;;  %p3254_p7 = scmp.lt.s32.totalorder %s584_s17, %s3252_s21 }
  0xf9   : > { %p3249_p0 = pnand %p3247_p6, %p3710_p9  ;;  %p3255_p8 = scmp.lt.s32.totalorder %s3253_s22, %s3246_s2 }
  0xfb   : > { %p3250_p1 = pneg %p3249_p0  ;;  %p3256_p11 = por %p3255_p8, %p3254_p7 }
  0xfd   : > { %p3257_p10 = pnand %p3256_p11, %p3250_p1 }
  0xff   : > { %3260 = shalt.err (!%p3257_p10)
}
 0x100   : > { %p4442_p12 = scmp.ne.s32.totalorder %s4430_s19, 0  ;;  %s3936_s30 = scalar_lea.hbm %s4381_s10, %s3690_s20 }
 0x101   : > { %s593_s3 = scalar_lea.vmem [#allocation15], %s3658_s28  ;;  %s3261_s2 = scalar_lea.hbm %s3936_s30, 16 }
 0x102   : > { %2846 = dma.hbm_to_vmem [thread:$0]  (!%p4442_p12), %s3911_s0, 16, %s584_s17, %s3704_s18  }
 0x103   : > { %s600_s15 = sshll.u32 %s593_s3, 4  ;;  %p3262_p11 = scmp.ne.s32.totalorder %s3936_s30, %s3261_s2  ;;  %s601_s15 = int_to_ptr.vmem [resolvable:$true] %s600_s15 }
 0x104   : > { %s3266_s0 = scalar_lea.hbm %s4381_s10, 32  ;;  %p3267_p13 = scmp.lt.u32.totalorder %s3936_s30, %s4381_s10 }
 0x105   : > { %p3264_p3 = pnand %p3262_p11, %p3710_p9  ;;  %p3268_p2 = scmp.lt.u32.totalorder %s3266_s0, %s3261_s2 }
 0x106   : > { %p3270_p6 = scmp.lt.u32.totalorder %s3261_s2, %s3936_s30 }
 0x107   : > { %p3265_p4 = pneg %p3264_p3  ;;  %p3269_p5 = por %p3268_p2, %p3267_p13 }
 0x109   : > { %p3271_p0 = por %p3270_p6, %p3269_p5 }
 0x10b   : > { %p3272_p1 = pnand %p3271_p0, %p3265_p4 }
 0x10d   : > { %3275 = shalt.err (!%p3272_p1)
}
 0x10e   : > { %s3276_s16 = scalar_lea.vmem %s601_s15, 16  ;;  %s3496_s13 = smov [#allocation15]  }
 0x10f   : > { %p3277_p7 = scmp.ne.s32.totalorder %s601_s15, %s3276_s16  ;;  %s3281_s3 = sshll.u32 %s3496_s13, 4  ;;  %s3282_s3 = int_to_ptr.vmem [resolvable:$false] %s3281_s3 }
 0x110   : > { %s3283_s23 = scalar_lea.vmem %s3282_s3, 32  ;;  %p3284_p11 = scmp.lt.s32.totalorder %s601_s15, %s3282_s3 }
 0x111   : > { %p3279_p8 = pnand %p3277_p7, %p3710_p9  ;;  %p3285_p3 = scmp.lt.s32.totalorder %s3283_s23, %s3276_s16 }
 0x113   : > { %p3280_p10 = pneg %p3279_p8  ;;  %p3286_p12 = por %p3285_p3, %p3284_p11 }
 0x115   : > { %p3287_p2 = pnand %p3286_p12, %p3280_p10 }
 0x117   : > { %3290 = shalt.err (!%p3287_p2)
}
 0x118   : > { %p4443_p13 = scmp.ne.s32.totalorder %s4430_s19, 0  ;;  %s3961_s0 = scalar_lea.hbm %s4382_s11, %s3735_s26 }
 0x119   : > { %s611_s17 = scalar_lea.vmem [#allocation16], %s3702_s24  ;;  %s3291_s16 = scalar_lea.hbm %s3961_s0, 256 }
 0x11a   : > { %2849 = dma.hbm_to_vmem [thread:$0]  (!%p4443_p13), %s3936_s30, 16, %s601_s15, %s3704_s18  }
 0x11b   : > { %s618_s22 = sshll.u32 %s611_s17, 4  ;;  %p3292_p12 = scmp.ne.s32.totalorder %s3961_s0, %s3291_s16  ;;  %s3964_s22 = int_to_ptr.vmem [resolvable:$true] %s618_s22 }
 0x11c   : > { %s3296_s15 = scalar_lea.hbm %s4382_s11, 512  ;;  %p3297_p6 = scmp.lt.u32.totalorder %s3961_s0, %s4382_s11 }
 0x11d   : > { %p3294_p4 = pnand %p3292_p12, %p3710_p9  ;;  %p3298_p0 = scmp.lt.u32.totalorder %s3296_s15, %s3291_s16 }
 0x11e   : > { %p3300_p7 = scmp.lt.u32.totalorder %s3291_s16, %s3961_s0 }
 0x11f   : > { %p3295_p5 = pneg %p3294_p4  ;;  %p3299_p1 = por %p3298_p0, %p3297_p6 }
 0x121   : > { %p3301_p8 = por %p3300_p7, %p3299_p1 }
 0x123   : > { %p3302_p10 = pnand %p3301_p8, %p3295_p5 }
 0x125   : > { %3305 = shalt.err (!%p3302_p10)
}
 0x126   : > { %s3306_s2 = scalar_lea.vmem %s3964_s22, 256  ;;  %s3497_s21 = smov [#allocation16]  }
 0x127   : > { %p3307_p11 = scmp.ne.s32.totalorder %s3964_s22, %s3306_s2  ;;  %s3311_s17 = sshll.u32 %s3497_s21, 4  ;;  %s3312_s17 = int_to_ptr.vmem [resolvable:$false] %s3311_s17 }
 0x128   : > { %s3313_s13 = scalar_lea.vmem %s3312_s17, 512  ;;  %p3314_p12 = scmp.lt.s32.totalorder %s3964_s22, %s3312_s17 }
 0x129   : > { %p3309_p3 = pnand %p3307_p11, %p3710_p9  ;;  %p3315_p4 = scmp.lt.s32.totalorder %s3313_s13, %s3306_s2 }
 0x12b   : > { %p3310_p2 = pneg %p3309_p3  ;;  %p3316_p6 = por %p3315_p4, %p3314_p12 }
 0x12d   : > { %p3317_p0 = pnand %p3316_p6, %p3310_p2 }
 0x12f   : > { %3320 = shalt.err (!%p3317_p0)
}
 0x130   : > { %2852 = dma.hbm_to_vmem [thread:$0]  (!%p4443_p13), %s3961_s0, 256, %s3964_s22, %s3704_s18, %s4438_s29, %s4438_s29, %s4437_s25  }
 0x131   : > { %s3995_s15 = scalar_lea.hbm %s4383_s12, %s3690_s20  ;;  %s631_s3 = scalar_lea.vmem [#allocation17], %s3658_s28 }
 0x132   : > { %s638_s23 = sshll.u32 %s631_s3, 4  ;;  %s3321_s2 = scalar_lea.hbm %s3995_s15, 16  ;;  %s639_s23 = int_to_ptr.vmem [resolvable:$true] %s638_s23 }
 0x133   : > { %p3322_p5 = scmp.ne.s32.totalorder %s3995_s15, %s3321_s2  ;;  %s3326_s0 = scalar_lea.hbm %s4383_s12, 32 }
 0x134   : > { %p3327_p8 = scmp.lt.u32.totalorder %s3995_s15, %s4383_s12  ;;  %p3328_p10 = scmp.lt.u32.totalorder %s3326_s0, %s3321_s2 }
 0x135   : > { %p3324_p1 = pnand %p3322_p5, %p3710_p9  ;;  %p3330_p3 = scmp.lt.u32.totalorder %s3321_s2, %s3995_s15 }
 0x136   : > { %p3329_p11 = por %p3328_p10, %p3327_p8 }
 0x137   : > { %p3325_p7 = pneg %p3324_p1 }
 0x138   : > { %p3331_p2 = por %p3330_p3, %p3329_p11 }
 0x13a   : > { %p3332_p12 = pnand %p3331_p2, %p3325_p7 }
 0x13c   : > { %3335 = shalt.err (!%p3332_p12)
}
 0x13d   : > { %s3336_s28 = scalar_lea.vmem %s639_s23, 16  ;;  %s3498_s20 = smov [#allocation17]  }
 0x13e   : > { %p3337_p4 = scmp.ne.s32.totalorder %s639_s23, %s3336_s28  ;;  %s3341_s16 = sshll.u32 %s3498_s20, 4  ;;  %s3342_s16 = int_to_ptr.vmem [resolvable:$false] %s3341_s16 }
 0x13f   : > { %s3343_s30 = scalar_lea.vmem %s3342_s16, 32  ;;  %p3344_p5 = scmp.lt.s32.totalorder %s639_s23, %s3342_s16 }
 0x140   : > { %p3339_p6 = pnand %p3337_p4, %p3710_p9  ;;  %p3345_p1 = scmp.lt.s32.totalorder %s3343_s30, %s3336_s28 }
 0x142   : > { %p3340_p0 = pneg %p3339_p6  ;;  %p3346_p13 = por %p3345_p1, %p3344_p5 }
 0x144   : > { %p3347_p8 = pnand %p3346_p13, %p3340_p0 }
 0x146   : > { %3350 = shalt.err (!%p3347_p8)
}
 0x147   : > { %p4444_p10 = scmp.ne.s32.totalorder %s4430_s19, 0  ;;  %s3499_s3 = smov [#allocation5]  }
 0x148   : > { %s432_s2 = sshll.u32 %s3499_s3, 4  ;;  %s3351_s0 = scalar_lea.hbm %s4372_s1, 32  ;;  %s433_s2 = int_to_ptr.vmem [resolvable:$true] %s432_s2 }
 0x149   : > { %2855 = dma.hbm_to_vmem [thread:$0]  (!%p4444_p10), %s3995_s15, 16, %s639_s23, %s3704_s18  }
 0x14a   : > { %p3352_p7 = scmp.ne.s32.totalorder %s4372_s1, %s3351_s0  ;;  %p4445_p11 = scmp.ne.s32.totalorder %s4429_s27, 0 }
 0x14b   : > { %p3358_p12 = scmp.lt.u32.totalorder %s3351_s0, %s4372_s1 }
 0x14c   : > { %p4446_p13 = pneg %p4445_p11 }
 0x14e   : > { %p3354_p3 = pnand %p3352_p7, %p4446_p13 }
 0x150   : > { %p3355_p2 = pneg %p3354_p3 }
 0x152   : > { %p3360_p4 = pnand %p3358_p12, %p3355_p2 }
 0x154   : > { %3363 = shalt.err (!%p3360_p4)
}
 0x155   : > { %s3364_s15 = scalar_lea.vmem %s433_s2, 32  ;;  %p4447_p0 = pmov %p4446_p13 }
 0x156   : > { %p3365_p6 = scmp.ne.s32.totalorder %s433_s2, %s3364_s15  ;;  %p3372_p8 = scmp.lt.s32.totalorder %s433_s2, %s433_s2 }
 0x157   : > { %p3373_p10 = scmp.lt.s32.totalorder %s3364_s15, %s3364_s15 }
 0x158   : > { %p3367_p5 = pnand %p3365_p6, %p4447_p0 }
 0x159   : > { %p3374_p9 = por %p3373_p10, %p3372_p8 }
 0x15a   : > { %p3368_p1 = pneg %p3367_p5 }
 0x15c   : > { %p3375_p7 = pnand %p3374_p9, %p3368_p1 }
 0x15e   : > { %3378 = shalt.err (!%p3375_p7)
}
 0x15f   : > { %s3500_s23 = smov 16   ;;  %s3501_s16 = smov 1  }
 0x160   : > { %2821 = dma.hbm_to_vmem [thread:$0]  (!%p4445_p11), %s4372_s1, 32, %s433_s2, [#allocation6], %s3500_s23, %s3500_s23, %s3501_s16  }
 0x161   : > { %s4448_s0 = sld [smem:[#allocation34_spill]]  ;;  %s649_s13 = scalar_lea.vmem [#allocation18], %s3702_s24 }
 0x162   : > { %s656_s28 = sshll.u32 %s649_s13, 4  ;;  %p4449_p10 = scmp.ne.s32.totalorder %s4434_s14, 0  ;;  %s4043_s28 = int_to_ptr.vmem [resolvable:$true] %s656_s28 }
 0x167   : > { %s4040_s22 = scalar_lea.hbm %s4448_s0, %s3735_s26  ;;  %s3384_s15 = scalar_lea.hbm %s4448_s0, 512 }
 0x168   : > { %s3379_s20 = scalar_lea.hbm %s4040_s22, 256  ;;  %p3385_p11 = scmp.lt.u32.totalorder %s4040_s22, %s4448_s0 }
 0x169   : > { %p3380_p9 = scmp.ne.s32.totalorder %s4040_s22, %s3379_s20  ;;  %p3386_p2 = scmp.lt.u32.totalorder %s3384_s15, %s3379_s20 }
 0x16a   : > { %p3388_p4 = scmp.lt.u32.totalorder %s3379_s20, %s4040_s22 }
 0x16b   : > { %p3382_p13 = pnand %p3380_p9, %p4449_p10  ;;  %p3387_p12 = por %p3386_p2, %p3385_p11 }
 0x16d   : > { %p3383_p3 = pneg %p3382_p13  ;;  %p3389_p6 = por %p3388_p4, %p3387_p12 }
 0x16f   : > { %p3390_p0 = pnand %p3389_p6, %p3383_p3 }
 0x171   : > { %3393 = shalt.err (!%p3390_p0)
}
 0x172   : > { %s3394_s24 = scalar_lea.vmem %s4043_s28, 256  ;;  %s3502_s16 = smov [#allocation18]  }
 0x173   : > { %p3395_p5 = scmp.ne.s32.totalorder %s4043_s28, %s3394_s24  ;;  %s3399_s30 = sshll.u32 %s3502_s16, 4  ;;  %s3400_s30 = int_to_ptr.vmem [resolvable:$false] %s3399_s30 }
 0x174   : > { %s3401_s3 = scalar_lea.vmem %s3400_s30, 512  ;;  %p3402_p7 = scmp.lt.s32.totalorder %s4043_s28, %s3400_s30 }
 0x175   : > { %p3397_p1 = pnand %p3395_p5, %p4449_p10  ;;  %p3403_p9 = scmp.lt.s32.totalorder %s3401_s3, %s3394_s24 }
 0x177   : > { %p3398_p8 = pneg %p3397_p1  ;;  %p3404_p13 = por %p3403_p9, %p3402_p7 }
 0x179   : > { %p3405_p11 = pnand %p3404_p13, %p3398_p8 }
 0x17b   : > { %3408 = shalt.err (!%p3405_p11)
}
 0x17c   : > { %p4450_p3 = scmp.ne.s32.totalorder %s4430_s19, 0  ;;  %s4451_s14 = sld [smem:[#allocation30_spill]] }
 0x17e   : > { %2858 = dma.hbm_to_vmem [thread:$0]  (!%p4450_p3), %s4040_s22, 256, %s4043_s28, %s3704_s18, %s4438_s29, %s4438_s29, %s4437_s25  }
 0x182   : > { %p4452_p10 = scmp.ne.s32.totalorder %s4451_s14, 0 }
 0x183   : > { %s4453_s21 = sld [smem:[#allocation26_spill]] (!%p4452_p10) }
 0x184   : > { %668 = sbr.rel (%p4452_p10) target bundleno = 4571 (0x11db), region = 76 }
 0x189   : > { %p4454_p2 = scmp.eq.s32.totalorder (!%p4452_p10), %s4453_s21, 0 }
 0x18b   : > { %3452 = dma.done.wait (%p4454_p2), [#allocation3], 256   ;;  %p4455_p12 = pmov %p4454_p2 }
 0x18c   : > { %p4456_p4 = pmov %p4454_p2 }
 0x18d   : > { %3454 = vsyncadd (%p4455_p12), [#allocation3], 4294967040 }
 0x18e   : > { %3456 = dma.done.wait (%p4456_p4), [#allocation6], 32   ;;  %p4457_p6 = pmov %p4454_p2 }
 0x18f   : > { %s4458_s19 = sld [smem:[#allocation24_spill]]  ;;  %s4459_s17 = sld [smem:[#allocation29_spill]] }
 0x190   : > { %3458 = vsyncadd (%p4457_p6), [#allocation6], 4294967264  ;;  %s678_s13 = sand.u32 1, %s4453_s21  }
 0x191   : > { %s679_s25 = scalar_lea.sflag [#allocation3], %s678_s13 }
 0x195   : > { %s4082_s18 = sand.u32 1, %s4458_s19   ;;  %p4460_p0 = scmp.ne.s32.totalorder %s4459_s17, 0 }
 0x196   : > { %s681_s29 = scalar_lea.vmem [#allocation7], %s4082_s18 }
 0x197   : > { %3460 = dma.done.wait (%p4460_p0), %s679_s25, 1920  }
 0x198   : > { %3462 = vsyncadd (%p4460_p0), %s679_s25, 4294965376  ;;  %s4090_s22 = sshll.u32 %s4082_s18, 4  ;;  %s2534_s28 = sshll.u32 %s4082_s18, 6 }
 0x199   : > { %s690_s20 = scalar_lea.vmem [#allocation8], %s4090_s22  ;;  %s698_s27 = scalar_lea.vmem [#allocation9], %s4082_s18 }
 0x19a   : > { %s4095_s2 = scalar_lea.vmem [#allocation10], %s2534_s28  ;;  %s715_s15 = scalar_lea.vmem [#allocation11], %s4082_s18 }
 0x19b   : > { %s723_s23 = scalar_lea.vmem [#allocation12], %s4082_s18  ;;  %s731_s26 = scalar_lea.vmem [#allocation13], %s4082_s18 }
 0x19c   : > { %s739_s24 = scalar_lea.vmem [#allocation14], %s4082_s18  ;;  %s747_s16 = scalar_lea.vmem [#allocation15], %s4082_s18 }
 0x19d   : > { %s756_s30 = scalar_lea.vmem [#allocation16], %s4090_s22  ;;  %s764_s3 = scalar_lea.vmem [#allocation17], %s4082_s18 }
 0x19e   : > { %s773_s14 = scalar_lea.vmem [#allocation18], %s4090_s22  ;;  %p4461_p5 = scmp.ne.s32.totalorder %s4453_s21, 0 }
 0x19f   : > { %v865_v0 = vld [vmem:[#allocation2] sm:$0xff] (!%p4461_p5)  ;;  %vm867_vm0 = vcmask (!%p4461_p5), 261120   ;;  %v866_v1 = vld [vmem:[#allocation2 + $0x8] sm:$0xff] (!%p4461_p5) }
 0x1a0   : > { %864 = sbr.rel (%p4461_p5) target bundleno = 423 (0x1a7), region = 136  ;;  %868 = vst.msk [vmem:[#allocation19] sm:$0xff] (!%p4461_p5), %vm867_vm0, %v865_v0  ;;  %869 = vst.msk [vmem:[#allocation19 + $0x8] sm:$0xff] (!%p4461_p5), %vm867_vm0, %v866_v1 }
 0x1a7 PF: > { %v2939_v2 = vld [vmem:[%s773_s14] sm:$0xff]   ;;  %v3503_v3 = vmov 0.0   ;;  %v2940_v4 = vld [vmem:[%s773_s14 + $0x8] sm:$0xff]   ;;  %vm3504_vm1 = vmmov 0   ;;  %vm898_vm2 = vcmask 261120   ;;  %s3505_s21 = smov 96  }
 0x1a8   : > { %2639 = vmatprep.subr.bf16.mxu0 %v3503_v3  ;;  %2659 = vmatprep.subr.bf16.mxu1 %v3503_v3  ;;  %v4111_v5 = vld [vmem:[#allocation19] sm:$0xff]  ;;  %v4113_v6 = vld [vmem:[#allocation19 + $0x8] sm:$0xff]  ;;  %v2538_v8 = vld [vmem:[%s764_s3] ss:$0 sm:$0xff]  ;;  %vm948_vm3 = vcmask 64512   ;;  %s3506_s19 = smov 64  }
 0x1a9   : > { %2640 = vmatpush3.bf16.msra.mxu0 %v2939_v2  ;;  %2643 = vmatprep.mubr.msk.bf16.mxu0 %vm3504_vm1, %v3503_v3  ;;  %v874_v7 = vpack.c.bf16 %v4113_v6, %v4111_v5  ;;  %v4142_v22 = vld [vmem:[#allocation5] ss:$0 sm:$0xff]  ;;  %v4146_v30 = vld [vmem:[#allocation5 + $0x1] ss:$0 sm:$0xff]  ;;  %s3507_s17 = smov 88   ;;  %vm1089_vm4 = vcmask 1043456  }
 0x1aa   : > { %2641 = vmatprep.subr.bf16.mxu0 %v3503_v3  ;;  %2661 = vmatprep.mubr.msk.bf16.mxu1 %vm3504_vm1, %v3503_v3  ;;  %s3508_s13 = smov 120   ;;  %s3509_s25 = smov 56   ;;  %vm1879_vm5 = vcmask 130048   ;;  %vm1882_vm6 = vcmask 195584  }
 0x1ab   : > { %s3510_s28 = smov 80   ;;  %s3511_s3 = smov 112  }
 0x1ac   : > { %s3512_s14 = smov 48   ;;  %s3519_s22 = smov [#allocation19]  }
 0x1ad   : > { %2642 = vmatpush3.bf16.msra.mxu0 %v2940_v4 }
 0x1ae   : > { %2647 = vmatprep.subr.bf16.mxu0 %v3503_v3 }
 0x1b0   : > { %2644 = vmatmul.mubr.msk.bf16.vlgmr.msra.gmra.mrb[0].mxu0 %vm898_vm2, %v874_v7 }
 0x1b1   : > { %2649 = vmatprep.mubr.msk.bf16.mxu0 %vm3504_vm1, %v3503_v3 }
 0x283   : > { %v936_v9 = vpop.f32.mrb[0].mxu0 }
 0x284   : > { %v937_v10 = vadd.f32 %v2538_v8, %v936_v9  ;;  %v2645_v11 = vpop.f32.mrb[1].mxu0 }
 0x285   : > { %v939_v12 = vpop.f32.mrb[2].mxu0 }
 0x286   : > { %v4124_v13 = vpack.c.bf16 %v937_v10, %v937_v10  ;;  %v940_v14 = vadd.f32 %v2538_v8, %v939_v12  ;;  %v2646_v15 = vpop.f32.mrb[3].mxu0 }
 0x288   : > { %946 = vrot.lane.b32.xlu0 %v4124_v13, %s3505_s21  ;;  %v4127_v16 = vpack.c.bf16 %v940_v14, %v940_v14 }
 0x28c   : > { %996 = vrot.lane.b32.xlu0 %v4127_v16, %s3505_s21  ;;  %s3513_s21 = smov 72  }
 0x2fa   : > { %v947_v17 = vpop.permute.xlu0 %946 }
 0x2fb   : > { %v953_v18 = vsel %vm948_vm3, %v947_v17, 0 }
 0x2fc   : > { %2648 = vmatpush3.bf16.xpose.msra.mxu0 %v953_v18 }
 0x2fd   : > { %2653 = vmatprep.subr.bf16.mxu0 %v3503_v3 }
 0x2fe   : > { %v997_v19 = vpop.permute.xlu0 %996 }
 0x2ff   : > { %v1002_v20 = vsel %vm948_vm3, %v997_v19, 0 }
 0x303   : > { %2650 = vmatmul.mubr.msk.bf16.vlgmr.msra.gmra.mrb[4].mxu0 %vm948_vm3, %v4124_v13 }
 0x304   : > { %2654 = vmatpush3.bf16.xpose.msra.mxu0 %v1002_v20  ;;  %2655 = vmatprep.mubr.msk.bf16.mxu0 %vm3504_vm1, %v3503_v3 }
 0x305   : > { %2665 = vmatprep.subr.bf16.mxu0 %v3503_v3 }
 0x30b   : > { %2656 = vmatmul.mubr.msk.bf16.vlgmr.msra.gmra.mrb[8].mxu0 %vm948_vm3, %v4127_v16 }
 0x30c   : > { %2667 = vmatprep.mubr.msk.bf16.mxu0 %vm3504_vm1, %v3503_v3 }
 0x3d6   : > { %v989_v21 = vpop.f32.mrb[4].mxu0 }
 0x3d7   : > { %v1044_v23 = vmul.f32 0.35355338, %v989_v21  ;;  %v2651_v24 = vpop.f32.mrb[5].mxu0 }
 0x3d8   : > { %v992_v25 = vpop.f32.mrb[6].mxu0 }
 0x3d9   : > { %v2652_v26 = vpop.f32.mrb[7].mxu0  ;;  %v1058_v27 = vadd.f32 %v4142_v22, %v1044_v23 }
 0x3db   : > { %v1060_v28 = vsel %vm948_vm3, %v1058_v27, -inf }
 0x3dc   : > { %1061 = vmax.xlane.f32.xlu1 %v1060_v28 }
 0x3de   : > { %v1038_v29 = vpop.f32.mrb[8].mxu0 }
 0x3df   : > { %v1045_v31 = vmul.f32 0.35355338, %v1038_v29  ;;  %v2657_v32 = vpop.f32.mrb[9].mxu0 }
 0x3e0   : > { %v1041_v33 = vpop.f32.mrb[10].mxu0 }
 0x3e1   : > { %v2658_v34 = vpop.f32.mrb[11].mxu0  ;;  %v1059_v35 = vadd.f32 %v4146_v30, %v1045_v31 }
 0x3e3   : > { %v1063_v36 = vsel %vm948_vm3, %v1059_v35, -inf }
 0x3e4   : > { %1064 = vmax.xlane.f32.xlu1 %v1063_v36 }
 0x3f5   : > { %1084 = vrot.lane.b32.xlu1 %v4124_v13, %s3506_s19 }
 0x3f9   : > { %1133 = vrot.lane.b32.xlu1 %v4127_v16, %s3506_s19  ;;  %s3514_s19 = smov 104  }
 0x3fd   : > { %1183 = vrot.lane.b32.xlu1 %v4124_v13, %s3507_s17 }
 0x469   : > { %v1062_v37 = vpop.xlane.xlu1 %1061 }
 0x46a   : > { %v1066_v38 = vsub.f32 %v1058_v27, %v1062_v37 }
 0x46c   : > { %v1068_v39 = vmul.f32 1.442695, %v1066_v38 }
 0x46e   : > { %2953 = vpow2.f32 %v1068_v39 }
 0x471   : > { %v1065_v40 = vpop.xlane.xlu1 %1064 }
 0x472   : > { %v1067_v41 = vsub.f32 %v1059_v35, %v1065_v40 }
 0x474   : > { %v1070_v42 = vmul.f32 1.442695, %v1067_v41 }
 0x475   : > { %v1085_v43 = vpop.permute.xlu1 %1084 }
 0x476   : > { %2955 = vpow2.f32 %v1070_v42  ;;  %v1091_v44 = vsel %vm1089_vm4, %v1085_v43, 0 }
 0x477   : > { %2660 = vmatpush3.bf16.msra.mxu1 %v1091_v44 }
 0x478   : > { %v2954_v45 = vpop.eup %2953  ;;  %2671 = vmatprep.subr.bf16.mxu1 %v3503_v3 }
 0x479   : > { %v1134_v46 = vpop.permute.xlu1 %1133  ;;  %v1072_v47 = vsel %vm948_vm3, %v2954_v45, 0.0 }
 0x47a   : > { %v1139_v48 = vsel %vm1089_vm4, %v1134_v46, 0  ;;  %1073 = vadd.xlane.f32.xlu0 %v1072_v47 }
 0x47b   : > { %2666 = vmatpush3.bf16.msra.mxu0 %v1139_v48 }
 0x47c   : > { %2677 = vmatprep.subr.bf16.mxu0 %v3503_v3 }
 0x47d   : > { %v1184_v52 = vpop.permute.xlu1 %1183 }
 0x47e   : > { %v1189_v57 = vsel %vm948_vm3, %v1184_v52, 0 }
 0x480   : > { %v2956_v49 = vpop.eup %2955 }
 0x481   : > { %v1075_v50 = vsel %vm948_vm3, %v2956_v49, 0.0 }
 0x482   : > { %1076 = vadd.xlane.f32.xlu1 %v1075_v50 }
 0x490   : > { %1181 = vrot.lane.b32.xlu0 %v4124_v13, %s3508_s13 }
 0x493   : > { %1233 = vrot.lane.b32.xlu1 %v4127_v16, %s3507_s17  ;;  %s3515_s17 = smov 40  }
 0x497   : > { %1231 = vrot.lane.b32.xlu1 %v4127_v16, %s3508_s13  ;;  %s3516_s13 = smov 8  }
 0x507   : > { %v1074_v51 = vpop.xlane.xlu0 %1073 }
 0x508   : > { %2957 = vrcp.f32 %v1074_v51 }
 0x50b   : > { %v1182_v62 = vpop.permute.xlu0 %1181 }
 0x50f   : > { %v1077_v53 = vpop.xlane.xlu1 %1076 }
 0x510   : > { %2959 = vrcp.f32 %v1077_v53 }
 0x512   : > { %v2958_v54 = vpop.eup %2957 }
 0x513   : > { %v1080_v55 = vmul.f32 %v2958_v54, %v2954_v45  ;;  %v1234_v60 = vpop.permute.xlu1 %1233 }
 0x514   : > { %v1239_v63 = vsel %vm948_vm3, %v1234_v60, 0 }
 0x515   : > { %v1082_v56 = vpack.c.bf16 %v1080_v55, %v1080_v55 }
 0x517   : > { %2662 = vmatmul.mubr.msk.bf16.vlgmr.msra.gmra.mrb[0].mxu1 %vm948_vm3, %v1082_v56  ;;  %v1232_v0 = vpop.permute.xlu1 %1231 }
 0x518   : > { %2672 = vmatpush3.bf16.xpose.msra.mxu1 %v1189_v57  ;;  %2673 = vmatprep.mubr.msk.bf16.mxu1 %vm3504_vm1, %v3503_v3 }
 0x519   : > { %2683 = vmatprep.subr.bf16.mxu1 %v3503_v3 }
 0x51a   : > { %v2960_v58 = vpop.eup %2959 }
 0x51b   : > { %v1081_v59 = vmul.f32 %v2960_v58, %v2956_v49 }
 0x51d   : > { %v1083_v61 = vpack.c.bf16 %v1081_v59, %v1081_v59 }
 0x51f   : > { %2668 = vmatmul.mubr.msk.bf16.vlgmr.msra.gmra.mrb[12].mxu0 %vm948_vm3, %v1083_v61  ;;  %2674 = vmatmul.mubr.msk.bf16.vlgmr.msra.gmra.mrb[4].mxu1 %vm948_vm3, %v1182_v62 }
 0x520   : > { %2678 = vmatpush3.bf16.xpose.msra.mxu0 %v1239_v63  ;;  %2679 = vmatprep.mubr.msk.bf16.mxu0 %vm3504_vm1, %v3503_v3 }
 0x521   : > { %2689 = vmatprep.subr.bf16.mxu0 %v3503_v3  ;;  %2685 = vmatprep.mubr.msk.bf16.mxu1 %vm3504_vm1, %v3503_v3 }
 0x527   : > { %2680 = vmatmul.mubr.msk.bf16.vlgmr.msra.gmra.mrb[16].mxu0 %vm948_vm3, %v1232_v0 }
 0x528   : > { %2691 = vmatprep.mubr.msk.bf16.mxu0 %vm3504_vm1, %v3503_v3 }
 0x5ea   : > { %v4178_v1 = vpop.f32.mrb[0].mxu1 }
 0x5eb   : > { %v2663_v2 = vpop.f32.mrb[1].mxu1 }
 0x5ec   : > { %v1130_v4 = vpop.f32.mrb[2].mxu1 }
 0x5ed   : > { %v2664_v7 = vpop.f32.mrb[3].mxu1 }
 0x5f2   : > { %v4180_v8 = vpop.f32.mrb[12].mxu0  ;;  %v1225_v9 = vpop.f32.mrb[4].mxu1 }
 0x5f3   : > { %v1281_v10 = vmul.f32 0.35355338, %v1225_v9  ;;  %v2669_v11 = vpop.f32.mrb[13].mxu0  ;;  %v2675_v12 = vpop.f32.mrb[5].mxu1 }
 0x5f4   : > { %v1178_v14 = vpop.f32.mrb[14].mxu0  ;;  %v1228_v15 = vpop.f32.mrb[6].mxu1 }
 0x5f5   : > { %v2670_v17 = vpop.f32.mrb[15].mxu0  ;;  %v2676_v18 = vpop.f32.mrb[7].mxu1  ;;  %v1283_v19 = vadd.f32 %v4142_v22, %v1281_v10 }
 0x5f7   : > { %v1285_v20 = vsel %vm948_vm3, %v1283_v19, -inf }
 0x5f8   : > { %1286 = vmax.xlane.f32.xlu1 %v1285_v20 }
 0x5fa   : > { %v1275_v21 = vpop.f32.mrb[16].mxu0 }
 0x5fb   : > { %v1282_v23 = vmul.f32 0.35355338, %v1275_v21  ;;  %v2681_v24 = vpop.f32.mrb[17].mxu0 }
 0x5fc   : > { %v1278_v25 = vpop.f32.mrb[18].mxu0 }
 0x5fd   : > { %v2682_v26 = vpop.f32.mrb[19].mxu0  ;;  %v1284_v27 = vadd.f32 %v4146_v30, %v1282_v23 }
 0x5ff   : > { %v1288_v28 = vsel %vm948_vm3, %v1284_v27, -inf }
 0x600   : > { %1289 = vmax.xlane.f32.xlu0 %v1288_v28 }
 0x609   : > { %1309 = vrot.lane.b32.xlu1 %v4124_v13, %s3509_s25 }
 0x60d   : > { %1407 = vrot.lane.b32.xlu1 %v4124_v13, %s3510_s28 }
 0x616   : > { %1357 = vrot.lane.b32.xlu0 %v4127_v16, %s3509_s25  ;;  %s3517_s25 = smov 16  }
 0x61a   : > { %1405 = vrot.lane.b32.xlu0 %v4124_v13, %s3511_s3 }
 0x685   : > { %v1287_v29 = vpop.xlane.xlu1 %1286 }
 0x686   : > { %v1291_v31 = vsub.f32 %v1283_v19, %v1287_v29 }
 0x688   : > { %v1293_v32 = vmul.f32 1.442695, %v1291_v31 }
 0x689   : > { %v1310_v33 = vpop.permute.xlu1 %1309 }
 0x68a   : > { %2961 = vpow2.f32 %v1293_v32  ;;  %v1315_v34 = vsel %vm1089_vm4, %v1310_v33, 0 }
 0x68b   : > { %2684 = vmatpush3.bf16.msra.mxu1 %v1315_v34 }
 0x68c   : > { %2695 = vmatprep.subr.bf16.mxu1 %v3503_v3 }
 0x68d   : > { %v1290_v35 = vpop.xlane.xlu0 %1289  ;;  %v1408_v44 = vpop.permute.xlu1 %1407 }
 0x68e   : > { %v1292_v36 = vsub.f32 %v1284_v27, %v1290_v35  ;;  %v1413_v50 = vsel %vm948_vm3, %v1408_v44, 0 }
 0x690   : > { %v1295_v37 = vmul.f32 1.442695, %v1292_v36 }
 0x691   : > { %v1358_v38 = vpop.permute.xlu0 %1357 }
 0x692   : > { %2963 = vpow2.f32 %v1295_v37  ;;  %v1363_v39 = vsel %vm1089_vm4, %v1358_v38, 0 }
 0x693   : > { %2690 = vmatpush3.bf16.msra.mxu0 %v1363_v39 }
 0x694   : > { %v2962_v40 = vpop.eup %2961  ;;  %2701 = vmatprep.subr.bf16.mxu0 %v3503_v3 }
 0x695   : > { %v1297_v41 = vsel %vm948_vm3, %v2962_v40, 0.0  ;;  %v1406_v55 = vpop.permute.xlu0 %1405 }
 0x696   : > { %1298 = vadd.xlane.f32.xlu1 %v1297_v41 }
 0x69c   : > { %v2964_v42 = vpop.eup %2963 }
 0x69d   : > { %v1300_v43 = vsel %vm948_vm3, %v2964_v42, 0.0 }
 0x69e   : > { %1301 = vadd.xlane.f32.xlu1 %v1300_v43 }
 0x6af   : > { %1457 = vrot.lane.b32.xlu1 %v4127_v16, %s3510_s28  ;;  %s3518_s28 = smov 24  }
 0x6b3   : > { %1455 = vrot.lane.b32.xlu1 %v4127_v16, %s3511_s3 }
 0x723   : > { %v1299_v45 = vpop.xlane.xlu1 %1298 }
 0x724   : > { %2965 = vrcp.f32 %v1299_v45 }
 0x72b   : > { %v1302_v46 = vpop.xlane.xlu1 %1301 }
 0x72c   : > { %2967 = vrcp.f32 %v1302_v46 }
 0x72e   : > { %v2966_v47 = vpop.eup %2965 }
 0x72f   : > { %v1305_v48 = vmul.f32 %v2966_v47, %v2962_v40  ;;  %v1458_v53 = vpop.permute.xlu1 %1457 }
 0x730   : > { %v1463_v56 = vsel %vm948_vm3, %v1458_v53, 0 }
 0x731   : > { %v1307_v49 = vpack.c.bf16 %v1305_v48, %v1305_v48 }
 0x733   : > { %2686 = vmatmul.mubr.msk.bf16.vlgmr.msra.gmra.mrb[8].mxu1 %vm948_vm3, %v1307_v49  ;;  %v1456_v57 = vpop.permute.xlu1 %1455 }
 0x734   : > { %2696 = vmatpush3.bf16.xpose.msra.mxu1 %v1413_v50  ;;  %2697 = vmatprep.mubr.msk.bf16.mxu1 %vm3504_vm1, %v3503_v3 }
 0x735   : > { %2707 = vmatprep.subr.bf16.mxu1 %v3503_v3 }
 0x736   : > { %v2968_v51 = vpop.eup %2967 }
 0x737   : > { %v1306_v52 = vmul.f32 %v2968_v51, %v2964_v42 }
 0x739   : > { %v1308_v54 = vpack.c.bf16 %v1306_v52, %v1306_v52 }
 0x73b   : > { %2692 = vmatmul.mubr.msk.bf16.vlgmr.msra.gmra.mrb[20].mxu0 %vm948_vm3, %v1308_v54  ;;  %2698 = vmatmul.mubr.msk.bf16.vlgmr.msra.gmra.mrb[12].mxu1 %vm948_vm3, %v1406_v55 }
 0x73c   : > { %2702 = vmatpush3.bf16.xpose.msra.mxu0 %v1463_v56  ;;  %2703 = vmatprep.mubr.msk.bf16.mxu0 %vm3504_vm1, %v3503_v3 }
 0x73d   : > { %2713 = vmatprep.subr.bf16.mxu0 %v3503_v3  ;;  %2709 = vmatprep.mubr.msk.bf16.mxu1 %vm3504_vm1, %v3503_v3 }
 0x743   : > { %2704 = vmatmul.mubr.msk.bf16.vlgmr.msra.gmra.mrb[24].mxu0 %vm948_vm3, %v1456_v57 }
 0x744   : > { %2715 = vmatprep.mubr.msk.bf16.mxu0 %vm3504_vm1, %v3503_v3 }
 0x806   : > { %v4214_v58 = vpop.f32.mrb[8].mxu1 }
 0x807   : > { %v2687_v59 = vpop.f32.mrb[9].mxu1 }
 0x808   : > { %v1354_v60 = vpop.f32.mrb[10].mxu1 }
 0x809   : > { %v2688_v61 = vpop.f32.mrb[11].mxu1 }
 0x80e   : > { %v4216_v62 = vpop.f32.mrb[20].mxu0  ;;  %v1449_v63 = vpop.f32.mrb[12].mxu1 }
 0x80f   : > { %v2924_v0 = vpack.i.bf16 %v4216_v62, %v4214_v58  ;;  %v1505_v2 = vmul.f32 0.35355338, %v1449_v63  ;;  %v2693_v4 = vpop.f32.mrb[21].mxu0  ;;  %v2699_v7 = vpop.f32.mrb[13].mxu1 }
 0x810   : > { %v1402_v9 = vpop.f32.mrb[22].mxu0  ;;  %v1452_v10 = vpop.f32.mrb[14].mxu1 }
 0x811   : > { %v2694_v11 = vpop.f32.mrb[23].mxu0  ;;  %v2700_v12 = vpop.f32.mrb[15].mxu1  ;;  %v1507_v14 = vadd.f32 %v4142_v22, %v1505_v2 }
 0x813   : > { %v1509_v15 = vsel %vm948_vm3, %v1507_v14, -inf }
 0x814   : > { %1510 = vmax.xlane.f32.xlu0 %v1509_v15 }
 0x816   : > { %v1499_v17 = vpop.f32.mrb[24].mxu0 }
 0x817   : > { %v1506_v18 = vmul.f32 0.35355338, %v1499_v17  ;;  %v2705_v19 = vpop.f32.mrb[25].mxu0 }
 0x818   : > { %v1502_v20 = vpop.f32.mrb[26].mxu0 }
 0x819   : > { %v2706_v21 = vpop.f32.mrb[27].mxu0  ;;  %v1508_v23 = vadd.f32 %v4146_v30, %v1506_v18 }
 0x81b   : > { %v1512_v24 = vsel %vm948_vm3, %v1508_v23, -inf }
 0x81c   : > { %1513 = vmax.xlane.f32.xlu1 %v1512_v24 }
 0x82d   : > { %1533 = vrot.lane.b32.xlu1 %v4124_v13, %s3512_s14 }
 0x831   : > { %1631 = vrot.lane.b32.xlu1 %v4124_v13, %s3513_s21 }
 0x835   : > { %1681 = vrot.lane.b32.xlu1 %v4127_v16, %s3513_s21 }
 0x839   : > { %1679 = vrot.lane.b32.xlu1 %v4127_v16, %s3514_s19 }
 0x8a1   : > { %v1511_v25 = vpop.xlane.xlu0 %1510 }
 0x8a2   : > { %v1515_v26 = vsub.f32 %v1507_v14, %v1511_v25 }
 0x8a4   : > { %v1517_v27 = vmul.f32 1.442695, %v1515_v26 }
 0x8a6   : > { %2969 = vpow2.f32 %v1517_v27 }
 0x8a9   : > { %v1514_v28 = vpop.xlane.xlu1 %1513 }
 0x8aa   : > { %v1516_v29 = vsub.f32 %v1508_v23, %v1514_v28 }
 0x8ac   : > { %v1519_v31 = vmul.f32 1.442695, %v1516_v29 }
 0x8ad   : > { %v1534_v32 = vpop.permute.xlu1 %1533 }
 0x8ae   : > { %2971 = vpow2.f32 %v1519_v31  ;;  %v1539_v33 = vsel %vm1089_vm4, %v1534_v32, 0 }
 0x8af   : > { %2708 = vmatpush3.bf16.msra.mxu1 %v1539_v33 }
 0x8b0   : > { %v2970_v34 = vpop.eup %2969  ;;  %2719 = vmatprep.subr.bf16.mxu1 %v3503_v3 }
 0x8b1   : > { %v1521_v35 = vsel %vm948_vm3, %v2970_v34, 0.0  ;;  %v1632_v43 = vpop.permute.xlu1 %1631 }
 0x8b2   : > { %1522 = vadd.xlane.f32.xlu0 %v1521_v35  ;;  %v1637_v46 = vsel %vm948_vm3, %v1632_v43, 0 }
 0x8b5   : > { %v1682_v49 = vpop.permute.xlu1 %1681 }
 0x8b6   : > { %v1687_v52 = vsel %vm948_vm3, %v1682_v49, 0 }
 0x8b8   : > { %v2972_v36 = vpop.eup %2971 }
 0x8b9   : > { %v1524_v37 = vsel %vm948_vm3, %v2972_v36, 0.0  ;;  %v1680_v53 = vpop.permute.xlu1 %1679 }
 0x8ba   : > { %1525 = vadd.xlane.f32.xlu0 %v1524_v37 }
 0x8d0   : > { %1581 = vrot.lane.b32.xlu0 %v4127_v16, %s3512_s14 }
 0x8d4   : > { %1629 = vrot.lane.b32.xlu0 %v4124_v13, %s3514_s19 }
 0x93f   : > { %v1523_v38 = vpop.xlane.xlu0 %1522 }
 0x940   : > { %2973 = vrcp.f32 %v1523_v38 }
 0x947   : > { %v1526_v39 = vpop.xlane.xlu0 %1525 }
 0x948   : > { %2975 = vrcp.f32 %v1526_v39 }
 0x94a   : > { %v2974_v40 = vpop.eup %2973 }
 0x94b   : > { %v1529_v41 = vmul.f32 %v2974_v40, %v2970_v34  ;;  %v1582_v42 = vpop.permute.xlu0 %1581  ;;  %v2941_v40 = vld [vmem:[%s756_s30] sm:$0xff]  }
 0x94c   : > { %v1587_v44 = vsel %vm1089_vm4, %v1582_v42, 0 }
 0x94d   : > { %2714 = vmatpush3.bf16.msra.mxu0 %v1587_v44  ;;  %v1531_v45 = vpack.c.bf16 %v1529_v41, %v1529_v41  ;;  %v2942_v41 = vld [vmem:[%s756_s30 + $0x8] sm:$0xff]  }
 0x94e   : > { %2725 = vmatprep.subr.bf16.mxu0 %v3503_v3 }
 0x94f   : > { %2710 = vmatmul.mubr.msk.bf16.vlgmr.msra.gmra.mrb[16].mxu1 %vm948_vm3, %v1531_v45  ;;  %v1630_v51 = vpop.permute.xlu0 %1629 }
 0x950   : > { %2720 = vmatpush3.bf16.xpose.msra.mxu1 %v1637_v46  ;;  %2721 = vmatprep.mubr.msk.bf16.mxu1 %vm3504_vm1, %v3503_v3 }
 0x951   : > { %2731 = vmatprep.subr.bf16.mxu1 %v3503_v3 }
 0x952   : > { %v2976_v47 = vpop.eup %2975 }
 0x953   : > { %v1530_v48 = vmul.f32 %v2976_v47, %v2972_v36 }
 0x955   : > { %v1532_v50 = vpack.c.bf16 %v1530_v48, %v1530_v48 }
 0x957   : > { %2716 = vmatmul.mubr.msk.bf16.vlgmr.msra.gmra.mrb[28].mxu0 %vm948_vm3, %v1532_v50  ;;  %2722 = vmatmul.mubr.msk.bf16.vlgmr.msra.gmra.mrb[20].mxu1 %vm948_vm3, %v1630_v51 }
 0x958   : > { %2726 = vmatpush3.bf16.xpose.msra.mxu0 %v1687_v52  ;;  %2727 = vmatprep.mubr.msk.bf16.mxu0 %vm3504_vm1, %v3503_v3 }
 0x959   : > { %2737 = vmatprep.subr.bf16.mxu0 %v3503_v3  ;;  %2733 = vmatprep.mubr.msk.bf16.mxu1 %vm3504_vm1, %v3503_v3 }
 0x95f   : > { %2728 = vmatmul.mubr.msk.bf16.vlgmr.msra.gmra.mrb[32].mxu0 %vm948_vm3, %v1680_v53 }
 0x960   : > { %2739 = vmatprep.mubr.msk.bf16.mxu0 %vm3504_vm1, %v3503_v3 }
 0xa22   : > { %v1575_v54 = vpop.f32.mrb[16].mxu1 }
 0xa23   : > { %v2711_v55 = vpop.f32.mrb[17].mxu1 }
 0xa24   : > { %v1578_v56 = vpop.f32.mrb[18].mxu1 }
 0xa25   : > { %v2712_v57 = vpop.f32.mrb[19].mxu1 }
 0xa2a   : > { %v1623_v59 = vpop.f32.mrb[28].mxu0  ;;  %v1673_v60 = vpop.f32.mrb[20].mxu1 }
 0xa2b   : > { %v2929_v61 = vpack.i.bf16 %v1623_v59, %v1575_v54  ;;  %v1729_v63 = vmul.f32 0.35355338, %v1673_v60  ;;  %v2717_v2 = vpop.f32.mrb[29].mxu0  ;;  %v2723_v4 = vpop.f32.mrb[21].mxu1 }
 0xa2c   : > { %v1626_v7 = vpop.f32.mrb[30].mxu0  ;;  %v1676_v9 = vpop.f32.mrb[22].mxu1 }
 0xa2d   : > { %v2718_v10 = vpop.f32.mrb[31].mxu0  ;;  %v2724_v11 = vpop.f32.mrb[23].mxu1  ;;  %v1731_v12 = vadd.f32 %v4142_v22, %v1729_v63 }
 0xa2e   : > { %v2560_v11 = vld [vmem:[%s747_s16] ss:$0 sm:$0xff] }
 0xa2f   : > { %v1733_v14 = vsel %vm948_vm3, %v1731_v12, -inf }
 0xa30   : > { %1734 = vmax.xlane.f32.xlu0 %v1733_v14 }
 0xa32   : > { %v1723_v15 = vpop.f32.mrb[32].mxu0 }
 0xa33   : > { %v1730_v17 = vmul.f32 0.35355338, %v1723_v15  ;;  %v2729_v18 = vpop.f32.mrb[33].mxu0 }
 0xa34   : > { %v1726_v19 = vpop.f32.mrb[34].mxu0 }
 0xa35   : > { %v2730_v20 = vpop.f32.mrb[35].mxu0  ;;  %v1732_v21 = vadd.f32 %v4146_v30, %v1730_v17 }
 0xa37   : > { %v1736_v23 = vsel %vm948_vm3, %v1732_v21, -inf }
 0xa38   : > { %1737 = vmax.xlane.f32.xlu1 %v1736_v23 }
 0xa49   : > { %1757 = vrot.lane.b32.xlu1 %v4124_v13, %s3515_s17 }
 0xa4d   : > { %2925 = vrot.lane.b32.xlu1 %v2924_v0, %s3516_s13 }
 0xa51   : > { %2930 = vrot.lane.b32.xlu1 %v2929_v61, %s3517_s25 }
 0xabd   : > { %v1735_v22 = vpop.xlane.xlu0 %1734 }
 0xabe   : > { %v1739_v24 = vsub.f32 %v1731_v12, %v1735_v22 }
 0xac0   : > { %v1741_v25 = vmul.f32 1.442695, %v1739_v24 }
 0xac2   : > { %2977 = vpow2.f32 %v1741_v25 }
 0xac5   : > { %v1738_v26 = vpop.xlane.xlu1 %1737 }
 0xac6   : > { %v1740_v30 = vsub.f32 %v1732_v21, %v1738_v26 }
 0xac8   : > { %v1743_v27 = vmul.f32 1.442695, %v1740_v30 }
 0xac9   : > { %v1758_v28 = vpop.permute.xlu1 %1757 }
 0xaca   : > { %2979 = vpow2.f32 %v1743_v27  ;;  %v1763_v29 = vsel %vm1089_vm4, %v1758_v28, 0 }
 0xacb   : > { %2732 = vmatpush3.bf16.msra.mxu1 %v1763_v29  ;;  %v2943_v29 = vld [vmem:[%s690_s20] sm:$0xff]  }
 0xacc   : > { %v2978_v13 = vpop.eup %2977  ;;  %2743 = vmatprep.subr.bf16.mxu1 %v3503_v3 }
 0xacd   : > { %v1745_v58 = vsel %vm948_vm3, %v2978_v13, 0.0  ;;  %v2926_v51 = vpop.permute.xlu1 %2925 }
 0xace   : > { %1746 = vadd.xlane.f32.xlu0 %v1745_v58  ;;  %v2928_v53 = vunpack.i.h.bf16 %v2926_v51  ;;  %v2927_v54 = vunpack.i.l.bf16 %v2926_v51  ;;  %v2945_v58 = vld [vmem:[%s4095_s2] sm:$0xff]   ;;  %v2952_v51 = vld [vmem:[%s4095_s2 + $0x38] sm:$0xff]  }
 0xad0   : > { %v1878_v59 = vsel %vm948_vm3, %v4180_v8, %v2928_v53  ;;  %v1877_v60 = vsel %vm948_vm3, %v4178_v1, %v2927_v54 }
 0xad1   : > { %v2931_v52 = vpop.permute.xlu1 %2930 }
 0xad2   : > { %v2933_v55 = vunpack.i.h.bf16 %v2931_v52  ;;  %v2932_v56 = vunpack.i.l.bf16 %v2931_v52  ;;  %v2566_v52 = vld [vmem:[%s681_s29] ss:$0 sm:$0xff]  ;;  %s4462_s29 = sld [smem:[#allocation26_spill]] }
 0xad4   : > { %v2980_v62 = vpop.eup %2979  ;;  %v1880_v2 = vsel %vm1879_vm5, %v1877_v60, %v2932_v56  ;;  %v1881_v4 = vsel %vm1879_vm5, %v1878_v59, %v2933_v55 }
 0xad5   : > { %v1748_v0 = vsel %vm948_vm3, %v2980_v62, 0.0 }
 0xad6   : > { %1749 = vadd.xlane.f32.xlu0 %v1748_v0  ;;  %v2947_v0 = vld [vmem:[%s4095_s2 + $0x10] sm:$0xff]  }
 0xad8   : > { %p2864_p1 = scmp.eq.s32.totalorder %s4462_s29, 1 }
 0xaec   : > { %1805 = vrot.lane.b32.xlu0 %v4127_v16, %s3515_s17 }
 0xb5b   : > { %v1747_v31 = vpop.xlane.xlu0 %1746 }
 0xb5c   : > { %2981 = vrcp.f32 %v1747_v31  ;;  %v2948_v31 = vld [vmem:[%s4095_s2 + $0x18] sm:$0xff]  }
 0xb63   : > { %v1750_v32 = vpop.xlane.xlu0 %1749 }
 0xb64   : > { %2983 = vrcp.f32 %v1750_v32  ;;  %v2949_v32 = vld [vmem:[%s4095_s2 + $0x20] sm:$0xff]  }
 0xb66   : > { %v2982_v33 = vpop.eup %2981 }
 0xb67   : > { %v1753_v34 = vmul.f32 %v2982_v33, %v2978_v13  ;;  %v1806_v35 = vpop.permute.xlu0 %1805  ;;  %v2944_v13 = vld [vmem:[%s690_s20 + $0x8] sm:$0xff]   ;;  %s2237_s20 = sshll.u32 %s3519_s22, 4  ;;  %s2238_s20 = int_to_ptr.vmem [resolvable:$true] %s2237_s20 }
 0xb68   : > { %v1811_v36 = vsel %vm1089_vm4, %v1806_v35, 0  ;;  %v2950_v33 = vld [vmem:[%s4095_s2 + $0x28] sm:$0xff]   ;;  %p3416_p13 = scmp.lt.s32.totalorder %s2238_s20, %s2238_s20 }
 0xb69   : > { %2738 = vmatpush3.bf16.msra.mxu0 %v1811_v36  ;;  %v1755_v37 = vpack.c.bf16 %v1753_v34, %v1753_v34 }
 0xb6a   : > { %2751 = vmatprep.subr.bf16.mxu0 %v3503_v3 }
 0xb6b   : > { %2734 = vmatmul.mubr.msk.bf16.vlgmr.msra.gmra.mrb[24].mxu1 %vm948_vm3, %v1755_v37 }
 0xb6c   : > { %2747 = vmatprep.mubr.msk.bf16.mxu1 %vm3504_vm1, %v3503_v3  ;;  %2744 = vmatpush3.bf16.msra.mxu1 %v2941_v40  ;;  %v2564_v40 = vld [vmem:[%s723_s23] ss:$0 sm:$0xff] }
 0xb6d   : > { %2745 = vmatprep.subr.bf16.mxu1 %v3503_v3 }
 0xb6e   : > { %v2984_v16 = vpop.eup %2983 }
 0xb6f   : > { %v1754_v38 = vmul.f32 %v2984_v16, %v2980_v62  ;;  %v2946_v62 = vld [vmem:[%s4095_s2 + $0x8] sm:$0xff]  }
 0xb70   : > { %2746 = vmatpush3.bf16.msra.mxu1 %v2942_v41 }
 0xb71   : > { %v1756_v39 = vpack.c.bf16 %v1754_v38, %v1754_v38  ;;  %2759 = vmatprep.subr.bf16.mxu1 %v3503_v3 }
 0xb73   : > { %2740 = vmatmul.mubr.msk.bf16.vlgmr.msra.gmra.mrb[36].mxu0 %vm948_vm3, %v1756_v39 }
 0xb74   : > { %2755 = vmatprep.mubr.msk.bf16.mxu0 %vm3504_vm1, %v3503_v3  ;;  %2752 = vmatpush3.bf16.msra.mxu0 %v2943_v29 }
 0xb75   : > { %2753 = vmatprep.subr.bf16.mxu0 %v3503_v3 }
 0xb78   : > { %2754 = vmatpush3.bf16.msra.mxu0 %v2944_v13  ;;  %v2579_v13 = vld [vmem:[%s739_s24] ss:$0 sm:$0xff] }
 0xc3e   : > { %v1799_v42 = vpop.f32.mrb[24].mxu1 }
 0xc3f   : > { %v2735_v43 = vpop.f32.mrb[25].mxu1 }
 0xc40   : > { %v1802_v44 = vpop.f32.mrb[26].mxu1 }
 0xc41   : > { %v2736_v45 = vpop.f32.mrb[27].mxu1 }
 0xc42   : > { %v2565_v45 = vld [vmem:[%s715_s15] ss:$0 sm:$0xff] }
 0xc46   : > { %v1847_v46 = vpop.f32.mrb[36].mxu0 }
 0xc47   : > { %v2934_v47 = vpack.i.bf16 %v1847_v46, %v1799_v42  ;;  %v2741_v48 = vpop.f32.mrb[37].mxu0 }
 0xc48   : > { %v1850_v49 = vpop.f32.mrb[38].mxu0 }
 0xc49   : > { %2935 = vrot.lane.b32.xlu0 %v2934_v47, %s3518_s28  ;;  %v2742_v50 = vpop.f32.mrb[39].mxu0 }
 0xc4a   : > { %v2951_v50 = vld [vmem:[%s4095_s2 + $0x30] sm:$0xff]  }
 0xcbb   : > { %v2936_v57 = vpop.permute.xlu0 %2935 }
 0xcbc   : > { %v2938_v61 = vunpack.i.h.bf16 %v2936_v57  ;;  %v2937_v63 = vunpack.i.l.bf16 %v2936_v57 }
 0xcbe   : > { %v1884_v7 = vsel %vm1882_vm6, %v1881_v4, %v2938_v61  ;;  %v1883_v9 = vsel %vm1882_vm6, %v1880_v2, %v2937_v63  ;;  %v2570_v2 = vld [vmem:[%s698_s27] ss:$0 sm:$0xff]  ;;  %s3409_s27 = scalar_lea.vmem %s2238_s20, 256 }
 0xcbf   : > { %v1885_v10 = vpack.c.bf16 %v1884_v7, %v1883_v9  ;;  %p3410_p8 = scmp.ne.s32.totalorder %s2238_s20, %s3409_s27  ;;  %p3417_p11 = scmp.lt.s32.totalorder %s3409_s27, %s3409_s27 }
 0xcc1   : > { %2748 = vmatmul.mubr.msk.bf16.vlgmr.msra.gmra.mrb[28].mxu1 %vm898_vm2, %v1885_v10  ;;  %p3411_p7 = pnand %p3410_p8, %p2864_p1  ;;  %p3418_p3 = por %p3417_p11, %p3416_p13 }
 0xcc2   : > { %2775 = vmatprep.mubr.msk.bf16.mxu1 %vm3504_vm1, %v3503_v3  ;;  %2760 = vmatpush3.bf16.msra.mxu1 %v2945_v58 }
 0xcc3   : > { %2761 = vmatprep.subr.bf16.mxu1 %v3503_v3  ;;  %p3412_p9 = pneg %p3411_p7 }
 0xcc5   : > { %p3419_p10 = pnand %p3418_p3, %p3412_p9 }
 0xcc6   : > { %2762 = vmatpush3.bf16.msra.mxu1 %v2946_v62 }
 0xcc7   : > { %2763 = vmatprep.subr.bf16.mxu1 %v3503_v3 }
 0xcca   : > { %2764 = vmatpush3.bf16.msra.mxu1 %v2947_v0  ;;  %v2580_v0 = vld [vmem:[%s731_s26] ss:$0 sm:$0xff] }
 0xccb   : > { %2765 = vmatprep.subr.bf16.mxu1 %v3503_v3 }
 0xcce   : > { %2766 = vmatpush3.bf16.msra.mxu1 %v2948_v31 }
 0xccf   : > { %2767 = vmatprep.subr.bf16.mxu1 %v3503_v3 }
 0xcd2   : > { %2768 = vmatpush3.bf16.msra.mxu1 %v2949_v32 }
 0xcd3   : > { %2769 = vmatprep.subr.bf16.mxu1 %v3503_v3 }
 0xcd6   : > { %2770 = vmatpush3.bf16.msra.mxu1 %v2950_v33 }
 0xcd7   : > { %2771 = vmatprep.subr.bf16.mxu1 %v3503_v3 }
 0xcda   : > { %2772 = vmatpush3.bf16.msra.mxu1 %v2951_v50 }
 0xcdb   : > { %2773 = vmatprep.subr.bf16.mxu1 %v3503_v3 }
 0xcde   : > { %2774 = vmatpush3.bf16.msra.mxu1 %v2952_v51 }
 0xd94   : > { %v1946_v12 = vpop.f32.mrb[28].mxu1 }
 0xd95   : > { %v1947_v14 = vadd.f32 %v2560_v11, %v1946_v12  ;;  %v2749_v8 = vpop.f32.mrb[29].mxu1 }
 0xd96   : > { %v1949_v15 = vpop.f32.mrb[30].mxu1 }
 0xd97   : > { %v1950_v17 = vadd.f32 %v2560_v11, %v1949_v15  ;;  %v2750_v1 = vpop.f32.mrb[31].mxu1  ;;  %v1953_v18 = vadd.f32 %v1947_v14, %v4111_v5 }
 0xd99   : > { %v1957_v19 = vsel %vm898_vm2, %v1953_v18, 0.0  ;;  %v1954_v20 = vadd.f32 %v1950_v17, %v4113_v6 }
 0xd9a   : > { %1958 = vadd.xlane.f32.xlu1 %v1957_v19 }
 0xd9b   : > { %v1960_v21 = vsel %vm898_vm2, %v1954_v20, 0.0 }
 0xd9c   : > { %1961 = vadd.xlane.f32.xlu0 %v1960_v21 }
 0xe27   : > { %v1959_v23 = vpop.xlane.xlu1 %1958 }
 0xe28   : > { %v1964_v22 = vmul.f32 0.03125, %v1959_v23 }
 0xe29   : > { %v1962_v24 = vpop.xlane.xlu0 %1961 }
 0xe2a   : > { %v1966_v25 = vsub.f32 %v1953_v18, %v1964_v22  ;;  %v1965_v26 = vmul.f32 0.03125, %v1962_v24 }
 0xe2c   : > { %v1967_v30 = vsub.f32 %v1954_v20, %v1965_v26  ;;  %v1968_v27 = vmul.f32 %v1966_v25, %v1966_v25 }
 0xe2e   : > { %v1970_v5 = vsel %vm898_vm2, %v1968_v27, 0.0  ;;  %v1969_v28 = vmul.f32 %v1967_v30, %v1967_v30 }
 0xe2f   : > { %1971 = vadd.xlane.f32.xlu0 %v1970_v5 }
 0xe30   : > { %v1973_v6 = vsel %vm898_vm2, %v1969_v28, 0.0 }
 0xe31   : > { %1974 = vadd.xlane.f32.xlu1 %v1973_v6 }
 0xebc   : > { %v1972_v34 = vpop.xlane.xlu0 %1971 }
 0xebd   : > { %v1976_v35 = vmul.f32 0.03125, %v1972_v34 }
 0xebe   : > { %v1975_v36 = vpop.xlane.xlu1 %1974 }
 0xebf   : > { %v1978_v37 = vadd.f32 1e-05, %v1976_v35  ;;  %v1977_v16 = vmul.f32 0.03125, %v1975_v36 }
 0xec1   : > { %2985 = vrsqrt.f32 %v1978_v37  ;;  %v1979_v38 = vadd.f32 1e-05, %v1977_v16 }
 0xec3   : > { %2987 = vrsqrt.f32 %v1979_v38 }
 0xecb   : > { %v2986_v39 = vpop.eup %2985 }
 0xecc   : > { %v1982_v41 = vmul.f32 %v2986_v39, %v1966_v25 }
 0xecd   : > { %v2988_v42 = vpop.eup %2987 }
 0xece   : > { %v1990_v43 = vmul.f32 %v2564_v40, %v1982_v41  ;;  %v1983_v44 = vmul.f32 %v2988_v42, %v1967_v30 }
 0xed0   : > { %v1991_v46 = vmul.f32 %v2564_v40, %v1983_v44  ;;  %v1998_v47 = vadd.f32 %v2565_v45, %v1990_v43 }
 0xed2   : > { %v1999_v48 = vadd.f32 %v2565_v45, %v1991_v46 }
 0xed4   : > { %v2000_v49 = vpack.c.bf16 %v1999_v48, %v1998_v47 }
 0xed6   : > { %2756 = vmatmul.mubr.msk.bf16.vlgmr.msra.gmra.mrb[40].mxu0 %vm898_vm2, %v2000_v49 }
 0xfa9   : > { %v2061_v53 = vpop.f32.mrb[40].mxu0 }
 0xfaa   : > { %v2062_v54 = vadd.f32 %v2566_v52, %v2061_v53  ;;  %v2757_v55 = vpop.f32.mrb[41].mxu0 }
 0xfab   : > { %v2064_v56 = vpop.f32.mrb[42].mxu0 }
 0xfac   : > { %v2065_v57 = vadd.f32 %v2566_v52, %v2064_v56  ;;  %v2758_v59 = vpop.f32.mrb[43].mxu0  ;;  %v2068_v60 = vmax.f32 %v2062_v54, 0.0 }
 0xfae   : > { %v2069_v61 = vmax.f32 %v2065_v57, 0.0 }
 0xfb0   : > { %v2070_v63 = vpack.c.bf16 %v2069_v61, %v2068_v60 }
 0xfb2   : > { %2776 = vmatmul.mubr.bf16.vlgmr.msra.gmra.mrb[32].mxu1 %v2070_v63 }
0x1085   : > { %v2176_v4 = vpop.f32.mrb[32].mxu1 }
0x1086   : > { %v2177_v7 = vadd.f32 %v2570_v2, %v2176_v4  ;;  %v2777_v9 = vpop.f32.mrb[33].mxu1 }
0x1087   : > { %v2179_v3 = vpop.f32.mrb[34].mxu1 }
0x1088   : > { %v2180_v10 = vadd.f32 %v2570_v2, %v2179_v3  ;;  %v2778_v11 = vpop.f32.mrb[35].mxu1  ;;  %v2183_v12 = vadd.f32 %v2177_v7, %v1998_v47 }
0x108a   : > { %v2187_v14 = vsel %vm898_vm2, %v2183_v12, 0.0  ;;  %v2184_v8 = vadd.f32 %v2180_v10, %v1999_v48 }
0x108b   : > { %2188 = vadd.xlane.f32.xlu0 %v2187_v14 }
0x108c   : > { %v2190_v15 = vsel %vm898_vm2, %v2184_v8, 0.0 }
0x108d   : > { %2191 = vadd.xlane.f32.xlu1 %v2190_v15 }
0x1118   : > { %v2189_v17 = vpop.xlane.xlu0 %2188 }
0x1119   : > { %v2193_v1 = vmul.f32 0.03125, %v2189_v17 }
0x111a   : > { %v2192_v18 = vpop.xlane.xlu1 %2191 }
0x111b   : > { %v2195_v19 = vsub.f32 %v2183_v12, %v2193_v1  ;;  %v2194_v20 = vmul.f32 0.03125, %v2192_v18 }
0x111d   : > { %v2196_v21 = vsub.f32 %v2184_v8, %v2194_v20  ;;  %v2197_v23 = vmul.f32 %v2195_v19, %v2195_v19 }
0x111f   : > { %v2199_v22 = vsel %vm898_vm2, %v2197_v23, 0.0  ;;  %v2198_v24 = vmul.f32 %v2196_v21, %v2196_v21 }
0x1120   : > { %2200 = vadd.xlane.f32.xlu0 %v2199_v22 }
0x1121   : > { %v2202_v25 = vsel %vm898_vm2, %v2198_v24, 0.0 }
0x1122   : > { %2203 = vadd.xlane.f32.xlu1 %v2202_v25 }
0x11ad   : > { %v2201_v26 = vpop.xlane.xlu0 %2200 }
0x11ae   : > { %v2205_v30 = vmul.f32 0.03125, %v2201_v26 }
0x11af   : > { %v2204_v27 = vpop.xlane.xlu1 %2203 }
0x11b0   : > { %v2207_v5 = vadd.f32 1e-05, %v2205_v30  ;;  %v2206_v28 = vmul.f32 0.03125, %v2204_v27 }
0x11b2   : > { %2989 = vrsqrt.f32 %v2207_v5  ;;  %v2208_v6 = vadd.f32 1e-05, %v2206_v28 }
0x11b4   : > { %2991 = vrsqrt.f32 %v2208_v6 }
0x11bc   : > { %v2990_v29 = vpop.eup %2989 }
0x11bd   : > { %v2211_v58 = vmul.f32 %v2990_v29, %v2195_v19 }
0x11be   : > { %v2992_v62 = vpop.eup %2991 }
0x11bf   : > { %v2219_v31 = vmul.f32 %v2579_v13, %v2211_v58  ;;  %v2212_v32 = vmul.f32 %v2992_v62, %v2196_v21 }
0x11c1   : > { %v2220_v33 = vmul.f32 %v2579_v13, %v2212_v32  ;;  %v2227_v34 = vadd.f32 %v2580_v0, %v2219_v31 }
0x11c3   : > { %v2228_v35 = vadd.f32 %v2580_v0, %v2220_v33  ;;  %2229 = vst.msk [vmem:[#allocation19] sm:$0xff] %vm898_vm2, %v2227_v34 }
0x11c5   : > { %2230 = vst.msk [vmem:[#allocation19 + $0x8] sm:$0xff] %vm898_vm2, %v2228_v35 }
0x11c6   : > { %3422 = shalt.err (!%p3419_p10)
}
0x11c7   : > { %s4463_s15 = sld [smem:[#allocation35_spill]] }
0x11cd   : > { %s4464_s23 = smov %s4463_s15  ;;  %s3423_s26 = scalar_lea.hbm %s4463_s15, 256 }
0x11ce   : > { %p3424_p2 = scmp.ne.s32.totalorder %s4464_s23, %s3423_s26  ;;  %p3429_p6 = scmp.lt.u32.totalorder %s3423_s26, %s4464_s23 }
0x11d0   : > { %p3425_p12 = pnand %p3424_p2, %p2864_p1 }
0x11d2   : > { %p3426_p4 = pneg %p3425_p12 }
0x11d4   : > { %p3431_p0 = pnand %p3429_p6, %p3426_p4 }
0x11d6   : > { %3434 = shalt.err (!%p3431_p0)
}
0x11d7   : > { %s3520_s14 = smov 128  }
0x11d8   : > { %2812 = dma.vmem_to_hbm [thread:$0]  (%p2864_p1), %s2238_s20, 256, %s4464_s23, [#allocation4], %s3520_s14, %s3520_s14, %s3516_s13  }
0x11d9   : > { %3464 = dma.done.wait (%p2864_p1), [#allocation4], 256  }
0x11da   : > { %3466 = vsyncadd (%p2864_p1), [#allocation4], 4294967040 }
0x11db PF: > { %s4465_s16 = sld [smem:[#allocation27_spill]]  ;;  %s4466_s29 = sld [smem:[#allocation24_spill]] }
0x11dc   : > { %s4467_s30 = sld [smem:[#allocation25_spill]]  ;;  %s4468_s15 = sld [smem:[#allocation28_spill]] }
0x11e1   : > { %p24_p5 = scmp.ge.s32.totalorder %s4465_s16, 4  }
0x11e3   :  { %26 = sbr.rel (!%p24_p5) target bundleno = 10 (0xa), region = 245 }
0x11ea   :  { %2253 = vsyncpa [#allocation3], 1 }
0x11eb   :  { %2255 = vsyncpa [#allocation3 + $0x1], 1 }
0x11ec   :  { %2256 = vsyncpa [#allocation6], 1 }
0x11ed   :  { %2257 = vsyncpa [#allocation4], 1 }
0x11ee   :  { %2259 = vsyncpa [#allocation4 + $0x1], 1 }

// kernel: _lambda_.6
= control target key start
LH: loop header
LB: loop body
LE: loop exit
PB: predicated region body
PF: predicated region fallthrough
CT: control target
= control target key end

     0   :  { %s7422_s0 = inlined_call_operand.hbm [shape: f32[16,32], index: 0, kind: input, shape index: {}]   ;;  %s7423_s1 = inlined_call_operand.hbm [shape: f32[16,32], index: 1, kind: input, shape index: {}]   ;;  %s7424_s2 = inlined_call_operand.hbm [shape: f32[2,8,8], index: 2, kind: input, shape index: {}]   ;;  %s7425_s3 = inlined_call_operand.hbm [shape: f32[2,1,64], index: 3, kind: input, shape index: {}]   ;;  %s7426_s4 = inlined_call_operand.hbm [shape: bf16[2,32,64], index: 4, kind: input, shape index: {}]   ;;  %s7427_s5 = inlined_call_operand.hbm [shape: f32[2,1,32], index: 5, kind: input, shape index: {}]   ;;  %s7428_s6 = inlined_call_operand.hbm [shape: bf16[2,32,32], index: 6, kind: input, shape index: {}]   ;;  %s7429_s7 = inlined_call_operand.hbm [shape: f32[2,1,32], index: 7, kind: input, shape index: {}]   ;;  %s7430_s8 = inlined_call_operand.hbm [shape: bf16[2,32,32], index: 8, kind: input, shape index: {}]   ;;  %s7431_s9 = inlined_call_operand.hbm [shape: f32[2,1,128], index: 9, kind: input, shape index: {}]   ;;  %s7432_s10 = inlined_call_operand.hbm [shape: bf16[2,32,128], index: 10, kind: input, shape index: {}]   ;;  %s7433_s11 = inlined_call_operand.hbm [shape: f32[2,1,32], index: 11, kind: input, shape index: {}]   ;;  %s7434_s12 = inlined_call_operand.hbm [shape: bf16[2,128,32], index: 12, kind: input, shape index: {}]   ;;  %s7435_s13 = inlined_call_operand.hbm [shape: f32[2,1,32], index: 13, kind: input, shape index: {}]   ;;  %s7436_s14 = inlined_call_operand.hbm [shape: f32[2,1,32], index: 14, kind: input, shape index: {}]   ;;  %s7437_s15 = inlined_call_operand.hbm [shape: f32[2,1,32], index: 15, kind: input, shape index: {}]   ;;  %s7438_s16 = inlined_call_operand.hbm [shape: f32[2,1,32], index: 16, kind: input, shape index: {}]   ;;  %s7439_s17 = inlined_call_operand.hbm [shape: f32[2,1,32], index: 17, kind: input, shape index: {}]   ;;  %s7440_s18 = inlined_call_operand.hbm [shape: f32[2,1,32], index: 18, kind: input, shape index: {}]   ;;  %s7441_s19 = inlined_call_operand.hbm [shape: f32[2,1,32], index: 19, kind: input, shape index: {}]   ;;  %s7442_s20 = inlined_call_operand.hbm [shape: bf16[2,32,32], index: 20, kind: input, shape index: {}]   ;;  %s7443_s21 = inlined_call_operand.hbm [shape: f32[2,1,96], index: 21, kind: input, shape index: {}]   ;;  %s7444_s22 = inlined_call_operand.hbm [shape: bf16[2,32,96], index: 22, kind: input, shape index: {}]   ;;  %s7445_s23 = inlined_call_operand.hbm [shape: f32[16,32], index: 23, kind: output, shape index: {}]  }
   0x1   :  { %7486 = sst [smem:[#allocation58_spill]] %s7422_s0 }
   0x2   :  { %7487 = sst [smem:[#allocation59_spill]] %s7423_s1 }
   0x3   :  { %7488 = sst [smem:[#allocation60_spill]] %s7424_s2 }
   0x4   :  { %7489 = sst [smem:[#allocation61_spill]] %s7425_s3 }
   0x5   :  { %7490 = sst [smem:[#allocation62_spill]] %s7426_s4 }
   0x6   :  { %7491 = sst [smem:[#allocation63_spill]] %s7427_s5 }
   0x7   :  { %7492 = sst [smem:[#allocation64_spill]] %s7428_s6 }
   0x8   :  { %7493 = sst [smem:[#allocation65_spill]] %s7429_s7 }
   0x9   :  { %7494 = sst [smem:[#allocation66_spill]] %s7430_s8 }
   0xa   :  { %7495 = sst [smem:[#allocation67_spill]] %s7431_s9 }
   0xb   :  { %7496 = sst [smem:[#allocation68_spill]] %s7433_s11 }
   0xc   :  { %7497 = sst [smem:[#allocation69_spill]] %s7435_s13 }
   0xd   :  { %7498 = sst [smem:[#allocation70_spill]] %s7436_s14 }
   0xe   :  { %7499 = sst [smem:[#allocation71_spill]] %s7437_s15 }
   0xf   :  { %7500 = sst [smem:[#allocation72_spill]] %s7438_s16 }
  0x10   :  { %7501 = sst [smem:[#allocation73_spill]] %s7440_s18 }
  0x11   :  { %7502 = sst [smem:[#allocation74_spill]] %s7442_s20 }
  0x12   :  { %7503 = sst [smem:[#allocation75_spill]] %s7444_s22 }
  0x13   :  { %7504 = sst [smem:[#allocation76_spill]] %s7445_s23 }
  0x14   :  { %28 = vsyncpa [#allocation3], 0 }
  0x15   :  { %29 = vsyncpa [#allocation6], 0 }
  0x16   :  { %30 = vsyncpa [#allocation9], 0 }
  0x17   :  { %32 = vsyncpa [#allocation9 + $0x1], 0 }
  0x18   :  { %33 = vsyncpa [#allocation12], 0 }
  0x19   :  { %35 = vsyncpa [#allocation12 + $0x1], 0 }
  0x1a   :  { %36 = vsyncpa [#allocation15], 0 }
  0x1b   :  { %38 = vsyncpa [#allocation15 + $0x1], 0 }
  0x1c   :  { %39 = vsyncpa [#allocation18], 0 }
  0x1d   :  { %41 = vsyncpa [#allocation18 + $0x1], 0 }
  0x1e   :  { %42 = vsyncpa [#allocation21], 0 }
  0x1f   :  { %44 = vsyncpa [#allocation21 + $0x1], 0 }
  0x20   :  { %45 = vsyncpa [#allocation24], 0 }
  0x21   :  { %47 = vsyncpa [#allocation24 + $0x1], 0 }
  0x22   :  { %48 = vsyncpa [#allocation27], 0 }
  0x23   :  { %50 = vsyncpa [#allocation27 + $0x1], 0 }
  0x24   :  { %51 = vsyncpa [#allocation30], 0 }
  0x25   :  { %53 = vsyncpa [#allocation30 + $0x1], 0 }
  0x26   :  { %54 = vsyncpa [#allocation33], 0 }
  0x27   :  { %56 = vsyncpa [#allocation33 + $0x1], 0 }
  0x28   :  { %57 = vsyncpa [#allocation36], 0 }
  0x29   :  { %59 = vsyncpa [#allocation36 + $0x1], 0 }
  0x2a   :  { %60 = vsyncpa [#allocation4], 0  ;;  %s6061_s4 = smov 0   ;;  %s6063_s30 = smov 0  }
  0x2b   :  { %s6065_s24 = smov 0   ;;  %s6067_s25 = smov 0  }
  0x2c LB: > { %7505 = sst [smem:[#allocation52_spill]] %s5886_s30  ;;  %s6080_s5 = sadd.s32 4294967295, %s5894_s25   ;;  %s5894_s25 = sphi %s6067_s25, %s7587_s25   ;;  %s5890_s24 = sphi %s6065_s24, %s7591_s24   ;;  %s5886_s30 = sphi %s6063_s30, %s7590_s30   ;;  %s5882_s4 = sphi %s6061_s4, %s7588_s4  }
  0x2d   : > { %7506 = sst [smem:[#allocation53_spill]] %s6080_s5  ;;  %s6083_s1 = sadd.s32 1, %s5894_s25  }
  0x2e   : > { %7507 = sst [smem:[#allocation54_spill]] %s6083_s1  ;;  %s133_s26 = ssub.s32 %s5894_s25, %s6083_s1 }
  0x2f   : > { %s136_s2 = sadd.s32 1, %s5890_s24  ;;  %p134_p0 = scmp.eq.s32.totalorder %s133_s26, 0 }
  0x30   : > { %p143_p1 = scmp.ne.s32.totalorder %s5890_s24, %s5886_s30  ;;  %p144_p2 = scmp.eq.s32.totalorder %s5894_s25, 0 }
  0x31   : > { %p149_p3 = scmp.ne.s32.totalorder %s5886_s30, %s5882_s4  ;;  %p7464_p5 = scmp.eq.s32.totalorder %s6080_s5, 0 }
  0x32   : > { %s6093_s6 = scalar_select %p134_p0, %s5890_s24, %s136_s2  }
  0x33   : > { %p6095_p4 = por %p144_p2, %p143_p1  ;;  %p4401_p6 = scmp.ge.s32.totalorder %s5894_s25, 1 }
  0x34   : > { %7508 = sst [smem:[#allocation55_spill]] %s6093_s6  ;;  %p675_p7 = scmp.lt.s32.totalorder %s5894_s25, 3 }
  0x35   : > { %s7509_s27 = scalar_select %p6095_p4, 1, 0 }
  0x36   : > { %p6104_p8 = por %p7464_p5, %p149_p3  ;;  %p6109_p10 = pnand %p4401_p6, %p675_p7 }
  0x37   : > { %s5896_s29 = smov [#allocation5]   ;;  %s5897_s4 = smov [#allocation2]  }
  0x38   : > { %s7510_s7 = scalar_select %p6104_p8, 1, 0 }
  0x39   : > { %s7512_s28 = scalar_select %p6109_p10, 1, 0 }
  0x3a   : > { %7511 = sst [smem:[#allocation56_spill]] %s7510_s7  ;;  %p4941_p11 = pneg %p6109_p10 }
  0x3b   : > { %7513 = sst [smem:[#allocation57_spill]] %s7512_s28  ;;  %s700_s3 = sshll.u32 %s5896_s29, 4  ;;  %s6115_s3 = int_to_ptr.vmem [resolvable:$true] %s700_s3 }
  0x3c   : > { %p6119_p12 = pnand %p4941_p11, %p7464_p5  ;;  %s687_s26 = sshll.u32 %s5897_s4, 4  ;;  %s6123_s26 = int_to_ptr.vmem [resolvable:$true] %s687_s26 }
  0x3d   : > { %s5898_s2 = smov [#allocation7]   ;;  %s7515_s7 = sld [smem:[#allocation59_spill]] }
  0x3e   : > { %s6125_s6 = sshll.u32 %s5898_s2, 4  ;;  %p6135_p0 = pneg %p6119_p12  ;;  %s714_s6 = int_to_ptr.vmem [resolvable:$true] %s6125_s6 }
  0x43   : > { %s5142_s30 = scalar_lea.hbm %s7515_s7, 256 }
  0x44   : > { %p5143_p13 = scmp.ne.s32.totalorder %s7515_s7, %s5142_s30  ;;  %p5149_p3 = scmp.lt.u32.totalorder %s5142_s30, %s7515_s7 }
  0x46   : > { %p5145_p1 = pnand %p6135_p0, %p5143_p13 }
  0x48   : > { %p5146_p2 = pneg %p5145_p1 }
  0x4a   : > { %p5151_p6 = pnand %p5149_p3, %p5146_p2 }
  0x4c   : > { %5154 = shalt.err (!%p5151_p6)
}
  0x4d   : > { %s5155_s23 = scalar_lea.vmem %s6115_s3, 256  ;;  %p5163_p5 = scmp.lt.s32.totalorder %s6115_s3, %s6115_s3 }
  0x4e   : > { %p5156_p7 = scmp.ne.s32.totalorder %s6115_s3, %s5155_s23  ;;  %p5164_p8 = scmp.lt.s32.totalorder %s5155_s23, %s5155_s23 }
  0x50   : > { %p5158_p11 = pnand %p5156_p7, %p6135_p0  ;;  %p5165_p13 = por %p5164_p8, %p5163_p5 }
  0x52   : > { %p5159_p9 = pneg %p5158_p11 }
  0x54   : > { %p5166_p1 = pnand %p5165_p13, %p5159_p9 }
  0x56   : > { %5169 = shalt.err (!%p5166_p1)
}
  0x57   : > { %s5899_s1 = smov 128   ;;  %s5900_s30 = smov 8  }
  0x58   : > { %4947 = dma.hbm_to_vmem [thread:$0]  (!%p6119_p12), %s7515_s7, 256, %s6115_s3, [#allocation6], %s5899_s1, %s5899_s1, %s5900_s30  }
  0x59   : > { %s7517_s22 = sld [smem:[#allocation58_spill]] }
  0x5f   : > { %s5170_s23 = scalar_lea.hbm %s7517_s22, 256 }
  0x60   : > { %p5171_p5 = scmp.ne.s32.totalorder %s7517_s22, %s5170_s23  ;;  %p5177_p2 = scmp.lt.u32.totalorder %s5170_s23, %s7517_s22 }
  0x62   : > { %p5173_p8 = pnand %p5171_p5, %p6135_p0 }
  0x64   : > { %p5174_p9 = pneg %p5173_p8 }
  0x66   : > { %p5179_p3 = pnand %p5177_p2, %p5174_p9 }
  0x68   : > { %5182 = shalt.err (!%p5179_p3)
}
  0x69   : > { %s5183_s3 = scalar_lea.vmem %s6123_s26, 256  ;;  %p5191_p13 = scmp.lt.s32.totalorder %s6123_s26, %s6123_s26 }
  0x6a   : > { %p5184_p6 = scmp.ne.s32.totalorder %s6123_s26, %s5183_s3  ;;  %p5192_p1 = scmp.lt.s32.totalorder %s5183_s3, %s5183_s3 }
  0x6c   : > { %p5186_p7 = pnand %p5184_p6, %p6135_p0  ;;  %p5193_p5 = por %p5192_p1, %p5191_p13 }
  0x6e   : > { %p5187_p11 = pneg %p5186_p7 }
  0x70   : > { %p5194_p8 = pnand %p5193_p5, %p5187_p11 }
  0x72   : > { %5197 = shalt.err (!%p5194_p8)
}
  0x73   : > { %4944 = dma.hbm_to_vmem [thread:$0]  (!%p6119_p12), %s7517_s22, 256, %s6123_s26, [#allocation3], %s5899_s1, %s5899_s1, %s5900_s30  }
  0x74   : > { %s7518_s28 = sld [smem:[#allocation60_spill]] }
  0x7a   : > { %s5198_s29 = scalar_lea.hbm %s7518_s28, 256 }
  0x7b   : > { %p5199_p9 = scmp.ne.s32.totalorder %s7518_s28, %s5198_s29  ;;  %p5205_p6 = scmp.lt.u32.totalorder %s5198_s29, %s7518_s28 }
  0x7d   : > { %p5201_p2 = pnand %p5199_p9, %p6135_p0 }
  0x7f   : > { %p5202_p3 = pneg %p5201_p2 }
  0x81   : > { %p5207_p7 = pnand %p5205_p6, %p5202_p3 }
  0x83   : > { %5210 = shalt.err (!%p5207_p7)
}
  0x84   : > { %s5211_s14 = scalar_lea.vmem %s714_s6, 256  ;;  %p5219_p5 = scmp.lt.s32.totalorder %s714_s6, %s714_s6 }
  0x85   : > { %p5212_p11 = scmp.ne.s32.totalorder %s714_s6, %s5211_s14  ;;  %p5220_p8 = scmp.lt.s32.totalorder %s5211_s14, %s5211_s14 }
  0x87   : > { %p5214_p13 = pnand %p5212_p11, %p6135_p0  ;;  %p5221_p10 = por %p5220_p8, %p5219_p5 }
  0x89   : > { %p5215_p1 = pneg %p5214_p13 }
  0x8b   : > { %p5222_p4 = pnand %p5221_p10, %p5215_p1 }
  0x8d   : > { %5225 = shalt.err (!%p5222_p4)
}
  0x8e   : > { %4950 = dma.hbm_to_vmem [thread:$0]  (!%p6119_p12), %s7518_s28, 256, %s714_s6, [#allocation6], %s5899_s1, %s5899_s1, %s5900_s30  }
  0x8f   : > { %p4405_p9 = scmp.ge.s32.totalorder %s5894_s25, 2 }
  0x90   : > { %s6209_s5 = sand.u32 (!%p4405_p9), 1, %s5894_s25   ;;  %s6212_s18 = sand.u32 (!%p4405_p9), 1, %s5890_s24  }
  0x91   : > { %723 = sbr.rel (%p4405_p9) target bundleno = 679 (0x2a7), region = 28  ;;  %s6215_s0 = sshll.u32 (!%p4405_p9), %s5894_s25, 4 }
  0x92   : > { %s730_s20 = scalar_lea.vmem (!%p4405_p9), [#allocation8], %s6212_s18  ;;  %s7519_s1 = sld [smem:[#allocation61_spill]] (!%p4405_p9) }
  0x93   : > { %s737_s29 = sshll.u32 (!%p4405_p9), %s730_s20, 4  ;;  %p7520_p10 = scmp.ne.s32.totalorder (!%p4405_p9), %s7509_s27, 0  ;;  %s738_s29 = int_to_ptr.vmem [resolvable:$true] %s737_s29 }
  0x98   : > { %s6222_s30 = scalar_lea.hbm %s7519_s1, %s6215_s0  ;;  %s5230_s26 = scalar_lea.hbm %s7519_s1, 32 }
  0x99   : > { %s5226_s23 = scalar_lea.hbm %s6222_s30, 16  ;;  %p5231_p2 = scmp.lt.u32.totalorder %s6222_s30, %s7519_s1 }
  0x9a   : > { %p5227_p4 = scmp.ne.s32.totalorder %s6222_s30, %s5226_s23  ;;  %p5232_p3 = scmp.lt.u32.totalorder %s5230_s26, %s5226_s23 }
  0x9b   : > { %p5234_p7 = scmp.lt.u32.totalorder %s5226_s23, %s6222_s30 }
  0x9c   : > { %p5228_p12 = pnand %p5227_p4, %p7520_p10  ;;  %p5233_p6 = por %p5232_p3, %p5231_p2 }
  0x9e   : > { %p5229_p0 = pneg %p5228_p12  ;;  %p5235_p11 = por %p5234_p7, %p5233_p6 }
  0xa0   : > { %p5236_p13 = pnand %p5235_p11, %p5229_p0 }
  0xa2   : > { %5239 = shalt.err (!%p5236_p13)
}
  0xa3   : > { %s5240_s4 = scalar_lea.vmem %s738_s29, 16  ;;  %s5901_s6 = smov [#allocation8]  }
  0xa4   : > { %p5241_p1 = scmp.ne.s32.totalorder %s738_s29, %s5240_s4  ;;  %s5244_s2 = sshll.u32 %s5901_s6, 4  ;;  %s5245_s2 = int_to_ptr.vmem [resolvable:$false] %s5244_s2 }
  0xa5   : > { %s5246_s3 = scalar_lea.vmem %s5245_s2, 32  ;;  %p5247_p9 = scmp.lt.s32.totalorder %s738_s29, %s5245_s2 }
  0xa6   : > { %p5242_p5 = pnand %p5241_p1, %p7520_p10  ;;  %p5248_p4 = scmp.lt.s32.totalorder %s5246_s3, %s5240_s4 }
  0xa8   : > { %p5243_p8 = pneg %p5242_p5  ;;  %p5249_p12 = por %p5248_p4, %p5247_p9 }
  0xaa   : > { %p5250_p2 = pnand %p5249_p12, %p5243_p8 }
  0xac   : > { %5253 = shalt.err (!%p5250_p2)
}
  0xad   : > { %s7521_s23 = scalar_lea.sflag [#allocation9], %s6209_s5  ;;  %s7522_s16 = sld [smem:[#allocation63_spill]] }
  0xae   : > { %4891 = dma.hbm_to_vmem [thread:$0]  (%p7520_p10), %s6222_s30, 16, %s738_s29, %s7521_s23  }
  0xaf   : > { %s768_s2 = scalar_lea.vmem [#allocation11], %s6212_s18 }
  0xb0   : > { %s775_s4 = sshll.u32 %s768_s2, 4  ;;  %s776_s4 = int_to_ptr.vmem [resolvable:$true] %s775_s4 }
  0xb3   : > { %s6248_s20 = scalar_lea.hbm %s7522_s16, %s6215_s0  ;;  %s5258_s30 = scalar_lea.hbm %s7522_s16, 32 }
  0xb4   : > { %s5254_s3 = scalar_lea.hbm %s6248_s20, 16  ;;  %p5259_p7 = scmp.lt.u32.totalorder %s6248_s20, %s7522_s16 }
  0xb5   : > { %p5255_p0 = scmp.ne.s32.totalorder %s6248_s20, %s5254_s3  ;;  %p5260_p11 = scmp.lt.u32.totalorder %s5258_s30, %s5254_s3 }
  0xb6   : > { %p5262_p1 = scmp.lt.u32.totalorder %s5254_s3, %s6248_s20 }
  0xb7   : > { %p5256_p3 = pnand %p5255_p0, %p7520_p10  ;;  %p5261_p13 = por %p5260_p11, %p5259_p7 }
  0xb9   : > { %p5257_p6 = pneg %p5256_p3  ;;  %p5263_p5 = por %p5262_p1, %p5261_p13 }
  0xbb   : > { %p5264_p8 = pnand %p5263_p5, %p5257_p6 }
  0xbd   : > { %5267 = shalt.err (!%p5264_p8)
}
  0xbe   : > { %s5268_s26 = scalar_lea.vmem %s776_s4, 16  ;;  %s5902_s2 = smov [#allocation11]  }
  0xbf   : > { %p5269_p9 = scmp.ne.s32.totalorder %s776_s4, %s5268_s26  ;;  %s5272_s6 = sshll.u32 %s5902_s2, 4  ;;  %s5273_s6 = int_to_ptr.vmem [resolvable:$false] %s5272_s6 }
  0xc0   : > { %s5274_s1 = scalar_lea.vmem %s5273_s6, 32  ;;  %p5275_p2 = scmp.lt.s32.totalorder %s776_s4, %s5273_s6 }
  0xc1   : > { %p5270_p4 = pnand %p5269_p9, %p7520_p10  ;;  %p5276_p0 = scmp.lt.s32.totalorder %s5274_s1, %s5268_s26 }
  0xc3   : > { %p5271_p12 = pneg %p5270_p4  ;;  %p5277_p3 = por %p5276_p0, %p5275_p2 }
  0xc5   : > { %p5278_p7 = pnand %p5277_p3, %p5271_p12 }
  0xc7   : > { %5281 = shalt.err (!%p5278_p7)
}
  0xc8   : > { %s7523_s3 = scalar_lea.sflag [#allocation12], %s6209_s5  ;;  %s7524_s23 = sld [smem:[#allocation65_spill]] }
  0xc9   : > { %4893 = dma.hbm_to_vmem [thread:$0]  (%p7520_p10), %s6248_s20, 16, %s776_s4, %s7523_s3  }
  0xca   : > { %s806_s6 = scalar_lea.vmem [#allocation14], %s6212_s18 }
  0xcb   : > { %s813_s26 = sshll.u32 %s806_s6, 4  ;;  %s814_s26 = int_to_ptr.vmem [resolvable:$true] %s813_s26 }
  0xce   : > { %s6275_s14 = scalar_lea.hbm %s7524_s23, %s6215_s0  ;;  %s5286_s4 = scalar_lea.hbm %s7524_s23, 32 }
  0xcf   : > { %s5282_s1 = scalar_lea.hbm %s6275_s14, 16  ;;  %p5287_p1 = scmp.lt.u32.totalorder %s6275_s14, %s7524_s23 }
  0xd0   : > { %p5283_p6 = scmp.ne.s32.totalorder %s6275_s14, %s5282_s1  ;;  %p5288_p5 = scmp.lt.u32.totalorder %s5286_s4, %s5282_s1 }
  0xd1   : > { %p5290_p9 = scmp.lt.u32.totalorder %s5282_s1, %s6275_s14 }
  0xd2   : > { %p5284_p11 = pnand %p5283_p6, %p7520_p10  ;;  %p5289_p8 = por %p5288_p5, %p5287_p1 }
  0xd4   : > { %p5285_p13 = pneg %p5284_p11  ;;  %p5291_p4 = por %p5290_p9, %p5289_p8 }
  0xd6   : > { %p5292_p12 = pnand %p5291_p4, %p5285_p13 }
  0xd8   : > { %5295 = shalt.err (!%p5292_p12)
}
  0xd9   : > { %s5296_s30 = scalar_lea.vmem %s814_s26, 16  ;;  %s5903_s6 = smov [#allocation14]  }
  0xda   : > { %p5297_p2 = scmp.ne.s32.totalorder %s814_s26, %s5296_s30  ;;  %s5300_s2 = sshll.u32 %s5903_s6, 4  ;;  %s5301_s2 = int_to_ptr.vmem [resolvable:$false] %s5300_s2 }
  0xdb   : > { %s5302_s7 = scalar_lea.vmem %s5301_s2, 32  ;;  %p5303_p7 = scmp.lt.s32.totalorder %s814_s26, %s5301_s2 }
  0xdc   : > { %p5298_p0 = pnand %p5297_p2, %p7520_p10  ;;  %p5304_p6 = scmp.lt.s32.totalorder %s5302_s7, %s5296_s30 }
  0xde   : > { %p5299_p3 = pneg %p5298_p0  ;;  %p5305_p11 = por %p5304_p6, %p5303_p7 }
  0xe0   : > { %p5306_p1 = pnand %p5305_p11, %p5299_p3 }
  0xe2   : > { %5309 = shalt.err (!%p5306_p1)
}
  0xe3   : > { %s7525_s1 = scalar_lea.sflag [#allocation15], %s6209_s5  ;;  %s7526_s9 = sld [smem:[#allocation67_spill]] }
  0xe4   : > { %4895 = dma.hbm_to_vmem [thread:$0]  (%p7520_p10), %s6275_s14, 16, %s814_s26, %s7525_s1  }
  0xe5   : > { %s844_s2 = scalar_lea.vmem [#allocation17], %s6212_s18 }
  0xe6   : > { %s851_s29 = sshll.u32 %s844_s2, 4  ;;  %s852_s29 = int_to_ptr.vmem [resolvable:$true] %s851_s29 }
  0xe9   : > { %s6302_s3 = scalar_lea.hbm %s7526_s9, %s6215_s0  ;;  %s5314_s26 = scalar_lea.hbm %s7526_s9, 32 }
  0xea   : > { %s5310_s6 = scalar_lea.hbm %s6302_s3, 16  ;;  %p5315_p9 = scmp.lt.u32.totalorder %s6302_s3, %s7526_s9 }
  0xeb   : > { %p5311_p13 = scmp.ne.s32.totalorder %s6302_s3, %s5310_s6  ;;  %p5316_p4 = scmp.lt.u32.totalorder %s5314_s26, %s5310_s6 }
  0xec   : > { %p5318_p2 = scmp.lt.u32.totalorder %s5310_s6, %s6302_s3 }
  0xed   : > { %p5312_p5 = pnand %p5311_p13, %p7520_p10  ;;  %p5317_p12 = por %p5316_p4, %p5315_p9 }
  0xef   : > { %p5313_p8 = pneg %p5312_p5  ;;  %p5319_p0 = por %p5318_p2, %p5317_p12 }
  0xf1   : > { %p5320_p3 = pnand %p5319_p0, %p5313_p8 }
  0xf3   : > { %5323 = shalt.err (!%p5320_p3)
}
  0xf4   : > { %s5324_s4 = scalar_lea.vmem %s852_s29, 16  ;;  %s5904_s2 = smov [#allocation17]  }
  0xf5   : > { %p5325_p7 = scmp.ne.s32.totalorder %s852_s29, %s5324_s4  ;;  %s5328_s30 = sshll.u32 %s5904_s2, 4  ;;  %s5329_s30 = int_to_ptr.vmem [resolvable:$false] %s5328_s30 }
  0xf6   : > { %s5330_s7 = scalar_lea.vmem %s5329_s30, 32  ;;  %p5331_p1 = scmp.lt.s32.totalorder %s852_s29, %s5329_s30 }
  0xf7   : > { %p5326_p6 = pnand %p5325_p7, %p7520_p10  ;;  %p5332_p13 = scmp.lt.s32.totalorder %s5330_s7, %s5324_s4 }
  0xf9   : > { %p5327_p11 = pneg %p5326_p6  ;;  %p5333_p5 = por %p5332_p13, %p5331_p1 }
  0xfb   : > { %p5334_p4 = pnand %p5333_p5, %p5327_p11 }
  0xfd   : > { %5337 = shalt.err (!%p5334_p4)
}
  0xfe   : > { %s7527_s6 = scalar_lea.sflag [#allocation18], %s6209_s5  ;;  %s7528_s11 = sld [smem:[#allocation68_spill]] }
  0xff   : > { %4897 = dma.hbm_to_vmem [thread:$0]  (%p7520_p10), %s6302_s3, 16, %s852_s29, %s7527_s6  }
 0x100   : > { %s882_s30 = scalar_lea.vmem [#allocation20], %s6212_s18 }
 0x101   : > { %s889_s20 = sshll.u32 %s882_s30, 4  ;;  %s890_s20 = int_to_ptr.vmem [resolvable:$true] %s889_s20 }
 0x104   : > { %s6329_s1 = scalar_lea.hbm %s7528_s11, %s6215_s0  ;;  %s5342_s29 = scalar_lea.hbm %s7528_s11, 32 }
 0x105   : > { %s5338_s2 = scalar_lea.hbm %s6329_s1, 16  ;;  %p5343_p2 = scmp.lt.u32.totalorder %s6329_s1, %s7528_s11 }
 0x106   : > { %p5339_p8 = scmp.ne.s32.totalorder %s6329_s1, %s5338_s2  ;;  %p5344_p0 = scmp.lt.u32.totalorder %s5342_s29, %s5338_s2 }
 0x107   : > { %p5346_p7 = scmp.lt.u32.totalorder %s5338_s2, %s6329_s1 }
 0x108   : > { %p5340_p9 = pnand %p5339_p8, %p7520_p10  ;;  %p5345_p3 = por %p5344_p0, %p5343_p2 }
 0x10a   : > { %p5341_p12 = pneg %p5340_p9  ;;  %p5347_p6 = por %p5346_p7, %p5345_p3 }
 0x10c   : > { %p5348_p11 = pnand %p5347_p6, %p5341_p12 }
 0x10e   : > { %5351 = shalt.err (!%p5348_p11)
}
 0x10f   : > { %s5352_s26 = scalar_lea.vmem %s890_s20, 16  ;;  %s5905_s30 = smov [#allocation20]  }
 0x110   : > { %p5353_p1 = scmp.ne.s32.totalorder %s890_s20, %s5352_s26  ;;  %s5356_s4 = sshll.u32 %s5905_s30, 4  ;;  %s5357_s4 = int_to_ptr.vmem [resolvable:$false] %s5356_s4 }
 0x111   : > { %s5358_s7 = scalar_lea.vmem %s5357_s4, 32  ;;  %p5359_p4 = scmp.lt.s32.totalorder %s890_s20, %s5357_s4 }
 0x112   : > { %p5354_p13 = pnand %p5353_p1, %p7520_p10  ;;  %p5360_p8 = scmp.lt.s32.totalorder %s5358_s7, %s5352_s26 }
 0x114   : > { %p5355_p5 = pneg %p5354_p13  ;;  %p5361_p9 = por %p5360_p8, %p5359_p4 }
 0x116   : > { %p5362_p0 = pnand %p5361_p9, %p5355_p5 }
 0x118   : > { %5365 = shalt.err (!%p5362_p0)
}
 0x119   : > { %s7529_s2 = scalar_lea.sflag [#allocation21], %s6209_s5  ;;  %s7530_s13 = sld [smem:[#allocation69_spill]] }
 0x11a   : > { %4899 = dma.hbm_to_vmem [thread:$0]  (%p7520_p10), %s6329_s1, 16, %s890_s20, %s7529_s2  }
 0x11b   : > { %s920_s4 = scalar_lea.vmem [#allocation23], %s6212_s18 }
 0x11c   : > { %s927_s14 = sshll.u32 %s920_s4, 4  ;;  %s928_s14 = int_to_ptr.vmem [resolvable:$true] %s927_s14 }
 0x11f   : > { %s6356_s6 = scalar_lea.hbm %s7530_s13, %s6215_s0  ;;  %s5370_s20 = scalar_lea.hbm %s7530_s13, 32 }
 0x120   : > { %s5366_s30 = scalar_lea.hbm %s6356_s6, 16  ;;  %p5371_p7 = scmp.lt.u32.totalorder %s6356_s6, %s7530_s13 }
 0x121   : > { %p5367_p12 = scmp.ne.s32.totalorder %s6356_s6, %s5366_s30  ;;  %p5372_p6 = scmp.lt.u32.totalorder %s5370_s20, %s5366_s30 }
 0x122   : > { %p5374_p1 = scmp.lt.u32.totalorder %s5366_s30, %s6356_s6 }
 0x123   : > { %p5368_p2 = pnand %p5367_p12, %p7520_p10  ;;  %p5373_p11 = por %p5372_p6, %p5371_p7 }
 0x125   : > { %p5369_p3 = pneg %p5368_p2  ;;  %p5375_p13 = por %p5374_p1, %p5373_p11 }
 0x127   : > { %p5376_p5 = pnand %p5375_p13, %p5369_p3 }
 0x129   : > { %5379 = shalt.err (!%p5376_p5)
}
 0x12a   : > { %s5380_s29 = scalar_lea.vmem %s928_s14, 16  ;;  %s5906_s4 = smov [#allocation23]  }
 0x12b   : > { %p5381_p4 = scmp.ne.s32.totalorder %s928_s14, %s5380_s29  ;;  %s5384_s26 = sshll.u32 %s5906_s4, 4  ;;  %s5385_s26 = int_to_ptr.vmem [resolvable:$false] %s5384_s26 }
 0x12c   : > { %s5386_s7 = scalar_lea.vmem %s5385_s26, 32  ;;  %p5387_p0 = scmp.lt.s32.totalorder %s928_s14, %s5385_s26 }
 0x12d   : > { %p5382_p8 = pnand %p5381_p4, %p7520_p10  ;;  %p5388_p12 = scmp.lt.s32.totalorder %s5386_s7, %s5380_s29 }
 0x12f   : > { %p5383_p9 = pneg %p5382_p8  ;;  %p5389_p2 = por %p5388_p12, %p5387_p0 }
 0x131   : > { %p5390_p6 = pnand %p5389_p2, %p5383_p9 }
 0x133   : > { %5393 = shalt.err (!%p5390_p6)
}
 0x134   : > { %s7531_s30 = scalar_lea.sflag [#allocation24], %s6209_s5  ;;  %s7532_s15 = sld [smem:[#allocation71_spill]] }
 0x135   : > { %4901 = dma.hbm_to_vmem [thread:$0]  (%p7520_p10), %s6356_s6, 16, %s928_s14, %s7531_s30  }
 0x136   : > { %s954_s26 = scalar_lea.vmem [#allocation26], %s6212_s18 }
 0x137   : > { %s961_s3 = sshll.u32 %s954_s26, 4  ;;  %s962_s3 = int_to_ptr.vmem [resolvable:$true] %s961_s3 }
 0x13a   : > { %s6383_s2 = scalar_lea.hbm %s7532_s15, %s6215_s0  ;;  %s5398_s14 = scalar_lea.hbm %s7532_s15, 32 }
 0x13b   : > { %s5394_s4 = scalar_lea.hbm %s6383_s2, 16  ;;  %p5399_p1 = scmp.lt.u32.totalorder %s6383_s2, %s7532_s15 }
 0x13c   : > { %p5395_p3 = scmp.ne.s32.totalorder %s6383_s2, %s5394_s4  ;;  %p5400_p13 = scmp.lt.u32.totalorder %s5398_s14, %s5394_s4 }
 0x13d   : > { %p5402_p4 = scmp.lt.u32.totalorder %s5394_s4, %s6383_s2 }
 0x13e   : > { %p5396_p7 = pnand %p5395_p3, %p7520_p10  ;;  %p5401_p5 = por %p5400_p13, %p5399_p1 }
 0x140   : > { %p5397_p11 = pneg %p5396_p7  ;;  %p5403_p8 = por %p5402_p4, %p5401_p5 }
 0x142   : > { %p5404_p9 = pnand %p5403_p8, %p5397_p11 }
 0x144   : > { %5407 = shalt.err (!%p5404_p9)
}
 0x145   : > { %s5408_s20 = scalar_lea.vmem %s962_s3, 16  ;;  %s5907_s26 = smov [#allocation26]  }
 0x146   : > { %p5409_p0 = scmp.ne.s32.totalorder %s962_s3, %s5408_s20  ;;  %s5412_s29 = sshll.u32 %s5907_s26, 4  ;;  %s5413_s29 = int_to_ptr.vmem [resolvable:$false] %s5412_s29 }
 0x147   : > { %s5414_s7 = scalar_lea.vmem %s5413_s29, 32  ;;  %p5415_p6 = scmp.lt.s32.totalorder %s962_s3, %s5413_s29 }
 0x148   : > { %p5410_p12 = pnand %p5409_p0, %p7520_p10  ;;  %p5416_p3 = scmp.lt.s32.totalorder %s5414_s7, %s5408_s20 }
 0x14a   : > { %p5411_p2 = pneg %p5410_p12  ;;  %p5417_p7 = por %p5416_p3, %p5415_p6 }
 0x14c   : > { %p5418_p1 = pnand %p5417_p7, %p5411_p2 }
 0x14e   : > { %5421 = shalt.err (!%p5418_p1)
}
 0x14f   : > { %s7533_s4 = scalar_lea.sflag [#allocation27], %s6209_s5  ;;  %s6410_s30 = scalar_lea.hbm %s7439_s17, %s6215_s0 }
 0x150   : > { %4903 = dma.hbm_to_vmem [thread:$0]  (%p7520_p10), %s6383_s2, 16, %s962_s3, %s7533_s4  }
 0x151   : > { %s988_s29 = scalar_lea.vmem [#allocation29], %s6212_s18  ;;  %s5422_s26 = scalar_lea.hbm %s6410_s30, 16 }
 0x152   : > { %s995_s1 = sshll.u32 %s988_s29, 4  ;;  %p5423_p11 = scmp.ne.s32.totalorder %s6410_s30, %s5422_s26  ;;  %s996_s1 = int_to_ptr.vmem [resolvable:$true] %s995_s1 }
 0x153   : > { %s5426_s3 = scalar_lea.hbm %s7439_s17, 32  ;;  %p5427_p4 = scmp.lt.u32.totalorder %s6410_s30, %s7439_s17 }
 0x154   : > { %p5424_p13 = pnand %p5423_p11, %p7520_p10  ;;  %p5428_p8 = scmp.lt.u32.totalorder %s5426_s3, %s5422_s26 }
 0x155   : > { %p5430_p0 = scmp.lt.u32.totalorder %s5422_s26, %s6410_s30 }
 0x156   : > { %p5425_p5 = pneg %p5424_p13  ;;  %p5429_p9 = por %p5428_p8, %p5427_p4 }
 0x158   : > { %p5431_p12 = por %p5430_p0, %p5429_p9 }
 0x15a   : > { %p5432_p2 = pnand %p5431_p12, %p5425_p5 }
 0x15c   : > { %5435 = shalt.err (!%p5432_p2)
}
 0x15d   : > { %s5436_s14 = scalar_lea.vmem %s996_s1, 16  ;;  %s5908_s29 = smov [#allocation29]  }
 0x15e   : > { %p5437_p6 = scmp.ne.s32.totalorder %s996_s1, %s5436_s14  ;;  %s5440_s20 = sshll.u32 %s5908_s29, 4  ;;  %s5441_s20 = int_to_ptr.vmem [resolvable:$false] %s5440_s20 }
 0x15f   : > { %s5442_s7 = scalar_lea.vmem %s5441_s20, 32  ;;  %p5443_p1 = scmp.lt.s32.totalorder %s996_s1, %s5441_s20 }
 0x160   : > { %p5438_p3 = pnand %p5437_p6, %p7520_p10  ;;  %p5444_p11 = scmp.lt.s32.totalorder %s5442_s7, %s5436_s14 }
 0x162   : > { %p5439_p7 = pneg %p5438_p3  ;;  %p5445_p13 = por %p5444_p11, %p5443_p1 }
 0x164   : > { %p5446_p4 = pnand %p5445_p13, %p5439_p7 }
 0x166   : > { %5449 = shalt.err (!%p5446_p4)
}
 0x167   : > { %s7534_s26 = scalar_lea.sflag [#allocation30], %s6209_s5  ;;  %s6437_s4 = scalar_lea.hbm %s7441_s19, %s6215_s0 }
 0x168   : > { %4905 = dma.hbm_to_vmem [thread:$0]  (%p7520_p10), %s6410_s30, 16, %s996_s1, %s7534_s26  }
 0x169   : > { %s1022_s20 = scalar_lea.vmem [#allocation32], %s6212_s18  ;;  %s5450_s29 = scalar_lea.hbm %s6437_s4, 16 }
 0x16a   : > { %s1029_s6 = sshll.u32 %s1022_s20, 4  ;;  %p5451_p5 = scmp.ne.s32.totalorder %s6437_s4, %s5450_s29  ;;  %s1030_s6 = int_to_ptr.vmem [resolvable:$true] %s1029_s6 }
 0x16b   : > { %s5454_s1 = scalar_lea.hbm %s7441_s19, 32  ;;  %p5455_p0 = scmp.lt.u32.totalorder %s6437_s4, %s7441_s19 }
 0x16c   : > { %p5452_p8 = pnand %p5451_p5, %p7520_p10  ;;  %p5456_p12 = scmp.lt.u32.totalorder %s5454_s1, %s5450_s29 }
 0x16d   : > { %p5458_p6 = scmp.lt.u32.totalorder %s5450_s29, %s6437_s4 }
 0x16e   : > { %p5453_p9 = pneg %p5452_p8  ;;  %p5457_p2 = por %p5456_p12, %p5455_p0 }
 0x170   : > { %p5459_p3 = por %p5458_p6, %p5457_p2 }
 0x172   : > { %p5460_p7 = pnand %p5459_p3, %p5453_p9 }
 0x174   : > { %5463 = shalt.err (!%p5460_p7)
}
 0x175   : > { %s5464_s3 = scalar_lea.vmem %s1030_s6, 16  ;;  %s5909_s20 = smov [#allocation32]  }
 0x176   : > { %p5465_p1 = scmp.ne.s32.totalorder %s1030_s6, %s5464_s3  ;;  %s5468_s14 = sshll.u32 %s5909_s20, 4  ;;  %s5469_s14 = int_to_ptr.vmem [resolvable:$false] %s5468_s14 }
 0x177   : > { %s5470_s7 = scalar_lea.vmem %s5469_s14, 32  ;;  %p5471_p4 = scmp.lt.s32.totalorder %s1030_s6, %s5469_s14 }
 0x178   : > { %p5466_p11 = pnand %p5465_p1, %p7520_p10  ;;  %p5472_p5 = scmp.lt.s32.totalorder %s5470_s7, %s5464_s3 }
 0x17a   : > { %p5467_p13 = pneg %p5466_p11  ;;  %p5473_p8 = por %p5472_p5, %p5471_p4 }
 0x17c   : > { %p5474_p0 = pnand %p5473_p8, %p5467_p13 }
 0x17e   : > { %5477 = shalt.err (!%p5474_p0)
}
 0x17f   : > { %s7535_s29 = scalar_lea.sflag [#allocation33], %s6209_s5  ;;  %s6464_s26 = scalar_lea.hbm %s7443_s21, %s6215_s0 }
 0x180   : > { %4907 = dma.hbm_to_vmem [thread:$0]  (%p7520_p10), %s6437_s4, 16, %s1030_s6, %s7535_s29  }
 0x181   : > { %s1060_s14 = scalar_lea.vmem [#allocation35], %s6212_s18  ;;  %s6470_s3 = sshll.u32 %s6212_s18, 4 }
 0x182   : > { %s1067_s2 = sshll.u32 %s1060_s14, 4  ;;  %s7475_s20 = scalar_lea.sflag [#allocation36], %s6209_s5  ;;  %s6467_s2 = int_to_ptr.vmem [resolvable:$true] %s1067_s2 }
 0x183   : > { %s5478_s7 = scalar_lea.hbm %s6464_s26, 16  ;;  %s5482_s29 = scalar_lea.hbm %s7443_s21, 32 }
 0x184   : > { %p5479_p9 = scmp.ne.s32.totalorder %s6464_s26, %s5478_s7  ;;  %p5483_p6 = scmp.lt.u32.totalorder %s6464_s26, %s7443_s21 }
 0x185   : > { %p5484_p3 = scmp.lt.u32.totalorder %s5482_s29, %s5478_s7  ;;  %p5486_p1 = scmp.lt.u32.totalorder %s5478_s7, %s6464_s26 }
 0x186   : > { %p5480_p12 = pnand %p5479_p9, %p7520_p10 }
 0x187   : > { %p5485_p7 = por %p5484_p3, %p5483_p6 }
 0x188   : > { %p5481_p2 = pneg %p5480_p12 }
 0x189   : > { %p5487_p11 = por %p5486_p1, %p5485_p7 }
 0x18b   : > { %p5488_p13 = pnand %p5487_p11, %p5481_p2 }
 0x18d   : > { %5491 = shalt.err (!%p5488_p13)
}
 0x18e   : > { %s5492_s14 = scalar_lea.vmem %s6467_s2, 16  ;;  %s5910_s4 = smov [#allocation35]  }
 0x18f   : > { %p5493_p4 = scmp.ne.s32.totalorder %s6467_s2, %s5492_s14  ;;  %s5496_s6 = sshll.u32 %s5910_s4, 4  ;;  %s5497_s6 = int_to_ptr.vmem [resolvable:$false] %s5496_s6 }
 0x190   : > { %s5498_s30 = scalar_lea.vmem %s5497_s6, 32  ;;  %p5499_p0 = scmp.lt.s32.totalorder %s6467_s2, %s5497_s6 }
 0x191   : > { %p5494_p5 = pnand %p5493_p4, %p7520_p10  ;;  %p5500_p9 = scmp.lt.s32.totalorder %s5498_s30, %s5492_s14 }
 0x193   : > { %p5495_p8 = pneg %p5494_p5  ;;  %p5501_p12 = por %p5500_p9, %p5499_p0 }
 0x195   : > { %p5502_p6 = pnand %p5501_p12, %p5495_p8 }
 0x197   : > { %5505 = shalt.err (!%p5502_p6)
}
 0x198   : > { %4909 = dma.hbm_to_vmem [thread:$0]  (%p7520_p10), %s6464_s26, 16, %s6467_s2, %s7475_s20  }
 0x199   : > { %s6497_s7 = sshll.u32 %s5894_s25, 8  ;;  %s7536_s4 = sld [smem:[#allocation62_spill]] }
 0x19a   : > { %s748_s30 = scalar_lea.vmem [#allocation10], %s6470_s3 }
 0x19b   : > { %s755_s9 = sshll.u32 %s748_s30, 4  ;;  %s6506_s9 = int_to_ptr.vmem [resolvable:$true] %s755_s9 }
 0x19f   : > { %s7537_s6 = smov %s7536_s4  ;;  %s6503_s14 = scalar_lea.hbm %s7536_s4, %s6497_s7 }
 0x1a0   : > { %s5506_s11 = scalar_lea.hbm %s6503_s14, 256  ;;  %s5510_s20 = scalar_lea.hbm %s7537_s6, 512 }
 0x1a1   : > { %p5507_p2 = scmp.ne.s32.totalorder %s6503_s14, %s5506_s11  ;;  %p5511_p1 = scmp.lt.u32.totalorder %s6503_s14, %s7537_s6 }
 0x1a2   : > { %p5512_p11 = scmp.lt.u32.totalorder %s5510_s20, %s5506_s11  ;;  %p5514_p4 = scmp.lt.u32.totalorder %s5506_s11, %s6503_s14 }
 0x1a3   : > { %p5508_p3 = pnand %p5507_p2, %p7520_p10 }
 0x1a4   : > { %p5513_p13 = por %p5512_p11, %p5511_p1 }
 0x1a5   : > { %p5509_p7 = pneg %p5508_p3 }
 0x1a6   : > { %p5515_p5 = por %p5514_p4, %p5513_p13 }
 0x1a8   : > { %p5516_p8 = pnand %p5515_p5, %p5509_p7 }
 0x1aa   : > { %5519 = shalt.err (!%p5516_p8)
}
 0x1ab   : > { %s5520_s4 = scalar_lea.vmem %s6506_s9, 256  ;;  %s5911_s30 = smov [#allocation10]  }
 0x1ac   : > { %p5521_p0 = scmp.ne.s32.totalorder %s6506_s9, %s5520_s4  ;;  %s5524_s26 = sshll.u32 %s5911_s30, 4  ;;  %s5525_s26 = int_to_ptr.vmem [resolvable:$false] %s5524_s26 }
 0x1ad   : > { %s5526_s2 = scalar_lea.vmem %s5525_s26, 512  ;;  %p5527_p6 = scmp.lt.s32.totalorder %s6506_s9, %s5525_s26 }
 0x1ae   : > { %p5522_p9 = pnand %p5521_p0, %p7520_p10  ;;  %p5528_p2 = scmp.lt.s32.totalorder %s5526_s2, %s5520_s4 }
 0x1b0   : > { %p5523_p12 = pneg %p5522_p9  ;;  %p5529_p3 = por %p5528_p2, %p5527_p6 }
 0x1b2   : > { %p5530_p1 = pnand %p5529_p3, %p5523_p12 }
 0x1b4   : > { %5533 = shalt.err (!%p5530_p1)
}
 0x1b5   : > { %s7478_s11 = smov 64   ;;  %s7480_s20 = smov 4  }
 0x1b6   : > { %s7538_s29 = scalar_lea.sflag [#allocation9], %s6209_s5  ;;  %s7539_s30 = sld [smem:[#allocation64_spill]] }
 0x1b7   : > { %4892 = dma.hbm_to_vmem [thread:$0]  (%p7520_p10), %s6503_s14, 256, %s6506_s9, %s7538_s29, %s7478_s11, %s7478_s11, %s7480_s20  }
 0x1b8   : > { %s786_s6 = scalar_lea.vmem [#allocation13], %s6470_s3 }
 0x1b9   : > { %s793_s13 = sshll.u32 %s786_s6, 4  ;;  %s6541_s13 = int_to_ptr.vmem [resolvable:$true] %s793_s13 }
 0x1bc   : > { %s7540_s26 = smov %s7539_s30  ;;  %s6538_s2 = scalar_lea.hbm %s7539_s30, %s6497_s7 }
 0x1bd   : > { %s5534_s15 = scalar_lea.hbm %s6538_s2, 256  ;;  %s5538_s14 = scalar_lea.hbm %s7540_s26, 512 }
 0x1be   : > { %p5535_p7 = scmp.ne.s32.totalorder %s6538_s2, %s5534_s15  ;;  %p5539_p4 = scmp.lt.u32.totalorder %s6538_s2, %s7540_s26 }
 0x1bf   : > { %p5540_p5 = scmp.lt.u32.totalorder %s5538_s14, %s5534_s15  ;;  %p5542_p0 = scmp.lt.u32.totalorder %s5534_s15, %s6538_s2 }
 0x1c0   : > { %p5536_p11 = pnand %p5535_p7, %p7520_p10 }
 0x1c1   : > { %p5541_p8 = por %p5540_p5, %p5539_p4 }
 0x1c2   : > { %p5537_p13 = pneg %p5536_p11 }
 0x1c3   : > { %p5543_p9 = por %p5542_p0, %p5541_p8 }
 0x1c5   : > { %p5544_p12 = pnand %p5543_p9, %p5537_p13 }
 0x1c7   : > { %5547 = shalt.err (!%p5544_p12)
}
 0x1c8   : > { %s5548_s6 = scalar_lea.vmem %s6541_s13, 256  ;;  %s5914_s16 = smov [#allocation13]  }
 0x1c9   : > { %p5549_p6 = scmp.ne.s32.totalorder %s6541_s13, %s5548_s6  ;;  %s5552_s4 = sshll.u32 %s5914_s16, 4  ;;  %s5553_s4 = int_to_ptr.vmem [resolvable:$false] %s5552_s4 }
 0x1ca   : > { %s5554_s30 = scalar_lea.vmem %s5553_s4, 512  ;;  %p5555_p1 = scmp.lt.s32.totalorder %s6541_s13, %s5553_s4 }
 0x1cb   : > { %p5550_p2 = pnand %p5549_p6, %p7520_p10  ;;  %p5556_p7 = scmp.lt.s32.totalorder %s5554_s30, %s5548_s6 }
 0x1cd   : > { %p5551_p3 = pneg %p5550_p2  ;;  %p5557_p11 = por %p5556_p7, %p5555_p1 }
 0x1cf   : > { %p5558_p4 = pnand %p5557_p11, %p5551_p3 }
 0x1d1   : > { %5561 = shalt.err (!%p5558_p4)
}
 0x1d2   : > { %s7541_s15 = scalar_lea.sflag [#allocation12], %s6209_s5  ;;  %s7542_s8 = sld [smem:[#allocation66_spill]] }
 0x1d3   : > { %4894 = dma.hbm_to_vmem [thread:$0]  (%p7520_p10), %s6538_s2, 256, %s6541_s13, %s7541_s15, %s7478_s11, %s7478_s11, %s7480_s20  }
 0x1d4   : > { %s824_s1 = scalar_lea.vmem [#allocation16], %s6470_s3 }
 0x1d5   : > { %s831_s6 = sshll.u32 %s824_s1, 4  ;;  %s6576_s6 = int_to_ptr.vmem [resolvable:$true] %s831_s6 }
 0x1d8   : > { %s6573_s29 = scalar_lea.hbm %s7542_s8, %s6497_s7  ;;  %s5566_s2 = scalar_lea.hbm %s7542_s8, 512 }
 0x1d9   : > { %s5562_s16 = scalar_lea.hbm %s6573_s29, 256  ;;  %p5567_p0 = scmp.lt.u32.totalorder %s6573_s29, %s7542_s8 }
 0x1da   : > { %p5563_p13 = scmp.ne.s32.totalorder %s6573_s29, %s5562_s16  ;;  %p5568_p9 = scmp.lt.u32.totalorder %s5566_s2, %s5562_s16 }
 0x1db   : > { %p5570_p6 = scmp.lt.u32.totalorder %s5562_s16, %s6573_s29 }
 0x1dc   : > { %p5564_p5 = pnand %p5563_p13, %p7520_p10  ;;  %p5569_p12 = por %p5568_p9, %p5567_p0 }
 0x1de   : > { %p5565_p8 = pneg %p5564_p5  ;;  %p5571_p2 = por %p5570_p6, %p5569_p12 }
 0x1e0   : > { %p5572_p3 = pnand %p5571_p2, %p5565_p8 }
 0x1e2   : > { %5575 = shalt.err (!%p5572_p3)
}
 0x1e3   : > { %s5576_s9 = scalar_lea.vmem %s6576_s6, 256  ;;  %s5915_s14 = smov [#allocation16]  }
 0x1e4   : > { %p5577_p1 = scmp.ne.s32.totalorder %s6576_s6, %s5576_s9  ;;  %s5580_s1 = sshll.u32 %s5915_s14, 4  ;;  %s5581_s1 = int_to_ptr.vmem [resolvable:$false] %s5580_s1 }
 0x1e5   : > { %s5582_s4 = scalar_lea.vmem %s5581_s1, 512  ;;  %p5583_p4 = scmp.lt.s32.totalorder %s6576_s6, %s5581_s1 }
 0x1e6   : > { %p5578_p7 = pnand %p5577_p1, %p7520_p10  ;;  %p5584_p13 = scmp.lt.s32.totalorder %s5582_s4, %s5576_s9 }
 0x1e8   : > { %p5579_p11 = pneg %p5578_p7  ;;  %p5585_p5 = por %p5584_p13, %p5583_p4 }
 0x1ea   : > { %p5586_p0 = pnand %p5585_p5, %p5579_p11 }
 0x1ec   : > { %5589 = shalt.err (!%p5586_p0)
}
 0x1ed   : > { %s7543_s16 = scalar_lea.sflag [#allocation15], %s6209_s5  ;;  %s6608_s30 = scalar_lea.hbm %s7432_s10, %s6497_s7 }
 0x1ee   : > { %4896 = dma.hbm_to_vmem [thread:$0]  (%p7520_p10), %s6573_s29, 256, %s6576_s6, %s7543_s16, %s7478_s11, %s7478_s11, %s7480_s20  }
 0x1ef   : > { %s862_s15 = scalar_lea.vmem [#allocation19], %s6470_s3  ;;  %s4423_s14 = sshll.u32 %s6212_s18, 6 }
 0x1f0   : > { %s869_s9 = sshll.u32 %s862_s15, 4  ;;  %s5590_s1 = scalar_lea.hbm %s6608_s30, 256  ;;  %s6611_s9 = int_to_ptr.vmem [resolvable:$true] %s869_s9 }
 0x1f1   : > { %p5591_p8 = scmp.ne.s32.totalorder %s6608_s30, %s5590_s1  ;;  %s5594_s4 = scalar_lea.hbm %s7432_s10, 512 }
 0x1f2   : > { %p5595_p6 = scmp.lt.u32.totalorder %s6608_s30, %s7432_s10  ;;  %p5596_p2 = scmp.lt.u32.totalorder %s5594_s4, %s5590_s1 }
 0x1f3   : > { %p5592_p9 = pnand %p5591_p8, %p7520_p10  ;;  %p5598_p1 = scmp.lt.u32.totalorder %s5590_s1, %s6608_s30 }
 0x1f4   : > { %p5597_p3 = por %p5596_p2, %p5595_p6 }
 0x1f5   : > { %p5593_p12 = pneg %p5592_p9 }
 0x1f6   : > { %p5599_p7 = por %p5598_p1, %p5597_p3 }
 0x1f8   : > { %p5600_p11 = pnand %p5599_p7, %p5593_p12 }
 0x1fa   : > { %5603 = shalt.err (!%p5600_p11)
}
 0x1fb   : > { %s5604_s2 = scalar_lea.vmem %s6611_s9, 256  ;;  %s5916_s15 = smov [#allocation19]  }
 0x1fc   : > { %p5605_p4 = scmp.ne.s32.totalorder %s6611_s9, %s5604_s2  ;;  %s5608_s29 = sshll.u32 %s5916_s15, 4  ;;  %s5609_s29 = int_to_ptr.vmem [resolvable:$false] %s5608_s29 }
 0x1fd   : > { %s5610_s6 = scalar_lea.vmem %s5609_s29, 512  ;;  %p5611_p0 = scmp.lt.s32.totalorder %s6611_s9, %s5609_s29 }
 0x1fe   : > { %p5606_p13 = pnand %p5605_p4, %p7520_p10  ;;  %p5612_p8 = scmp.lt.s32.totalorder %s5610_s6, %s5604_s2 }
 0x200   : > { %p5607_p5 = pneg %p5606_p13  ;;  %p5613_p9 = por %p5612_p8, %p5611_p0 }
 0x202   : > { %p5614_p6 = pnand %p5613_p9, %p5607_p5 }
 0x204   : > { %5617 = shalt.err (!%p5614_p6)
}
 0x205   : > { %s7544_s1 = scalar_lea.sflag [#allocation18], %s6209_s5  ;;  %s4531_s4 = sshll.u32 %s5894_s25, 10 }
 0x206   : > { %4898 = dma.hbm_to_vmem [thread:$0]  (%p7520_p10), %s6608_s30, 256, %s6611_s9, %s7544_s1, %s7478_s11, %s7478_s11, %s7480_s20  }
 0x207   : > { %s6644_s2 = scalar_lea.hbm %s7434_s12, %s4531_s4  ;;  %s900_s15 = scalar_lea.vmem [#allocation22], %s4423_s14 }
 0x208   : > { %s907_s29 = sshll.u32 %s900_s15, 4  ;;  %s5618_s6 = scalar_lea.hbm %s6644_s2, 1024  ;;  %s6648_s29 = int_to_ptr.vmem [resolvable:$true] %s907_s29 }
 0x209   : > { %p5619_p12 = scmp.ne.s32.totalorder %s6644_s2, %s5618_s6  ;;  %s5622_s9 = scalar_lea.hbm %s7434_s12, 2048 }
 0x20a   : > { %p5623_p1 = scmp.lt.u32.totalorder %s6644_s2, %s7434_s12  ;;  %p5624_p7 = scmp.lt.u32.totalorder %s5622_s9, %s5618_s6 }
 0x20b   : > { %p5620_p2 = pnand %p5619_p12, %p7520_p10  ;;  %p5626_p4 = scmp.lt.u32.totalorder %s5618_s6, %s6644_s2 }
 0x20c   : > { %p5625_p11 = por %p5624_p7, %p5623_p1 }
 0x20d   : > { %p5621_p3 = pneg %p5620_p2 }
 0x20e   : > { %p5627_p13 = por %p5626_p4, %p5625_p11 }
 0x210   : > { %p5628_p5 = pnand %p5627_p13, %p5621_p3 }
 0x212   : > { %5631 = shalt.err (!%p5628_p5)
}
 0x213   : > { %s5632_s14 = scalar_lea.vmem %s6648_s29, 1024  ;;  %s5917_s16 = smov [#allocation22]  }
 0x214   : > { %p5633_p0 = scmp.ne.s32.totalorder %s6648_s29, %s5632_s14  ;;  %s5636_s13 = sshll.u32 %s5917_s16, 4  ;;  %s5637_s13 = int_to_ptr.vmem [resolvable:$false] %s5636_s13 }
 0x215   : > { %s5638_s15 = scalar_lea.vmem %s5637_s13, 2048  ;;  %p5639_p6 = scmp.lt.s32.totalorder %s6648_s29, %s5637_s13 }
 0x216   : > { %p5634_p8 = pnand %p5633_p0, %p7520_p10  ;;  %p5640_p12 = scmp.lt.s32.totalorder %s5638_s15, %s5632_s14 }
 0x218   : > { %p5635_p9 = pneg %p5634_p8  ;;  %p5641_p2 = por %p5640_p12, %p5639_p6 }
 0x21a   : > { %p5642_p1 = pnand %p5641_p2, %p5635_p9 }
 0x21c   : > { %5645 = shalt.err (!%p5642_p1)
}
 0x21d   : > { %s7545_s6 = scalar_lea.sflag [#allocation21], %s6209_s5  ;;  %s7546_s9 = sld [smem:[#allocation70_spill]] }
 0x21e   : > { %4900 = dma.hbm_to_vmem [thread:$0]  (%p7520_p10), %s6644_s2, 1024, %s6648_s29, %s7545_s6, %s7478_s11, %s7478_s11, %s7480_s20  }
 0x21f   : > { %s937_s4 = scalar_lea.vmem [#allocation25], %s6212_s18 }
 0x220   : > { %s944_s14 = sshll.u32 %s937_s4, 4  ;;  %s945_s14 = int_to_ptr.vmem [resolvable:$true] %s944_s14 }
 0x223   : > { %s6680_s1 = scalar_lea.hbm %s7546_s9, %s6215_s0  ;;  %s5650_s2 = scalar_lea.hbm %s7546_s9, 32 }
 0x224   : > { %s5646_s16 = scalar_lea.hbm %s6680_s1, 16  ;;  %p5651_p4 = scmp.lt.u32.totalorder %s6680_s1, %s7546_s9 }
 0x225   : > { %p5647_p3 = scmp.ne.s32.totalorder %s6680_s1, %s5646_s16  ;;  %p5652_p13 = scmp.lt.u32.totalorder %s5650_s2, %s5646_s16 }
 0x226   : > { %p5654_p0 = scmp.lt.u32.totalorder %s5646_s16, %s6680_s1 }
 0x227   : > { %p5648_p7 = pnand %p5647_p3, %p7520_p10  ;;  %p5653_p5 = por %p5652_p13, %p5651_p4 }
 0x229   : > { %p5649_p11 = pneg %p5648_p7  ;;  %p5655_p8 = por %p5654_p0, %p5653_p5 }
 0x22b   : > { %p5656_p9 = pnand %p5655_p8, %p5649_p11 }
 0x22d   : > { %5659 = shalt.err (!%p5656_p9)
}
 0x22e   : > { %s5660_s25 = scalar_lea.vmem %s945_s14, 16  ;;  %s5918_s30 = smov [#allocation25]  }
 0x22f   : > { %p5661_p6 = scmp.ne.s32.totalorder %s945_s14, %s5660_s25  ;;  %s5664_s4 = sshll.u32 %s5918_s30, 4  ;;  %s5665_s4 = int_to_ptr.vmem [resolvable:$false] %s5664_s4 }
 0x230   : > { %s5666_s13 = scalar_lea.vmem %s5665_s4, 32  ;;  %p5667_p1 = scmp.lt.s32.totalorder %s945_s14, %s5665_s4 }
 0x231   : > { %p5662_p12 = pnand %p5661_p6, %p7520_p10  ;;  %p5668_p3 = scmp.lt.s32.totalorder %s5666_s13, %s5660_s25 }
 0x233   : > { %p5663_p2 = pneg %p5662_p12  ;;  %p5669_p7 = por %p5668_p3, %p5667_p1 }
 0x235   : > { %p5670_p4 = pnand %p5669_p7, %p5663_p2 }
 0x237   : > { %5673 = shalt.err (!%p5670_p4)
}
 0x238   : > { %s7547_s16 = scalar_lea.sflag [#allocation24], %s6209_s5  ;;  %s7548_s29 = sld [smem:[#allocation72_spill]] }
 0x239   : > { %4902 = dma.hbm_to_vmem [thread:$0]  (%p7520_p10), %s6680_s1, 16, %s945_s14, %s7547_s16  }
 0x23a   : > { %s971_s25 = scalar_lea.vmem [#allocation28], %s6212_s18 }
 0x23b   : > { %s978_s30 = sshll.u32 %s971_s25, 4  ;;  %s979_s30 = int_to_ptr.vmem [resolvable:$true] %s978_s30 }
 0x23e   : > { %s6706_s6 = scalar_lea.hbm %s7548_s29, %s6215_s0  ;;  %s5678_s1 = scalar_lea.hbm %s7548_s29, 32 }
 0x23f   : > { %s5674_s4 = scalar_lea.hbm %s6706_s6, 16  ;;  %p5679_p0 = scmp.lt.u32.totalorder %s6706_s6, %s7548_s29 }
 0x240   : > { %p5675_p11 = scmp.ne.s32.totalorder %s6706_s6, %s5674_s4  ;;  %p5680_p8 = scmp.lt.u32.totalorder %s5678_s1, %s5674_s4 }
 0x241   : > { %p5682_p6 = scmp.lt.u32.totalorder %s5674_s4, %s6706_s6 }
 0x242   : > { %p5676_p13 = pnand %p5675_p11, %p7520_p10  ;;  %p5681_p9 = por %p5680_p8, %p5679_p0 }
 0x244   : > { %p5677_p5 = pneg %p5676_p13  ;;  %p5683_p12 = por %p5682_p6, %p5681_p9 }
 0x246   : > { %p5684_p2 = pnand %p5683_p12, %p5677_p5 }
 0x248   : > { %5687 = shalt.err (!%p5684_p2)
}
 0x249   : > { %s5688_s15 = scalar_lea.vmem %s979_s30, 16  ;;  %s5919_s2 = smov [#allocation28]  }
 0x24a   : > { %p5689_p1 = scmp.ne.s32.totalorder %s979_s30, %s5688_s15  ;;  %s5692_s25 = sshll.u32 %s5919_s2, 4  ;;  %s5693_s25 = int_to_ptr.vmem [resolvable:$false] %s5692_s25 }
 0x24b   : > { %s5694_s11 = scalar_lea.vmem %s5693_s25, 32  ;;  %p5695_p4 = scmp.lt.s32.totalorder %s979_s30, %s5693_s25 }
 0x24c   : > { %p5690_p3 = pnand %p5689_p1, %p7520_p10  ;;  %p5696_p11 = scmp.lt.s32.totalorder %s5694_s11, %s5688_s15 }
 0x24e   : > { %p5691_p7 = pneg %p5690_p3  ;;  %p5697_p13 = por %p5696_p11, %p5695_p4 }
 0x250   : > { %p5698_p0 = pnand %p5697_p13, %p5691_p7 }
 0x252   : > { %5701 = shalt.err (!%p5698_p0)
}
 0x253   : > { %s7549_s4 = scalar_lea.sflag [#allocation27], %s6209_s5  ;;  %s7550_s14 = sld [smem:[#allocation73_spill]] }
 0x254   : > { %4904 = dma.hbm_to_vmem [thread:$0]  (%p7520_p10), %s6706_s6, 16, %s979_s30, %s7549_s4  }
 0x255   : > { %s1005_s15 = scalar_lea.vmem [#allocation31], %s6212_s18 }
 0x256   : > { %s1012_s2 = sshll.u32 %s1005_s15, 4  ;;  %s1013_s2 = int_to_ptr.vmem [resolvable:$true] %s1012_s2 }
 0x259   : > { %s6732_s16 = scalar_lea.hbm %s7550_s14, %s6215_s0  ;;  %s5706_s6 = scalar_lea.hbm %s7550_s14, 32 }
 0x25a   : > { %s5702_s25 = scalar_lea.hbm %s6732_s16, 16  ;;  %p5707_p6 = scmp.lt.u32.totalorder %s6732_s16, %s7550_s14 }
 0x25b   : > { %p5703_p5 = scmp.ne.s32.totalorder %s6732_s16, %s5702_s25  ;;  %p5708_p12 = scmp.lt.u32.totalorder %s5706_s6, %s5702_s25 }
 0x25c   : > { %p5710_p1 = scmp.lt.u32.totalorder %s5702_s25, %s6732_s16 }
 0x25d   : > { %p5704_p8 = pnand %p5703_p5, %p7520_p10  ;;  %p5709_p2 = por %p5708_p12, %p5707_p6 }
 0x25f   : > { %p5705_p9 = pneg %p5704_p8  ;;  %p5711_p3 = por %p5710_p1, %p5709_p2 }
 0x261   : > { %p5712_p7 = pnand %p5711_p3, %p5705_p9 }
 0x263   : > { %5715 = shalt.err (!%p5712_p7)
}
 0x264   : > { %s5716_s18 = scalar_lea.vmem %s1013_s2, 16  ;;  %s5920_s0 = smov [#allocation31]  }
 0x265   : > { %p5717_p4 = scmp.ne.s32.totalorder %s1013_s2, %s5716_s18  ;;  %s5720_s13 = sshll.u32 %s5920_s0, 4  ;;  %s5721_s13 = int_to_ptr.vmem [resolvable:$false] %s5720_s13 }
 0x266   : > { %s5722_s20 = scalar_lea.vmem %s5721_s13, 32  ;;  %p5723_p0 = scmp.lt.s32.totalorder %s1013_s2, %s5721_s13 }
 0x267   : > { %p5718_p11 = pnand %p5717_p4, %p7520_p10  ;;  %p5724_p5 = scmp.lt.s32.totalorder %s5722_s20, %s5716_s18 }
 0x269   : > { %p5719_p13 = pneg %p5718_p11  ;;  %p5725_p8 = por %p5724_p5, %p5723_p0 }
 0x26b   : > { %p5726_p6 = pnand %p5725_p8, %p5719_p13 }
 0x26d   : > { %5729 = shalt.err (!%p5726_p6)
}
 0x26e   : > { %s7551_s1 = scalar_lea.sflag [#allocation30], %s6209_s5  ;;  %s7552_s11 = sld [smem:[#allocation74_spill]] }
 0x26f   : > { %4906 = dma.hbm_to_vmem [thread:$0]  (%p7520_p10), %s6732_s16, 16, %s1013_s2, %s7551_s1  }
 0x270   : > { %s1040_s30 = scalar_lea.vmem [#allocation34], %s6470_s3 }
 0x271   : > { %s1047_s4 = sshll.u32 %s1040_s30, 4  ;;  %s6761_s4 = int_to_ptr.vmem [resolvable:$true] %s1047_s4 }
 0x274   : > { %s6758_s6 = scalar_lea.hbm %s7552_s11, %s6497_s7  ;;  %s5734_s2 = scalar_lea.hbm %s7552_s11, 512 }
 0x275   : > { %s5730_s18 = scalar_lea.hbm %s6758_s6, 256  ;;  %p5735_p1 = scmp.lt.u32.totalorder %s6758_s6, %s7552_s11 }
 0x276   : > { %p5731_p9 = scmp.ne.s32.totalorder %s6758_s6, %s5730_s18  ;;  %p5736_p3 = scmp.lt.u32.totalorder %s5734_s2, %s5730_s18 }
 0x277   : > { %p5738_p4 = scmp.lt.u32.totalorder %s5730_s18, %s6758_s6 }
 0x278   : > { %p5732_p12 = pnand %p5731_p9, %p7520_p10  ;;  %p5737_p7 = por %p5736_p3, %p5735_p1 }
 0x27a   : > { %p5733_p2 = pneg %p5732_p12  ;;  %p5739_p11 = por %p5738_p4, %p5737_p7 }
 0x27c   : > { %p5740_p13 = pnand %p5739_p11, %p5733_p2 }
 0x27e   : > { %5743 = shalt.err (!%p5740_p13)
}
 0x27f   : > { %s5744_s1 = scalar_lea.vmem %s6761_s4, 256  ;;  %s5921_s15 = smov [#allocation34]  }
 0x280   : > { %p5745_p0 = scmp.ne.s32.totalorder %s6761_s4, %s5744_s1  ;;  %s5748_s25 = sshll.u32 %s5921_s15, 4  ;;  %s5749_s25 = int_to_ptr.vmem [resolvable:$false] %s5748_s25 }
 0x281   : > { %s5750_s30 = scalar_lea.vmem %s5749_s25, 512  ;;  %p5751_p6 = scmp.lt.s32.totalorder %s6761_s4, %s5749_s25 }
 0x282   : > { %p5746_p5 = pnand %p5745_p0, %p7520_p10  ;;  %p5752_p9 = scmp.lt.s32.totalorder %s5750_s30, %s5744_s1 }
 0x284   : > { %p5747_p8 = pneg %p5746_p5  ;;  %p5753_p12 = por %p5752_p9, %p5751_p6 }
 0x286   : > { %p5754_p1 = pnand %p5753_p12, %p5747_p8 }
 0x288   : > { %5757 = shalt.err (!%p5754_p1)
}
 0x289   : > { %s7553_s18 = smov 4   ;;  %s7554_s0 = smov 64  }
 0x28a   : > { %s7555_s16 = scalar_lea.sflag [#allocation33], %s6209_s5  ;;  %s7556_s20 = sld [smem:[#allocation75_spill]] }
 0x28b   : > { %4908 = dma.hbm_to_vmem [thread:$0]  (%p7520_p10), %s6758_s6, 256, %s6761_s4, %s7555_s16, %s7554_s0, %s7554_s0, %s7553_s18  }
 0x28c   : > { %s1078_s15 = scalar_lea.vmem [#allocation37], %s6470_s3 }
 0x28d   : > { %s1085_s25 = sshll.u32 %s1078_s15, 4  ;;  %s6796_s25 = int_to_ptr.vmem [resolvable:$true] %s1085_s25 }
 0x290   : > { %s6793_s1 = scalar_lea.hbm %s7556_s20, %s6497_s7  ;;  %s5762_s4 = scalar_lea.hbm %s7556_s20, 512 }
 0x291   : > { %s5758_s30 = scalar_lea.hbm %s6793_s1, 256  ;;  %p5763_p4 = scmp.lt.u32.totalorder %s6793_s1, %s7556_s20 }
 0x292   : > { %p5759_p2 = scmp.ne.s32.totalorder %s6793_s1, %s5758_s30  ;;  %p5764_p11 = scmp.lt.u32.totalorder %s5762_s4, %s5758_s30 }
 0x293   : > { %p5766_p0 = scmp.lt.u32.totalorder %s5758_s30, %s6793_s1 }
 0x294   : > { %p5760_p3 = pnand %p5759_p2, %p7520_p10  ;;  %p5765_p13 = por %p5764_p11, %p5763_p4 }
 0x296   : > { %p5761_p7 = pneg %p5760_p3  ;;  %p5767_p5 = por %p5766_p0, %p5765_p13 }
 0x298   : > { %p5768_p8 = pnand %p5767_p5, %p5761_p7 }
 0x29a   : > { %5771 = shalt.err (!%p5768_p8)
}
 0x29b   : > { %s5772_s3 = scalar_lea.vmem %s6796_s25, 256  ;;  %s5922_s8 = smov [#allocation37]  }
 0x29c   : > { %p5773_p6 = scmp.ne.s32.totalorder %s6796_s25, %s5772_s3  ;;  %s5776_s2 = sshll.u32 %s5922_s8, 4  ;;  %s5777_s2 = int_to_ptr.vmem [resolvable:$false] %s5776_s2 }
 0x29d   : > { %s5778_s13 = scalar_lea.vmem %s5777_s2, 512  ;;  %p5779_p1 = scmp.lt.s32.totalorder %s6796_s25, %s5777_s2 }
 0x29e   : > { %p5774_p9 = pnand %p5773_p6, %p7520_p10  ;;  %p5780_p2 = scmp.lt.s32.totalorder %s5778_s13, %s5772_s3 }
 0x2a0   : > { %p5775_p12 = pneg %p5774_p9  ;;  %p5781_p3 = por %p5780_p2, %p5779_p1 }
 0x2a2   : > { %p5782_p4 = pnand %p5781_p3, %p5775_p12 }
 0x2a4   : > { %5785 = shalt.err (!%p5782_p4)
}
 0x2a5   : > { %s7557_s15 = scalar_lea.sflag [#allocation36], %s6209_s5 }
 0x2a6   : > { %4910 = dma.hbm_to_vmem [thread:$0]  (%p7520_p10), %s6793_s1, 256, %s6796_s25, %s7557_s15, %s7554_s0, %s7554_s0, %s7553_s18  }
 0x2a7 PF: > { %s7558_s30 = sld [smem:[#allocation57_spill]] }
 0x2ad   : > { %p7559_p7 = scmp.ne.s32.totalorder %s7558_s30, 0 }
 0x2ae   : > { %s7560_s6 = sld [smem:[#allocation53_spill]] (!%p7559_p7) }
 0x2af   : > { %1097 = sbr.rel (%p7559_p7) target bundleno = 8116 (0x1fb4), region = 112 }
 0x2b4   : > { %p7561_p11 = scmp.eq.s32.totalorder (!%p7559_p7), %s7560_s6, 0 }
 0x2b6   : > { %5829 = dma.done.wait (%p7561_p11), [#allocation3], 256   ;;  %p7562_p13 = pmov %p7561_p11 }
 0x2b7   : > { %p7563_p0 = pmov %p7561_p11 }
 0x2b8   : > { %5831 = vsyncadd (%p7562_p13), [#allocation3], 4294967040 }
 0x2b9   : > { %5833 = dma.done.wait (%p7563_p0), [#allocation6], 512   ;;  %p7564_p5 = pmov %p7563_p0 }
 0x2ba   : > { %s7565_s27 = sld [smem:[#allocation52_spill]]  ;;  %s7566_s5 = sld [smem:[#allocation56_spill]] }
 0x2bb   : > { %5835 = vsyncadd (%p7564_p5), [#allocation6], 4294966784  ;;  %s6835_s18 = sand.u32 1, %s7560_s6  }
 0x2bc   : > { %s1112_s1 = scalar_lea.sflag [#allocation9], %s6835_s18 }
 0x2c0   : > { %s6838_s0 = sand.u32 1, %s7565_s27   ;;  %p7567_p10 = scmp.ne.s32.totalorder %s7566_s5, 0 }
 0x2c2   : > { %5837 = dma.done.wait (%p7567_p10), %s1112_s1, 272  }
 0x2c3   : > { %5839 = vsyncadd (%p7567_p10), %s1112_s1, 4294967024  ;;  %s6847_s4 = sshll.u32 %s6838_s0, 4  ;;  %s1129_s7 = scalar_lea.sflag [#allocation12], %s6835_s18 }
 0x2c4   : > { %s1123_s16 = scalar_lea.vmem [#allocation10], %s6847_s4 }
 0x2c5   : > { %5841 = dma.done.wait (%p7567_p10), %s1129_s7, 272  }
 0x2c6   : > { %5843 = vsyncadd (%p7567_p10), %s1129_s7, 4294967024  ;;  %s1146_s2 = scalar_lea.sflag [#allocation15], %s6835_s18 }
 0x2c7   : > { %5845 = dma.done.wait (%p7567_p10), %s1146_s2, 272  }
 0x2c8   : > { %5847 = vsyncadd (%p7567_p10), %s1146_s2, 4294967024  ;;  %s1157_s15 = scalar_lea.vmem [#allocation16], %s6847_s4  ;;  %s1163_s30 = scalar_lea.sflag [#allocation18], %s6835_s18 }
 0x2c9   : > { %5849 = dma.done.wait (%p7567_p10), %s1163_s30, 272  }
 0x2ca   : > { %5851 = vsyncadd (%p7567_p10), %s1163_s30, 4294967024  ;;  %s1180_s7 = scalar_lea.sflag [#allocation21], %s6835_s18 }
 0x2cb   : > { %5853 = dma.done.wait (%p7567_p10), %s1180_s7, 1040  }
 0x2cc   : > { %5855 = vsyncadd (%p7567_p10), %s1180_s7, 4294966256  ;;  %s4448_s2 = sshll.u32 %s6838_s0, 6  ;;  %s1197_s30 = scalar_lea.sflag [#allocation24], %s6835_s18 }
 0x2cd   : > { %s6878_s27 = scalar_lea.vmem [#allocation22], %s4448_s2 }
 0x2ce   : > { %5857 = dma.done.wait (%p7567_p10), %s1197_s30, 32  }
 0x2cf   : > { %5859 = vsyncadd (%p7567_p10), %s1197_s30, 4294967264  ;;  %s1207_s3 = scalar_lea.vmem [#allocation25], %s6838_s0  ;;  %s1213_s7 = scalar_lea.sflag [#allocation27], %s6835_s18 }
 0x2d0   : > { %5861 = dma.done.wait (%p7567_p10), %s1213_s7, 32  }
 0x2d1   : > { %5863 = vsyncadd (%p7567_p10), %s1213_s7, 4294967264  ;;  %s1229_s13 = scalar_lea.sflag [#allocation30], %s6835_s18 }
 0x2d2   : > { %5865 = dma.done.wait (%p7567_p10), %s1229_s13, 32  }
 0x2d3   : > { %5867 = vsyncadd (%p7567_p10), %s1229_s13, 4294967264  ;;  %s1245_s1 = scalar_lea.sflag [#allocation33], %s6835_s18  ;;  %s1247_s8 = scalar_lea.vmem [#allocation32], %s6838_s0 }
 0x2d4   : > { %5869 = dma.done.wait (%p7567_p10), %s1245_s1, 272  }
 0x2d5   : > { %5871 = vsyncadd (%p7567_p10), %s1245_s1, 4294967024  ;;  %s1256_s7 = scalar_lea.vmem [#allocation34], %s6847_s4  ;;  %s1262_s25 = scalar_lea.sflag [#allocation36], %s6835_s18 }
 0x2d6   : > { %s1264_s2 = scalar_lea.vmem [#allocation35], %s6838_s0 }
 0x2d7   : > { %5873 = dma.done.wait (%p7567_p10), %s1262_s25, 272  }
 0x2d8   : > { %5875 = vsyncadd (%p7567_p10), %s1262_s25, 4294967024  ;;  %s1273_s13 = scalar_lea.vmem [#allocation37], %s6847_s4  ;;  %p7568_p8 = scmp.ne.s32.totalorder %s7560_s6, 0 }
 0x2d9   : > { %v1418_v0 = vld [vmem:[#allocation2] sm:$0xff] (!%p7568_p8)  ;;  %vm1420_vm0 = vcmask (!%p7568_p8), 261120   ;;  %v1419_v1 = vld [vmem:[#allocation2 + $0x8] sm:$0xff] (!%p7568_p8) }
 0x2da   : > { %1417 = sbr.rel (%p7568_p8) target bundleno = 737 (0x2e1), region = 208  ;;  %1421 = vst.msk [vmem:[#allocation38] sm:$0xff] (!%p7568_p8), %vm1420_vm0, %v1418_v0  ;;  %1422 = vst.msk [vmem:[#allocation38 + $0x8] sm:$0xff] (!%p7568_p8), %vm1420_vm0, %v1419_v1 }
 0x2e1 PF: > { %v5046_v2 = vld [vmem:[%s1273_s13] sm:$0xff]   ;;  %v5923_v3 = vmov 0.0   ;;  %v5047_v4 = vld [vmem:[%s1273_s13 + $0x8] sm:$0xff]   ;;  %vm5924_vm1 = vmmov 0   ;;  %vm1453_vm2 = vcmask 261120   ;;  %s5925_s6 = smov 96  }
 0x2e2   : > { %4625 = vmatprep.subr.bf16.mxu1 %v5923_v3  ;;  %4651 = vmatprep.subr.bf16.mxu0 %v5923_v3  ;;  %v6921_v5 = vld [vmem:[#allocation38] sm:$0xff]  ;;  %v6923_v6 = vld [vmem:[#allocation38 + $0x8] sm:$0xff]  ;;  %v4452_v8 = vld [vmem:[%s1264_s2] ss:$0 sm:$0xff]  ;;  %vm1503_vm3 = vcmask 64512   ;;  %s5926_s5 = smov 64  }
 0x2e3   : > { %4626 = vmatpush3.bf16.msra.mxu1 %v5046_v2  ;;  %4629 = vmatprep.mubr.msk.bf16.mxu1 %vm5924_vm1, %v5923_v3  ;;  %v1429_v7 = vpack.c.bf16 %v6923_v6, %v6921_v5  ;;  %v6954_v22 = vld [vmem:[#allocation7] sm:$0xff]  ;;  %v6958_v30 = vld [vmem:[#allocation7 + $0x8] sm:$0xff]  ;;  %s5927_s18 = smov 88   ;;  %vm1632_vm4 = vcmask 1043456   ;;  %s5928_s25 = smov 120   ;;  %vm2422_vm5 = vcmask 130048  }
 0x2e4   : > { %4627 = vmatprep.subr.bf16.mxu1 %v5923_v3  ;;  %4653 = vmatprep.mubr.msk.bf16.mxu0 %vm5924_vm1, %v5923_v3  ;;  %s5929_s1 = smov 56   ;;  %s5930_s2 = smov 80   ;;  %vm2425_vm6 = vcmask 195584  }
 0x2e5   : > { %s5931_s13 = smov 112   ;;  %s7484_s30 = smov 104  }
 0x2e7   : > { %4628 = vmatpush3.bf16.msra.mxu1 %v5047_v4 }
 0x2e8   : > { %4633 = vmatprep.subr.bf16.mxu1 %v5923_v3 }
 0x2ea   : > { %4630 = vmatmul.mubr.msk.bf16.vlgmr.msra.gmra.mrb[0].mxu1 %vm1453_vm2, %v1429_v7 }
 0x2eb   : > { %4635 = vmatprep.mubr.msk.bf16.mxu1 %vm5924_vm1, %v5923_v3 }
 0x3bd   : > { %v1491_v9 = vpop.f32.mrb[0].mxu1 }
 0x3be   : > { %v1492_v10 = vadd.f32 %v4452_v8, %v1491_v9  ;;  %v4631_v11 = vpop.f32.mrb[1].mxu1 }
 0x3bf   : > { %v1494_v12 = vpop.f32.mrb[2].mxu1 }
 0x3c0   : > { %v6934_v13 = vpack.c.bf16 %v1492_v10, %v1492_v10  ;;  %v1495_v14 = vadd.f32 %v4452_v8, %v1494_v12  ;;  %v4632_v15 = vpop.f32.mrb[3].mxu1 }
 0x3c2   : > { %1501 = vrot.lane.b32.xlu0 %v6934_v13, %s5925_s6  ;;  %v6938_v16 = vpack.c.bf16 %v1495_v14, %v1495_v14 }
 0x3c6   : > { %1551 = vrot.lane.b32.xlu0 %v6938_v16, %s5925_s6 }
 0x434   : > { %v1502_v17 = vpop.permute.xlu0 %1501 }
 0x435   : > { %v1508_v18 = vsel %vm1503_vm3, %v1502_v17, 0 }
 0x436   : > { %4634 = vmatpush3.bf16.xpose.msra.mxu1 %v1508_v18 }
 0x437   : > { %4639 = vmatprep.subr.bf16.mxu1 %v5923_v3 }
 0x438   : > { %v1552_v19 = vpop.permute.xlu0 %1551 }
 0x439   : > { %v1557_v20 = vsel %vm1503_vm3, %v1552_v19, 0 }
 0x43d   : > { %4636 = vmatmul.mubr.msk.bf16.vlgmr.msra.gmra.mrb[4].mxu1 %vm1503_vm3, %v6934_v13 }
 0x43e   : > { %4640 = vmatpush3.bf16.xpose.msra.mxu1 %v1557_v20  ;;  %4641 = vmatprep.mubr.msk.bf16.mxu1 %vm5924_vm1, %v5923_v3 }
 0x43f   : > { %4645 = vmatprep.subr.bf16.mxu1 %v5923_v3 }
 0x445   : > { %4642 = vmatmul.mubr.msk.bf16.vlgmr.msra.gmra.mrb[8].mxu1 %vm1503_vm3, %v6938_v16 }
 0x446   : > { %4647 = vmatprep.mubr.msk.bf16.mxu1 %vm5924_vm1, %v5923_v3 }
 0x510   : > { %v1544_v21 = vpop.f32.mrb[4].mxu1 }
 0x511   : > { %v1599_v23 = vmul.f32 0.35355338, %v1544_v21  ;;  %v4637_v24 = vpop.f32.mrb[5].mxu1 }
 0x512   : > { %v1547_v25 = vpop.f32.mrb[6].mxu1 }
 0x513   : > { %v4638_v26 = vpop.f32.mrb[7].mxu1  ;;  %v1601_v27 = vadd.f32 %v1599_v23, %v6954_v22 }
 0x515   : > { %v1603_v28 = vsel %vm1503_vm3, %v1601_v27, -inf }
 0x516   : > { %1604 = vmax.xlane.f32.xlu1 %v1603_v28 }
 0x518   : > { %v1593_v29 = vpop.f32.mrb[8].mxu1 }
 0x519   : > { %v1600_v31 = vmul.f32 0.35355338, %v1593_v29  ;;  %v4643_v32 = vpop.f32.mrb[9].mxu1 }
 0x51a   : > { %v1596_v33 = vpop.f32.mrb[10].mxu1 }
 0x51b   : > { %v4644_v34 = vpop.f32.mrb[11].mxu1  ;;  %v1602_v35 = vadd.f32 %v1600_v31, %v6958_v30 }
 0x51d   : > { %v1606_v36 = vsel %vm1503_vm3, %v1602_v35, -inf }
 0x51e   : > { %1607 = vmax.xlane.f32.xlu1 %v1606_v36 }
 0x52f   : > { %1627 = vrot.lane.b32.xlu1 %v6934_v13, %s5926_s5 }
 0x533   : > { %1676 = vrot.lane.b32.xlu1 %v6938_v16, %s5926_s5  ;;  %s5932_s5 = smov 48  }
 0x537   : > { %1726 = vrot.lane.b32.xlu1 %v6934_v13, %s5927_s18 }
 0x5a3   : > { %v1605_v37 = vpop.xlane.xlu1 %1604 }
 0x5a4   : > { %v1609_v38 = vsub.f32 %v1601_v27, %v1605_v37 }
 0x5a6   : > { %v1611_v39 = vmul.f32 1.442695, %v1609_v38 }
 0x5a8   : > { %5066 = vpow2.f32 %v1611_v39 }
 0x5ab   : > { %v1608_v40 = vpop.xlane.xlu1 %1607 }
 0x5ac   : > { %v1610_v41 = vsub.f32 %v1602_v35, %v1608_v40 }
 0x5ae   : > { %v1613_v42 = vmul.f32 1.442695, %v1610_v41 }
 0x5af   : > { %v1628_v43 = vpop.permute.xlu1 %1627 }
 0x5b0   : > { %5068 = vpow2.f32 %v1613_v42  ;;  %v1634_v44 = vsel %vm1632_vm4, %v1628_v43, 0 }
 0x5b1   : > { %4646 = vmatpush3.bf16.msra.mxu1 %v1634_v44 }
 0x5b2   : > { %v5067_v45 = vpop.eup %5066  ;;  %4657 = vmatprep.subr.bf16.mxu1 %v5923_v3 }
 0x5b3   : > { %v1677_v46 = vpop.permute.xlu1 %1676  ;;  %v1615_v47 = vsel %vm1503_vm3, %v5067_v45, 0.0 }
 0x5b4   : > { %1616 = vadd.xlane.f32.xlu0 %v1615_v47  ;;  %v1682_v48 = vsel %vm1632_vm4, %v1677_v46, 0 }
 0x5b5   : > { %4652 = vmatpush3.bf16.msra.mxu0 %v1682_v48 }
 0x5b6   : > { %4663 = vmatprep.subr.bf16.mxu0 %v5923_v3 }
 0x5b7   : > { %v1727_v52 = vpop.permute.xlu1 %1726 }
 0x5b8   : > { %v1732_v57 = vsel %vm1503_vm3, %v1727_v52, 0 }
 0x5ba   : > { %v5069_v49 = vpop.eup %5068 }
 0x5bb   : > { %v1618_v50 = vsel %vm1503_vm3, %v5069_v49, 0.0 }
 0x5bc   : > { %1619 = vadd.xlane.f32.xlu1 %v1618_v50 }
 0x5ca   : > { %1724 = vrot.lane.b32.xlu0 %v6934_v13, %s5928_s25 }
 0x5cd   : > { %1776 = vrot.lane.b32.xlu1 %v6938_v16, %s5927_s18 }
 0x5d1   : > { %1774 = vrot.lane.b32.xlu1 %v6938_v16, %s5928_s25 }
 0x641   : > { %v1617_v51 = vpop.xlane.xlu0 %1616 }
 0x642   : > { %5070 = vrcp.f32 %v1617_v51 }
 0x645   : > { %v1725_v62 = vpop.permute.xlu0 %1724 }
 0x649   : > { %v1620_v53 = vpop.xlane.xlu1 %1619 }
 0x64a   : > { %5072 = vrcp.f32 %v1620_v53 }
 0x64c   : > { %v5071_v54 = vpop.eup %5070 }
 0x64d   : > { %v1623_v55 = vmul.f32 %v5071_v54, %v5067_v45  ;;  %v1777_v60 = vpop.permute.xlu1 %1776 }
 0x64e   : > { %v1782_v63 = vsel %vm1503_vm3, %v1777_v60, 0 }
 0x64f   : > { %v1625_v56 = vpack.c.bf16 %v1623_v55, %v1623_v55 }
 0x651   : > { %4648 = vmatmul.mubr.msk.bf16.vlgmr.msra.gmra.mrb[12].mxu1 %vm1503_vm3, %v1625_v56  ;;  %v1775_v0 = vpop.permute.xlu1 %1774 }
 0x652   : > { %4658 = vmatpush3.bf16.xpose.msra.mxu1 %v1732_v57  ;;  %4659 = vmatprep.mubr.msk.bf16.mxu1 %vm5924_vm1, %v5923_v3 }
 0x653   : > { %4669 = vmatprep.subr.bf16.mxu1 %v5923_v3 }
 0x654   : > { %v5073_v58 = vpop.eup %5072 }
 0x655   : > { %v1624_v59 = vmul.f32 %v5073_v58, %v5069_v49 }
 0x657   : > { %v1626_v61 = vpack.c.bf16 %v1624_v59, %v1624_v59 }
 0x659   : > { %4654 = vmatmul.mubr.msk.bf16.vlgmr.msra.gmra.mrb[0].mxu0 %vm1503_vm3, %v1626_v61  ;;  %4660 = vmatmul.mubr.msk.bf16.vlgmr.msra.gmra.mrb[16].mxu1 %vm1503_vm3, %v1725_v62 }
 0x65a   : > { %4664 = vmatpush3.bf16.xpose.msra.mxu0 %v1782_v63  ;;  %4665 = vmatprep.mubr.msk.bf16.mxu0 %vm5924_vm1, %v5923_v3 }
 0x65b   : > { %4675 = vmatprep.subr.bf16.mxu0 %v5923_v3  ;;  %4671 = vmatprep.mubr.msk.bf16.mxu1 %vm5924_vm1, %v5923_v3 }
 0x661   : > { %4666 = vmatmul.mubr.msk.bf16.vlgmr.msra.gmra.mrb[4].mxu0 %vm1503_vm3, %v1775_v0 }
 0x662   : > { %4677 = vmatprep.mubr.msk.bf16.mxu0 %vm5924_vm1, %v5923_v3 }
 0x724   : > { %v6994_v1 = vpop.f32.mrb[12].mxu1 }
 0x725   : > { %v4649_v2 = vpop.f32.mrb[13].mxu1 }
 0x726   : > { %v1673_v4 = vpop.f32.mrb[14].mxu1 }
 0x727   : > { %v4650_v7 = vpop.f32.mrb[15].mxu1 }
 0x72c   : > { %v6996_v8 = vpop.f32.mrb[0].mxu0  ;;  %v1768_v9 = vpop.f32.mrb[16].mxu1 }
 0x72d   : > { %v1824_v10 = vmul.f32 0.35355338, %v1768_v9  ;;  %v4655_v11 = vpop.f32.mrb[1].mxu0  ;;  %v4661_v12 = vpop.f32.mrb[17].mxu1 }
 0x72e   : > { %v1721_v14 = vpop.f32.mrb[2].mxu0  ;;  %v1771_v15 = vpop.f32.mrb[18].mxu1 }
 0x72f   : > { %v4656_v17 = vpop.f32.mrb[3].mxu0  ;;  %v4662_v18 = vpop.f32.mrb[19].mxu1  ;;  %v1826_v19 = vadd.f32 %v1824_v10, %v6954_v22 }
 0x731   : > { %v1828_v20 = vsel %vm1503_vm3, %v1826_v19, -inf }
 0x732   : > { %1829 = vmax.xlane.f32.xlu1 %v1828_v20 }
 0x734   : > { %v1818_v21 = vpop.f32.mrb[4].mxu0 }
 0x735   : > { %v1825_v23 = vmul.f32 0.35355338, %v1818_v21  ;;  %v4667_v24 = vpop.f32.mrb[5].mxu0 }
 0x736   : > { %v1821_v25 = vpop.f32.mrb[6].mxu0 }
 0x737   : > { %v4668_v26 = vpop.f32.mrb[7].mxu0  ;;  %v1827_v27 = vadd.f32 %v1825_v23, %v6958_v30 }
 0x739   : > { %v1831_v28 = vsel %vm1503_vm3, %v1827_v27, -inf }
 0x73a   : > { %1832 = vmax.xlane.f32.xlu0 %v1831_v28 }
 0x743   : > { %1852 = vrot.lane.b32.xlu1 %v6934_v13, %s5929_s1 }
 0x747   : > { %1950 = vrot.lane.b32.xlu1 %v6934_v13, %s5930_s2 }
 0x750   : > { %1900 = vrot.lane.b32.xlu0 %v6938_v16, %s5929_s1  ;;  %s7482_s1 = smov 72  }
 0x754   : > { %1948 = vrot.lane.b32.xlu0 %v6934_v13, %s5931_s13 }
 0x7bf   : > { %v1830_v29 = vpop.xlane.xlu1 %1829 }
 0x7c0   : > { %v1834_v31 = vsub.f32 %v1826_v19, %v1830_v29 }
 0x7c2   : > { %v1836_v32 = vmul.f32 1.442695, %v1834_v31 }
 0x7c3   : > { %v1853_v33 = vpop.permute.xlu1 %1852 }
 0x7c4   : > { %5074 = vpow2.f32 %v1836_v32  ;;  %v1858_v34 = vsel %vm1632_vm4, %v1853_v33, 0 }
 0x7c5   : > { %4670 = vmatpush3.bf16.msra.mxu1 %v1858_v34 }
 0x7c6   : > { %4681 = vmatprep.subr.bf16.mxu1 %v5923_v3 }
 0x7c7   : > { %v1833_v35 = vpop.xlane.xlu0 %1832  ;;  %v1951_v44 = vpop.permute.xlu1 %1950 }
 0x7c8   : > { %v1835_v36 = vsub.f32 %v1827_v27, %v1833_v35  ;;  %v1956_v50 = vsel %vm1503_vm3, %v1951_v44, 0 }
 0x7ca   : > { %v1838_v37 = vmul.f32 1.442695, %v1835_v36 }
 0x7cb   : > { %v1901_v38 = vpop.permute.xlu0 %1900 }
 0x7cc   : > { %5076 = vpow2.f32 %v1838_v37  ;;  %v1906_v39 = vsel %vm1632_vm4, %v1901_v38, 0 }
 0x7cd   : > { %4676 = vmatpush3.bf16.msra.mxu0 %v1906_v39 }
 0x7ce   : > { %v5075_v40 = vpop.eup %5074  ;;  %4687 = vmatprep.subr.bf16.mxu0 %v5923_v3 }
 0x7cf   : > { %v1840_v41 = vsel %vm1503_vm3, %v5075_v40, 0.0  ;;  %v1949_v55 = vpop.permute.xlu0 %1948 }
 0x7d0   : > { %1841 = vadd.xlane.f32.xlu1 %v1840_v41 }
 0x7d6   : > { %v5077_v42 = vpop.eup %5076 }
 0x7d7   : > { %v1843_v43 = vsel %vm1503_vm3, %v5077_v42, 0.0 }
 0x7d8   : > { %1844 = vadd.xlane.f32.xlu1 %v1843_v43 }
 0x7e9   : > { %2000 = vrot.lane.b32.xlu1 %v6938_v16, %s5930_s2 }
 0x7ed   : > { %1998 = vrot.lane.b32.xlu1 %v6938_v16, %s5931_s13 }
 0x85d   : > { %v1842_v45 = vpop.xlane.xlu1 %1841 }
 0x85e   : > { %5078 = vrcp.f32 %v1842_v45 }
 0x865   : > { %v1845_v46 = vpop.xlane.xlu1 %1844 }
 0x866   : > { %5080 = vrcp.f32 %v1845_v46 }
 0x868   : > { %v5079_v47 = vpop.eup %5078 }
 0x869   : > { %v1848_v48 = vmul.f32 %v5079_v47, %v5075_v40  ;;  %v2001_v53 = vpop.permute.xlu1 %2000 }
 0x86a   : > { %v2006_v56 = vsel %vm1503_vm3, %v2001_v53, 0 }
 0x86b   : > { %v1850_v49 = vpack.c.bf16 %v1848_v48, %v1848_v48 }
 0x86d   : > { %4672 = vmatmul.mubr.msk.bf16.vlgmr.msra.gmra.mrb[20].mxu1 %vm1503_vm3, %v1850_v49  ;;  %v1999_v57 = vpop.permute.xlu1 %1998 }
 0x86e   : > { %4682 = vmatpush3.bf16.xpose.msra.mxu1 %v1956_v50  ;;  %4683 = vmatprep.mubr.msk.bf16.mxu1 %vm5924_vm1, %v5923_v3 }
 0x86f   : > { %4693 = vmatprep.subr.bf16.mxu1 %v5923_v3 }
 0x870   : > { %v5081_v51 = vpop.eup %5080 }
 0x871   : > { %v1849_v52 = vmul.f32 %v5081_v51, %v5077_v42 }
 0x873   : > { %v1851_v54 = vpack.c.bf16 %v1849_v52, %v1849_v52 }
 0x875   : > { %4678 = vmatmul.mubr.msk.bf16.vlgmr.msra.gmra.mrb[8].mxu0 %vm1503_vm3, %v1851_v54  ;;  %4684 = vmatmul.mubr.msk.bf16.vlgmr.msra.gmra.mrb[24].mxu1 %vm1503_vm3, %v1949_v55 }
 0x876   : > { %4688 = vmatpush3.bf16.xpose.msra.mxu0 %v2006_v56  ;;  %4689 = vmatprep.mubr.msk.bf16.mxu0 %vm5924_vm1, %v5923_v3 }
 0x877   : > { %4699 = vmatprep.subr.bf16.mxu0 %v5923_v3  ;;  %4695 = vmatprep.mubr.msk.bf16.mxu1 %vm5924_vm1, %v5923_v3 }
 0x87d   : > { %4690 = vmatmul.mubr.msk.bf16.vlgmr.msra.gmra.mrb[12].mxu0 %vm1503_vm3, %v1999_v57 }
 0x87e   : > { %4701 = vmatprep.mubr.msk.bf16.mxu0 %vm5924_vm1, %v5923_v3 }
 0x940   : > { %v7034_v58 = vpop.f32.mrb[20].mxu1 }
 0x941   : > { %v4673_v59 = vpop.f32.mrb[21].mxu1 }
 0x942   : > { %v1897_v60 = vpop.f32.mrb[22].mxu1 }
 0x943   : > { %v4674_v61 = vpop.f32.mrb[23].mxu1 }
 0x948   : > { %v7036_v62 = vpop.f32.mrb[8].mxu0  ;;  %v1992_v63 = vpop.f32.mrb[24].mxu1 }
 0x949   : > { %v5016_v0 = vpack.i.bf16 %v7036_v62, %v7034_v58  ;;  %v2048_v2 = vmul.f32 0.35355338, %v1992_v63  ;;  %v4679_v4 = vpop.f32.mrb[9].mxu0  ;;  %v4685_v7 = vpop.f32.mrb[25].mxu1 }
 0x94a   : > { %v1945_v9 = vpop.f32.mrb[10].mxu0  ;;  %v1995_v10 = vpop.f32.mrb[26].mxu1 }
 0x94b   : > { %v4680_v11 = vpop.f32.mrb[11].mxu0  ;;  %v4686_v12 = vpop.f32.mrb[27].mxu1  ;;  %v2050_v14 = vadd.f32 %v2048_v2, %v6954_v22 }
 0x94d   : > { %v2052_v15 = vsel %vm1503_vm3, %v2050_v14, -inf }
 0x94e   : > { %2053 = vmax.xlane.f32.xlu0 %v2052_v15 }
 0x950   : > { %v2042_v17 = vpop.f32.mrb[12].mxu0 }
 0x951   : > { %v2049_v18 = vmul.f32 0.35355338, %v2042_v17  ;;  %v4691_v19 = vpop.f32.mrb[13].mxu0 }
 0x952   : > { %v2045_v20 = vpop.f32.mrb[14].mxu0 }
 0x953   : > { %v4692_v21 = vpop.f32.mrb[15].mxu0  ;;  %v2051_v23 = vadd.f32 %v2049_v18, %v6958_v30 }
 0x955   : > { %v2055_v24 = vsel %vm1503_vm3, %v2051_v23, -inf }
 0x956   : > { %2056 = vmax.xlane.f32.xlu1 %v2055_v24 }
 0x967   : > { %2076 = vrot.lane.b32.xlu1 %v6934_v13, %s5932_s5 }
 0x96b   : > { %2174 = vrot.lane.b32.xlu1 %v6934_v13, %s7482_s1 }
 0x96f   : > { %2224 = vrot.lane.b32.xlu1 %v6938_v16, %s7482_s1  ;;  %s5936_s1 = smov 8  }
 0x973   : > { %2222 = vrot.lane.b32.xlu1 %v6938_v16, %s7484_s30 }
 0x9db   : > { %v2054_v25 = vpop.xlane.xlu0 %2053 }
 0x9dc   : > { %v2058_v26 = vsub.f32 %v2050_v14, %v2054_v25 }
 0x9de   : > { %v2060_v27 = vmul.f32 1.442695, %v2058_v26 }
 0x9e0   : > { %5082 = vpow2.f32 %v2060_v27 }
 0x9e3   : > { %v2057_v28 = vpop.xlane.xlu1 %2056 }
 0x9e4   : > { %v2059_v29 = vsub.f32 %v2051_v23, %v2057_v28 }
 0x9e6   : > { %v2062_v31 = vmul.f32 1.442695, %v2059_v29 }
 0x9e7   : > { %v2077_v32 = vpop.permute.xlu1 %2076 }
 0x9e8   : > { %5084 = vpow2.f32 %v2062_v31  ;;  %v2082_v33 = vsel %vm1632_vm4, %v2077_v32, 0 }
 0x9e9   : > { %4694 = vmatpush3.bf16.msra.mxu1 %v2082_v33 }
 0x9ea   : > { %v5083_v34 = vpop.eup %5082  ;;  %4705 = vmatprep.subr.bf16.mxu1 %v5923_v3 }
 0x9eb   : > { %v2064_v35 = vsel %vm1503_vm3, %v5083_v34, 0.0  ;;  %v2175_v43 = vpop.permute.xlu1 %2174 }
 0x9ec   : > { %2065 = vadd.xlane.f32.xlu0 %v2064_v35  ;;  %v2180_v46 = vsel %vm1503_vm3, %v2175_v43, 0 }
 0x9ef   : > { %v2225_v49 = vpop.permute.xlu1 %2224 }
 0x9f0   : > { %v2230_v52 = vsel %vm1503_vm3, %v2225_v49, 0 }
 0x9f2   : > { %v5085_v36 = vpop.eup %5084 }
 0x9f3   : > { %v2067_v37 = vsel %vm1503_vm3, %v5085_v36, 0.0  ;;  %v2223_v53 = vpop.permute.xlu1 %2222 }
 0x9f4   : > { %2068 = vadd.xlane.f32.xlu0 %v2067_v37 }
 0xa0a   : > { %2124 = vrot.lane.b32.xlu0 %v6938_v16, %s5932_s5  ;;  %s5935_s5 = smov 40  }
 0xa0e   : > { %2172 = vrot.lane.b32.xlu0 %v6934_v13, %s7484_s30  ;;  %s5937_s30 = smov 16  }
 0xa79   : > { %v2066_v38 = vpop.xlane.xlu0 %2065 }
 0xa7a   : > { %5086 = vrcp.f32 %v2066_v38 }
 0xa81   : > { %v2069_v39 = vpop.xlane.xlu0 %2068 }
 0xa82   : > { %5088 = vrcp.f32 %v2069_v39 }
 0xa84   : > { %v5087_v40 = vpop.eup %5086 }
 0xa85   : > { %v2072_v41 = vmul.f32 %v5087_v40, %v5083_v34  ;;  %v2125_v42 = vpop.permute.xlu0 %2124  ;;  %v5048_v40 = vld [vmem:[%s1256_s7] sm:$0xff]  }
 0xa86   : > { %v2130_v44 = vsel %vm1632_vm4, %v2125_v42, 0 }
 0xa87   : > { %4700 = vmatpush3.bf16.msra.mxu0 %v2130_v44  ;;  %v2074_v45 = vpack.c.bf16 %v2072_v41, %v2072_v41  ;;  %v5049_v41 = vld [vmem:[%s1256_s7 + $0x8] sm:$0xff]   ;;  %s7573_s7 = smov 72  }
 0xa88   : > { %4711 = vmatprep.subr.bf16.mxu0 %v5923_v3 }
 0xa89   : > { %4696 = vmatmul.mubr.msk.bf16.vlgmr.msra.gmra.mrb[28].mxu1 %vm1503_vm3, %v2074_v45  ;;  %v2173_v51 = vpop.permute.xlu0 %2172 }
 0xa8a   : > { %4706 = vmatpush3.bf16.xpose.msra.mxu1 %v2180_v46  ;;  %4707 = vmatprep.mubr.msk.bf16.mxu1 %vm5924_vm1, %v5923_v3 }
 0xa8b   : > { %4717 = vmatprep.subr.bf16.mxu1 %v5923_v3 }
 0xa8c   : > { %v5089_v47 = vpop.eup %5088 }
 0xa8d   : > { %v2073_v48 = vmul.f32 %v5089_v47, %v5085_v36 }
 0xa8f   : > { %v2075_v50 = vpack.c.bf16 %v2073_v48, %v2073_v48 }
 0xa91   : > { %4702 = vmatmul.mubr.msk.bf16.vlgmr.msra.gmra.mrb[16].mxu0 %vm1503_vm3, %v2075_v50  ;;  %4708 = vmatmul.mubr.msk.bf16.vlgmr.msra.gmra.mrb[32].mxu1 %vm1503_vm3, %v2173_v51 }
 0xa92   : > { %4712 = vmatpush3.bf16.xpose.msra.mxu0 %v2230_v52  ;;  %4713 = vmatprep.mubr.msk.bf16.mxu0 %vm5924_vm1, %v5923_v3 }
 0xa93   : > { %4723 = vmatprep.subr.bf16.mxu0 %v5923_v3  ;;  %4719 = vmatprep.mubr.msk.bf16.mxu1 %vm5924_vm1, %v5923_v3 }
 0xa99   : > { %4714 = vmatmul.mubr.msk.bf16.vlgmr.msra.gmra.mrb[20].mxu0 %vm1503_vm3, %v2223_v53 }
 0xa9a   : > { %4725 = vmatprep.mubr.msk.bf16.mxu0 %vm5924_vm1, %v5923_v3 }
 0xb5c   : > { %v2118_v54 = vpop.f32.mrb[28].mxu1 }
 0xb5d   : > { %v4697_v55 = vpop.f32.mrb[29].mxu1 }
 0xb5e   : > { %v2121_v56 = vpop.f32.mrb[30].mxu1 }
 0xb5f   : > { %v4698_v57 = vpop.f32.mrb[31].mxu1 }
 0xb64   : > { %v2166_v59 = vpop.f32.mrb[16].mxu0  ;;  %v2216_v60 = vpop.f32.mrb[32].mxu1 }
 0xb65   : > { %v5021_v61 = vpack.i.bf16 %v2166_v59, %v2118_v54  ;;  %v2272_v63 = vmul.f32 0.35355338, %v2216_v60  ;;  %v4703_v2 = vpop.f32.mrb[17].mxu0  ;;  %v4709_v4 = vpop.f32.mrb[33].mxu1 }
 0xb66   : > { %v2169_v7 = vpop.f32.mrb[18].mxu0  ;;  %v2219_v9 = vpop.f32.mrb[34].mxu1 }
 0xb67   : > { %v4704_v10 = vpop.f32.mrb[19].mxu0  ;;  %v4710_v11 = vpop.f32.mrb[35].mxu1  ;;  %v2274_v12 = vadd.f32 %v2272_v63, %v6954_v22 }
 0xb69   : > { %v2276_v14 = vsel %vm1503_vm3, %v2274_v12, -inf }
 0xb6a   : > { %2277 = vmax.xlane.f32.xlu0 %v2276_v14 }
 0xb6c   : > { %v2266_v15 = vpop.f32.mrb[20].mxu0 }
 0xb6d   : > { %v2273_v17 = vmul.f32 0.35355338, %v2266_v15  ;;  %v4715_v18 = vpop.f32.mrb[21].mxu0 }
 0xb6e   : > { %v2269_v19 = vpop.f32.mrb[22].mxu0 }
 0xb6f   : > { %v4716_v20 = vpop.f32.mrb[23].mxu0  ;;  %v2275_v21 = vadd.f32 %v2273_v17, %v6958_v30 }
 0xb71   : > { %v2279_v23 = vsel %vm1503_vm3, %v2275_v21, -inf }
 0xb72   : > { %2280 = vmax.xlane.f32.xlu1 %v2279_v23 }
 0xb83   : > { %2300 = vrot.lane.b32.xlu1 %v6934_v13, %s5935_s5 }
 0xb87   : > { %5017 = vrot.lane.b32.xlu1 %v5016_v0, %s5936_s1 }
 0xb8b   : > { %5022 = vrot.lane.b32.xlu1 %v5021_v61, %s5937_s30 }
 0xbf7   : > { %v2278_v22 = vpop.xlane.xlu0 %2277 }
 0xbf8   : > { %v2282_v24 = vsub.f32 %v2274_v12, %v2278_v22 }
 0xbfa   : > { %v2284_v25 = vmul.f32 1.442695, %v2282_v24 }
 0xbfc   : > { %5090 = vpow2.f32 %v2284_v25 }
 0xbff   : > { %v2281_v30 = vpop.xlane.xlu1 %2280 }
 0xc00   : > { %v2283_v26 = vsub.f32 %v2275_v21, %v2281_v30 }
 0xc02   : > { %v2286_v27 = vmul.f32 1.442695, %v2283_v26 }
 0xc03   : > { %v2301_v28 = vpop.permute.xlu1 %2300 }
 0xc04   : > { %5092 = vpow2.f32 %v2286_v27  ;;  %v2306_v13 = vsel %vm1632_vm4, %v2301_v28, 0 }
 0xc05   : > { %4718 = vmatpush3.bf16.msra.mxu1 %v2306_v13  ;;  %v5050_v13 = vld [vmem:[%s1123_s16] sm:$0xff]  }
 0xc06   : > { %v5091_v29 = vpop.eup %5090  ;;  %4729 = vmatprep.subr.bf16.mxu1 %v5923_v3 }
 0xc07   : > { %v2288_v58 = vsel %vm1503_vm3, %v5091_v29, 0.0  ;;  %v5018_v51 = vpop.permute.xlu1 %5017 }
 0xc08   : > { %2289 = vadd.xlane.f32.xlu0 %v2288_v58  ;;  %v5020_v53 = vunpack.i.h.bf16 %v5018_v51  ;;  %v5019_v54 = vunpack.i.l.bf16 %v5018_v51  ;;  %v1425_v58 = vld [vmem:[#allocation5] sm:$0xff] }
 0xc0a   : > { %v2421_v59 = vsel %vm1503_vm3, %v6996_v8, %v5020_v53  ;;  %v2420_v60 = vsel %vm1503_vm3, %v6994_v1, %v5019_v54  ;;  %v4472_v8 = vld [vmem:[%s1247_s8] ss:$0 sm:$0xff]  ;;  %s7571_s8 = scalar_lea.vmem [#allocation14], %s6838_s0 }
 0xc0b   : > { %v5023_v52 = vpop.permute.xlu1 %5022 }
 0xc0c   : > { %v5025_v55 = vunpack.i.h.bf16 %v5023_v52  ;;  %v5024_v56 = vunpack.i.l.bf16 %v5023_v52 }
 0xc0e   : > { %v5093_v62 = vpop.eup %5092  ;;  %v2424_v2 = vsel %vm2422_vm5, %v2421_v59, %v5025_v55  ;;  %v2423_v4 = vsel %vm2422_vm5, %v2420_v60, %v5024_v56 }
 0xc0f   : > { %v2291_v0 = vsel %vm1503_vm3, %v5093_v62, 0.0 }
 0xc10   : > { %2292 = vadd.xlane.f32.xlu0 %v2291_v0 }
 0xc26   : > { %2348 = vrot.lane.b32.xlu0 %v6938_v16, %s5935_s5  ;;  %s5938_s5 = smov 24  }
 0xc95   : > { %v2290_v31 = vpop.xlane.xlu0 %2289 }
 0xc96   : > { %5094 = vrcp.f32 %v2290_v31  ;;  %v5052_v31 = vld [vmem:[%s1157_s15] sm:$0xff]  }
 0xc9d   : > { %v2293_v32 = vpop.xlane.xlu0 %2292 }
 0xc9e   : > { %5096 = vrcp.f32 %v2293_v32  ;;  %v5053_v32 = vld [vmem:[%s1157_s15 + $0x8] sm:$0xff]   ;;  %s7572_s15 = smov 104  }
 0xca0   : > { %v5095_v33 = vpop.eup %5094 }
 0xca1   : > { %v2296_v34 = vmul.f32 %v5095_v33, %v5091_v29  ;;  %v2349_v35 = vpop.permute.xlu0 %2348  ;;  %v5051_v29 = vld [vmem:[%s1123_s16 + $0x8] sm:$0xff]   ;;  %s7569_s16 = scalar_lea.vmem [#allocation23], %s6838_s0 }
 0xca2   : > { %v2354_v36 = vsel %vm1632_vm4, %v2349_v35, 0 }
 0xca3   : > { %4724 = vmatpush3.bf16.msra.mxu0 %v2354_v36  ;;  %v2298_v37 = vpack.c.bf16 %v2296_v34, %v2296_v34 }
 0xca4   : > { %4737 = vmatprep.subr.bf16.mxu0 %v5923_v3 }
 0xca5   : > { %4720 = vmatmul.mubr.msk.bf16.vlgmr.msra.gmra.mrb[36].mxu1 %vm1503_vm3, %v2298_v37 }
 0xca6   : > { %4733 = vmatprep.mubr.msk.bf16.mxu1 %vm5924_vm1, %v5923_v3  ;;  %4730 = vmatpush3.bf16.msra.mxu1 %v5048_v40 }
 0xca7   : > { %4731 = vmatprep.subr.bf16.mxu1 %v5923_v3 }
 0xca8   : > { %v5097_v16 = vpop.eup %5096 }
 0xca9   : > { %v2297_v38 = vmul.f32 %v5097_v16, %v5093_v62  ;;  %v1426_v62 = vld [vmem:[#allocation5 + $0x8] sm:$0xff] }
 0xcaa   : > { %4732 = vmatpush3.bf16.msra.mxu1 %v5049_v41  ;;  %v2611_v0 = vpack.c.bf16 %v1426_v62, %v1425_v58 }
 0xcab   : > { %v2299_v39 = vpack.c.bf16 %v2297_v38, %v2297_v38  ;;  %4745 = vmatprep.subr.bf16.mxu1 %v5923_v3 }
 0xcad   : > { %4726 = vmatmul.mubr.msk.bf16.vlgmr.msra.gmra.mrb[24].mxu0 %vm1503_vm3, %v2299_v39  ;;  %v4476_v39 = vld [vmem:[%s1207_s3] ss:$0 sm:$0xff]  ;;  %s7570_s3 = scalar_lea.vmem [#allocation8], %s6838_s0 }
 0xcae   : > { %4741 = vmatprep.mubr.msk.bf16.mxu0 %vm5924_vm1, %v5923_v3  ;;  %4738 = vmatpush3.bf16.msra.mxu0 %v5052_v31 }
 0xcaf   : > { %4739 = vmatprep.subr.bf16.mxu0 %v5923_v3 }
 0xcb2   : > { %4740 = vmatpush3.bf16.msra.mxu0 %v5053_v32 }
 0xcb3   : > { %4753 = vmatprep.subr.bf16.mxu0 %v5923_v3 }
 0xd78   : > { %v2342_v42 = vpop.f32.mrb[36].mxu1 }
 0xd79   : > { %v4721_v43 = vpop.f32.mrb[37].mxu1 }
 0xd7a   : > { %v2345_v44 = vpop.f32.mrb[38].mxu1 }
 0xd7b   : > { %v4722_v45 = vpop.f32.mrb[39].mxu1  ;;  %v4477_v44 = vld [vmem:[%s7569_s16] ss:$0 sm:$0xff]  ;;  %s7582_s16 = scalar_lea.vmem [#allocation20], %s6838_s0 }
 0xd80   : > { %v2390_v46 = vpop.f32.mrb[24].mxu0 }
 0xd81   : > { %v5026_v47 = vpack.i.bf16 %v2390_v46, %v2342_v42  ;;  %v4727_v48 = vpop.f32.mrb[25].mxu0 }
 0xd82   : > { %v2393_v49 = vpop.f32.mrb[26].mxu0 }
 0xd83   : > { %v4728_v50 = vpop.f32.mrb[27].mxu0  ;;  %5027 = vrot.lane.b32.xlu0 %v5026_v47, %s5938_s5  ;;  %v4482_v49 = vld [vmem:[%s7570_s3] ss:$0 sm:$0xff]  ;;  %s7584_s3 = scalar_lea.vmem [#allocation31], %s6838_s0 }
 0xdf5   : > { %v5028_v57 = vpop.permute.xlu0 %5027 }
 0xdf6   : > { %v5030_v61 = vunpack.i.h.bf16 %v5028_v57  ;;  %v5029_v63 = vunpack.i.l.bf16 %v5028_v57 }
 0xdf8   : > { %v2427_v7 = vsel %vm2425_vm6, %v2424_v2, %v5030_v61  ;;  %v2426_v9 = vsel %vm2425_vm6, %v2423_v4, %v5029_v63  ;;  %v4478_v61 = vld [vmem:[%s7571_s8] ss:$0 sm:$0xff]  ;;  %s7585_s8 = scalar_lea.vmem [#allocation29], %s6838_s0 }
 0xdf9   : > { %v2428_v10 = vpack.c.bf16 %v2427_v7, %v2426_v9 }
 0xdfb   : > { %4734 = vmatmul.mubr.msk.bf16.vlgmr.msra.gmra.mrb[40].mxu1 %vm1453_vm2, %v2428_v10 }
 0xdfc   : > { %4749 = vmatprep.mubr.msk.bf16.mxu1 %vm5924_vm1, %v5923_v3  ;;  %4746 = vmatpush3.bf16.msra.mxu1 %v5050_v13 }
 0xdfd   : > { %4747 = vmatprep.subr.bf16.mxu1 %v5923_v3 }
 0xe00   : > { %4748 = vmatpush3.bf16.msra.mxu1 %v5051_v29 }
 0xe01   : > { %4759 = vmatprep.subr.bf16.mxu1 %v5923_v3 }
 0xe03   : > { %4750 = vmatmul.mubr.msk.bf16.vlgmr.msra.gmra.mrb[44].mxu1 %vm1453_vm2, %v2611_v0 }
 0xe04   : > { %4761 = vmatprep.mubr.msk.bf16.mxu1 %vm5924_vm1, %v5923_v3 }
 0xece   : > { %v2489_v11 = vpop.f32.mrb[40].mxu1 }
 0xecf   : > { %v2490_v1 = vadd.f32 %v4472_v8, %v2489_v11  ;;  %v4735_v12 = vpop.f32.mrb[41].mxu1 }
 0xed0   : > { %v2492_v14 = vpop.f32.mrb[42].mxu1 }
 0xed1   : > { %v2493_v15 = vadd.f32 %v4472_v8, %v2492_v14  ;;  %v4736_v17 = vpop.f32.mrb[43].mxu1  ;;  %v2496_v18 = vadd.f32 %v2490_v1, %v6921_v5 }
 0xed3   : > { %v2500_v19 = vsel %vm1453_vm2, %v2496_v18, 0.0  ;;  %v2497_v20 = vadd.f32 %v2493_v15, %v6923_v6 }
 0xed4   : > { %2501 = vadd.xlane.f32.xlu1 %v2500_v19 }
 0xed5   : > { %v2503_v21 = vsel %vm1453_vm2, %v2497_v20, 0.0 }
 0xed6   : > { %2504 = vadd.xlane.f32.xlu0 %v2503_v21  ;;  %v2672_v50 = vpop.f32.mrb[44].mxu1 }
 0xed7   : > { %v2673_v51 = vadd.f32 %v4482_v49, %v2672_v50  ;;  %v4751_v52 = vpop.f32.mrb[45].mxu1 }
 0xed8   : > { %v2675_v53 = vpop.f32.mrb[46].mxu1 }
 0xed9   : > { %v7155_v54 = vpack.c.bf16 %v2673_v51, %v2673_v51  ;;  %v2676_v55 = vadd.f32 %v4482_v49, %v2675_v53  ;;  %v4752_v56 = vpop.f32.mrb[47].mxu1 }
 0xedb   : > { %v7157_v57 = vpack.c.bf16 %v2676_v55, %v2676_v55  ;;  %v2687_v59 = vsel %vm1503_vm3, %v7155_v54, 0 }
 0xedd   : > { %v2733_v60 = vsel %vm1503_vm3, %v7157_v57, 0 }
 0xede   : > { %4760 = vmatpush3.bf16.xpose.msra.mxu1 %v2733_v60 }
 0xedf   : > { %4771 = vmatprep.subr.bf16.mxu1 %v5923_v3 }
 0xf61   : > { %v2502_v23 = vpop.xlane.xlu1 %2501 }
 0xf62   : > { %v2507_v22 = vmul.f32 0.03125, %v2502_v23 }
 0xf63   : > { %v2505_v24 = vpop.xlane.xlu0 %2504 }
 0xf64   : > { %v2509_v25 = vsub.f32 %v2496_v18, %v2507_v22  ;;  %v2508_v30 = vmul.f32 0.03125, %v2505_v24 }
 0xf66   : > { %v2510_v26 = vsub.f32 %v2497_v20, %v2508_v30  ;;  %v2511_v27 = vmul.f32 %v2509_v25, %v2509_v25 }
 0xf68   : > { %v2513_v28 = vsel %vm1453_vm2, %v2511_v27, 0.0  ;;  %v2512_v5 = vmul.f32 %v2510_v26, %v2510_v26 }
 0xf69   : > { %2514 = vadd.xlane.f32.xlu0 %v2513_v28 }
 0xf6a   : > { %v2516_v6 = vsel %vm1453_vm2, %v2512_v5, 0.0 }
 0xf6b   : > { %2517 = vadd.xlane.f32.xlu1 %v2516_v6 }
 0xff6   : > { %v2515_v33 = vpop.xlane.xlu0 %2514 }
 0xff7   : > { %v2519_v34 = vmul.f32 0.03125, %v2515_v33 }
 0xff8   : > { %v2518_v35 = vpop.xlane.xlu1 %2517 }
 0xff9   : > { %v2521_v36 = vadd.f32 1e-05, %v2519_v34  ;;  %v2520_v37 = vmul.f32 0.03125, %v2518_v35 }
 0xffb   : > { %5098 = vrsqrt.f32 %v2521_v36  ;;  %v2522_v16 = vadd.f32 1e-05, %v2520_v37 }
 0xffd   : > { %5100 = vrsqrt.f32 %v2522_v16 }
0x1005   : > { %v5099_v38 = vpop.eup %5098 }
0x1006   : > { %v2525_v40 = vmul.f32 %v5099_v38, %v2509_v25 }
0x1007   : > { %v5101_v41 = vpop.eup %5100 }
0x1008   : > { %v2533_v42 = vmul.f32 %v4476_v39, %v2525_v40  ;;  %v2526_v43 = vmul.f32 %v5101_v41, %v2510_v26 }
0x100a   : > { %v2534_v45 = vmul.f32 %v4476_v39, %v2526_v43  ;;  %v7144_v46 = vadd.f32 %v4477_v44, %v2533_v42 }
0x100c   : > { %v7146_v47 = vadd.f32 %v4477_v44, %v2534_v45 }
0x100e   : > { %v2543_v48 = vpack.c.bf16 %v7146_v47, %v7144_v46 }
0x1010   : > { %4742 = vmatmul.mubr.msk.bf16.vlgmr.msra.gmra.mrb[28].mxu0 %vm1453_vm2, %v2543_v48 }
0x1011   : > { %4755 = vmatprep.mubr.msk.bf16.mxu0 %vm5924_vm1, %v5923_v3  ;;  %4754 = vmatpush3.bf16.xpose.msra.mxu0 %v2687_v59 }
0x1012   : > { %4765 = vmatprep.subr.bf16.mxu0 %v5923_v3 }
0x10e3   : > { %v2604_v63 = vpop.f32.mrb[28].mxu0 }
0x10e4   : > { %v2605_v2 = vadd.f32 %v4478_v61, %v2604_v63  ;;  %v4743_v4 = vpop.f32.mrb[29].mxu0 }
0x10e5   : > { %v2607_v7 = vpop.f32.mrb[30].mxu0 }
0x10e6   : > { %v7167_v9 = vpack.c.bf16 %v2605_v2, %v2605_v2  ;;  %v2608_v10 = vadd.f32 %v4478_v61, %v2607_v7  ;;  %v4744_v8 = vpop.f32.mrb[31].mxu0 }
0x10e8   : > { %v7169_v11 = vpack.c.bf16 %v2608_v10, %v2608_v10  ;;  %4756 = vmatmul.mubr.msk.bf16.vlgmr.msra.gmra.mrb[32].mxu0 %vm1503_vm3, %v7167_v9 }
0x10e9   : > { %4767 = vmatprep.mubr.msk.bf16.mxu0 %vm5924_vm1, %v5923_v3 }
0x10ea   : > { %4762 = vmatmul.mubr.msk.bf16.vlgmr.msra.gmra.mrb[48].mxu1 %vm1503_vm3, %v7169_v11 }
0x10eb   : > { %4773 = vmatprep.mubr.msk.bf16.mxu1 %vm5924_vm1, %v5923_v3 }
0x11bb   : > { %v2723_v1 = vpop.f32.mrb[32].mxu0 }
0x11bc   : > { %v2775_v12 = vmul.f32 0.35355338, %v2723_v1  ;;  %v4757_v14 = vpop.f32.mrb[33].mxu0 }
0x11bd   : > { %v2726_v15 = vpop.f32.mrb[34].mxu0  ;;  %v2769_v17 = vpop.f32.mrb[48].mxu1 }
0x11be   : > { %v2776_v18 = vmul.f32 0.35355338, %v2769_v17  ;;  %v4758_v19 = vpop.f32.mrb[35].mxu0  ;;  %v4763_v20 = vpop.f32.mrb[49].mxu1  ;;  %v2777_v21 = vsel %vm1503_vm3, %v2775_v12, -inf }
0x11bf   : > { %2778 = vmax.xlane.f32.xlu0 %v2777_v21  ;;  %v2772_v23 = vpop.f32.mrb[50].mxu1 }
0x11c0   : > { %v4764_v22 = vpop.f32.mrb[51].mxu1  ;;  %v2780_v24 = vsel %vm1503_vm3, %v2776_v18, -inf }
0x11c1   : > { %2781 = vmax.xlane.f32.xlu1 %v2780_v24 }
0x11d2   : > { %2851 = vrot.lane.b32.xlu1 %v7157_v57, %s5925_s6 }
0x11d5   : > { %2802 = vrot.lane.b32.xlu0 %v7155_v54, %s5925_s6 }
0x124c   : > { %v2779_v25 = vpop.xlane.xlu0 %2778 }
0x124d   : > { %v2783_v30 = vsub.f32 %v2775_v12, %v2779_v25 }
0x124e   : > { %v2782_v26 = vpop.xlane.xlu1 %2781 }
0x124f   : > { %v2785_v27 = vmul.f32 1.442695, %v2783_v30  ;;  %v2784_v28 = vsub.f32 %v2776_v18, %v2782_v26 }
0x1250   : > { %v2803_v5 = vpop.permute.xlu0 %2802 }
0x1251   : > { %5102 = vpow2.f32 %v2785_v27  ;;  %v2787_v6 = vmul.f32 1.442695, %v2784_v28  ;;  %v2808_v13 = vsel %vm1632_vm4, %v2803_v5, 0 }
0x1252   : > { %4766 = vmatpush3.bf16.msra.mxu0 %v2808_v13  ;;  %v2852_v29 = vpop.permute.xlu1 %2851 }
0x1253   : > { %5104 = vpow2.f32 %v2787_v6  ;;  %v2857_v58 = vsel %vm1632_vm4, %v2852_v29, 0  ;;  %4777 = vmatprep.subr.bf16.mxu0 %v5923_v3 }
0x1254   : > { %4772 = vmatpush3.bf16.msra.mxu1 %v2857_v58 }
0x1255   : > { %4783 = vmatprep.subr.bf16.mxu1 %v5923_v3 }
0x125b   : > { %v5103_v62 = vpop.eup %5102 }
0x125c   : > { %v2789_v0 = vsel %vm1503_vm3, %v5103_v62, 0.0 }
0x125d   : > { %v5105_v31 = vpop.eup %5104  ;;  %2790 = vadd.xlane.f32.xlu0 %v2789_v0 }
0x125e   : > { %v2792_v32 = vsel %vm1503_vm3, %v5105_v31, 0.0 }
0x125f   : > { %2793 = vadd.xlane.f32.xlu1 %v2792_v32 }
0x1270   : > { %2902 = vrot.lane.b32.xlu1 %v7155_v54, %s5928_s25 }
0x1273   : > { %2953 = vrot.lane.b32.xlu0 %v7157_v57, %s5928_s25 }
0x1274   : > { %2900 = vrot.lane.b32.xlu1 %v7167_v9, %s5928_s25 }
0x1277   : > { %2951 = vrot.lane.b32.xlu0 %v7169_v11, %s5928_s25  ;;  %s7577_s25 = scalar_lea.vmem [#allocation19], %s6847_s4 }
0x12ea   : > { %v2791_v33 = vpop.xlane.xlu0 %2790 }
0x12eb   : > { %5106 = vrcp.f32 %v2791_v33 }
0x12ec   : > { %v2794_v34 = vpop.xlane.xlu1 %2793 }
0x12ed   : > { %5108 = vrcp.f32 %v2794_v34 }
0x12ee   : > { %v2954_v40 = vpop.permute.xlu0 %2953 }
0x12ef   : > { %v2959_v43 = vsel %vm1503_vm3, %v2954_v40, 0 }
0x12f0   : > { %v2903_v16 = vpop.permute.xlu1 %2902 }
0x12f1   : > { %v2908_v41 = vsel %vm1503_vm3, %v2903_v16, 0 }
0x12f2   : > { %v2952_v45 = vpop.permute.xlu0 %2951 }
0x12f4   : > { %v2901_v44 = vpop.permute.xlu1 %2900 }
0x12f5   : > { %v5107_v35 = vpop.eup %5106 }
0x12f6   : > { %v2797_v36 = vmul.f32 %v5107_v35, %v5103_v62 }
0x12f7   : > { %v5109_v37 = vpop.eup %5108 }
0x12f8   : > { %v2798_v38 = vmul.f32 %v5109_v37, %v5105_v31  ;;  %v2799_v39 = vpack.c.bf16 %v2797_v36, %v2797_v36 }
0x12fa   : > { %4768 = vmatmul.mubr.msk.bf16.vlgmr.msra.gmra.mrb[36].mxu0 %vm1503_vm3, %v2799_v39  ;;  %v2800_v42 = vpack.c.bf16 %v2798_v38, %v2798_v38 }
0x12fb   : > { %4778 = vmatpush3.bf16.xpose.msra.mxu0 %v2908_v41  ;;  %4779 = vmatprep.mubr.msk.bf16.mxu0 %vm5924_vm1, %v5923_v3 }
0x12fc   : > { %4774 = vmatmul.mubr.msk.bf16.vlgmr.msra.gmra.mrb[52].mxu1 %vm1503_vm3, %v2800_v42  ;;  %4789 = vmatprep.subr.bf16.mxu0 %v5923_v3 }
0x12fd   : > { %4784 = vmatpush3.bf16.xpose.msra.mxu1 %v2959_v43  ;;  %4785 = vmatprep.mubr.msk.bf16.mxu1 %vm5924_vm1, %v5923_v3 }
0x12fe   : > { %4795 = vmatprep.subr.bf16.mxu1 %v5923_v3 }
0x1302   : > { %4780 = vmatmul.mubr.msk.bf16.vlgmr.msra.gmra.mrb[40].mxu0 %vm1503_vm3, %v2901_v44 }
0x1303   : > { %4791 = vmatprep.mubr.msk.bf16.mxu0 %vm5924_vm1, %v5923_v3 }
0x1304   : > { %4786 = vmatmul.mubr.msk.bf16.vlgmr.msra.gmra.mrb[56].mxu1 %vm1503_vm3, %v2952_v45 }
0x1305   : > { %4797 = vmatprep.mubr.msk.bf16.mxu1 %vm5924_vm1, %v5923_v3 }
0x13cd   : > { %v7215_v48 = vpop.f32.mrb[36].mxu0 }
0x13ce   : > { %v4769_v49 = vpop.f32.mrb[37].mxu0 }
0x13cf   : > { %v2847_v50 = vpop.f32.mrb[38].mxu0  ;;  %v7217_v51 = vpop.f32.mrb[52].mxu1 }
0x13d0   : > { %v4770_v52 = vpop.f32.mrb[39].mxu0  ;;  %v4775_v53 = vpop.f32.mrb[53].mxu1 }
0x13d1   : > { %v2896_v55 = vpop.f32.mrb[54].mxu1 }
0x13d2   : > { %v4776_v56 = vpop.f32.mrb[55].mxu1 }
0x13d5   : > { %v2944_v59 = vpop.f32.mrb[40].mxu0 }
0x13d6   : > { %v3001_v60 = vmul.f32 0.35355338, %v2944_v59  ;;  %v4781_v61 = vpop.f32.mrb[41].mxu0 }
0x13d7   : > { %v2947_v63 = vpop.f32.mrb[42].mxu0  ;;  %v2995_v2 = vpop.f32.mrb[56].mxu1 }
0x13d8   : > { %v3002_v4 = vmul.f32 0.35355338, %v2995_v2  ;;  %v4782_v7 = vpop.f32.mrb[43].mxu0  ;;  %v4787_v10 = vpop.f32.mrb[57].mxu1  ;;  %v3003_v8 = vsel %vm1503_vm3, %v3001_v60, -inf }
0x13d9   : > { %3004 = vmax.xlane.f32.xlu1 %v3003_v8  ;;  %v2998_v1 = vpop.f32.mrb[58].mxu1 }
0x13da   : > { %v4788_v12 = vpop.f32.mrb[59].mxu1  ;;  %v3006_v14 = vsel %vm1503_vm3, %v3002_v4, -inf }
0x13db   : > { %3007 = vmax.xlane.f32.xlu0 %v3006_v14 }
0x13ea   : > { %3075 = vrot.lane.b32.xlu1 %v7157_v57, %s5927_s18 }
0x13f1   : > { %3027 = vrot.lane.b32.xlu0 %v7155_v54, %s5927_s18  ;;  %s7576_s18 = scalar_lea.vmem [#allocation11], %s6838_s0 }
0x1466   : > { %v3005_v15 = vpop.xlane.xlu1 %3004 }
0x1467   : > { %v3009_v17 = vsub.f32 %v3001_v60, %v3005_v15 }
0x1468   : > { %v3008_v18 = vpop.xlane.xlu0 %3007 }
0x1469   : > { %v3011_v19 = vmul.f32 1.442695, %v3009_v17  ;;  %v3010_v20 = vsub.f32 %v3002_v4, %v3008_v18 }
0x146a   : > { %v3076_v21 = vpop.permute.xlu1 %3075 }
0x146b   : > { %5110 = vpow2.f32 %v3011_v19  ;;  %v3013_v23 = vmul.f32 1.442695, %v3010_v20  ;;  %v3081_v22 = vsel %vm1632_vm4, %v3076_v21, 0 }
0x146c   : > { %4796 = vmatpush3.bf16.msra.mxu1 %v3081_v22  ;;  %v3028_v24 = vpop.permute.xlu0 %3027 }
0x146d   : > { %5112 = vpow2.f32 %v3013_v23  ;;  %v3033_v25 = vsel %vm1632_vm4, %v3028_v24, 0  ;;  %4807 = vmatprep.subr.bf16.mxu1 %v5923_v3 }
0x146e   : > { %4790 = vmatpush3.bf16.msra.mxu0 %v3033_v25 }
0x146f   : > { %4801 = vmatprep.subr.bf16.mxu0 %v5923_v3 }
0x1475   : > { %v5111_v30 = vpop.eup %5110 }
0x1476   : > { %v3015_v26 = vsel %vm1503_vm3, %v5111_v30, 0.0 }
0x1477   : > { %v5113_v27 = vpop.eup %5112  ;;  %3016 = vadd.xlane.f32.xlu0 %v3015_v26 }
0x1478   : > { %v3018_v28 = vsel %vm1503_vm3, %v5113_v27, 0.0 }
0x1479   : > { %3019 = vadd.xlane.f32.xlu1 %v3018_v28 }
0x148a   : > { %3125 = vrot.lane.b32.xlu1 %v7155_v54, %s5931_s13 }
0x148d   : > { %3175 = vrot.lane.b32.xlu0 %v7157_v57, %s5931_s13 }
0x148e   : > { %3123 = vrot.lane.b32.xlu1 %v7167_v9, %s5931_s13 }
0x1491   : > { %3173 = vrot.lane.b32.xlu0 %v7169_v11, %s5931_s13  ;;  %s7580_s13 = scalar_lea.vmem [#allocation26], %s6838_s0 }
0x1504   : > { %v3017_v5 = vpop.xlane.xlu0 %3016 }
0x1505   : > { %5114 = vrcp.f32 %v3017_v5 }
0x1506   : > { %v3020_v6 = vpop.xlane.xlu1 %3019 }
0x1507   : > { %5116 = vrcp.f32 %v3020_v6 }
0x1508   : > { %v3176_v32 = vpop.permute.xlu0 %3175 }
0x1509   : > { %v3181_v35 = vsel %vm1503_vm3, %v3176_v32, 0 }
0x150a   : > { %v3126_v62 = vpop.permute.xlu1 %3125 }
0x150b   : > { %v3131_v33 = vsel %vm1503_vm3, %v3126_v62, 0 }
0x150c   : > { %v3174_v37 = vpop.permute.xlu0 %3173 }
0x150e   : > { %v3124_v36 = vpop.permute.xlu1 %3123 }
0x150f   : > { %v5115_v13 = vpop.eup %5114 }
0x1510   : > { %v3023_v29 = vmul.f32 %v5115_v13, %v5111_v30 }
0x1511   : > { %v5117_v58 = vpop.eup %5116 }
0x1512   : > { %v3024_v0 = vmul.f32 %v5117_v58, %v5113_v27  ;;  %v3025_v31 = vpack.c.bf16 %v3023_v29, %v3023_v29 }
0x1514   : > { %4792 = vmatmul.mubr.msk.bf16.vlgmr.msra.gmra.mrb[44].mxu0 %vm1503_vm3, %v3025_v31  ;;  %v3026_v34 = vpack.c.bf16 %v3024_v0, %v3024_v0 }
0x1515   : > { %4802 = vmatpush3.bf16.xpose.msra.mxu0 %v3131_v33  ;;  %4803 = vmatprep.mubr.msk.bf16.mxu0 %vm5924_vm1, %v5923_v3 }
0x1516   : > { %4798 = vmatmul.mubr.msk.bf16.vlgmr.msra.gmra.mrb[60].mxu1 %vm1503_vm3, %v3026_v34  ;;  %4813 = vmatprep.subr.bf16.mxu0 %v5923_v3 }
0x1517   : > { %4808 = vmatpush3.bf16.xpose.msra.mxu1 %v3181_v35  ;;  %4809 = vmatprep.mubr.msk.bf16.mxu1 %vm5924_vm1, %v5923_v3 }
0x1518   : > { %4819 = vmatprep.subr.bf16.mxu1 %v5923_v3 }
0x151c   : > { %4804 = vmatmul.mubr.msk.bf16.vlgmr.msra.gmra.mrb[48].mxu0 %vm1503_vm3, %v3124_v36 }
0x151d   : > { %4815 = vmatprep.mubr.msk.bf16.mxu0 %vm5924_vm1, %v5923_v3 }
0x151e   : > { %4810 = vmatmul.mubr.msk.bf16.vlgmr.msra.gmra.mrb[64].mxu1 %vm1503_vm3, %v3174_v37 }
0x151f   : > { %4821 = vmatprep.mubr.msk.bf16.mxu1 %vm5924_vm1, %v5923_v3 }
0x15e7   : > { %v7255_v16 = vpop.f32.mrb[44].mxu0 }
0x15e8   : > { %v4793_v38 = vpop.f32.mrb[45].mxu0 }
0x15e9   : > { %v3072_v39 = vpop.f32.mrb[46].mxu0  ;;  %v7257_v40 = vpop.f32.mrb[60].mxu1 }
0x15ea   : > { %v5031_v41 = vpack.i.bf16 %v7257_v40, %v7255_v16  ;;  %v4794_v42 = vpop.f32.mrb[47].mxu0  ;;  %v4799_v43 = vpop.f32.mrb[61].mxu1 }
0x15eb   : > { %v3120_v44 = vpop.f32.mrb[62].mxu1 }
0x15ec   : > { %v4800_v45 = vpop.f32.mrb[63].mxu1 }
0x15ef   : > { %v3167_v49 = vpop.f32.mrb[48].mxu0 }
0x15f0   : > { %v3223_v50 = vmul.f32 0.35355338, %v3167_v49  ;;  %v4805_v52 = vpop.f32.mrb[49].mxu0 }
0x15f1   : > { %v3170_v53 = vpop.f32.mrb[50].mxu0  ;;  %v3217_v55 = vpop.f32.mrb[64].mxu1 }
0x15f2   : > { %v3224_v56 = vmul.f32 0.35355338, %v3217_v55  ;;  %v4806_v59 = vpop.f32.mrb[51].mxu0  ;;  %v4811_v60 = vpop.f32.mrb[65].mxu1  ;;  %v3225_v61 = vsel %vm1503_vm3, %v3223_v50, -inf }
0x15f3   : > { %3226 = vmax.xlane.f32.xlu1 %v3225_v61  ;;  %v3220_v63 = vpop.f32.mrb[66].mxu1 }
0x15f4   : > { %v4812_v2 = vpop.f32.mrb[67].mxu1  ;;  %v3228_v4 = vsel %vm1503_vm3, %v3224_v56, -inf }
0x15f5   : > { %3229 = vmax.xlane.f32.xlu0 %v3228_v4 }
0x1604   : > { %3297 = vrot.lane.b32.xlu1 %v7157_v57, %s5930_s2 }
0x160b   : > { %3249 = vrot.lane.b32.xlu0 %v7155_v54, %s5930_s2  ;;  %s7578_s2 = smov %s7577_s25 }
0x1680   : > { %v3227_v7 = vpop.xlane.xlu1 %3226 }
0x1681   : > { %v3231_v10 = vsub.f32 %v3223_v50, %v3227_v7 }
0x1682   : > { %v3230_v8 = vpop.xlane.xlu0 %3229 }
0x1683   : > { %v3233_v1 = vmul.f32 1.442695, %v3231_v10  ;;  %v3232_v12 = vsub.f32 %v3224_v56, %v3230_v8 }
0x1684   : > { %v3298_v14 = vpop.permute.xlu1 %3297 }
0x1685   : > { %5118 = vpow2.f32 %v3233_v1  ;;  %v3235_v15 = vmul.f32 1.442695, %v3232_v12  ;;  %v3303_v17 = vsel %vm1632_vm4, %v3298_v14, 0 }
0x1686   : > { %4820 = vmatpush3.bf16.msra.mxu1 %v3303_v17  ;;  %v3250_v18 = vpop.permute.xlu0 %3249 }
0x1687   : > { %5120 = vpow2.f32 %v3235_v15  ;;  %v3255_v19 = vsel %vm1632_vm4, %v3250_v18, 0  ;;  %4831 = vmatprep.subr.bf16.mxu1 %v5923_v3 }
0x1688   : > { %4814 = vmatpush3.bf16.msra.mxu0 %v3255_v19 }
0x1689   : > { %4825 = vmatprep.subr.bf16.mxu0 %v5923_v3 }
0x168f   : > { %v5119_v20 = vpop.eup %5118 }
0x1690   : > { %v3237_v21 = vsel %vm1503_vm3, %v5119_v20, 0.0 }
0x1691   : > { %v5121_v23 = vpop.eup %5120  ;;  %3238 = vadd.xlane.f32.xlu0 %v3237_v21 }
0x1692   : > { %v3240_v22 = vsel %vm1503_vm3, %v5121_v23, 0.0 }
0x1693   : > { %3241 = vadd.xlane.f32.xlu1 %v3240_v22 }
0x16a4   : > { %3347 = vrot.lane.b32.xlu1 %v7155_v54, %s7572_s15 }
0x16a7   : > { %3397 = vrot.lane.b32.xlu0 %v7157_v57, %s7572_s15 }
0x16a8   : > { %3345 = vrot.lane.b32.xlu1 %v7167_v9, %s7572_s15 }
0x16ab   : > { %3395 = vrot.lane.b32.xlu0 %v7169_v11, %s7572_s15  ;;  %s5939_s15 = smov [#allocation38]  }
0x171e   : > { %v3239_v24 = vpop.xlane.xlu0 %3238 }
0x171f   : > { %5122 = vrcp.f32 %v3239_v24 }
0x1720   : > { %v3242_v25 = vpop.xlane.xlu1 %3241 }
0x1721   : > { %5124 = vrcp.f32 %v3242_v25 }
0x1722   : > { %v3398_v13 = vpop.permute.xlu0 %3397 }
0x1723   : > { %v3403_v9 = vsel %vm1503_vm3, %v3398_v13, 0 }
0x1724   : > { %v3348_v28 = vpop.permute.xlu1 %3347 }
0x1725   : > { %v3353_v29 = vsel %vm1503_vm3, %v3348_v28, 0 }
0x1726   : > { %v3396_v62 = vpop.permute.xlu0 %3395 }
0x1728   : > { %v3346_v11 = vpop.permute.xlu1 %3345 }
0x1729   : > { %v5123_v30 = vpop.eup %5122 }
0x172a   : > { %v3245_v26 = vmul.f32 %v5123_v30, %v5119_v20 }
0x172b   : > { %v5125_v27 = vpop.eup %5124 }
0x172c   : > { %v3246_v5 = vmul.f32 %v5125_v27, %v5121_v23  ;;  %v3247_v6 = vpack.c.bf16 %v3245_v26, %v3245_v26 }
0x172e   : > { %4816 = vmatmul.mubr.msk.bf16.vlgmr.msra.gmra.mrb[52].mxu0 %vm1503_vm3, %v3247_v6  ;;  %v3248_v58 = vpack.c.bf16 %v3246_v5, %v3246_v5 }
0x172f   : > { %4826 = vmatpush3.bf16.xpose.msra.mxu0 %v3353_v29  ;;  %4827 = vmatprep.mubr.msk.bf16.mxu0 %vm5924_vm1, %v5923_v3 }
0x1730   : > { %4822 = vmatmul.mubr.msk.bf16.vlgmr.msra.gmra.mrb[68].mxu1 %vm1503_vm3, %v3248_v58  ;;  %4837 = vmatprep.subr.bf16.mxu0 %v5923_v3 }
0x1731   : > { %4832 = vmatpush3.bf16.xpose.msra.mxu1 %v3403_v9  ;;  %4833 = vmatprep.mubr.msk.bf16.mxu1 %vm5924_vm1, %v5923_v3 }
0x1732   : > { %4843 = vmatprep.subr.bf16.mxu1 %v5923_v3 }
0x1736   : > { %4828 = vmatmul.mubr.msk.bf16.vlgmr.msra.gmra.mrb[56].mxu0 %vm1503_vm3, %v3346_v11 }
0x1737   : > { %4839 = vmatprep.mubr.msk.bf16.mxu0 %vm5924_vm1, %v5923_v3 }
0x1738   : > { %4834 = vmatmul.mubr.msk.bf16.vlgmr.msra.gmra.mrb[72].mxu1 %vm1503_vm3, %v3396_v62 }
0x1739   : > { %4845 = vmatprep.mubr.msk.bf16.mxu1 %vm5924_vm1, %v5923_v3 }
0x1801   : > { %v3291_v0 = vpop.f32.mrb[52].mxu0 }
0x1802   : > { %v4817_v31 = vpop.f32.mrb[53].mxu0 }
0x1803   : > { %v3294_v32 = vpop.f32.mrb[54].mxu0  ;;  %v3339_v33 = vpop.f32.mrb[68].mxu1 }
0x1804   : > { %v5036_v34 = vpack.i.bf16 %v3339_v33, %v3291_v0  ;;  %v4818_v35 = vpop.f32.mrb[55].mxu0  ;;  %v4823_v36 = vpop.f32.mrb[69].mxu1 }
0x1805   : > { %v3342_v37 = vpop.f32.mrb[70].mxu1 }
0x1806   : > { %v4824_v38 = vpop.f32.mrb[71].mxu1 }
0x1809   : > { %v3389_v39 = vpop.f32.mrb[56].mxu0 }
0x180a   : > { %v3445_v42 = vmul.f32 0.35355338, %v3389_v39  ;;  %v4829_v43 = vpop.f32.mrb[57].mxu0 }
0x180b   : > { %v3392_v44 = vpop.f32.mrb[58].mxu0  ;;  %v3439_v45 = vpop.f32.mrb[72].mxu1 }
0x180c   : > { %v3446_v49 = vmul.f32 0.35355338, %v3439_v45  ;;  %v4830_v50 = vpop.f32.mrb[59].mxu0  ;;  %v4835_v52 = vpop.f32.mrb[73].mxu1  ;;  %v3447_v53 = vsel %vm1503_vm3, %v3445_v42, -inf }
0x180d   : > { %3448 = vmax.xlane.f32.xlu1 %v3447_v53  ;;  %v3442_v55 = vpop.f32.mrb[74].mxu1 }
0x180e   : > { %v4836_v56 = vpop.f32.mrb[75].mxu1  ;;  %v3450_v59 = vsel %vm1503_vm3, %v3446_v49, -inf }
0x180f   : > { %3451 = vmax.xlane.f32.xlu0 %v3450_v59 }
0x189a   : > { %v3449_v60 = vpop.xlane.xlu1 %3448 }
0x189b   : > { %v3453_v61 = vsub.f32 %v3445_v42, %v3449_v60 }
0x189c   : > { %v3452_v63 = vpop.xlane.xlu0 %3451 }
0x189d   : > { %v3455_v2 = vmul.f32 1.442695, %v3453_v61  ;;  %v3454_v4 = vsub.f32 %v3446_v49, %v3452_v63 }
0x189f   : > { %5126 = vpow2.f32 %v3455_v2  ;;  %v3457_v7 = vmul.f32 1.442695, %v3454_v4 }
0x18a1   : > { %5128 = vpow2.f32 %v3457_v7 }
0x18a9   : > { %v5127_v10 = vpop.eup %5126 }
0x18aa   : > { %v3459_v8 = vsel %vm1503_vm3, %v5127_v10, 0.0 }
0x18ab   : > { %v5129_v1 = vpop.eup %5128  ;;  %3460 = vadd.xlane.f32.xlu0 %v3459_v8  ;;  %v5056_v8 = vld [vmem:[%s7577_s25] sm:$0xff]  }
0x18ac   : > { %v3462_v12 = vsel %vm1503_vm3, %v5129_v1, 0.0 }
0x18ad   : > { %3463 = vadd.xlane.f32.xlu1 %v3462_v12  ;;  %v5058_v12 = vld [vmem:[%s6878_s27] sm:$0xff]  }
0x18be   : > { %3519 = vrot.lane.b32.xlu1 %v7157_v57, %s7573_s7 }
0x18c1   : > { %3471 = vrot.lane.b32.xlu0 %v7155_v54, %s7573_s7  ;;  %s3948_s7 = sshll.u32 %s5939_s15, 4  ;;  %s3949_s7 = int_to_ptr.vmem [resolvable:$true] %s3948_s7 }
0x18c2   : > { %5032 = vrot.lane.b32.xlu1 %v5031_v41, %s5936_s1  ;;  %p5793_p2 = scmp.lt.s32.totalorder %s3949_s7, %s3949_s7 }
0x18c5   : > { %5037 = vrot.lane.b32.xlu0 %v5036_v34, %s5937_s30  ;;  %s7574_s30 = scalar_lea.vmem [#allocation13], %s6847_s4  ;;  %s7579_s4 = scalar_lea.vmem [#allocation28], %s6838_s0 }
0x18c6   : > { %v5054_v23 = vld [vmem:[%s7574_s30] sm:$0xff]   ;;  %s7575_s6 = smov %s7574_s30  ;;  %s5786_s30 = scalar_lea.vmem %s3949_s7, 256 }
0x18c7   : > { %v5055_v22 = vld [vmem:[%s7575_s6 + $0x8] sm:$0xff]   ;;  %p5787_p9 = scmp.ne.s32.totalorder %s3949_s7, %s5786_s30  ;;  %p5794_p3 = scmp.lt.s32.totalorder %s5786_s30, %s5786_s30 }
0x18c9   : > { %p5795_p4 = por %p5794_p3, %p5793_p2 }
0x1938   : > { %v3461_v14 = vpop.xlane.xlu0 %3460 }
0x1939   : > { %5130 = vrcp.f32 %v3461_v14  ;;  %v5059_v14 = vld [vmem:[%s6878_s27 + $0x8] sm:$0xff]  }
0x193a   : > { %v3464_v15 = vpop.xlane.xlu1 %3463 }
0x193b   : > { %5132 = vrcp.f32 %v3464_v15  ;;  %v5060_v15 = vld [vmem:[%s6878_s27 + $0x10] sm:$0xff]  }
0x193c   : > { %v3472_v17 = vpop.permute.xlu0 %3471 }
0x193d   : > { %v3477_v18 = vsel %vm1632_vm4, %v3472_v17, 0  ;;  %v5061_v17 = vld [vmem:[%s6878_s27 + $0x18] sm:$0xff]  }
0x193e   : > { %v3520_v19 = vpop.permute.xlu1 %3519  ;;  %4838 = vmatpush3.bf16.msra.mxu0 %v3477_v18  ;;  %v5062_v18 = vld [vmem:[%s6878_s27 + $0x20] sm:$0xff]  }
0x193f   : > { %v3525_v57 = vsel %vm1632_vm4, %v3520_v19, 0  ;;  %4849 = vmatprep.subr.bf16.mxu0 %v5923_v3  ;;  %v5063_v19 = vld [vmem:[%s6878_s27 + $0x28] sm:$0xff]  }
0x1940   : > { %4844 = vmatpush3.bf16.msra.mxu1 %v3525_v57  ;;  %v5038_v11 = vpop.permute.xlu0 %5037 }
0x1941   : > { %4857 = vmatprep.subr.bf16.mxu1 %v5923_v3  ;;  %v5040_v31 = vunpack.i.h.bf16 %v5038_v11  ;;  %v5039_v32 = vunpack.i.l.bf16 %v5038_v11 }
0x1942   : > { %v5033_v29 = vpop.permute.xlu1 %5032 }
0x1943   : > { %v5131_v54 = vpop.eup %5130  ;;  %v5035_v58 = vunpack.i.h.bf16 %v5033_v29  ;;  %v5034_v9 = vunpack.i.l.bf16 %v5033_v29  ;;  %v5065_v29 = vld [vmem:[%s6878_s27 + $0x38] sm:$0xff]  }
0x1944   : > { %v3467_v16 = vmul.f32 %v5131_v54, %v5127_v10 }
0x1945   : > { %v5133_v40 = vpop.eup %5132  ;;  %v3592_v62 = vsel %vm1503_vm3, %v7217_v51, %v5035_v58  ;;  %v3591_v0 = vsel %vm1503_vm3, %v7215_v48, %v5034_v9  ;;  %v4502_v48 = vld [vmem:[%s7576_s18] ss:$0 sm:$0xff] }
0x1946   : > { %v3468_v41 = vmul.f32 %v5133_v40, %v5129_v1  ;;  %v3469_v20 = vpack.c.bf16 %v3467_v16, %v3467_v16  ;;  %v3593_v36 = vsel %vm2422_vm5, %v3591_v0, %v5039_v32  ;;  %v3594_v37 = vsel %vm2422_vm5, %v3592_v62, %v5040_v31  ;;  %v5057_v1 = vld [vmem:[%s7578_s2 + $0x8] sm:$0xff]  }
0x1948   : > { %4840 = vmatmul.mubr.msk.bf16.vlgmr.msra.gmra.mrb[60].mxu0 %vm1503_vm3, %v3469_v20  ;;  %v3470_v21 = vpack.c.bf16 %v3468_v41, %v3468_v41 }
0x1949   : > { %4853 = vmatprep.mubr.msk.bf16.mxu0 %vm5924_vm1, %v5923_v3  ;;  %4850 = vmatpush3.bf16.msra.mxu0 %v5054_v23 }
0x194a   : > { %4846 = vmatmul.mubr.msk.bf16.vlgmr.msra.gmra.mrb[76].mxu1 %vm1503_vm3, %v3470_v21  ;;  %4851 = vmatprep.subr.bf16.mxu0 %v5923_v3 }
0x194b   : > { %4861 = vmatprep.mubr.msk.bf16.mxu1 %vm5924_vm1, %v5923_v3  ;;  %4858 = vmatpush3.bf16.msra.mxu1 %v5056_v8 }
0x194c   : > { %4859 = vmatprep.subr.bf16.mxu1 %v5923_v3 }
0x194d   : > { %4852 = vmatpush3.bf16.msra.mxu0 %v5055_v22  ;;  %v4506_v22 = vld [vmem:[%s7579_s4] ss:$0 sm:$0xff] }
0x194e   : > { %4865 = vmatprep.subr.bf16.mxu0 %v5923_v3 }
0x194f   : > { %4860 = vmatpush3.bf16.msra.mxu1 %v5057_v1  ;;  %v4521_v1 = vld [vmem:[%s7584_s3] ss:$0 sm:$0xff] }
0x1a1b   : > { %v3513_v24 = vpop.f32.mrb[60].mxu0 }
0x1a1c   : > { %v4841_v25 = vpop.f32.mrb[61].mxu0 }
0x1a1d   : > { %v3516_v30 = vpop.f32.mrb[62].mxu0  ;;  %v3561_v26 = vpop.f32.mrb[76].mxu1 }
0x1a1e   : > { %v5041_v27 = vpack.i.bf16 %v3561_v26, %v3513_v24  ;;  %v4842_v28 = vpop.f32.mrb[63].mxu0  ;;  %v4847_v5 = vpop.f32.mrb[77].mxu1  ;;  %v4507_v26 = vld [vmem:[%s7580_s13] ss:$0 sm:$0xff] }
0x1a1f   : > { %v3564_v6 = vpop.f32.mrb[78].mxu1 }
0x1a20   : > { %5042 = vrot.lane.b32.xlu1 %v5041_v27, %s5938_s5  ;;  %v4848_v13 = vpop.f32.mrb[79].mxu1  ;;  %s7581_s5 = scalar_lea.vmem [#allocation17], %s6838_s0 }
0x1a21   : > { %v5064_v13 = vld [vmem:[%s6878_s27 + $0x30] sm:$0xff]   ;;  %v4508_v58 = vld [vmem:[%s7581_s5] ss:$0 sm:$0xff]  ;;  %s7583_s27 = sld [smem:[#allocation53_spill]] }
0x1a27   : > { %p4957_p6 = scmp.eq.s32.totalorder %s7583_s27, 1 }
0x1a29   : > { %p5788_p12 = pnand %p5787_p9, %p4957_p6 }
0x1a2b   : > { %p5789_p1 = pneg %p5788_p12 }
0x1a2d   : > { %p5796_p7 = pnand %p5795_p4, %p5789_p1 }
0x1a92   : > { %v5043_v33 = vpop.permute.xlu1 %5042 }
0x1a93   : > { %v5045_v34 = vunpack.i.h.bf16 %v5043_v33  ;;  %v5044_v35 = vunpack.i.l.bf16 %v5043_v33 }
0x1a95   : > { %v3596_v38 = vsel %vm2425_vm6, %v3594_v37, %v5045_v34  ;;  %v3595_v39 = vsel %vm2425_vm6, %v3593_v36, %v5044_v35  ;;  %v4512_v36 = vld [vmem:[%s7582_s16] ss:$0 sm:$0xff] }
0x1a96   : > { %v3597_v42 = vpack.c.bf16 %v3596_v38, %v3595_v39 }
0x1a98   : > { %4854 = vmatmul.mubr.msk.bf16.vlgmr.msra.gmra.mrb[64].mxu0 %vm1453_vm2, %v3597_v42 }
0x1a99   : > { %4881 = vmatprep.mubr.msk.bf16.mxu0 %vm5924_vm1, %v5923_v3  ;;  %4866 = vmatpush3.bf16.msra.mxu0 %v5058_v12 }
0x1a9a   : > { %4867 = vmatprep.subr.bf16.mxu0 %v5923_v3 }
0x1a9d   : > { %4868 = vmatpush3.bf16.msra.mxu0 %v5059_v14 }
0x1a9e   : > { %4869 = vmatprep.subr.bf16.mxu0 %v5923_v3 }
0x1aa1   : > { %4870 = vmatpush3.bf16.msra.mxu0 %v5060_v15  ;;  %v4522_v15 = vld [vmem:[%s7585_s8] ss:$0 sm:$0xff] }
0x1aa2   : > { %4871 = vmatprep.subr.bf16.mxu0 %v5923_v3 }
0x1aa5   : > { %4872 = vmatpush3.bf16.msra.mxu0 %v5061_v17 }
0x1aa6   : > { %4873 = vmatprep.subr.bf16.mxu0 %v5923_v3 }
0x1aa9   : > { %4874 = vmatpush3.bf16.msra.mxu0 %v5062_v18 }
0x1aaa   : > { %4875 = vmatprep.subr.bf16.mxu0 %v5923_v3 }
0x1aad   : > { %4876 = vmatpush3.bf16.msra.mxu0 %v5063_v19 }
0x1aae   : > { %4877 = vmatprep.subr.bf16.mxu0 %v5923_v3 }
0x1ab1   : > { %4878 = vmatpush3.bf16.msra.mxu0 %v5064_v13 }
0x1ab2   : > { %4879 = vmatprep.subr.bf16.mxu0 %v5923_v3 }
0x1ab5   : > { %4880 = vmatpush3.bf16.msra.mxu0 %v5065_v29 }
0x1b6b   : > { %v3658_v51 = vpop.f32.mrb[64].mxu0 }
0x1b6c   : > { %v3659_v43 = vadd.f32 %v4502_v48, %v3658_v51  ;;  %v4855_v44 = vpop.f32.mrb[65].mxu0 }
0x1b6d   : > { %v3661_v45 = vpop.f32.mrb[66].mxu0 }
0x1b6e   : > { %v3662_v49 = vadd.f32 %v4502_v48, %v3661_v45  ;;  %v4856_v50 = vpop.f32.mrb[67].mxu0  ;;  %v3665_v52 = vadd.f32 %v3659_v43, %v7144_v46 }
0x1b70   : > { %v3669_v53 = vsel %vm1453_vm2, %v3665_v52, 0.0  ;;  %v3666_v55 = vadd.f32 %v3662_v49, %v7146_v47 }
0x1b71   : > { %3670 = vadd.xlane.f32.xlu0 %v3669_v53 }
0x1b72   : > { %v3672_v56 = vsel %vm1453_vm2, %v3666_v55, 0.0 }
0x1b73   : > { %3673 = vadd.xlane.f32.xlu1 %v3672_v56 }
0x1bfe   : > { %v3671_v59 = vpop.xlane.xlu0 %3670 }
0x1bff   : > { %v3675_v60 = vmul.f32 0.03125, %v3671_v59 }
0x1c00   : > { %v3674_v61 = vpop.xlane.xlu1 %3673 }
0x1c01   : > { %v3677_v63 = vsub.f32 %v3665_v52, %v3675_v60  ;;  %v3676_v2 = vmul.f32 0.03125, %v3674_v61 }
0x1c03   : > { %v3678_v4 = vsub.f32 %v3666_v55, %v3676_v2  ;;  %v3679_v7 = vmul.f32 %v3677_v63, %v3677_v63 }
0x1c05   : > { %v3681_v46 = vsel %vm1453_vm2, %v3679_v7, 0.0  ;;  %v3680_v10 = vmul.f32 %v3678_v4, %v3678_v4 }
0x1c06   : > { %3682 = vadd.xlane.f32.xlu0 %v3681_v46 }
0x1c07   : > { %v3684_v47 = vsel %vm1453_vm2, %v3680_v10, 0.0 }
0x1c0a   : > { %3685 = vadd.xlane.f32.xlu0 %v3684_v47 }
0x1c93   : > { %v3683_v57 = vpop.xlane.xlu0 %3682 }
0x1c94   : > { %v3687_v54 = vmul.f32 0.03125, %v3683_v57 }
0x1c96   : > { %v3689_v16 = vadd.f32 1e-05, %v3687_v54 }
0x1c97   : > { %v3686_v40 = vpop.xlane.xlu0 %3685 }
0x1c98   : > { %5134 = vrsqrt.f32 %v3689_v16  ;;  %v3688_v41 = vmul.f32 0.03125, %v3686_v40 }
0x1c9a   : > { %v3690_v20 = vadd.f32 1e-05, %v3688_v41 }
0x1c9c   : > { %5136 = vrsqrt.f32 %v3690_v20 }
0x1ca2   : > { %v5135_v21 = vpop.eup %5134 }
0x1ca3   : > { %v3693_v23 = vmul.f32 %v5135_v21, %v3677_v63 }
0x1ca5   : > { %v3701_v25 = vmul.f32 %v4506_v22, %v3693_v23 }
0x1ca6   : > { %v5137_v24 = vpop.eup %5136 }
0x1ca7   : > { %v3694_v30 = vmul.f32 %v5137_v24, %v3678_v4  ;;  %v3709_v28 = vadd.f32 %v4507_v26, %v3701_v25 }
0x1ca9   : > { %v3702_v27 = vmul.f32 %v4506_v22, %v3694_v30 }
0x1cab   : > { %v3710_v5 = vadd.f32 %v4507_v26, %v3702_v27 }
0x1cad   : > { %v3711_v6 = vpack.c.bf16 %v3710_v5, %v3709_v28 }
0x1caf   : > { %4862 = vmatmul.mubr.msk.bf16.vlgmr.msra.gmra.mrb[80].mxu1 %vm1453_vm2, %v3711_v6 }
0x1d82   : > { %v3772_v9 = vpop.f32.mrb[80].mxu1 }
0x1d83   : > { %v3773_v11 = vadd.f32 %v4508_v58, %v3772_v9  ;;  %v4863_v62 = vpop.f32.mrb[81].mxu1 }
0x1d84   : > { %v3775_v0 = vpop.f32.mrb[82].mxu1 }
0x1d85   : > { %v3776_v31 = vadd.f32 %v4508_v58, %v3775_v0  ;;  %v4864_v32 = vpop.f32.mrb[83].mxu1  ;;  %v3779_v33 = vmax.f32 %v3773_v11, 0.0 }
0x1d87   : > { %v3780_v34 = vmax.f32 %v3776_v31, 0.0 }
0x1d89   : > { %v3781_v35 = vpack.c.bf16 %v3780_v34, %v3779_v33 }
0x1d8b   : > { %4882 = vmatmul.mubr.bf16.vlgmr.msra.gmra.mrb[68].mxu0 %v3781_v35 }
0x1e5e   : > { %v3887_v37 = vpop.f32.mrb[68].mxu0 }
0x1e5f   : > { %v3888_v38 = vadd.f32 %v4512_v36, %v3887_v37  ;;  %v4883_v39 = vpop.f32.mrb[69].mxu0 }
0x1e60   : > { %v3890_v3 = vpop.f32.mrb[70].mxu0 }
0x1e61   : > { %v3891_v42 = vadd.f32 %v4512_v36, %v3890_v3  ;;  %v4884_v48 = vpop.f32.mrb[71].mxu0  ;;  %v3894_v51 = vadd.f32 %v3888_v38, %v3709_v28 }
0x1e63   : > { %v3898_v43 = vsel %vm1453_vm2, %v3894_v51, 0.0  ;;  %v3895_v44 = vadd.f32 %v3891_v42, %v3710_v5 }
0x1e64   : > { %3899 = vadd.xlane.f32.xlu1 %v3898_v43 }
0x1e65   : > { %v3901_v45 = vsel %vm1453_vm2, %v3895_v44, 0.0 }
0x1e66   : > { %3902 = vadd.xlane.f32.xlu0 %v3901_v45 }
0x1ef1   : > { %v3900_v49 = vpop.xlane.xlu1 %3899 }
0x1ef2   : > { %v3904_v50 = vmul.f32 0.03125, %v3900_v49 }
0x1ef3   : > { %v3903_v52 = vpop.xlane.xlu0 %3902 }
0x1ef4   : > { %v3906_v53 = vsub.f32 %v3894_v51, %v3904_v50  ;;  %v3905_v55 = vmul.f32 0.03125, %v3903_v52 }
0x1ef6   : > { %v3907_v56 = vsub.f32 %v3895_v44, %v3905_v55  ;;  %v3908_v59 = vmul.f32 %v3906_v53, %v3906_v53 }
0x1ef8   : > { %v3910_v60 = vsel %vm1453_vm2, %v3908_v59, 0.0  ;;  %v3909_v61 = vmul.f32 %v3907_v56, %v3907_v56 }
0x1ef9   : > { %3911 = vadd.xlane.f32.xlu1 %v3910_v60 }
0x1efa   : > { %v3913_v63 = vsel %vm1453_vm2, %v3909_v61, 0.0 }
0x1efb   : > { %3914 = vadd.xlane.f32.xlu0 %v3913_v63 }
0x1f86   : > { %v3912_v2 = vpop.xlane.xlu1 %3911 }
0x1f87   : > { %v3916_v4 = vmul.f32 0.03125, %v3912_v2 }
0x1f88   : > { %v3915_v7 = vpop.xlane.xlu0 %3914 }
0x1f89   : > { %v3918_v46 = vadd.f32 1e-05, %v3916_v4  ;;  %v3917_v10 = vmul.f32 0.03125, %v3915_v7 }
0x1f8b   : > { %5138 = vrsqrt.f32 %v3918_v46  ;;  %v3919_v47 = vadd.f32 1e-05, %v3917_v10 }
0x1f8d   : > { %5140 = vrsqrt.f32 %v3919_v47 }
0x1f95   : > { %v5139_v8 = vpop.eup %5138 }
0x1f96   : > { %v3922_v12 = vmul.f32 %v5139_v8, %v3906_v53 }
0x1f97   : > { %v5141_v14 = vpop.eup %5140 }
0x1f98   : > { %v3930_v17 = vmul.f32 %v4521_v1, %v3922_v12  ;;  %v3923_v18 = vmul.f32 %v5141_v14, %v3907_v56 }
0x1f9a   : > { %v3931_v19 = vmul.f32 %v4521_v1, %v3923_v18  ;;  %v3938_v57 = vadd.f32 %v4522_v15, %v3930_v17 }
0x1f9c   : > { %v3939_v54 = vadd.f32 %v4522_v15, %v3931_v19  ;;  %3940 = vst.msk [vmem:[#allocation38] sm:$0xff] %vm1453_vm2, %v3938_v57 }
0x1f9e   : > { %3941 = vst.msk [vmem:[#allocation38 + $0x8] sm:$0xff] %vm1453_vm2, %v3939_v54 }
0x1f9f   : > { %5799 = shalt.err (!%p5796_p7)
}
0x1fa0   : > { %s7586_s18 = sld [smem:[#allocation76_spill]] }
0x1fa6   : > { %s5800_s25 = scalar_lea.hbm %s7586_s18, 256 }
0x1fa7   : > { %p5801_p11 = scmp.ne.s32.totalorder %s7586_s18, %s5800_s25  ;;  %p5806_p5 = scmp.lt.u32.totalorder %s5800_s25, %s7586_s18 }
0x1fa9   : > { %p5802_p13 = pnand %p5801_p11, %p4957_p6 }
0x1fab   : > { %p5803_p0 = pneg %p5802_p13 }
0x1fad   : > { %p5808_p10 = pnand %p5806_p5, %p5803_p0 }
0x1faf   : > { %5811 = shalt.err (!%p5808_p10)
}
0x1fb0   : > { %s5940_s16 = smov 128  }
0x1fb1   : > { %4938 = dma.vmem_to_hbm [thread:$0]  (%p4957_p6), %s3949_s7, 256, %s7586_s18, [#allocation4], %s5940_s16, %s5940_s16, %s5936_s1  }
0x1fb2   : > { %5877 = dma.done.wait (%p4957_p6), [#allocation4], 256  }
0x1fb3   : > { %5879 = vsyncadd (%p4957_p6), [#allocation4], 4294967040 }
0x1fb4 PF: > { %s7587_s25 = sld [smem:[#allocation54_spill]]  ;;  %s7588_s4 = sld [smem:[#allocation52_spill]] }
0x1fb5   : > { %s7589_s15 = sld [smem:[#allocation55_spill]]  ;;  %s7590_s30 = smov %s5890_s24 }
0x1fba   : > { %p63_p8 = scmp.ge.s32.totalorder %s7587_s25, 4  }
0x1fbb   : > { %s7591_s24 = smov %s7589_s15 }
0x1fbc   :  { %65 = sbr.rel (!%p63_p8) target bundleno = 44 (0x2c), region = 393 }
0x1fc3   :  { %3964 = vsyncpa [#allocation3], 1 }
0x1fc4   :  { %3966 = vsyncpa [#allocation3 + $0x1], 1 }
0x1fc5   :  { %3967 = vsyncpa [#allocation6], 1 }
0x1fc6   :  { %3968 = vsyncpa [#allocation9], 1 }
0x1fc7   :  { %3970 = vsyncpa [#allocation9 + $0x1], 1 }
0x1fc8   :  { %3971 = vsyncpa [#allocation12], 1 }
0x1fc9   :  { %3973 = vsyncpa [#allocation12 + $0x1], 1 }
0x1fca   :  { %3974 = vsyncpa [#allocation15], 1 }
0x1fcb   :  { %3976 = vsyncpa [#allocation15 + $0x1], 1 }
0x1fcc   :  { %3977 = vsyncpa [#allocation18], 1 }
0x1fcd   :  { %3979 = vsyncpa [#allocation18 + $0x1], 1 }
0x1fce   :  { %3980 = vsyncpa [#allocation21], 1 }
0x1fcf   :  { %3982 = vsyncpa [#allocation21 + $0x1], 1 }
0x1fd0   :  { %3983 = vsyncpa [#allocation24], 1 }
0x1fd1   :  { %3985 = vsyncpa [#allocation24 + $0x1], 1 }
0x1fd2   :  { %3986 = vsyncpa [#allocation27], 1 }
0x1fd3   :  { %3988 = vsyncpa [#allocation27 + $0x1], 1 }
0x1fd4   :  { %3989 = vsyncpa [#allocation30], 1 }
0x1fd5   :  { %3991 = vsyncpa [#allocation30 + $0x1], 1 }
0x1fd6   :  { %3992 = vsyncpa [#allocation33], 1 }
0x1fd7   :  { %3994 = vsyncpa [#allocation33 + $0x1], 1 }
0x1fd8   :  { %3995 = vsyncpa [#allocation36], 1 }
0x1fd9   :  { %3997 = vsyncpa [#allocation36 + $0x1], 1 }
0x1fda   :  { %3998 = vsyncpa [#allocation4], 1 }
0x1fdb   :  { %4000 = vsyncpa [#allocation4 + $0x1], 1 }

</bundles_post_ra>
